<compile_context>
chip_gen: v7x
topology: tpu7x:2x2x1
jax: 0.10.0
libtpu: 0.0.40
codegen_flags: <defaults>
</compile_context>

<pallas_src>
import functools

import jax
import jax.numpy as jnp
from jax.experimental import pallas as pl
from jax.experimental.pallas import tpu as pltpu


def _round_up(x, m):
    return (x + m - 1) // m * m


def _basic_block_kernel(x_ref, w1_ref, t1_ref, w2_ref, t2_ref, out_ref,
                        ypad_ref, *, H, W, Wp8, Cp):
    # x_ref:    (Rp, Cp) f32   zero-padded, row-flattened input image
    # w1/w2:    (3, 3*Cp, Cp) bf16  per-dy weight matrices (BN scale folded in)
    # t1/t2:    (1, Cp)  f32   folded BN bias
    # out_ref:  (Rv, Cp) f32   output rows (also reused as the f32 accumulator)
    # ypad_ref: (Rp, Cp) f32   zero-padded intermediate y = relu(bn1(conv1(x)))
    Rv = H * Wp8

    def conv3x3(src_ref, w_ref):
        # Accumulate the 3x3 conv of src into out_ref (f32), 3 MXU matmuls.
        for dy in range(3):
            taps = [
                src_ref[pl.ds(dy * Wp8 + dx, Rv), :].astype(jnp.bfloat16)
                for dx in range(3)
            ]
            xcat = jnp.concatenate(taps, axis=1)          # (Rv, 3*Cp) bf16
            part = jnp.dot(xcat, w_ref[dy],
                           preferred_element_type=jnp.float32)
            if dy == 0:
                out_ref[...] = part
            else:
                out_ref[...] = out_ref[...] + part

    # Zero only the small top/bottom halo rows of the intermediate scratch;
    # the interior is fully rewritten below (masked), so this is correct every
    # step regardless of how the parallel batch axis is sharded across cores.
    zeros_border = jnp.zeros((Wp8 + 8, Cp), jnp.float32)
    ypad_ref[pl.ds(0, Wp8 + 8), :] = zeros_border
    ypad_ref[pl.ds((H + 1) * Wp8, Wp8 + 8), :] = zeros_border

    # Rows whose column index falls in the alignment / right-pad region.
    col = jax.lax.broadcasted_iota(jnp.int32, (Rv, 1), 0) % Wp8
    valid = col < W

    # ---- conv1 (bn1 scale folded) -> +bias -> relu -> padded intermediate ---
    conv3x3(x_ref, w1_ref)
    y = jnp.maximum(out_ref[...] + t1_ref[...], 0.0)
    y = jnp.where(valid, y, 0.0)           # keep ypad's padding at exact zero
    ypad_ref[pl.ds(Wp8 + 1, Rv), :] = y

    # ---- conv2 (bn2 scale folded) -> +bias -> residual add -> relu ----------
    conv3x3(ypad_ref, w2_ref)
    residual = x_ref[pl.ds(Wp8 + 1, Rv), :]
    out_ref[...] = jnp.maximum(out_ref[...] + t2_ref[...] + residual, 0.0)


def basic_block_pallas(x_nchw, w1, g1, b1, m1, v1, w2, g2, b2, m2, v2,
                       eps=1e-5):
    """x_nchw: (N, C, H, W); w1/w2: (C, C, 3, 3) OIHW.  stride=1, no downsample."""
    # TODO(synk): stride != 1 / downsample branch of BasicBlock not implemented
    # (the module as instantiated here uses neither).
    N, C, H, W = x_nchw.shape
    Cp = _round_up(C, 128)            # lane-dense channel padding
    Wp8 = _round_up(W + 2, 8)         # sublane-aligned padded row length
    Rv = H * Wp8                      # rows holding the H*W outputs
    Rp = (H + 2) * Wp8 + 8            # padded-image rows (+ tap slack)

    # NCHW -> NHWC, 1-px halo + alignment + channel padding, flatten rows.
    x_nhwc = jnp.transpose(x_nchw, (0, 2, 3, 1)).astype(jnp.float32)
    x_pad = jnp.pad(x_nhwc, ((0, 0), (1, 1), (1, Wp8 - W - 1), (0, Cp - C)))
    x_flat = x_pad.reshape(N, (H + 2) * Wp8, Cp)
    x_flat = jnp.pad(x_flat, ((0, 0), (0, Rp - (H + 2) * Wp8), (0, 0)))

    def fold_bn_into_conv(w, g, b, m, v):
        s = (g / jnp.sqrt(v + eps)).astype(jnp.float32)               # (C,)
        t = (b - m * s).astype(jnp.float32)                           # (C,)
        w_hwio = jnp.transpose(w, (2, 3, 1, 0)).astype(jnp.float32)   # (3,3,Ci,Co)
        w_hwio = w_hwio * s[None, None, None, :]
        w_hwio = jnp.pad(w_hwio, ((0, 0), (0, 0), (0, Cp - C), (0, Cp - C)))
        w_mat = w_hwio.reshape(3, 3 * Cp, Cp).astype(jnp.bfloat16)
        t_pad = jnp.pad(t, (0, Cp - C)).reshape(1, Cp)
        return w_mat, t_pad

    w1_mat, t1 = fold_bn_into_conv(w1, g1, b1, m1, v1)
    w2_mat, t2 = fold_bn_into_conv(w2, g2, b2, m2, v2)

    kernel = functools.partial(_basic_block_kernel, H=H, W=W, Wp8=Wp8, Cp=Cp)

    out_flat = pl.pallas_call(
        kernel,
        out_shape=jax.ShapeDtypeStruct((N, Rv, Cp), jnp.float32),
        grid_spec=pltpu.PrefetchScalarGridSpec(
            num_scalar_prefetch=0,
            grid=(N,),
            in_specs=[
                pl.BlockSpec((None, Rp, Cp), lambda b: (b, 0, 0)),
                pl.BlockSpec((3, 3 * Cp, Cp), lambda b: (0, 0, 0)),
                pl.BlockSpec((1, Cp), lambda b: (0, 0)),
                pl.BlockSpec((3, 3 * Cp, Cp), lambda b: (0, 0, 0)),
                pl.BlockSpec((1, Cp), lambda b: (0, 0)),
            ],
            out_specs=pl.BlockSpec((None, Rv, Cp), lambda b: (b, 0, 0)),
            scratch_shapes=[pltpu.VMEM((Rp, Cp), jnp.float32)],
        ),
        compiler_params=pltpu.CompilerParams(
            dimension_semantics=("parallel",)),
    )(x_flat, w1_mat, t1, w2_mat, t2)

    # Drop alignment/pad columns and channels, back to NCHW.
    out = out_flat.reshape(N, H, Wp8, Cp)[:, :, :W, :C]
    return jnp.transpose(out, (0, 3, 1, 2))


def basic_block_reference(x, w1, g1, b1, m1, v1, w2, g2, b2, m2, v2, eps=1e-5):
    """Faithful f32 NCHW reference of the PyTorch module (inference-mode BN)."""
    def conv(a, w):
        return jax.lax.conv_general_dilated(
            a, w, window_strides=(1, 1), padding=((1, 1), (1, 1)),
            dimension_numbers=("NCHW", "OIHW", "NCHW"),
            precision=jax.lax.Precision.HIGHEST)

    def bn(a, g, b, m, v):
        inv = g / jnp.sqrt(v + eps)
        return a * inv[None, :, None, None] + (b - m * inv)[None, :, None, None]

    out = jax.nn.relu(bn(conv(x, w1), g1, b1, m1, v1))
    out = bn(conv(out, w2), g2, b2, m2, v2)
    return jax.nn.relu(out + x)


def _matched_precision_reference(x, w1, g1, b1, m1, v1, w2, g2, b2, m2, v2,
                                 eps=1e-5):
    """Same math as the kernel: bf16-rounded conv operands, f32 everywhere else."""
    def conv(a, w):
        return jax.lax.conv_general_dilated(
            a, w, window_strides=(1, 1), padding=((1, 1), (1, 1)),
            dimension_numbers=("NCHW", "OIHW", "NCHW"),
            precision=jax.lax.Precision.HIGHEST)

    def fold(w, g, b, m, v):
        s = g / jnp.sqrt(v + eps)
        t = b - m * s
        wf = (w * s[:, None, None, None]).astype(jnp.bfloat16).astype(jnp.float32)
        return wf, t

    xr = x.astype(jnp.bfloat16).astype(jnp.float32)
    w1f, t1 = fold(w1, g1, b1, m1, v1)
    w2f, t2 = fold(w2, g2, b2, m2, v2)
    y = jax.nn.relu(conv(xr, w1f) + t1[None, :, None, None])
    yr = y.astype(jnp.bfloat16).astype(jnp.float32)
    z = conv(yr, w2f) + t2[None, :, None, None]
    return jax.nn.relu(z + x)


if __name__ == "__main__":
    N, C, H, W = 2, 8, 16, 16   # inplanes == planes, stride == 1, no downsample

    key = jax.random.PRNGKey(0)
    ks = jax.random.split(key, 11)

    x = jax.random.normal(ks[0], (N, C, H, W), jnp.float32)

    w1 = jax.random.normal(ks[1], (C, C, 3, 3), jnp.float32) * 0.1
    w2 = jax.random.normal(ks[2], (C, C, 3, 3), jnp.float32) * 0.1

    g1 = 1.0 + 0.1 * jax.random.normal(ks[3], (C,), jnp.float32)
    b1 = 0.1 * jax.random.normal(ks[4], (C,), jnp.float32)
    m1 = 0.1 * jax.random.normal(ks[5], (C,), jnp.float32)
    v1 = jnp.abs(jax.random.normal(ks[6], (C,), jnp.float32)) + 0.5

    g2 = 1.0 + 0.1 * jax.random.normal(ks[7], (C,), jnp.float32)
    b2 = 0.1 * jax.random.normal(ks[8], (C,), jnp.float32)
    m2 = 0.1 * jax.random.normal(ks[9], (C,), jnp.float32)
    v2 = jnp.abs(jax.random.normal(ks[10], (C,), jnp.float32)) + 0.5

    out = basic_block_pallas(x, w1, g1, b1, m1, v1, w2, g2, b2, m2, v2)
    out = jax.block_until_ready(out)
    assert out.shape == (N, C, H, W)

    # Tight check vs. a reference using the exact same operand precision
    # (bf16-rounded x / folded weights / intermediate, f32 accumulation).
    ref_matched = _matched_precision_reference(
        x, w1, g1, b1, m1, v1, w2, g2, b2, m2, v2)
    assert jnp.allclose(out, ref_matched, atol=2e-3, rtol=2e-3), (
        float(jnp.max(jnp.abs(out - ref_matched))))

    # Loose end-to-end check vs. the full-f32 module semantics (slack covers
    # the bf16 rounding of the MXU operands).
    ref_full = basic_block_reference(
        x, w1, g1, b1, m1, v1, w2, g2, b2, m2, v2)
    assert jnp.allclose(out, ref_full, atol=0.15, rtol=0.1), (
        float(jnp.max(jnp.abs(out - ref_full))))

    print("KERNEL_OK")
</pallas_src>

<mosaic_0001>
module attributes {stable_mosaic.version = 11 : i64} {
  func.func @_basic_block_kernel(%arg0: i32, %arg1: memref<1x440x128xf32, #tpu.memory_space<vmem>>, %arg2: memref<3x384x128xbf16, #tpu.memory_space<vmem>>, %arg3: memref<1x128xf32, #tpu.memory_space<vmem>>, %arg4: memref<3x384x128xbf16, #tpu.memory_space<vmem>>, %arg5: memref<1x128xf32, #tpu.memory_space<vmem>>, %arg6: memref<1x384x128xf32, #tpu.memory_space<vmem>>, %arg7: memref<440x128xf32, #tpu.memory_space<vmem>>) attributes {dimension_semantics = [#tpu.dimension_semantics<parallel>], iteration_bounds = array<i64: 2>, scalar_prefetch = 0 : i64, scratch_operands = 1 : i64, tpu.core_type = #tpu.core_type<tc>, window_params = [{transform_indices = @transform_0, window_bounds = array<i64: 1, 440, 128>}, {pipeline_mode = #tpu.pipeline_mode<synchronous>, transform_indices = @transform_1, window_bounds = array<i64: 3, 384, 128>}, {pipeline_mode = #tpu.pipeline_mode<synchronous>, transform_indices = @transform_2, window_bounds = array<i64: 1, 128>}, {pipeline_mode = #tpu.pipeline_mode<synchronous>, transform_indices = @transform_3, window_bounds = array<i64: 3, 384, 128>}, {pipeline_mode = #tpu.pipeline_mode<synchronous>, transform_indices = @transform_4, window_bounds = array<i64: 1, 128>}, {transform_indices = @transform_5, window_bounds = array<i64: 1, 384, 128>}]} {
    %cst = arith.constant 0.000000e+00 : f32
    %0 = vector.broadcast %cst : f32 to vector<32x128xf32>
    %c0 = arith.constant 0 : index
    %c0_0 = arith.constant 0 : index
    %1 = vector.load %arg7[%c0, %c0_0] : memref<440x128xf32, #tpu.memory_space<vmem>>, vector<32x128xf32>
    tpu.vector_store %arg7[%c0, %c0_0], %0 {strides = array<i32>} : memref<440x128xf32, #tpu.memory_space<vmem>>, vector<32x128xf32>,
    %c408 = arith.constant 408 : index
    %c0_1 = arith.constant 0 : index
    %2 = vector.load %arg7[%c408, %c0_1] : memref<440x128xf32, #tpu.memory_space<vmem>>, vector<32x128xf32>
    tpu.vector_store %arg7[%c408, %c0_1], %0 {strides = array<i32>} : memref<440x128xf32, #tpu.memory_space<vmem>>, vector<32x128xf32>,
    %3 = tpu.iota {dimensions = array<i32: 0>} : vector<384x1xi32>
    %c24_i32 = arith.constant 24 : i32
    %c0_i32 = arith.constant 0 : i32
    %4 = arith.cmpi eq, %c24_i32, %c0_i32 : i32
    %c1_i32 = arith.constant 1 : i32
    %5 = arith.select %4, %c1_i32, %c24_i32 : i32
    %6 = vector.broadcast %5 : i32 to vector<384x1xi32>
    %7 = arith.remsi %3, %6 : vector<384x1xi32>
    %c0_i32_2 = arith.constant 0 : i32
    %8 = vector.broadcast %c0_i32_2 : i32 to vector<384x1xi32>
    %9 = arith.cmpi ne, %7, %8 : vector<384x1xi32>
    %c0_i32_3 = arith.constant 0 : i32
    %10 = vector.broadcast %c0_i32_3 : i32 to vector<384x1xi32>
    %11 = arith.cmpi slt, %7, %10 : vector<384x1xi32>
    %c0_i32_4 = arith.constant 0 : i32
    %12 = arith.cmpi slt, %5, %c0_i32_4 : i32
    %13 = vector.broadcast %12 : i1 to vector<384x1xi1>
    %14 = vector.broadcast %13 : vector<384x1xi1> to vector<384x1xi1>
    %15 = arith.xori %11, %14 : vector<384x1xi1>
    %16 = arith.andi %15, %9 : vector<384x1xi1>
    %17 = vector.broadcast %5 : i32 to vector<384x1xi32>
    %18 = arith.addi %7, %17 : vector<384x1xi32>
    %19 = arith.select %16, %18, %7 : vector<384x1xi1>, vector<384x1xi32>
    %c16_i32 = arith.constant 16 : i32
    %20 = vector.broadcast %c16_i32 : i32 to vector<384x1xi32>
    %21 = arith.cmpi slt, %19, %20 : vector<384x1xi32>
    %c0_5 = arith.constant 0 : index
    %c0_6 = arith.constant 0 : index
    %c0_7 = arith.constant 0 : index
    %22 = vector.load %arg1[%c0_5, %c0_6, %c0_7] : memref<1x440x128xf32, #tpu.memory_space<vmem>>, vector<1x384x128xf32>
    %23 = vector.shape_cast %22 : vector<1x384x128xf32> to vector<384x128xf32>
    %24 = arith.truncf %23 : vector<384x128xf32> to vector<384x128xbf16>
    %c0_8 = arith.constant 0 : index
    %c1 = arith.constant 1 : index
    %c0_9 = arith.constant 0 : index
    %25 = vector.load %arg1[%c0_8, %c1, %c0_9] : memref<1x440x128xf32, #tpu.memory_space<vmem>>, vector<1x384x128xf32>
    %26 = vector.shape_cast %25 : vector<1x384x128xf32> to vector<384x128xf32>
    %27 = arith.truncf %26 : vector<384x128xf32> to vector<384x128xbf16>
    %c0_10 = arith.constant 0 : index
    %c2 = arith.constant 2 : index
    %c0_11 = arith.constant 0 : index
    %28 = vector.load %arg1[%c0_10, %c2, %c0_11] : memref<1x440x128xf32, #tpu.memory_space<vmem>>, vector<1x384x128xf32>
    %29 = vector.shape_cast %28 : vector<1x384x128xf32> to vector<384x128xf32>
    %30 = arith.truncf %29 : vector<384x128xf32> to vector<384x128xbf16>
    %31 = tpu.concatenate %24, %27, %30 in 1 : vector<384x128xbf16>, vector<384x128xbf16>, vector<384x128xbf16> -> vector<384x384xbf16>
    %c0_12 = arith.constant 0 : index
    %c0_13 = arith.constant 0 : index
    %c0_14 = arith.constant 0 : index
    %32 = vector.load %arg2[%c0_12, %c0_13, %c0_14] : memref<3x384x128xbf16, #tpu.memory_space<vmem>>, vector<1x384x128xbf16>
    %33 = vector.shape_cast %32 : vector<1x384x128xbf16> to vector<384x128xbf16>
    %cst_15 = arith.constant dense<0.000000e+00> : vector<384x128xf32>
    %34 = tpu.matmul %31, %33, %cst_15 {dimension_numbers = #tpu.dot_dimension_numbers<[1], [0], [0], [1], [0, 0, 1, 1], [], []>} : vector<384x384xbf16>, vector<384x128xbf16>, vector<384x128xf32> -> vector<384x128xf32>
    %c0_16 = arith.constant 0 : index
    %c0_17 = arith.constant 0 : index
    %c0_18 = arith.constant 0 : index
    %35 = vector.load %arg6[%c0_16, %c0_17, %c0_18] : memref<1x384x128xf32, #tpu.memory_space<vmem>>, vector<1x384x128xf32>
    %36 = vector.shape_cast %35 : vector<1x384x128xf32> to vector<384x128xf32>
    %37 = vector.shape_cast %34 : vector<384x128xf32> to vector<1x384x128xf32>
    tpu.vector_store %arg6[%c0_16, %c0_17, %c0_18], %37 {strides = array<i32>} : memref<1x384x128xf32, #tpu.memory_space<vmem>>, vector<1x384x128xf32>,
    %c0_19 = arith.constant 0 : index
    %c24 = arith.constant 24 : index
    %c0_20 = arith.constant 0 : index
    %38 = vector.load %arg1[%c0_19, %c24, %c0_20] : memref<1x440x128xf32, #tpu.memory_space<vmem>>, vector<1x384x128xf32>
    %39 = vector.shape_cast %38 : vector<1x384x128xf32> to vector<384x128xf32>
    %40 = arith.truncf %39 : vector<384x128xf32> to vector<384x128xbf16>
    %c0_21 = arith.constant 0 : index
    %c25 = arith.constant 25 : index
    %c0_22 = arith.constant 0 : index
    %41 = vector.load %arg1[%c0_21, %c25, %c0_22] : memref<1x440x128xf32, #tpu.memory_space<vmem>>, vector<1x384x128xf32>
    %42 = vector.shape_cast %41 : vector<1x384x128xf32> to vector<384x128xf32>
    %43 = arith.truncf %42 : vector<384x128xf32> to vector<384x128xbf16>
    %c0_23 = arith.constant 0 : index
    %c26 = arith.constant 26 : index
    %c0_24 = arith.constant 0 : index
    %44 = vector.load %arg1[%c0_23, %c26, %c0_24] : memref<1x440x128xf32, #tpu.memory_space<vmem>>, vector<1x384x128xf32>
    %45 = vector.shape_cast %44 : vector<1x384x128xf32> to vector<384x128xf32>
    %46 = arith.truncf %45 : vector<384x128xf32> to vector<384x128xbf16>
    %47 = tpu.concatenate %40, %43, %46 in 1 : vector<384x128xbf16>, vector<384x128xbf16>, vector<384x128xbf16> -> vector<384x384xbf16>
    %c1_25 = arith.constant 1 : index
    %c0_26 = arith.constant 0 : index
    %c0_27 = arith.constant 0 : index
    %48 = vector.load %arg2[%c1_25, %c0_26, %c0_27] : memref<3x384x128xbf16, #tpu.memory_space<vmem>>, vector<1x384x128xbf16>
    %49 = vector.shape_cast %48 : vector<1x384x128xbf16> to vector<384x128xbf16>
    %cst_28 = arith.constant dense<0.000000e+00> : vector<384x128xf32>
    %50 = tpu.matmul %47, %49, %cst_28 {dimension_numbers = #tpu.dot_dimension_numbers<[1], [0], [0], [1], [0, 0, 1, 1], [], []>} : vector<384x384xbf16>, vector<384x128xbf16>, vector<384x128xf32> -> vector<384x128xf32>
    %c0_29 = arith.constant 0 : index
    %c0_30 = arith.constant 0 : index
    %c0_31 = arith.constant 0 : index
    %51 = vector.load %arg6[%c0_29, %c0_30, %c0_31] : memref<1x384x128xf32, #tpu.memory_space<vmem>>, vector<1x384x128xf32>
    %52 = vector.shape_cast %51 : vector<1x384x128xf32> to vector<384x128xf32>
    %53 = arith.addf %52, %50 : vector<384x128xf32>
    %c0_32 = arith.constant 0 : index
    %c0_33 = arith.constant 0 : index
    %c0_34 = arith.constant 0 : index
    %54 = vector.load %arg6[%c0_32, %c0_33, %c0_34] : memref<1x384x128xf32, #tpu.memory_space<vmem>>, vector<1x384x128xf32>
    %55 = vector.shape_cast %54 : vector<1x384x128xf32> to vector<384x128xf32>
    %56 = vector.shape_cast %53 : vector<384x128xf32> to vector<1x384x128xf32>
    tpu.vector_store %arg6[%c0_32, %c0_33, %c0_34], %56 {strides = array<i32>} : memref<1x384x128xf32, #tpu.memory_space<vmem>>, vector<1x384x128xf32>,
    %c0_35 = arith.constant 0 : index
    %c48 = arith.constant 48 : index
    %c0_36 = arith.constant 0 : index
    %57 = vector.load %arg1[%c0_35, %c48, %c0_36] : memref<1x440x128xf32, #tpu.memory_space<vmem>>, vector<1x384x128xf32>
    %58 = vector.shape_cast %57 : vector<1x384x128xf32> to vector<384x128xf32>
    %59 = arith.truncf %58 : vector<384x128xf32> to vector<384x128xbf16>
    %c0_37 = arith.constant 0 : index
    %c49 = arith.constant 49 : index
    %c0_38 = arith.constant 0 : index
    %60 = vector.load %arg1[%c0_37, %c49, %c0_38] : memref<1x440x128xf32, #tpu.memory_space<vmem>>, vector<1x384x128xf32>
    %61 = vector.shape_cast %60 : vector<1x384x128xf32> to vector<384x128xf32>
    %62 = arith.truncf %61 : vector<384x128xf32> to vector<384x128xbf16>
    %c0_39 = arith.constant 0 : index
    %c50 = arith.constant 50 : index
    %c0_40 = arith.constant 0 : index
    %63 = vector.load %arg1[%c0_39, %c50, %c0_40] : memref<1x440x128xf32, #tpu.memory_space<vmem>>, vector<1x384x128xf32>
    %64 = vector.shape_cast %63 : vector<1x384x128xf32> to vector<384x128xf32>
    %65 = arith.truncf %64 : vector<384x128xf32> to vector<384x128xbf16>
    %66 = tpu.concatenate %59, %62, %65 in 1 : vector<384x128xbf16>, vector<384x128xbf16>, vector<384x128xbf16> -> vector<384x384xbf16>
    %c2_41 = arith.constant 2 : index
    %c0_42 = arith.constant 0 : index
    %c0_43 = arith.constant 0 : index
    %67 = vector.load %arg2[%c2_41, %c0_42, %c0_43] : memref<3x384x128xbf16, #tpu.memory_space<vmem>>, vector<1x384x128xbf16>
    %68 = vector.shape_cast %67 : vector<1x384x128xbf16> to vector<384x128xbf16>
    %cst_44 = arith.constant dense<0.000000e+00> : vector<384x128xf32>
    %69 = tpu.matmul %66, %68, %cst_44 {dimension_numbers = #tpu.dot_dimension_numbers<[1], [0], [0], [1], [0, 0, 1, 1], [], []>} : vector<384x384xbf16>, vector<384x128xbf16>, vector<384x128xf32> -> vector<384x128xf32>
    %c0_45 = arith.constant 0 : index
    %c0_46 = arith.constant 0 : index
    %c0_47 = arith.constant 0 : index
    %70 = vector.load %arg6[%c0_45, %c0_46, %c0_47] : memref<1x384x128xf32, #tpu.memory_space<vmem>>, vector<1x384x128xf32>
    %71 = vector.shape_cast %70 : vector<1x384x128xf32> to vector<384x128xf32>
    %72 = arith.addf %71, %69 : vector<384x128xf32>
    %c0_48 = arith.constant 0 : index
    %c0_49 = arith.constant 0 : index
    %c0_50 = arith.constant 0 : index
    %73 = vector.load %arg6[%c0_48, %c0_49, %c0_50] : memref<1x384x128xf32, #tpu.memory_space<vmem>>, vector<1x384x128xf32>
    %74 = vector.shape_cast %73 : vector<1x384x128xf32> to vector<384x128xf32>
    %75 = vector.shape_cast %72 : vector<384x128xf32> to vector<1x384x128xf32>
    tpu.vector_store %arg6[%c0_48, %c0_49, %c0_50], %75 {strides = array<i32>} : memref<1x384x128xf32, #tpu.memory_space<vmem>>, vector<1x384x128xf32>,
    %c0_51 = arith.constant 0 : index
    %c0_52 = arith.constant 0 : index
    %c0_53 = arith.constant 0 : index
    %76 = vector.load %arg6[%c0_51, %c0_52, %c0_53] : memref<1x384x128xf32, #tpu.memory_space<vmem>>, vector<1x384x128xf32>
    %77 = vector.shape_cast %76 : vector<1x384x128xf32> to vector<384x128xf32>
    %c0_54 = arith.constant 0 : index
    %c0_55 = arith.constant 0 : index
    %78 = vector.load %arg3[%c0_54, %c0_55] : memref<1x128xf32, #tpu.memory_space<vmem>>, vector<1x128xf32>
    %79 = vector.broadcast %78 : vector<1x128xf32> to vector<384x128xf32>
    %80 = arith.addf %77, %79 : vector<384x128xf32>
    %cst_56 = arith.constant 0.000000e+00 : f32
    %81 = vector.broadcast %cst_56 : f32 to vector<384x128xf32>
    %82 = arith.maximumf %80, %81 : vector<384x128xf32>
    %cst_57 = arith.constant 0.000000e+00 : f32
    %83 = vector.shape_cast %21 : vector<384x1xi1> to vector<384x1xi1>
    %84 = vector.broadcast %83 : vector<384x1xi1> to vector<384x128xi1>
    %85 = vector.broadcast %cst_57 : f32 to vector<384x128xf32>
    %86 = arith.select %84, %82, %85 : vector<384x128xi1>, vector<384x128xf32>
    %c25_58 = arith.constant 25 : index
    %c0_59 = arith.constant 0 : index
    %87 = vector.load %arg7[%c25_58, %c0_59] : memref<440x128xf32, #tpu.memory_space<vmem>>, vector<384x128xf32>
    tpu.vector_store %arg7[%c25_58, %c0_59], %86 {strides = array<i32>} : memref<440x128xf32, #tpu.memory_space<vmem>>, vector<384x128xf32>,
    %c0_60 = arith.constant 0 : index
    %c0_61 = arith.constant 0 : index
    %88 = vector.load %arg7[%c0_60, %c0_61] : memref<440x128xf32, #tpu.memory_space<vmem>>, vector<384x128xf32>
    %89 = arith.truncf %88 : vector<384x128xf32> to vector<384x128xbf16>
    %c1_62 = arith.constant 1 : index
    %c0_63 = arith.constant 0 : index
    %90 = vector.load %arg7[%c1_62, %c0_63] : memref<440x128xf32, #tpu.memory_space<vmem>>, vector<384x128xf32>
    %91 = arith.truncf %90 : vector<384x128xf32> to vector<384x128xbf16>
    %c2_64 = arith.constant 2 : index
    %c0_65 = arith.constant 0 : index
    %92 = vector.load %arg7[%c2_64, %c0_65] : memref<440x128xf32, #tpu.memory_space<vmem>>, vector<384x128xf32>
    %93 = arith.truncf %92 : vector<384x128xf32> to vector<384x128xbf16>
    %94 = tpu.concatenate %89, %91, %93 in 1 : vector<384x128xbf16>, vector<384x128xbf16>, vector<384x128xbf16> -> vector<384x384xbf16>
    %c0_66 = arith.constant 0 : index
    %c0_67 = arith.constant 0 : index
    %c0_68 = arith.constant 0 : index
    %95 = vector.load %arg4[%c0_66, %c0_67, %c0_68] : memref<3x384x128xbf16, #tpu.memory_space<vmem>>, vector<1x384x128xbf16>
    %96 = vector.shape_cast %95 : vector<1x384x128xbf16> to vector<384x128xbf16>
    %cst_69 = arith.constant dense<0.000000e+00> : vector<384x128xf32>
    %97 = tpu.matmul %94, %96, %cst_69 {dimension_numbers = #tpu.dot_dimension_numbers<[1], [0], [0], [1], [0, 0, 1, 1], [], []>} : vector<384x384xbf16>, vector<384x128xbf16>, vector<384x128xf32> -> vector<384x128xf32>
    %c0_70 = arith.constant 0 : index
    %c0_71 = arith.constant 0 : index
    %c0_72 = arith.constant 0 : index
    %98 = vector.load %arg6[%c0_70, %c0_71, %c0_72] : memref<1x384x128xf32, #tpu.memory_space<vmem>>, vector<1x384x128xf32>
    %99 = vector.shape_cast %98 : vector<1x384x128xf32> to vector<384x128xf32>
    %100 = vector.shape_cast %97 : vector<384x128xf32> to vector<1x384x128xf32>
    tpu.vector_store %arg6[%c0_70, %c0_71, %c0_72], %100 {strides = array<i32>} : memref<1x384x128xf32, #tpu.memory_space<vmem>>, vector<1x384x128xf32>,
    %c24_73 = arith.constant 24 : index
    %c0_74 = arith.constant 0 : index
    %101 = vector.load %arg7[%c24_73, %c0_74] : memref<440x128xf32, #tpu.memory_space<vmem>>, vector<384x128xf32>
    %102 = arith.truncf %101 : vector<384x128xf32> to vector<384x128xbf16>
    %c25_75 = arith.constant 25 : index
    %c0_76 = arith.constant 0 : index
    %103 = vector.load %arg7[%c25_75, %c0_76] : memref<440x128xf32, #tpu.memory_space<vmem>>, vector<384x128xf32>
    %104 = arith.truncf %103 : vector<384x128xf32> to vector<384x128xbf16>
    %c26_77 = arith.constant 26 : index
    %c0_78 = arith.constant 0 : index
    %105 = vector.load %arg7[%c26_77, %c0_78] : memref<440x128xf32, #tpu.memory_space<vmem>>, vector<384x128xf32>
    %106 = arith.truncf %105 : vector<384x128xf32> to vector<384x128xbf16>
    %107 = tpu.concatenate %102, %104, %106 in 1 : vector<384x128xbf16>, vector<384x128xbf16>, vector<384x128xbf16> -> vector<384x384xbf16>
    %c1_79 = arith.constant 1 : index
    %c0_80 = arith.constant 0 : index
    %c0_81 = arith.constant 0 : index
    %108 = vector.load %arg4[%c1_79, %c0_80, %c0_81] : memref<3x384x128xbf16, #tpu.memory_space<vmem>>, vector<1x384x128xbf16>
    %109 = vector.shape_cast %108 : vector<1x384x128xbf16> to vector<384x128xbf16>
    %cst_82 = arith.constant dense<0.000000e+00> : vector<384x128xf32>
    %110 = tpu.matmul %107, %109, %cst_82 {dimension_numbers = #tpu.dot_dimension_numbers<[1], [0], [0], [1], [0, 0, 1, 1], [], []>} : vector<384x384xbf16>, vector<384x128xbf16>, vector<384x128xf32> -> vector<384x128xf32>
    %c0_83 = arith.constant 0 : index
    %c0_84 = arith.constant 0 : index
    %c0_85 = arith.constant 0 : index
    %111 = vector.load %arg6[%c0_83, %c0_84, %c0_85] : memref<1x384x128xf32, #tpu.memory_space<vmem>>, vector<1x384x128xf32>
    %112 = vector.shape_cast %111 : vector<1x384x128xf32> to vector<384x128xf32>
    %113 = arith.addf %112, %110 : vector<384x128xf32>
    %c0_86 = arith.constant 0 : index
    %c0_87 = arith.constant 0 : index
    %c0_88 = arith.constant 0 : index
    %114 = vector.load %arg6[%c0_86, %c0_87, %c0_88] : memref<1x384x128xf32, #tpu.memory_space<vmem>>, vector<1x384x128xf32>
    %115 = vector.shape_cast %114 : vector<1x384x128xf32> to vector<384x128xf32>
    %116 = vector.shape_cast %113 : vector<384x128xf32> to vector<1x384x128xf32>
    tpu.vector_store %arg6[%c0_86, %c0_87, %c0_88], %116 {strides = array<i32>} : memref<1x384x128xf32, #tpu.memory_space<vmem>>, vector<1x384x128xf32>,
    %c48_89 = arith.constant 48 : index
    %c0_90 = arith.constant 0 : index
    %117 = vector.load %arg7[%c48_89, %c0_90] : memref<440x128xf32, #tpu.memory_space<vmem>>, vector<384x128xf32>
    %118 = arith.truncf %117 : vector<384x128xf32> to vector<384x128xbf16>
    %c49_91 = arith.constant 49 : index
    %c0_92 = arith.constant 0 : index
    %119 = vector.load %arg7[%c49_91, %c0_92] : memref<440x128xf32, #tpu.memory_space<vmem>>, vector<384x128xf32>
    %120 = arith.truncf %119 : vector<384x128xf32> to vector<384x128xbf16>
    %c50_93 = arith.constant 50 : index
    %c0_94 = arith.constant 0 : index
    %121 = vector.load %arg7[%c50_93, %c0_94] : memref<440x128xf32, #tpu.memory_space<vmem>>, vector<384x128xf32>
    %122 = arith.truncf %121 : vector<384x128xf32> to vector<384x128xbf16>
    %123 = tpu.concatenate %118, %120, %122 in 1 : vector<384x128xbf16>, vector<384x128xbf16>, vector<384x128xbf16> -> vector<384x384xbf16>
    %c2_95 = arith.constant 2 : index
    %c0_96 = arith.constant 0 : index
    %c0_97 = arith.constant 0 : index
    %124 = vector.load %arg4[%c2_95, %c0_96, %c0_97] : memref<3x384x128xbf16, #tpu.memory_space<vmem>>, vector<1x384x128xbf16>
    %125 = vector.shape_cast %124 : vector<1x384x128xbf16> to vector<384x128xbf16>
    %cst_98 = arith.constant dense<0.000000e+00> : vector<384x128xf32>
    %126 = tpu.matmul %123, %125, %cst_98 {dimension_numbers = #tpu.dot_dimension_numbers<[1], [0], [0], [1], [0, 0, 1, 1], [], []>} : vector<384x384xbf16>, vector<384x128xbf16>, vector<384x128xf32> -> vector<384x128xf32>
    %c0_99 = arith.constant 0 : index
    %c0_100 = arith.constant 0 : index
    %c0_101 = arith.constant 0 : index
    %127 = vector.load %arg6[%c0_99, %c0_100, %c0_101] : memref<1x384x128xf32, #tpu.memory_space<vmem>>, vector<1x384x128xf32>
    %128 = vector.shape_cast %127 : vector<1x384x128xf32> to vector<384x128xf32>
    %129 = arith.addf %128, %126 : vector<384x128xf32>
    %c0_102 = arith.constant 0 : index
    %c0_103 = arith.constant 0 : index
    %c0_104 = arith.constant 0 : index
    %130 = vector.load %arg6[%c0_102, %c0_103, %c0_104] : memref<1x384x128xf32, #tpu.memory_space<vmem>>, vector<1x384x128xf32>
    %131 = vector.shape_cast %130 : vector<1x384x128xf32> to vector<384x128xf32>
    %132 = vector.shape_cast %129 : vector<384x128xf32> to vector<1x384x128xf32>
    tpu.vector_store %arg6[%c0_102, %c0_103, %c0_104], %132 {strides = array<i32>} : memref<1x384x128xf32, #tpu.memory_space<vmem>>, vector<1x384x128xf32>,
    %c0_105 = arith.constant 0 : index
    %c25_106 = arith.constant 25 : index
    %c0_107 = arith.constant 0 : index
    %133 = vector.load %arg1[%c0_105, %c25_106, %c0_107] : memref<1x440x128xf32, #tpu.memory_space<vmem>>, vector<1x384x128xf32>
    %134 = vector.shape_cast %133 : vector<1x384x128xf32> to vector<384x128xf32>
    %c0_108 = arith.constant 0 : index
    %c0_109 = arith.constant 0 : index
    %c0_110 = arith.constant 0 : index
    %135 = vector.load %arg6[%c0_108, %c0_109, %c0_110] : memref<1x384x128xf32, #tpu.memory_space<vmem>>, vector<1x384x128xf32>
    %136 = vector.shape_cast %135 : vector<1x384x128xf32> to vector<384x128xf32>
    %c0_111 = arith.constant 0 : index
    %c0_112 = arith.constant 0 : index
    %137 = vector.load %arg5[%c0_111, %c0_112] : memref<1x128xf32, #tpu.memory_space<vmem>>, vector<1x128xf32>
    %138 = vector.broadcast %137 : vector<1x128xf32> to vector<384x128xf32>
    %139 = arith.addf %136, %138 : vector<384x128xf32>
    %140 = arith.addf %139, %134 : vector<384x128xf32>
    %cst_113 = arith.constant 0.000000e+00 : f32
    %141 = vector.broadcast %cst_113 : f32 to vector<384x128xf32>
    %142 = arith.maximumf %140, %141 : vector<384x128xf32>
    %c0_114 = arith.constant 0 : index
    %c0_115 = arith.constant 0 : index
    %c0_116 = arith.constant 0 : index
    %143 = vector.load %arg6[%c0_114, %c0_115, %c0_116] : memref<1x384x128xf32, #tpu.memory_space<vmem>>, vector<1x384x128xf32>
    %144 = vector.shape_cast %143 : vector<1x384x128xf32> to vector<384x128xf32>
    %145 = vector.shape_cast %142 : vector<384x128xf32> to vector<1x384x128xf32>
    tpu.vector_store %arg6[%c0_114, %c0_115, %c0_116], %145 {strides = array<i32>} : memref<1x384x128xf32, #tpu.memory_space<vmem>>, vector<1x384x128xf32>,
    return
  }
  func.func @transform_0(%arg0: i32) -> (i32, i32, i32) {
    %c0_i32 = arith.constant 0 : i32
    %c0_i32_0 = arith.constant 0 : i32
    %c0_i32_1 = arith.constant 0 : i32
    return %arg0, %c0_i32, %c0_i32_0 : i32, i32, i32
  }
  func.func @transform_1(%arg0: i32) -> (i32, i32, i32) {
    %c0_i32 = arith.constant 0 : i32
    %c0_i32_0 = arith.constant 0 : i32
    %c0_i32_1 = arith.constant 0 : i32
    %c0_i32_2 = arith.constant 0 : i32
    return %c0_i32, %c0_i32_0, %c0_i32_1 : i32, i32, i32
  }
  func.func @transform_2(%arg0: i32) -> (i32, i32) {
    %c0_i32 = arith.constant 0 : i32
    %c0_i32_0 = arith.constant 0 : i32
    %c0_i32_1 = arith.constant 0 : i32
    return %c0_i32, %c0_i32_0 : i32, i32
  }
  func.func @transform_3(%arg0: i32) -> (i32, i32, i32) {
    %c0_i32 = arith.constant 0 : i32
    %c0_i32_0 = arith.constant 0 : i32
    %c0_i32_1 = arith.constant 0 : i32
    %c0_i32_2 = arith.constant 0 : i32
    return %c0_i32, %c0_i32_0, %c0_i32_1 : i32, i32, i32
  }
  func.func @transform_4(%arg0: i32) -> (i32, i32) {
    %c0_i32 = arith.constant 0 : i32
    %c0_i32_0 = arith.constant 0 : i32
    %c0_i32_1 = arith.constant 0 : i32
    return %c0_i32, %c0_i32_0 : i32, i32
  }
  func.func @transform_5(%arg0: i32) -> (i32, i32, i32) {
    %c0_i32 = arith.constant 0 : i32
    %c0_i32_0 = arith.constant 0 : i32
    %c0_i32_1 = arith.constant 0 : i32
    return %arg0, %c0_i32, %c0_i32_0 : i32, i32, i32
  }
}

</mosaic_0001>

<bundles_post_ra>
// kernel: tpu_custom_call.1
= control target key start
LH: loop header
LB: loop body
LE: loop exit
PB: predicated region body
PF: predicated region fallthrough
CT: control target
= control target key end

     0   :  { %10 = vsyncpa [#allocation4], 0  ;;  %s14215_s0 = inlined_call_operand.hbm [shape: f32[2,440,128], index: 0, kind: input, shape index: {}]   ;;  %s14216_s1 = inlined_call_operand.hbm [shape: bf16[3,384,128], index: 1, kind: input, shape index: {}]   ;;  %s14217_s2 = inlined_call_operand.vmem [shape: f32[1,128], index: 2, kind: input, shape index: {}]   ;;  %s14218_s3 = inlined_call_operand.hbm [shape: bf16[3,384,128], index: 3, kind: input, shape index: {}]   ;;  %s14219_s4 = inlined_call_operand.vmem [shape: f32[1,128], index: 4, kind: input, shape index: {}]   ;;  %s14220_s5 = inlined_call_operand.hbm [shape: f32[2,384,128], index: 5, kind: output, shape index: {}]  }
   0x1   :  { %12 = vsyncpa [#allocation4 + $0x1], 0 }
   0x2   :  { %13 = vsyncpa [#allocation7], 0 }
   0x3   :  { %14 = vsyncpa [#allocation5], 0 }
   0x4   :  { %16 = vsyncpa [#allocation5 + $0x1], 0  ;;  %s9120_s18 = smov 0   ;;  %s9122_s19 = smov 0  }
   0x5   :  { %s9124_s20 = smov 0   ;;  %s9126_s21 = smov 0  }
   0x6 LB: > { %s9141_s22 = sadd.s32 4294967295, %s9074_s21   ;;  %s7714_s23 = sadd.s32 4294967294, %s9074_s21   ;;  %s9074_s21 = sphi %s9126_s21, %s15188_s21   ;;  %s9070_s20 = sphi %s9124_s20, %s15187_s20   ;;  %s9066_s19 = sphi %s9122_s19, %s15186_s19   ;;  %s9062_s18 = sphi %s9120_s18, %s15185_s18  }
   0x7   : > { %p42_p0 = scmp.ne.s32.totalorder %s9066_s19, %s9062_s18  ;;  %p14221_p1 = scmp.eq.s32.totalorder %s9141_s22, 0 }
   0x8   : > { %p156_p3 = scmp.eq.s32.totalorder %s7714_s23, 1  ;;  %p7715_p5 = scmp.ge.s32.totalorder %s9074_s21, 1 }
   0x9   : > { %p9150_p4 = por %p14221_p1, %p42_p0  ;;  %p163_p7 = scmp.lt.s32.totalorder %s9074_s21, 3 }
   0xa   : > { %p9155_p6 = por %p156_p3, %p42_p0  ;;  %s9076_s27 = smov [#allocation6]  }
   0xb   : > { %s14404_s24 = scalar_select %p9150_p4, 1, 0 }
   0xc   : > { %s14405_s25 = scalar_select %p9155_p6, 1, 0 }
   0xd   : > { %p9160_p8 = pnand %p7715_p5, %p163_p7  ;;  %s175_s28 = sshll.u32 %s9076_s27, 4  ;;  %s9164_s28 = int_to_ptr.vmem [resolvable:$true] %s175_s28 }
   0xe   : > { %s9077_s30 = smov [#allocation8]   ;;  %s8918_s9 = scalar_lea.hbm %s14216_s1, 9216 }
   0xf   : > { %p8561_p9 = pneg %p9160_p8  ;;  %s191_s6 = sshll.u32 %s9077_s30, 4  ;;  %s9175_s6 = int_to_ptr.vmem [resolvable:$true] %s191_s6 }
  0x10   : > { %p8919_p12 = scmp.ne.s32.totalorder %s14216_s1, %s8918_s9  ;;  %p8925_p5 = scmp.lt.u32.totalorder %s8918_s9, %s14216_s1 }
  0x11   : > { %p9171_p11 = pnand %p8561_p9, %p14221_p1 }
  0x13   : > { %p8920_p13 = pneg %p9171_p11 }
  0x15   : > { %p8921_p0 = pnand %p8920_p13, %p8919_p12 }
  0x17   : > { %p8922_p3 = pneg %p8921_p0 }
  0x19   : > { %p8927_p7 = pnand %p8925_p5, %p8922_p3 }
  0x1b   : > { %8930 = shalt.err (!%p8927_p7)
}
  0x1c   : > { %s8931_s14 = scalar_lea.vmem %s9164_s28, 9216  ;;  %p8939_p2 = scmp.lt.s32.totalorder %s9164_s28, %s9164_s28 }
  0x1d   : > { %p8932_p9 = scmp.ne.s32.totalorder %s9164_s28, %s8931_s14  ;;  %p8940_p12 = scmp.lt.s32.totalorder %s8931_s14, %s8931_s14 }
  0x1f   : > { %p8934_p10 = pnand %p8932_p9, %p8920_p13  ;;  %p8941_p0 = por %p8940_p12, %p8939_p2 }
  0x21   : > { %p8935_p1 = pneg %p8934_p10 }
  0x23   : > { %p8942_p6 = pnand %p8941_p0, %p8935_p1 }
  0x25   : > { %8945 = shalt.err (!%p8942_p6)
}
  0x26   : > { %s9078_s15 = smov 64   ;;  %s9079_s16 = smov 4  }
  0x27   : > { %8564 = dma.hbm_to_vmem [thread:$0]  (!%p9171_p11), %s14216_s1, 9216, %s9164_s28, [#allocation7], %s9078_s15, %s9078_s15, %s9079_s16  }
  0x28   : > { %s8946_s7 = scalar_lea.hbm %s14218_s3, 9216 }
  0x29   : > { %p8947_p2 = scmp.ne.s32.totalorder %s14218_s3, %s8946_s7  ;;  %p8953_p10 = scmp.lt.u32.totalorder %s8946_s7, %s14218_s3 }
  0x2b   : > { %p8949_p1 = pnand %p8947_p2, %p8920_p13 }
  0x2d   : > { %p8950_p6 = pneg %p8949_p1 }
  0x2f   : > { %p8955_p3 = pnand %p8953_p10, %p8950_p6 }
  0x31   : > { %8958 = shalt.err (!%p8955_p3)
}
  0x32   : > { %s8959_s28 = scalar_lea.vmem %s9175_s6, 9216  ;;  %p8967_p12 = scmp.lt.s32.totalorder %s9175_s6, %s9175_s6 }
  0x33   : > { %p8960_p5 = scmp.ne.s32.totalorder %s9175_s6, %s8959_s28  ;;  %p8968_p0 = scmp.lt.s32.totalorder %s8959_s28, %s8959_s28 }
  0x35   : > { %p8962_p7 = pnand %p8960_p5, %p8920_p13  ;;  %p8969_p2 = por %p8968_p0, %p8967_p12 }
  0x37   : > { %p8963_p9 = pneg %p8962_p7 }
  0x39   : > { %p8970_p1 = pnand %p8969_p2, %p8963_p9 }
  0x3b   : > { %8973 = shalt.err (!%p8970_p1)
}
  0x3c   : > { %8567 = dma.hbm_to_vmem [thread:$0]  (!%p9171_p11), %s14218_s3, 9216, %s9175_s6, [#allocation7], %s9078_s15, %s9078_s15, %s9079_s16  }
  0x3d   : > { %s9230_s14 = sadd.s32 1, %s9074_s21   ;;  %s29_s29 = sadd.s32 1, %s9070_s20 }
  0x3e   : > { %s26_s17 = ssub.s32 %s9074_s21, %s9230_s14  ;;  %p36_p13 = scmp.ne.s32.totalorder %s9070_s20, %s9066_s19 }
  0x3f   : > { %p27_p6 = scmp.eq.s32.totalorder %s26_s17, 0  ;;  %p37_p10 = scmp.eq.s32.totalorder %s9074_s21, 0 }
  0x40   : > { %p14408_p3 = scmp.eq.s32.totalorder %s9141_s22, 1  ;;  %p8578_p7 = scmp.lt.s32.totalorder %s9074_s21, 2 }
  0x41   : > { %s9246_s27 = scalar_select %p27_p6, %s9070_s20, %s29_s29  }
  0x42   : > { %p9240_p5 = por %p14408_p3, %p36_p13  ;;  %p38_p9 = por %p37_p10, %p36_p13 }
  0x43   : > { %s208_s30 = sand.u32 1, %s9070_s20   ;;  %s8449_s6 = smul.u32 7040, %s9074_s21 }
  0x44   : > { %s14409_s23 = scalar_select %p9240_p5, 1, 0 }
  0x45   : > { %s8448_s7 = smul.u32 440, %s208_s30  ;;  %p9250_p11 = pnand %p8578_p7, %p38_p9 }
  0x46   : > { %s9257_s9 = scalar_lea.hbm %s14215_s0, %s8449_s6  ;;  %s9261_s28 = scalar_lea.sflag [#allocation4], %s208_s30 }
  0x47   : > { %s212_s10 = scalar_lea.vmem [#allocation3], %s8448_s7  ;;  %s8974_s12 = scalar_lea.hbm %s9257_s9, 7040 }
  0x48   : > { %s219_s11 = sshll.u32 %s212_s10, 4  ;;  %p8975_p12 = scmp.ne.s32.totalorder %s9257_s9, %s8974_s12  ;;  %s9259_s11 = int_to_ptr.vmem [resolvable:$true] %s219_s11 }
  0x49   : > { %p8976_p0 = pneg %p9250_p11  ;;  %s8979_s17 = scalar_lea.hbm %s14215_s0, 14080 }
  0x4a   : > { %p8980_p13 = scmp.lt.u32.totalorder %s9257_s9, %s14215_s0  ;;  %p8981_p6 = scmp.lt.u32.totalorder %s8979_s17, %s8974_s12 }
  0x4b   : > { %p8977_p2 = pnand %p8976_p0, %p8975_p12  ;;  %p8983_p3 = scmp.lt.u32.totalorder %s8974_s12, %s9257_s9 }
  0x4c   : > { %p8982_p10 = por %p8981_p6, %p8980_p13 }
  0x4d   : > { %p8978_p1 = pneg %p8977_p2 }
  0x4e   : > { %p8984_p7 = por %p8983_p3, %p8982_p10 }
  0x50   : > { %p8985_p9 = pnand %p8984_p7, %p8978_p1 }
  0x52   : > { %8988 = shalt.err (!%p8985_p9)
}
  0x53   : > { %s8989_s30 = scalar_lea.vmem %s9259_s11, 7040  ;;  %s9080_s7 = smov [#allocation3]  }
  0x54   : > { %p8990_p12 = scmp.ne.s32.totalorder %s9259_s11, %s8989_s30  ;;  %s8994_s8 = sshll.u32 %s9080_s7, 4  ;;  %s8995_s8 = int_to_ptr.vmem [resolvable:$false] %s8994_s8 }
  0x55   : > { %s8996_s10 = scalar_lea.vmem %s8995_s8, 14080  ;;  %p8997_p4 = scmp.lt.s32.totalorder %s9259_s11, %s8995_s8 }
  0x56   : > { %p8992_p2 = pnand %p8990_p12, %p8976_p0  ;;  %p8998_p13 = scmp.lt.s32.totalorder %s8996_s10, %s8989_s30 }
  0x58   : > { %p8993_p5 = pneg %p8992_p2  ;;  %p8999_p6 = por %p8998_p13, %p8997_p4 }
  0x5a   : > { %p9000_p10 = pnand %p8999_p6, %p8993_p5 }
  0x5c   : > { %9003 = shalt.err (!%p9000_p10)
}
  0x5d   : > { %s9081_s12 = smov 128   ;;  %s9082_s13 = smov 8  }
  0x5e   : > { %8571 = dma.hbm_to_vmem [thread:$0]  (!%p9250_p11), %s9257_s9, 7040, %s9259_s11, %s9261_s28, %s9081_s12, %s9081_s12, %s9082_s13  }
  0x5f   : > { %231 = sbr.rel (%p9160_p8) target bundleno = 1439 (0x59f), region = 40 }
  0x66   : > { %s9292_s29 = sand.u32 1, %s9066_s19   ;;  %p14411_p4 = scmp.ne.s32.totalorder %s14404_s24, 0 }
  0x67   : > { %s8450_s17 = smul.u32 440, %s9292_s29  ;;  %s234_s6 = scalar_lea.sflag [#allocation4], %s9292_s29 }
  0x69   : > { %s9296_s16 = scalar_lea.vmem [#allocation3], %s8450_s17 }
  0x6a   : > { %9049 = dma.done.wait (%p14411_p4), %s234_s6, 7040  }
  0x6b   : > { %9051 = vsyncadd (%p14411_p4), %s234_s6, 4294960256  ;;  %p14412_p5 = scmp.eq.s32.totalorder %s9141_s22, 0 }
  0x6d   : > { %9053 = dma.done.wait (%p14412_p5), [#allocation7], 18432   ;;  %p14413_p8 = pmov %p14412_p5 }
  0x6e   : > { %v14224_v0 = vmov 0   ;;  %v8624_v1 = vld [vmem:[#allocation6] sm:$0xff]   ;;  %v8626_v3 = vld [vmem:[#allocation6 + $0x8] sm:$0xff]   ;;  %v8629_v5 = vld [vmem:[#allocation6 + $0x90] sm:$0xff]   ;;  %s8451_s24 = smul.u32 384, %s9292_s29  ;;  %p15182_p0 = scmp.ne.s32.totalorder %s14409_s23, 0 }
  0x6f   : > { %9055 = vsyncadd (%p14413_p8), [#allocation7], 4294948864  ;;  %1554 = vmatprep.subr.bf16.mxu0 %v14224_v0  ;;  %v8625_v2 = vld [vmem:[#allocation6 + $0x80] sm:$0xff]   ;;  %v8627_v4 = vld [vmem:[#allocation6 + $0x88] sm:$0xff]   ;;  %s8548_s12 = smul.u32 6144, %s9141_s22  ;;  %s7609_s22 = scalar_lea.sflag [#allocation5], %s9292_s29 }
  0x70   : > { %1555 = vmatpush1.bf16.msra.mxu0 %v8624_v1  ;;  %8064 = vmatprep.subr.bf16.mxu1 %v8625_v2  ;;  %v8628_v6 = vld [vmem:[#allocation6 + $0x10] sm:$0xff]   ;;  %v8631_v7 = vld [vmem:[#allocation6 + $0x98] sm:$0xff]   ;;  %v8633_v9 = vld [vmem:[#allocation6 + $0xa0] sm:$0xff]   ;;  %s9949_s26 = scalar_lea.vmem [#allocation9], %s8451_s24  ;;  %s9087_s15 = smov [#allocation9]  }
  0x71   : > { %1556 = vmatprep.subr.bf16.mxu0 %v14224_v0  ;;  %8065 = vmatpush3.bf16.msra.mxu1 %v8625_v2  ;;  %v8630_v8 = vld [vmem:[#allocation6 + $0x18] sm:$0xff]   ;;  %v8632_v10 = vld [vmem:[#allocation6 + $0x20] sm:$0xff]   ;;  %v8635_v13 = vld [vmem:[#allocation6 + $0xa8] sm:$0xff]   ;;  %s7622_s13 = sshll.u32 %s9949_s26, 4  ;;  %s14167_s24 = scalar_lea.hbm %s14220_s5, %s8548_s12  ;;  %s14170_s13 = int_to_ptr.vmem [resolvable:$true] %s7622_s13 }
  0x72   : > { %8066 = vmatprep.subr.bf16.mxu1 %v8627_v4  ;;  %v1290_v11 = vld [vmem:[%s9296_s16 + $0x2] sm:$0xff]  ;;  %v1291_v12 = vld [vmem:[%s9296_s16 + $0xa] sm:$0xff]  ;;  %v1292_v20 = vld [vmem:[%s9296_s16 + $0x12] sm:$0xff]  ;;  %s9008_s9 = sshll.u32 %s9087_s15, 4  ;;  %s9009_s9 = int_to_ptr.vmem [resolvable:$false] %s9008_s9 }
  0x73   : > { %v1338_v14 = vpack.c.bf16 %v1291_v12, %v1290_v11  ;;  %v8634_v15 = vld [vmem:[#allocation6 + $0x28] sm:$0xff]   ;;  %v8637_v16 = vld [vmem:[#allocation6 + $0xb0] sm:$0xff]   ;;  %v8639_v18 = vld [vmem:[#allocation6 + $0xb8] sm:$0xff]   ;;  %s9010_s11 = scalar_lea.vmem %s9009_s9, 12288  ;;  %p9011_p7 = scmp.lt.s32.totalorder %s14170_s13, %s9009_s9 }
  0x74   : > { %1557 = vmatpush1.bf16.msra.mxu0 %v8626_v3  ;;  %v8636_v17 = vld [vmem:[#allocation6 + $0x30] sm:$0xff]   ;;  %v8638_v19 = vld [vmem:[#allocation6 + $0x38] sm:$0xff]   ;;  %v8640_v26 = vld [vmem:[#allocation6 + $0x40] sm:$0xff]  }
  0x75   : > { %1558 = vmatprep.subr.bf16.mxu0 %v14224_v0  ;;  %8067 = vmatpush3.bf16.msra.mxu1 %v8627_v4  ;;  %v1293_v21 = vld [vmem:[%s9296_s16 + $0x1a] sm:$0xff]  ;;  %v1294_v22 = vld [vmem:[%s9296_s16 + $0x22] sm:$0xff]  ;;  %v1295_v23 = vld [vmem:[%s9296_s16 + $0x2a] sm:$0xff] }
  0x76   : > { %8068 = vmatprep.subr.bf16.mxu1 %v8629_v5  ;;  %8080 = vmatprep.mubr.bf16.mxu1 %v1338_v14  ;;  %v1218_v24 = vld [vmem:[%s9296_s16 + $0x1] sm:$0xff]  ;;  %v1219_v25 = vld [vmem:[%s9296_s16 + $0x9] sm:$0xff]  ;;  %v1339_v28 = vpack.c.bf16 %v1293_v21, %v1292_v20  ;;  %v1340_v29 = vpack.c.bf16 %v1295_v23, %v1294_v22  ;;  %v1296_v32 = vld [vmem:[%s9296_s16 + $0x32] sm:$0xff] }
  0x77   : > { %v1266_v27 = vpack.c.bf16 %v1219_v25, %v1218_v24  ;;  %v8648_v30 = vld [vmem:[#allocation6 + $0xc0] sm:$0xff]   ;;  %v8641_v31 = vld [vmem:[#allocation6 + $0x48] sm:$0xff]   ;;  %v8642_v37 = vld [vmem:[#allocation6 + $0x50] sm:$0xff]  }
  0x78   : > { %1559 = vmatpush1.bf16.msra.mxu0 %v8628_v6  ;;  %v1297_v33 = vld [vmem:[%s9296_s16 + $0x3a] sm:$0xff]  ;;  %v1298_v35 = vld [vmem:[%s9296_s16 + $0x42] sm:$0xff]  ;;  %v1299_v36 = vld [vmem:[%s9296_s16 + $0x4a] sm:$0xff] }
  0x79   : > { %1560 = vmatprep.subr.bf16.mxu0 %v14224_v0  ;;  %8069 = vmatpush3.bf16.msra.mxu1 %v8629_v5  ;;  %v8650_v34 = vld [vmem:[#allocation6 + $0xc8] sm:$0xff]   ;;  %v1341_v38 = vpack.c.bf16 %v1297_v33, %v1296_v32  ;;  %v1342_v39 = vpack.c.bf16 %v1299_v36, %v1298_v35  ;;  %v8651_v40 = vld [vmem:[#allocation6 + $0xd0] sm:$0xff]   ;;  %v8643_v41 = vld [vmem:[#allocation6 + $0x58] sm:$0xff]  }
  0x7a   : > { %8070 = vmatprep.subr.bf16.mxu1 %v8631_v7  ;;  %1586 = vmatprep.mubr.bf16.mxu0 %v1266_v27  ;;  %v1300_v42 = vld [vmem:[%s9296_s16 + $0x52] sm:$0xff]  ;;  %v1301_v43 = vld [vmem:[%s9296_s16 + $0x5a] sm:$0xff]  ;;  %v1302_v45 = vld [vmem:[%s9296_s16 + $0x62] sm:$0xff] }
  0x7b   : > { %v8652_v44 = vld [vmem:[#allocation6 + $0xd8] sm:$0xff]   ;;  %v8644_v47 = vld [vmem:[#allocation6 + $0x60] sm:$0xff]   ;;  %v1343_v48 = vpack.c.bf16 %v1301_v43, %v1300_v42  ;;  %v8645_v51 = vld [vmem:[#allocation6 + $0x68] sm:$0xff]  }
  0x7c   : > { %1561 = vmatpush1.bf16.msra.mxu0 %v8630_v8  ;;  %v1303_v46 = vld [vmem:[%s9296_s16 + $0x6a] sm:$0xff]  ;;  %v1304_v52 = vld [vmem:[%s9296_s16 + $0x72] sm:$0xff]  ;;  %v1305_v53 = vld [vmem:[%s9296_s16 + $0x7a] sm:$0xff] }
  0x7d   : > { %1562 = vmatprep.subr.bf16.mxu0 %v14224_v0  ;;  %8071 = vmatpush3.bf16.msra.mxu1 %v8631_v7  ;;  %v1344_v49 = vpack.c.bf16 %v1303_v46, %v1302_v45  ;;  %v8653_v50 = vld [vmem:[#allocation6 + $0xe0] sm:$0xff]   ;;  %v1306_v54 = vld [vmem:[%s9296_s16 + $0x82] sm:$0xff]  ;;  %v1345_v58 = vpack.c.bf16 %v1305_v53, %v1304_v52 }
  0x7e   : > { %8072 = vmatprep.subr.bf16.mxu1 %v8633_v9  ;;  %v8654_v55 = vld [vmem:[#allocation6 + $0xe8] sm:$0xff]   ;;  %v1307_v56 = vld [vmem:[%s9296_s16 + $0x8a] sm:$0xff] }
  0x7f   : > { %v8646_v57 = vld [vmem:[#allocation6 + $0x70] sm:$0xff]   ;;  %v8647_v59 = vld [vmem:[#allocation6 + $0x78] sm:$0xff]   ;;  %v1346_v61 = vpack.c.bf16 %v1307_v56, %v1306_v54  ;;  %v8649_v1 = vld [vmem:[#allocation6 + $0x140] sm:$0xff]  }
  0x80   : > { %1563 = vmatpush1.bf16.msra.mxu0 %v8632_v10  ;;  %v1146_v60 = vld [vmem:[%s9296_s16] sm:$0xff]  ;;  %v1147_v63 = vld [vmem:[%s9296_s16 + $0x8] sm:$0xff]  ;;  %v1308_v2 = vld [vmem:[%s9296_s16 + $0x92] sm:$0xff] }
  0x81   : > { %1564 = vmatprep.subr.bf16.mxu0 %v14224_v0  ;;  %8073 = vmatpush3.bf16.msra.mxu1 %v8633_v9  ;;  %v8656_v62 = vld [vmem:[#allocation6 + $0xf0] sm:$0xff]   ;;  %v1220_v3 = vld [vmem:[%s9296_s16 + $0x11] sm:$0xff]  ;;  %v1194_v8 = vpack.c.bf16 %v1147_v63, %v1146_v60 }
  0x82   : > { %8074 = vmatprep.subr.bf16.mxu1 %v8635_v13  ;;  %v9354_v4 = vld [vmem:[%s9296_s16 + $0x19] sm:$0xff]  ;;  %v1310_v6 = vld [vmem:[%s9296_s16 + $0xa2] sm:$0xff]  ;;  %v1311_v9 = vld [vmem:[%s9296_s16 + $0xaa] sm:$0xff] }
  0x83   : > { %v1309_v5 = vld [vmem:[%s9296_s16 + $0x9a] sm:$0xff]  ;;  %v8657_v7 = vld [vmem:[#allocation6 + $0xf8] sm:$0xff]   ;;  %v1267_v10 = vpack.c.bf16 %v9354_v4, %v1220_v3 }
  0x84   : > { %1565 = vmatpush1.bf16.msra.mxu0 %v8634_v15  ;;  %v1347_v11 = vpack.c.bf16 %v1309_v5, %v1308_v2  ;;  %v8655_v12 = vld [vmem:[#allocation6 + $0x148] sm:$0xff]   ;;  %v8658_v14 = vld [vmem:[#allocation6 + $0x100] sm:$0xff]   ;;  %v8662_v21 = vld [vmem:[#allocation6 + $0x150] sm:$0xff]  }
  0x85   : > { %1566 = vmatprep.subr.bf16.mxu0 %v14224_v0  ;;  %8075 = vmatpush3.bf16.msra.mxu1 %v8635_v13  ;;  %v1348_v13 = vpack.c.bf16 %v1311_v9, %v1310_v6  ;;  %v1148_v15 = vld [vmem:[%s9296_s16 + $0x10] sm:$0xff]  ;;  %v8659_v22 = vld [vmem:[#allocation6 + $0x108] sm:$0xff]   ;;  %v9385_v32 = vld [vmem:[%s9296_s16 + $0x28] sm:$0xff] }
  0x86   : > { %8076 = vmatprep.subr.bf16.mxu1 %v8637_v16  ;;  %v9372_v20 = vld [vmem:[%s9296_s16 + $0x29] sm:$0xff]  ;;  %v1316_v33 = vld [vmem:[%s9296_s16 + $0xd2] sm:$0xff]  ;;  %v1317_v36 = vld [vmem:[%s9296_s16 + $0xda] sm:$0xff] }
  0x87   : > { %v1314_v24 = vld [vmem:[%s9296_s16 + $0xc2] sm:$0xff]  ;;  %v1315_v25 = vld [vmem:[%s9296_s16 + $0xca] sm:$0xff]  ;;  %v9392_v35 = vld [vmem:[%s9296_s16 + $0x39] sm:$0xff]  ;;  %v1351_v43 = vpack.c.bf16 %v1317_v36, %v1316_v33 }
  0x88   : > { %1567 = vmatpush1.bf16.msra.mxu0 %v8636_v17  ;;  %v1312_v17 = vld [vmem:[%s9296_s16 + $0xb2] sm:$0xff]  ;;  %v1322_v52 = vld [vmem:[%s9296_s16 + $0x102] sm:$0xff]  ;;  %v1323_v53 = vld [vmem:[%s9296_s16 + $0x10a] sm:$0xff] }
  0x89   : > { %1568 = vmatprep.subr.bf16.mxu0 %v14224_v0  ;;  %8077 = vmatpush3.bf16.msra.mxu1 %v8637_v16  ;;  %v9363_v16 = vld [vmem:[%s9296_s16 + $0x18] sm:$0xff]  ;;  %v9403_v46 = vld [vmem:[%s9296_s16 + $0x30] sm:$0xff]  ;;  %v8665_v60 = vld [vmem:[#allocation6 + $0x130] sm:$0xff]  }
  0x8a   : > { %8078 = vmatprep.subr.bf16.mxu1 %v8639_v18  ;;  %v1195_v23 = vpack.c.bf16 %v9363_v16, %v1148_v15  ;;  %v8668_v42 = vld [vmem:[#allocation6 + $0x160] sm:$0xff]   ;;  %v8664_v54 = vld [vmem:[#allocation6 + $0x128] sm:$0xff]   ;;  %v8666_v5 = vld [vmem:[#allocation6 + $0x138] sm:$0xff]  }
  0x8b   : > { %v8663_v45 = vld [vmem:[#allocation6 + $0x120] sm:$0xff]   ;;  %v8671_v56 = vld [vmem:[#allocation6 + $0x168] sm:$0xff]   ;;  %v8674_v6 = vld [vmem:[#allocation6 + $0x170] sm:$0xff]  }
  0x8c   : > { %1569 = vmatpush1.bf16.msra.mxu0 %v8638_v19  ;;  %v9369_v19 = vld [vmem:[%s9296_s16 + $0x21] sm:$0xff]  ;;  %v1324_v63 = vld [vmem:[%s9296_s16 + $0x112] sm:$0xff]  ;;  %v1327_v9 = vld [vmem:[%s9296_s16 + $0x12a] sm:$0xff] }
  0x8d   : > { %1570 = vmatprep.subr.bf16.mxu0 %v14224_v0  ;;  %8079 = vmatpush3.bf16.msra.mxu1 %v8639_v18  ;;  %v1313_v18 = vld [vmem:[%s9296_s16 + $0xba] sm:$0xff]  ;;  %v9434_v2 = vld [vmem:[%s9296_s16 + $0x51] sm:$0xff] }
  0x8e   : > { %2461 = vmatprep.subr.bf16.mxu1 %v14224_v0  ;;  %v1349_v27 = vpack.c.bf16 %v1313_v18, %v1312_v17  ;;  %v9437_v3 = vld [vmem:[%s9296_s16 + $0x59] sm:$0xff]  ;;  %v9456_v18 = vld [vmem:[%s9296_s16 + $0x61] sm:$0xff] }
  0x8f   : > { %v1328_v15 = vld [vmem:[%s9296_s16 + $0x132] sm:$0xff]  ;;  %v1329_v17 = vld [vmem:[%s9296_s16 + $0x13a] sm:$0xff] }
  0x90   : > { %1571 = vmatpush1.bf16.msra.mxu0 %v8640_v26  ;;  %8081 = vmatmul.mubr.bf16.vlgmr.msra.gmra.mrb[0].mxu1 %v1339_v28  ;;  %v1268_v26 = vpack.c.bf16 %v9372_v20, %v9369_v19  ;;  %v1350_v28 = vpack.c.bf16 %v1315_v25, %v1314_v24  ;;  %v1332_v33 = vld [vmem:[%s9296_s16 + $0x152] sm:$0xff]  ;;  %v1333_v36 = vld [vmem:[%s9296_s16 + $0x15a] sm:$0xff] }
  0x91   : > { %1572 = vmatprep.subr.bf16.mxu0 %v14224_v0  ;;  %8084 = vmatprep.mubr.bf16.mxu1 %v1340_v29  ;;  %v8660_v29 = vld [vmem:[#allocation6 + $0x110] sm:$0xff]  }
  0x92   : > { %2462 = vmatpush1.bf16.msra.mxu1 %v8648_v30  ;;  %v8667_v30 = vld [vmem:[#allocation6 + $0x158] sm:$0xff]  }
  0x93   : > { %2463 = vmatprep.subr.bf16.mxu1 %v14224_v0 }
  0x94   : > { %1573 = vmatpush1.bf16.msra.mxu0 %v8641_v31  ;;  %v9382_v31 = vld [vmem:[%s9296_s16 + $0x20] sm:$0xff] }
  0x95   : > { %1574 = vmatprep.subr.bf16.mxu0 %v14224_v0 }
  0x96   : > { %2464 = vmatpush1.bf16.msra.mxu1 %v8650_v34  ;;  %v9389_v34 = vld [vmem:[%s9296_s16 + $0x31] sm:$0xff] }
  0x97   : > { %2465 = vmatprep.subr.bf16.mxu1 %v14224_v0 }
  0x98   : > { %1575 = vmatpush1.bf16.msra.mxu0 %v8642_v37  ;;  %8085 = vmatmul.mubr.bf16.gmra.mrb[4].mxu1 %v1341_v38  ;;  %v1318_v37 = vld [vmem:[%s9296_s16 + $0xe2] sm:$0xff] }
  0x99   : > { %1576 = vmatprep.subr.bf16.mxu0 %v14224_v0  ;;  %8088 = vmatprep.mubr.bf16.mxu1 %v1342_v39  ;;  %v8661_v38 = vld [vmem:[#allocation6 + $0x118] sm:$0xff]   ;;  %v1196_v39 = vpack.c.bf16 %v9385_v32, %v9382_v31 }
  0x9a   : > { %2466 = vmatpush1.bf16.msra.mxu1 %v8651_v40  ;;  %v1319_v40 = vld [vmem:[%s9296_s16 + $0xea] sm:$0xff] }
  0x9b   : > { %2467 = vmatprep.subr.bf16.mxu1 %v14224_v0 }
  0x9c   : > { %1577 = vmatpush1.bf16.msra.mxu0 %v8643_v41  ;;  %v1269_v41 = vpack.c.bf16 %v9392_v35, %v9389_v34 }
  0x9d   : > { %1578 = vmatprep.subr.bf16.mxu0 %v14224_v0 }
  0x9e   : > { %2468 = vmatpush1.bf16.msra.mxu1 %v8652_v44  ;;  %v1352_v44 = vpack.c.bf16 %v1319_v40, %v1318_v37  ;;  %v9476_v37 = vld [vmem:[%s9296_s16 + $0x71] sm:$0xff] }
  0x9f   : > { %2469 = vmatprep.subr.bf16.mxu1 %v14224_v0  ;;  %v1335_v40 = vld [vmem:[%s9296_s16 + $0x16a] sm:$0xff] }
  0xa0   : > { %1579 = vmatpush1.bf16.msra.mxu0 %v8644_v47  ;;  %8089 = vmatmul.mubr.bf16.gmra.mrb[8].mxu1 %v1343_v48  ;;  %v9406_v47 = vld [vmem:[%s9296_s16 + $0x38] sm:$0xff] }
  0xa1   : > { %1580 = vmatprep.subr.bf16.mxu0 %v14224_v0  ;;  %8092 = vmatprep.mubr.bf16.mxu1 %v1344_v49  ;;  %v1320_v48 = vld [vmem:[%s9296_s16 + $0xf2] sm:$0xff]  ;;  %v1321_v49 = vld [vmem:[%s9296_s16 + $0xfa] sm:$0xff] }
  0xa2   : > { %2470 = vmatpush1.bf16.msra.mxu1 %v8653_v50  ;;  %v9412_v50 = vld [vmem:[%s9296_s16 + $0x41] sm:$0xff] }
  0xa3   : > { %2471 = vmatprep.subr.bf16.mxu1 %v14224_v0 }
  0xa4   : > { %1581 = vmatpush1.bf16.msra.mxu0 %v8645_v51  ;;  %v9415_v51 = vld [vmem:[%s9296_s16 + $0x49] sm:$0xff] }
  0xa5   : > { %1582 = vmatprep.subr.bf16.mxu0 %v14224_v0 }
  0xa6   : > { %2472 = vmatpush1.bf16.msra.mxu1 %v8654_v55  ;;  %v1197_v55 = vpack.c.bf16 %v9406_v47, %v9403_v46 }
  0xa7   : > { %2473 = vmatprep.subr.bf16.mxu1 %v14224_v0 }
  0xa8   : > { %1583 = vmatpush1.bf16.msra.mxu0 %v8646_v57  ;;  %8093 = vmatmul.mubr.bf16.gmra.mrb[12].mxu1 %v1345_v58  ;;  %v1270_v57 = vpack.c.bf16 %v9415_v51, %v9412_v50  ;;  %v1353_v58 = vpack.c.bf16 %v1321_v49, %v1320_v48  ;;  %v9494_v49 = vld [vmem:[%s9296_s16 + $0x81] sm:$0xff] }
  0xa9   : > { %1584 = vmatprep.subr.bf16.mxu0 %v14224_v0  ;;  %8096 = vmatprep.mubr.bf16.mxu1 %v1346_v61  ;;  %v9425_v61 = vld [vmem:[%s9296_s16 + $0x40] sm:$0xff] }
  0xaa   : > { %2474 = vmatpush1.bf16.msra.mxu1 %v8656_v62  ;;  %v9428_v62 = vld [vmem:[%s9296_s16 + $0x48] sm:$0xff] }
  0xab   : > { %2475 = vmatprep.subr.bf16.mxu1 %v14224_v0 }
  0xac   : > { %1585 = vmatpush1.bf16.msra.mxu0 %v8647_v59  ;;  %v1354_v59 = vpack.c.bf16 %v1323_v53, %v1322_v52  ;;  %v9497_v52 = vld [vmem:[%s9296_s16 + $0x89] sm:$0xff]  ;;  %v1336_v53 = vld [vmem:[%s9296_s16 + $0x172] sm:$0xff] }
  0xad   : > { %8128 = vmatprep.subr.bf16.mxu0 %v8649_v1 }
  0xae   : > { %2476 = vmatpush1.bf16.msra.mxu1 %v8657_v7  ;;  %v1198_v7 = vpack.c.bf16 %v9428_v62, %v9425_v61 }
  0xaf   : > { %1587 = vmatmul.mubr.bf16.vlgmr.msra.gmra.mrb[0].mxu0 %v1194_v8  ;;  %2477 = vmatprep.subr.bf16.mxu1 %v14224_v0  ;;  %v1326_v8 = vld [vmem:[%s9296_s16 + $0x122] sm:$0xff] }
  0xb0   : > { %8129 = vmatpush3.bf16.msra.mxu0 %v8649_v1  ;;  %1594 = vmatprep.mubr.bf16.mxu0 %v1267_v10  ;;  %v1325_v1 = vld [vmem:[%s9296_s16 + $0x11a] sm:$0xff]  ;;  %v1271_v10 = vpack.c.bf16 %v9437_v3, %v9434_v2 }
  0xb1   : > { %8097 = vmatmul.mubr.bf16.gmra.mrb[16].mxu1 %v1347_v11  ;;  %8130 = vmatprep.subr.bf16.mxu0 %v8655_v12  ;;  %v1355_v11 = vpack.c.bf16 %v1325_v1, %v1324_v63  ;;  %v9514_v63 = vld [vmem:[%s9296_s16 + $0x91] sm:$0xff]  ;;  %v9517_v1 = vld [vmem:[%s9296_s16 + $0x99] sm:$0xff] }
  0xb2   : > { %8100 = vmatprep.mubr.bf16.mxu1 %v1348_v13  ;;  %2478 = vmatpush1.bf16.msra.mxu1 %v8658_v14  ;;  %v9450_v13 = vld [vmem:[%s9296_s16 + $0x58] sm:$0xff]  ;;  %v1356_v14 = vpack.c.bf16 %v1327_v9, %v1326_v8  ;;  %v2173_v8 = vpack.c.bf16 %v9389_v34, %v9372_v20  ;;  %v8672_v34 = vld [vmem:[#allocation6 + $0x190] sm:$0xff]  }
  0xb3   : > { %2479 = vmatprep.subr.bf16.mxu1 %v14224_v0  ;;  %v9531_v9 = vld [vmem:[%s9296_s16 + $0x98] sm:$0xff] }
  0xb4   : > { %8131 = vmatpush3.bf16.msra.mxu0 %v8655_v12  ;;  %v9447_v12 = vld [vmem:[%s9296_s16 + $0x50] sm:$0xff] }
  0xb5   : > { %8132 = vmatprep.subr.bf16.mxu0 %v8662_v21  ;;  %v1199_v24 = vpack.c.bf16 %v9450_v13, %v9447_v12 }
  0xb6   : > { %2480 = vmatpush1.bf16.msra.mxu1 %v8659_v22  ;;  %v1330_v22 = vld [vmem:[%s9296_s16 + $0x142] sm:$0xff] }
  0xb7   : > { %1595 = vmatmul.mubr.bf16.gmra.mrb[4].mxu0 %v1195_v23  ;;  %2481 = vmatprep.subr.bf16.mxu1 %v14224_v0  ;;  %v1331_v23 = vld [vmem:[%s9296_s16 + $0x14a] sm:$0xff] }
  0xb8   : > { %1602 = vmatprep.mubr.bf16.mxu0 %v1268_v26  ;;  %8133 = vmatpush3.bf16.msra.mxu0 %v8662_v21  ;;  %v9459_v21 = vld [vmem:[%s9296_s16 + $0x69] sm:$0xff]  ;;  %v1357_v26 = vpack.c.bf16 %v1329_v17, %v1328_v15  ;;  %v2101_v15 = vpack.c.bf16 %v9403_v46, %v9385_v32  ;;  %v9550_v17 = vld [vmem:[%s9296_s16 + $0xa0] sm:$0xff] }
  0xb9   : > { %8101 = vmatmul.mubr.bf16.gmra.mrb[20].mxu1 %v1349_v27  ;;  %8134 = vmatprep.subr.bf16.mxu0 %v8667_v30  ;;  %v1272_v25 = vpack.c.bf16 %v9459_v21, %v9456_v18  ;;  %v9468_v27 = vld [vmem:[%s9296_s16 + $0x60] sm:$0xff]  ;;  %v8673_v46 = vld [vmem:[#allocation6 + $0x198] sm:$0xff]  }
  0xba   : > { %8104 = vmatprep.mubr.bf16.mxu1 %v1350_v28  ;;  %2482 = vmatpush1.bf16.msra.mxu1 %v8660_v29  ;;  %v1358_v28 = vpack.c.bf16 %v1331_v23, %v1330_v22  ;;  %v9471_v29 = vld [vmem:[%s9296_s16 + $0x68] sm:$0xff]  ;;  %v2174_v23 = vpack.c.bf16 %v9412_v50, %v9392_v35  ;;  %v9562_v32 = vld [vmem:[%s9296_s16 + $0xb9] sm:$0xff] }
  0xbb   : > { %2483 = vmatprep.subr.bf16.mxu1 %v14224_v0  ;;  %v9553_v22 = vld [vmem:[%s9296_s16 + $0xa8] sm:$0xff] }
  0xbc   : > { %8135 = vmatpush3.bf16.msra.mxu0 %v8667_v30  ;;  %v8677_v30 = vld [vmem:[#allocation6 + $0x178] sm:$0xff]   ;;  %v1204_v35 = vpack.c.bf16 %v9553_v22, %v9550_v17 }
  0xbd   : > { %8136 = vmatprep.subr.bf16.mxu0 %v8668_v42 }
  0xbe   : > { %2484 = vmatpush1.bf16.msra.mxu1 %v8661_v38  ;;  %v9479_v38 = vld [vmem:[%s9296_s16 + $0x79] sm:$0xff] }
  0xbf   : > { %1603 = vmatmul.mubr.bf16.gmra.mrb[8].mxu0 %v1196_v39  ;;  %2485 = vmatprep.subr.bf16.mxu1 %v14224_v0  ;;  %v1334_v39 = vld [vmem:[%s9296_s16 + $0x162] sm:$0xff] }
  0xc0   : > { %1610 = vmatprep.mubr.bf16.mxu0 %v1269_v41  ;;  %8137 = vmatpush3.bf16.msra.mxu0 %v8668_v42  ;;  %v1200_v41 = vpack.c.bf16 %v9471_v29, %v9468_v27  ;;  %v1273_v42 = vpack.c.bf16 %v9479_v38, %v9476_v37  ;;  %v1360_v48 = vpack.c.bf16 %v1335_v40, %v1334_v39  ;;  %v9583_v39 = vld [vmem:[%s9296_s16 + $0xc9] sm:$0xff] }
  0xc1   : > { %8105 = vmatmul.mubr.bf16.gmra.mrb[24].mxu1 %v1351_v43  ;;  %8138 = vmatprep.subr.bf16.mxu0 %v8671_v56  ;;  %v1359_v43 = vpack.c.bf16 %v1333_v36, %v1332_v33  ;;  %v2175_v33 = vpack.c.bf16 %v9434_v2, %v9415_v51  ;;  %v9580_v36 = vld [vmem:[%s9296_s16 + $0xc1] sm:$0xff]  ;;  %v2103_v2 = vpack.c.bf16 %v9447_v12, %v9428_v62 }
  0xc2   : > { %8108 = vmatprep.mubr.bf16.mxu1 %v1352_v44  ;;  %2486 = vmatpush1.bf16.msra.mxu1 %v8663_v45  ;;  %v9488_v44 = vld [vmem:[%s9296_s16 + $0x70] sm:$0xff]  ;;  %v9491_v45 = vld [vmem:[%s9296_s16 + $0x78] sm:$0xff]  ;;  %v8678_v40 = vld [vmem:[#allocation6 + $0x1b0] sm:$0xff]  }
  0xc3   : > { %2487 = vmatprep.subr.bf16.mxu1 %v14224_v0  ;;  %v8679_v62 = vld [vmem:[#allocation6 + $0x1b8] sm:$0xff]  }
  0xc4   : > { %8139 = vmatpush3.bf16.msra.mxu0 %v8671_v56  ;;  %v1274_v56 = vpack.c.bf16 %v9497_v52, %v9494_v49 }
  0xc5   : > { %8140 = vmatprep.subr.bf16.mxu0 %v8674_v6 }
  0xc6   : > { %2488 = vmatpush1.bf16.msra.mxu1 %v8664_v54  ;;  %v1337_v54 = vld [vmem:[%s9296_s16 + $0x17a] sm:$0xff] }
  0xc7   : > { %1611 = vmatmul.mubr.bf16.gmra.mrb[12].mxu0 %v1197_v55  ;;  %2489 = vmatprep.subr.bf16.mxu1 %v14224_v0  ;;  %v1201_v55 = vpack.c.bf16 %v9491_v45, %v9488_v44 }
  0xc8   : > { %1618 = vmatprep.mubr.bf16.mxu0 %v1270_v57  ;;  %8141 = vmatpush3.bf16.msra.mxu0 %v8674_v6  ;;  %v1361_v57 = vpack.c.bf16 %v1337_v54, %v1336_v53  ;;  %v1275_v6 = vpack.c.bf16 %v9517_v1, %v9514_v63  ;;  %v9605_v53 = vld [vmem:[%s9296_s16 + $0xd9] sm:$0xff] }
  0xc9   : > { %8109 = vmatmul.mubr.bf16.gmra.mrb[28].mxu1 %v1353_v58  ;;  %8142 = vmatprep.subr.bf16.mxu0 %v8677_v30  ;;  %v9506_v58 = vld [vmem:[%s9296_s16 + $0x80] sm:$0xff]  ;;  %v8680_v54 = vld [vmem:[#allocation6 + $0x1c0] sm:$0xff]  }
  0xca   : > { %8112 = vmatprep.mubr.bf16.mxu1 %v1354_v59  ;;  %2490 = vmatpush1.bf16.msra.mxu1 %v8665_v60  ;;  %v9509_v59 = vld [vmem:[%s9296_s16 + $0x88] sm:$0xff]  ;;  %v2172_v60 = vpack.c.bf16 %v9369_v19, %v9354_v4  ;;  %v2100_v4 = vpack.c.bf16 %v9382_v31, %v9363_v16  ;;  %v9526_v19 = vld [vmem:[%s9296_s16 + $0x90] sm:$0xff]  ;;  %v8670_v16 = vld [vmem:[#allocation6 + $0x188] sm:$0xff]  }
  0xcb   : > { %2491 = vmatprep.subr.bf16.mxu1 %v14224_v0  ;;  %v1203_v20 = vpack.c.bf16 %v9531_v9, %v9526_v19 }
  0xcc   : > { %8143 = vmatpush3.bf16.msra.mxu0 %v8677_v30  ;;  %v9575_v30 = vld [vmem:[%s9296_s16 + $0xb8] sm:$0xff] }
  0xce   : > { %2492 = vmatpush1.bf16.msra.mxu1 %v8666_v5  ;;  %v1202_v5 = vpack.c.bf16 %v9509_v59, %v9506_v58 }
  0xcf   : > { %1619 = vmatmul.mubr.bf16.gmra.mrb[16].mxu0 %v1198_v7  ;;  %3464 = vmatprep.subr.bf16.mxu1 %v14224_v0  ;;  %v8669_v7 = vld [vmem:[#allocation6 + $0x180] sm:$0xff]  }
  0xd0   : > { %1626 = vmatprep.mubr.bf16.mxu0 %v1271_v10  ;;  %v9533_v10 = vld [vmem:[#allocation6 + $0x200] sm:$0xff]  }
  0xd1   : > { %8113 = vmatmul.mubr.bf16.gmra.mrb[32].mxu1 %v1355_v11  ;;  %v9536_v11 = vld [vmem:[%s9296_s16 + $0xa1] sm:$0xff]  ;;  %8192 = vmatprep.subr.bf16.mxu0 %v9533_v10 }
  0xd2   : > { %8116 = vmatprep.mubr.bf16.mxu1 %v1356_v14  ;;  %v9539_v14 = vld [vmem:[%s9296_s16 + $0xa9] sm:$0xff] }
  0xd3   : > { %v1276_v31 = vpack.c.bf16 %v9539_v14, %v9536_v11 }
  0xd7   : > { %1627 = vmatmul.mubr.bf16.gmra.mrb[20].mxu0 %v1199_v24  ;;  %v9559_v24 = vld [vmem:[%s9296_s16 + $0xb1] sm:$0xff] }
  0xd8   : > { %1634 = vmatprep.mubr.bf16.mxu0 %v1272_v25  ;;  %v1277_v50 = vpack.c.bf16 %v9562_v32, %v9559_v24  ;;  %v8675_v25 = vld [vmem:[#allocation6 + $0x1a0] sm:$0xff]  }
  0xd9   : > { %8117 = vmatmul.mubr.bf16.gmra.mrb[36].mxu1 %v1357_v26  ;;  %v2102_v26 = vpack.c.bf16 %v9425_v61, %v9406_v47  ;;  %v8676_v47 = vld [vmem:[#allocation6 + $0x1a8] sm:$0xff]   ;;  %v1278_v61 = vpack.c.bf16 %v9583_v39, %v9580_v36 }
  0xda   : > { %8120 = vmatprep.mubr.bf16.mxu1 %v1358_v28  ;;  %v9572_v28 = vld [vmem:[%s9296_s16 + $0xb0] sm:$0xff] }
  0xdb   : > { %v1205_v51 = vpack.c.bf16 %v9575_v30, %v9572_v28 }
  0xdf   : > { %1635 = vmatmul.mubr.bf16.gmra.mrb[24].mxu0 %v1200_v41  ;;  %v9594_v41 = vld [vmem:[%s9296_s16 + $0xc0] sm:$0xff] }
  0xe0   : > { %1642 = vmatprep.mubr.bf16.mxu0 %v1273_v42  ;;  %v9597_v42 = vld [vmem:[%s9296_s16 + $0xc8] sm:$0xff] }
  0xe1   : > { %8121 = vmatmul.mubr.bf16.gmra.mrb[40].mxu1 %v1359_v43  ;;  %v2176_v43 = vpack.c.bf16 %v9456_v18, %v9437_v3  ;;  %v1206_v3 = vpack.c.bf16 %v9597_v42, %v9594_v41  ;;  %v2104_v18 = vpack.c.bf16 %v9468_v27, %v9450_v13  ;;  %v8682_v13 = vld [vmem:[#allocation6 + $0x1c8] sm:$0xff]  }
  0xe2   : > { %8124 = vmatprep.mubr.bf16.mxu1 %v1360_v48  ;;  %v9602_v48 = vld [vmem:[%s9296_s16 + $0xd1] sm:$0xff] }
  0xe3   : > { %v1279_v12 = vpack.c.bf16 %v9605_v53, %v9602_v48 }
  0xe7   : > { %1643 = vmatmul.mubr.bf16.gmra.mrb[28].mxu0 %v1201_v55  ;;  %v9616_v55 = vld [vmem:[%s9296_s16 + $0xd0] sm:$0xff] }
  0xe8   : > { %1650 = vmatprep.mubr.bf16.mxu0 %v1274_v56  ;;  %v9619_v56 = vld [vmem:[%s9296_s16 + $0xd8] sm:$0xff] }
  0xe9   : > { %8125 = vmatmul.mubr.bf16.gmra.mrb[44].mxu1 %v1361_v57  ;;  %v2177_v57 = vpack.c.bf16 %v9476_v37, %v9459_v21  ;;  %v1207_v27 = vpack.c.bf16 %v9619_v56, %v9616_v55  ;;  %v2105_v37 = vpack.c.bf16 %v9488_v44, %v9471_v29  ;;  %v8686_v29 = vld [vmem:[#allocation6 + $0x1d8] sm:$0xff]  }
  0xea   : > { %2493 = vmatprep.mubr.bf16.mxu1 %v2172_v60  ;;  %v9624_v60 = vld [vmem:[%s9296_s16 + $0xe1] sm:$0xff] }
  0xef   : > { %1651 = vmatmul.mubr.bf16.gmra.mrb[32].mxu0 %v1202_v5  ;;  %v9627_v5 = vld [vmem:[%s9296_s16 + $0xe9] sm:$0xff] }
  0xf0   : > { %1658 = vmatprep.mubr.bf16.mxu0 %v1275_v6  ;;  %v1280_v21 = vpack.c.bf16 %v9627_v5, %v9624_v60  ;;  %v9638_v6 = vld [vmem:[%s9296_s16 + $0xe0] sm:$0xff] }
  0xf1   : > { %2494 = vmatmul.mubr.bf16.vlgmr.msra.gmra.mrb[48].mxu1 %v2100_v4  ;;  %v2178_v4 = vpack.c.bf16 %v9494_v49, %v9479_v38  ;;  %v2106_v49 = vpack.c.bf16 %v9506_v58, %v9491_v45  ;;  %v8690_v58 = vld [vmem:[#allocation6 + $0x1e8] sm:$0xff]  }
  0xf2   : > { %2501 = vmatprep.mubr.bf16.mxu1 %v2173_v8  ;;  %3465 = vmatpush1.bf16.msra.mxu1 %v8669_v7  ;;  %v9641_v7 = vld [vmem:[%s9296_s16 + $0xe8] sm:$0xff] }
  0xf3   : > { %3466 = vmatprep.subr.bf16.mxu1 %v14224_v0  ;;  %v8684_v8 = vld [vmem:[#allocation6 + $0x1d0] sm:$0xff]   ;;  %v1208_v38 = vpack.c.bf16 %v9641_v7, %v9638_v6 }
  0xf6   : > { %3467 = vmatpush1.bf16.msra.mxu1 %v8670_v16  ;;  %v9646_v16 = vld [vmem:[%s9296_s16 + $0xf1] sm:$0xff] }
  0xf7   : > { %1659 = vmatmul.mubr.bf16.gmra.mrb[36].mxu0 %v1203_v20  ;;  %3468 = vmatprep.subr.bf16.mxu1 %v14224_v0  ;;  %v9649_v20 = vld [vmem:[%s9296_s16 + $0xf9] sm:$0xff] }
  0xf8   : > { %1666 = vmatprep.mubr.bf16.mxu0 %v1276_v31  ;;  %v1281_v44 = vpack.c.bf16 %v9649_v20, %v9646_v16  ;;  %v2179_v31 = vpack.c.bf16 %v9514_v63, %v9497_v52  ;;  %v2107_v63 = vpack.c.bf16 %v9526_v19, %v9509_v59  ;;  %v9694_v59 = vld [vmem:[%s9296_s16 + $0x119] sm:$0xff] }
  0xf9   : > { %2502 = vmatmul.mubr.bf16.gmra.mrb[52].mxu1 %v2101_v15  ;;  %v9663_v15 = vld [vmem:[%s9296_s16 + $0xf0] sm:$0xff] }
  0xfa   : > { %2509 = vmatprep.mubr.bf16.mxu1 %v2174_v23  ;;  %3469 = vmatpush1.bf16.msra.mxu1 %v8672_v34  ;;  %v8688_v34 = vld [vmem:[#allocation6 + $0x1e0] sm:$0xff]  }
  0xfb   : > { %3470 = vmatprep.subr.bf16.mxu1 %v14224_v0  ;;  %v9666_v23 = vld [vmem:[%s9296_s16 + $0xf8] sm:$0xff] }
  0xfc   : > { %v1209_v45 = vpack.c.bf16 %v9666_v23, %v9663_v15 }
  0xfe   : > { %3471 = vmatpush1.bf16.msra.mxu1 %v8673_v46  ;;  %v9669_v46 = vld [vmem:[%s9296_s16 + $0x101] sm:$0xff] }
  0xff   : > { %1667 = vmatmul.mubr.bf16.gmra.mrb[40].mxu0 %v1204_v35  ;;  %3472 = vmatprep.subr.bf16.mxu1 %v14224_v0  ;;  %v9672_v35 = vld [vmem:[%s9296_s16 + $0x109] sm:$0xff] }
 0x100   : > { %1674 = vmatprep.mubr.bf16.mxu0 %v1277_v50  ;;  %v1282_v52 = vpack.c.bf16 %v9672_v35, %v9669_v46  ;;  %v2180_v50 = vpack.c.bf16 %v9536_v11, %v9517_v1  ;;  %v8693_v11 = vld [vmem:[#allocation6 + $0x1f8] sm:$0xff]  }
 0x101   : > { %2510 = vmatmul.mubr.bf16.gmra.mrb[56].mxu1 %v2102_v26  ;;  %v9688_v26 = vld [vmem:[%s9296_s16 + $0x108] sm:$0xff] }
 0x102   : > { %2517 = vmatprep.mubr.bf16.mxu1 %v2175_v33  ;;  %3473 = vmatpush1.bf16.msra.mxu1 %v8675_v25  ;;  %v9685_v25 = vld [vmem:[%s9296_s16 + $0x100] sm:$0xff] }
 0x103   : > { %3474 = vmatprep.subr.bf16.mxu1 %v14224_v0  ;;  %v8691_v33 = vld [vmem:[#allocation6 + $0x1f0] sm:$0xff]   ;;  %v1210_v1 = vpack.c.bf16 %v9688_v26, %v9685_v25 }
 0x106   : > { %3475 = vmatpush1.bf16.msra.mxu1 %v8676_v47  ;;  %v9691_v47 = vld [vmem:[%s9296_s16 + $0x111] sm:$0xff] }
 0x107   : > { %1675 = vmatmul.mubr.bf16.gmra.mrb[44].mxu0 %v1205_v51  ;;  %3476 = vmatprep.subr.bf16.mxu1 %v14224_v0  ;;  %v1283_v19 = vpack.c.bf16 %v9694_v59, %v9691_v47  ;;  %v2108_v51 = vpack.c.bf16 %v9550_v17, %v9531_v9  ;;  %v2109_v17 = vpack.c.bf16 %v9572_v28, %v9553_v22 }
 0x108   : > { %1682 = vmatprep.mubr.bf16.mxu0 %v1278_v61  ;;  %v2181_v61 = vpack.c.bf16 %v9559_v24, %v9539_v14  ;;  %v2182_v24 = vpack.c.bf16 %v9580_v36, %v9562_v32  ;;  %v2110_v28 = vpack.c.bf16 %v9594_v41, %v9575_v30  ;;  %v2183_v36 = vpack.c.bf16 %v9602_v48, %v9583_v39 }
 0x109   : > { %2518 = vmatmul.mubr.bf16.gmra.mrb[60].mxu1 %v2103_v2  ;;  %v9706_v2 = vld [vmem:[%s9296_s16 + $0x110] sm:$0xff]  ;;  %v2111_v41 = vpack.c.bf16 %v9616_v55, %v9597_v42  ;;  %v2184_v48 = vpack.c.bf16 %v9624_v60, %v9605_v53  ;;  %v2112_v55 = vpack.c.bf16 %v9638_v6, %v9619_v56  ;;  %v2185_v60 = vpack.c.bf16 %v9646_v16, %v9627_v5 }
 0x10a   : > { %2525 = vmatprep.mubr.bf16.mxu1 %v2176_v43  ;;  %3477 = vmatpush1.bf16.msra.mxu1 %v8678_v40  ;;  %v9709_v40 = vld [vmem:[%s9296_s16 + $0x118] sm:$0xff]  ;;  %v9712_v43 = vld [vmem:[%s9296_s16 + $0x121] sm:$0xff]  ;;  %v2113_v6 = vpack.c.bf16 %v9663_v15, %v9641_v7  ;;  %v2186_v16 = vpack.c.bf16 %v9669_v46, %v9649_v20  ;;  %v2114_v15 = vpack.c.bf16 %v9685_v25, %v9666_v23 }
 0x10b   : > { %3478 = vmatprep.subr.bf16.mxu1 %v14224_v0  ;;  %v1211_v9 = vpack.c.bf16 %v9709_v40, %v9706_v2  ;;  %v2187_v46 = vpack.c.bf16 %v9691_v47, %v9672_v35  ;;  %v2115_v35 = vpack.c.bf16 %v9706_v2, %v9688_v26  ;;  %v9855_v26 = vld [vmem:[%s9296_s16 + $0x42] sm:$0xff] }
 0x10e   : > { %3479 = vmatpush1.bf16.msra.mxu1 %v8679_v62  ;;  %v9715_v62 = vld [vmem:[%s9296_s16 + $0x129] sm:$0xff] }
 0x10f   : > { %1683 = vmatmul.mubr.bf16.gmra.mrb[48].mxu0 %v1206_v3  ;;  %3480 = vmatprep.subr.bf16.mxu1 %v14224_v0  ;;  %v1284_v14 = vpack.c.bf16 %v9715_v62, %v9712_v43  ;;  %v9726_v3 = vld [vmem:[%s9296_s16 + $0x120] sm:$0xff] }
 0x110   : > { %1690 = vmatprep.mubr.bf16.mxu0 %v1279_v12  ;;  %v9729_v12 = vld [vmem:[%s9296_s16 + $0x128] sm:$0xff] }
 0x111   : > { %2526 = vmatmul.mubr.bf16.gmra.mrb[64].mxu1 %v2104_v18  ;;  %v9732_v18 = vld [vmem:[%s9296_s16 + $0x131] sm:$0xff]  ;;  %v1212_v22 = vpack.c.bf16 %v9729_v12, %v9726_v3 }
 0x112   : > { %2533 = vmatprep.mubr.bf16.mxu1 %v2177_v57  ;;  %3481 = vmatpush1.bf16.msra.mxu1 %v8680_v54  ;;  %v9735_v54 = vld [vmem:[%s9296_s16 + $0x139] sm:$0xff]  ;;  %v9746_v57 = vld [vmem:[%s9296_s16 + $0x130] sm:$0xff] }
 0x113   : > { %3482 = vmatprep.subr.bf16.mxu1 %v14224_v0  ;;  %v1285_v32 = vpack.c.bf16 %v9735_v54, %v9732_v18 }
 0x116   : > { %3483 = vmatpush1.bf16.msra.mxu1 %v8682_v13  ;;  %v9749_v13 = vld [vmem:[%s9296_s16 + $0x138] sm:$0xff] }
 0x117   : > { %1691 = vmatmul.mubr.bf16.gmra.mrb[52].mxu0 %v1207_v27  ;;  %3484 = vmatprep.subr.bf16.mxu1 %v14224_v0  ;;  %v9752_v27 = vld [vmem:[%s9296_s16 + $0x141] sm:$0xff]  ;;  %v1213_v30 = vpack.c.bf16 %v9749_v13, %v9746_v57 }
 0x118   : > { %1698 = vmatprep.mubr.bf16.mxu0 %v1280_v21  ;;  %v9755_v21 = vld [vmem:[%s9296_s16 + $0x149] sm:$0xff] }
 0x119   : > { %2534 = vmatmul.mubr.bf16.gmra.mrb[68].mxu1 %v2105_v37  ;;  %v1286_v39 = vpack.c.bf16 %v9755_v21, %v9752_v27  ;;  %v9766_v37 = vld [vmem:[%s9296_s16 + $0x140] sm:$0xff] }
 0x11a   : > { %2541 = vmatprep.mubr.bf16.mxu1 %v2178_v4  ;;  %3485 = vmatpush1.bf16.msra.mxu1 %v8684_v8  ;;  %v9769_v4 = vld [vmem:[%s9296_s16 + $0x148] sm:$0xff]  ;;  %v9772_v8 = vld [vmem:[%s9296_s16 + $0x151] sm:$0xff] }
 0x11b   : > { %3486 = vmatprep.subr.bf16.mxu1 %v14224_v0  ;;  %v1214_v42 = vpack.c.bf16 %v9769_v4, %v9766_v37 }
 0x11e   : > { %3487 = vmatpush1.bf16.msra.mxu1 %v8686_v29  ;;  %v9775_v29 = vld [vmem:[%s9296_s16 + $0x159] sm:$0xff] }
 0x11f   : > { %1699 = vmatmul.mubr.bf16.gmra.mrb[56].mxu0 %v1208_v38  ;;  %3488 = vmatprep.subr.bf16.mxu1 %v14224_v0  ;;  %v1287_v53 = vpack.c.bf16 %v9775_v29, %v9772_v8  ;;  %v9786_v38 = vld [vmem:[%s9296_s16 + $0x150] sm:$0xff] }
 0x120   : > { %1706 = vmatprep.mubr.bf16.mxu0 %v1281_v44  ;;  %v9789_v44 = vld [vmem:[%s9296_s16 + $0x158] sm:$0xff] }
 0x121   : > { %2542 = vmatmul.mubr.bf16.gmra.mrb[72].mxu1 %v2106_v49  ;;  %v9792_v49 = vld [vmem:[%s9296_s16 + $0x161] sm:$0xff]  ;;  %v1215_v56 = vpack.c.bf16 %v9789_v44, %v9786_v38 }
 0x122   : > { %2549 = vmatprep.mubr.bf16.mxu1 %v2179_v31  ;;  %3489 = vmatpush1.bf16.msra.mxu1 %v8688_v34  ;;  %v9795_v31 = vld [vmem:[%s9296_s16 + $0x169] sm:$0xff]  ;;  %v9806_v34 = vld [vmem:[%s9296_s16 + $0x160] sm:$0xff] }
 0x123   : > { %3490 = vmatprep.subr.bf16.mxu1 %v14224_v0  ;;  %v1288_v5 = vpack.c.bf16 %v9795_v31, %v9792_v49 }
 0x126   : > { %3491 = vmatpush1.bf16.msra.mxu1 %v8690_v58  ;;  %v9815_v58 = vld [vmem:[%s9296_s16 + $0x179] sm:$0xff] }
 0x127   : > { %1707 = vmatmul.mubr.bf16.gmra.mrb[60].mxu0 %v1209_v45  ;;  %3492 = vmatprep.subr.bf16.mxu1 %v14224_v0  ;;  %v9809_v45 = vld [vmem:[%s9296_s16 + $0x168] sm:$0xff] }
 0x128   : > { %1714 = vmatprep.mubr.bf16.mxu0 %v1282_v52  ;;  %v9812_v52 = vld [vmem:[%s9296_s16 + $0x171] sm:$0xff]  ;;  %v1216_v7 = vpack.c.bf16 %v9809_v45, %v9806_v34 }
 0x129   : > { %2550 = vmatmul.mubr.bf16.gmra.mrb[76].mxu1 %v2107_v63  ;;  %v1289_v20 = vpack.c.bf16 %v9815_v58, %v9812_v52  ;;  %v9826_v63 = vld [vmem:[%s9296_s16 + $0x170] sm:$0xff] }
 0x12a   : > { %2557 = vmatprep.mubr.bf16.mxu1 %v2180_v50  ;;  %3493 = vmatpush1.bf16.msra.mxu1 %v8691_v33  ;;  %v9829_v50 = vld [vmem:[%s9296_s16 + $0x178] sm:$0xff] }
 0x12b   : > { %3494 = vmatprep.subr.bf16.mxu1 %v14224_v0  ;;  %v2196_v33 = vld [vmem:[%s9296_s16 + $0x1a] sm:$0xff]  ;;  %v1217_v23 = vpack.c.bf16 %v9829_v50, %v9826_v63 }
 0x12e   : > { %3495 = vmatpush1.bf16.msra.mxu1 %v8693_v11  ;;  %v2188_v11 = vpack.c.bf16 %v9712_v43, %v9694_v59 }
 0x12f   : > { %1715 = vmatmul.mubr.bf16.gmra.mrb[64].mxu0 %v1210_v1  ;;  %v2197_v1 = vld [vmem:[%s9296_s16 + $0x22] sm:$0xff] }
 0x130   : > { %1722 = vmatprep.mubr.bf16.mxu0 %v1283_v19  ;;  %v2244_v25 = vpack.c.bf16 %v2197_v1, %v2196_v33  ;;  %v8692_v33 = vld [vmem:[#allocation6 + $0x228] sm:$0xff]   ;;  %v2191_v1 = vpack.c.bf16 %v9772_v8, %v9755_v21 }
 0x131   : > { %2558 = vmatmul.mubr.bf16.gmra.mrb[80].mxu1 %v2108_v51 }
 0x132   : > { %2565 = vmatprep.mubr.bf16.mxu1 %v2181_v61 }
 0x137   : > { %1723 = vmatmul.mubr.bf16.gmra.mrb[68].mxu0 %v1211_v9  ;;  %v2198_v9 = vld [vmem:[%s9296_s16 + $0x2a] sm:$0xff] }
 0x138   : > { %1730 = vmatprep.mubr.bf16.mxu0 %v1284_v14  ;;  %v9849_v14 = vld [vmem:[%s9296_s16 + $0x32] sm:$0xff] }
 0x139   : > { %2566 = vmatmul.mubr.bf16.gmra.mrb[84].mxu1 %v2109_v17  ;;  %v9852_v17 = vld [vmem:[%s9296_s16 + $0x3a] sm:$0xff]  ;;  %v2245_v2 = vpack.c.bf16 %v9849_v14, %v2198_v9 }
 0x13a   : > { %2573 = vmatprep.mubr.bf16.mxu1 %v2182_v24  ;;  %v2246_v59 = vpack.c.bf16 %v9855_v26, %v9852_v17  ;;  %v2116_v24 = vpack.c.bf16 %v9726_v3, %v9709_v40  ;;  %v9880_v40 = vld [vmem:[%s9296_s16 + $0x5a] sm:$0xff]  ;;  %v9883_v3 = vld [vmem:[%s9296_s16 + $0x62] sm:$0xff] }
 0x13b   : > { %v8694_v9 = vld [vmem:[#allocation6 + $0x230] sm:$0xff]  }
 0x13f   : > { %1731 = vmatmul.mubr.bf16.gmra.mrb[72].mxu0 %v1212_v22  ;;  %v8683_v22 = vld [vmem:[#allocation6 + $0x208] sm:$0xff]  }
 0x140   : > { %1738 = vmatprep.mubr.bf16.mxu0 %v1285_v32 }
 0x141   : > { %2574 = vmatmul.mubr.bf16.gmra.mrb[88].mxu1 %v2110_v28  ;;  %v2189_v28 = vpack.c.bf16 %v9732_v18, %v9715_v62  ;;  %v8685_v62 = vld [vmem:[#allocation6 + $0x210] sm:$0xff]  }
 0x142   : > { %2581 = vmatprep.mubr.bf16.mxu1 %v2183_v36 }
 0x147   : > { %1739 = vmatmul.mubr.bf16.gmra.mrb[76].mxu0 %v1213_v30 }
 0x148   : > { %1746 = vmatprep.mubr.bf16.mxu0 %v1286_v39  ;;  %v9874_v39 = vld [vmem:[%s9296_s16 + $0x4a] sm:$0xff] }
 0x149   : > { %2582 = vmatmul.mubr.bf16.gmra.mrb[92].mxu1 %v2111_v41  ;;  %v9877_v41 = vld [vmem:[%s9296_s16 + $0x52] sm:$0xff] }
 0x14a   : > { %2589 = vmatprep.mubr.bf16.mxu1 %v2184_v48  ;;  %v2247_v18 = vpack.c.bf16 %v9877_v41, %v9874_v39 }
 0x14f   : > { %1747 = vmatmul.mubr.bf16.gmra.mrb[80].mxu0 %v1214_v42  ;;  %v2117_v42 = vpack.c.bf16 %v9746_v57, %v9729_v12  ;;  %v9908_v12 = vld [vmem:[%s9296_s16 + $0x7a] sm:$0xff]  ;;  %v9911_v57 = vld [vmem:[%s9296_s16 + $0x82] sm:$0xff] }
 0x150   : > { %1754 = vmatprep.mubr.bf16.mxu0 %v1287_v53 }
 0x151   : > { %2590 = vmatmul.mubr.bf16.gmra.mrb[96].mxu1 %v2112_v55  ;;  %v8687_v55 = vld [vmem:[#allocation6 + $0x218] sm:$0xff]  }
 0x152   : > { %2597 = vmatprep.mubr.bf16.mxu1 %v2185_v60  ;;  %v2190_v60 = vpack.c.bf16 %v9752_v27, %v9735_v54  ;;  %v2250_v27 = vpack.c.bf16 %v9911_v57, %v9908_v12 }
 0x157   : > { %1755 = vmatmul.mubr.bf16.gmra.mrb[84].mxu0 %v1215_v56 }
 0x158   : > { %1762 = vmatprep.mubr.bf16.mxu0 %v1288_v5 }
 0x159   : > { %2598 = vmatmul.mubr.bf16.gmra.mrb[100].mxu1 %v2113_v6  ;;  %v9902_v6 = vld [vmem:[%s9296_s16 + $0x6a] sm:$0xff] }
 0x15a   : > { %2605 = vmatprep.mubr.bf16.mxu1 %v2186_v16  ;;  %v9905_v16 = vld [vmem:[%s9296_s16 + $0x72] sm:$0xff] }
 0x15b   : > { %v2249_v54 = vpack.c.bf16 %v9905_v16, %v9902_v6 }
 0x15f   : > { %1763 = vmatmul.mubr.bf16.gmra.mrb[88].mxu0 %v1216_v7  ;;  %v8689_v7 = vld [vmem:[#allocation6 + $0x220] sm:$0xff]  }
 0x160   : > { %1770 = vmatprep.mubr.bf16.mxu0 %v1289_v20 }
 0x161   : > { %2606 = vmatmul.mubr.bf16.gmra.mrb[104].mxu1 %v2114_v15  ;;  %v2118_v15 = vpack.c.bf16 %v9766_v37, %v9749_v13  ;;  %v9937_v13 = vld [vmem:[%s9296_s16 + $0x9a] sm:$0xff]  ;;  %v9940_v37 = vld [vmem:[%s9296_s16 + $0xa2] sm:$0xff] }
 0x162   : > { %2613 = vmatprep.mubr.bf16.mxu1 %v2187_v46 }
 0x163   : > { %v9835_v19 = vpop.f32.mrb[0].mxu1 }
 0x164   : > { %v9839_v47 = vpop.f32.mrb[1].mxu1 }
 0x165   : > { %v9843_v51 = vpop.f32.mrb[2].mxu1 }
 0x166   : > { %v9845_v61 = vpop.f32.mrb[3].mxu1 }
 0x167   : > { %1771 = vmatmul.mubr.bf16.gmra.mrb[92].mxu0 %v1217_v23 }
 0x168   : > { %8144 = vmatprep.mubr.bf16.mxu0 %v2244_v25 }
 0x169   : > { %2614 = vmatmul.mubr.bf16.gmra.mrb[108].mxu1 %v2115_v35  ;;  %v9931_v35 = vld [vmem:[%s9296_s16 + $0x8a] sm:$0xff] }
 0x16a   : > { %2621 = vmatprep.mubr.bf16.mxu1 %v2188_v11  ;;  %v9934_v11 = vld [vmem:[%s9296_s16 + $0x92] sm:$0xff] }
 0x16b   : > { %v9860_v43 = vpop.f32.mrb[4].mxu1 }
 0x16c   : > { %v9864_v32 = vpop.f32.mrb[5].mxu1 }
 0x16d   : > { %v9868_v36 = vpop.f32.mrb[6].mxu1 }
 0x16e   : > { %v9870_v30 = vpop.f32.mrb[7].mxu1 }
 0x16f   : > { %8145 = vmatmul.mubr.bf16.vlgmr.msra.gmra.mrb[96].mxu0 %v2245_v2 }
 0x170   : > { %8193 = vmatpush3.bf16.msra.mxu0 %v9533_v10  ;;  %8148 = vmatprep.mubr.bf16.mxu0 %v2246_v59  ;;  %v2248_v10 = vpack.c.bf16 %v9883_v3, %v9880_v40  ;;  %v2251_v59 = vpack.c.bf16 %v9934_v11, %v9931_v35 }
 0x171   : > { %2622 = vmatmul.mubr.bf16.gmra.mrb[112].mxu1 %v2116_v24  ;;  %8194 = vmatprep.subr.bf16.mxu0 %v8683_v22 }
 0x172   : > { %2629 = vmatprep.mubr.bf16.mxu1 %v2189_v28 }
 0x173   : > { %v9889_v48 = vpop.f32.mrb[8].mxu1 }
 0x174   : > { %8195 = vmatpush3.bf16.msra.mxu0 %v8683_v22  ;;  %v9893_v53 = vpop.f32.mrb[9].mxu1  ;;  %v2252_v22 = vpack.c.bf16 %v9940_v37, %v9937_v13 }
 0x175   : > { %8196 = vmatprep.subr.bf16.mxu0 %v8685_v62  ;;  %v9897_v56 = vpop.f32.mrb[10].mxu1 }
 0x176   : > { %v9899_v5 = vpop.f32.mrb[11].mxu1 }
 0x177   : > { %8149 = vmatmul.mubr.bf16.gmra.mrb[100].mxu0 %v2247_v18  ;;  %v2119_v18 = vpack.c.bf16 %v9786_v38, %v9769_v4  ;;  %v9971_v4 = vld [vmem:[%s9296_s16 + $0xba] sm:$0xff]  ;;  %v9974_v38 = vld [vmem:[%s9296_s16 + $0xc2] sm:$0xff] }
 0x178   : > { %8152 = vmatprep.mubr.bf16.mxu0 %v2248_v10  ;;  %8197 = vmatpush3.bf16.msra.mxu0 %v8685_v62 }
 0x179   : > { %2630 = vmatmul.mubr.bf16.gmra.mrb[116].mxu1 %v2117_v42  ;;  %8198 = vmatprep.subr.bf16.mxu0 %v8687_v55  ;;  %v8695_v42 = vld [vmem:[#allocation6 + $0x238] sm:$0xff]  }
 0x17a   : > { %2637 = vmatprep.mubr.bf16.mxu1 %v2190_v60 }
 0x17b   : > { %v9917_v20 = vpop.f32.mrb[12].mxu1 }
 0x17c   : > { %8199 = vmatpush3.bf16.msra.mxu0 %v8687_v55  ;;  %v9921_v46 = vpop.f32.mrb[13].mxu1  ;;  %v2192_v55 = vpack.c.bf16 %v9792_v49, %v9775_v29 }
 0x17d   : > { %8200 = vmatprep.subr.bf16.mxu0 %v8689_v7  ;;  %v9926_v23 = vpop.f32.mrb[14].mxu1 }
 0x17e   : > { %v9928_v25 = vpop.f32.mrb[15].mxu1 }
 0x17f   : > { %8153 = vmatmul.mubr.bf16.gmra.mrb[104].mxu0 %v2249_v54  ;;  %v9968_v54 = vld [vmem:[%s9296_s16 + $0xb2] sm:$0xff] }
 0x180   : > { %8156 = vmatprep.mubr.bf16.mxu0 %v2250_v27  ;;  %8201 = vmatpush3.bf16.msra.mxu0 %v8689_v7 }
 0x181   : > { %2638 = vmatmul.mubr.bf16.gmra.mrb[120].mxu1 %v2118_v15  ;;  %8202 = vmatprep.subr.bf16.mxu0 %v8692_v33 }
 0x182   : > { %v1588_v2 = vpop.f32.mrb[0].mxu0  ;;  %2645 = vmatprep.mubr.bf16.mxu1 %v2191_v1  ;;  %v2254_v1 = vpack.c.bf16 %v9974_v38, %v9971_v4 }
 0x183   : > { %v1814_v21 = vadd.f32 %v9839_v47, %v1588_v2  ;;  %v1590_v8 = vpop.f32.mrb[1].mxu0 }
 0x184   : > { %v1591_v24 = vpop.f32.mrb[2].mxu0  ;;  %v9947_v28 = vpop.f32.mrb[16].mxu1  ;;  %8203 = vmatpush3.bf16.msra.mxu0 %v8692_v33 }
 0x185   : > { %2004 = vst [vmem:[%s9949_s26] sm:$0xff] %v1814_v21  ;;  %v1817_v47 = vadd.f32 %v9845_v61, %v1591_v24  ;;  %v1593_v62 = vpop.f32.mrb[3].mxu0  ;;  %v9955_v10 = vpop.f32.mrb[17].mxu1  ;;  %8204 = vmatprep.subr.bf16.mxu0 %v8694_v9  ;;  %v9965_v61 = vld [vmem:[%s9296_s16 + $0xaa] sm:$0xff] }
 0x186   : > { %v9959_v60 = vpop.f32.mrb[18].mxu1  ;;  %v2253_v15 = vpack.c.bf16 %v9968_v54, %v9965_v61 }
 0x187   : > { %2005 = vst [vmem:[%s9949_s26 + $0x8] sm:$0xff] %v1817_v47  ;;  %8157 = vmatmul.mubr.bf16.gmra.mrb[108].mxu0 %v2251_v59  ;;  %v9962_v7 = vpop.f32.mrb[19].mxu1  ;;  %v2193_v59 = vpack.c.bf16 %v9812_v52, %v9795_v31  ;;  %v10001_v47 = vld [vmem:[%s9296_s16 + $0xd2] sm:$0xff] }
 0x188   : > { %8160 = vmatprep.mubr.bf16.mxu0 %v2252_v22  ;;  %8205 = vmatpush3.bf16.msra.mxu0 %v8694_v9 }
 0x189   : > { %2646 = vmatmul.mubr.bf16.gmra.mrb[124].mxu1 %v2119_v18  ;;  %8206 = vmatprep.subr.bf16.mxu0 %v8695_v42 }
 0x18a   : > { %v1596_v29 = vpop.f32.mrb[4].mxu0  ;;  %2653 = vmatprep.mubr.bf16.mxu1 %v2192_v55 }
 0x18b   : > { %v1822_v49 = vadd.f32 %v9835_v19, %v1596_v29  ;;  %v1598_v27 = vpop.f32.mrb[5].mxu0  ;;  %v2120_v19 = vpack.c.bf16 %v9806_v34, %v9789_v44  ;;  %v10004_v44 = vld [vmem:[%s9296_s16 + $0xda] sm:$0xff]  ;;  %v10007_v34 = vld [vmem:[%s9296_s16 + $0xe2] sm:$0xff] }
 0x18c   : > { %v1599_v33 = vpop.f32.mrb[6].mxu0  ;;  %v9981_v9 = vpop.f32.mrb[20].mxu1  ;;  %8207 = vmatpush3.bf16.msra.mxu0 %v8695_v42  ;;  %v2169_v42 = vld [vmem:[%s9296_s16 + $0x181] sm:$0xff]  ;;  %v2256_v29 = vpack.c.bf16 %v10007_v34, %v10004_v44 }
 0x18d   : > { %2006 = vst [vmem:[%s9949_s26 + $0x10] sm:$0xff] %v1822_v49  ;;  %v1825_v2 = vadd.f32 %v9843_v51, %v1599_v33  ;;  %v1601_v21 = vpop.f32.mrb[7].mxu0  ;;  %v9987_v8 = vpop.f32.mrb[21].mxu1  ;;  %4809 = vmatprep.subr.bf16.mxu0 %v14224_v0  ;;  %v9998_v51 = vld [vmem:[%s9296_s16 + $0xca] sm:$0xff] }
 0x18e   : > { %v9992_v24 = vpop.f32.mrb[22].mxu1  ;;  %v2255_v18 = vpack.c.bf16 %v10001_v47, %v9998_v51 }
 0x18f   : > { %2007 = vst [vmem:[%s9949_s26 + $0x18] sm:$0xff] %v1825_v2  ;;  %8161 = vmatmul.mubr.bf16.gmra.mrb[112].mxu0 %v2253_v15  ;;  %v9995_v22 = vpop.f32.mrb[23].mxu1 }
 0x190   : > { %8164 = vmatprep.mubr.bf16.mxu0 %v2254_v1  ;;  %v2194_v1 = vpack.c.bf16 %v2169_v42, %v9815_v58  ;;  %v2171_v42 = vld [vmem:[%s9296_s16 + $0x191] sm:$0xff] }
 0x191   : > { %2654 = vmatmul.mubr.bf16.gmra.mrb[128].mxu1 %v2120_v19  ;;  %v10030_v19 = vld [vmem:[%s9296_s16 + $0xea] sm:$0xff] }
 0x192   : > { %v1604_v62 = vpop.f32.mrb[8].mxu0  ;;  %2661 = vmatprep.mubr.bf16.mxu1 %v2193_v59  ;;  %v2097_v59 = vld [vmem:[%s9296_s16 + $0x180] sm:$0xff] }
 0x193   : > { %v1830_v31 = vadd.f32 %v9864_v32, %v1604_v62  ;;  %v1606_v52 = vpop.f32.mrb[9].mxu0  ;;  %v2121_v32 = vpack.c.bf16 %v9826_v63, %v9809_v45  ;;  %v10036_v45 = vld [vmem:[%s9296_s16 + $0xfa] sm:$0xff]  ;;  %v10039_v63 = vld [vmem:[%s9296_s16 + $0x102] sm:$0xff] }
 0x194   : > { %v1607_v55 = vpop.f32.mrb[10].mxu0  ;;  %v10015_v49 = vpop.f32.mrb[24].mxu1  ;;  %14414 = vst [vmem:[#allocation13_spill] sm:$0xff] %v10039_v63 }
 0x195   : > { %2008 = vst [vmem:[%s9949_s26 + $0x20] sm:$0xff] %v1830_v31  ;;  %v1833_v27 = vadd.f32 %v9870_v30, %v1607_v55  ;;  %v1609_v15 = vpop.f32.mrb[11].mxu0  ;;  %v10021_v33 = vpop.f32.mrb[25].mxu1  ;;  %v10033_v30 = vld [vmem:[%s9296_s16 + $0xf2] sm:$0xff] }
 0x196   : > { %v10024_v2 = vpop.f32.mrb[26].mxu1  ;;  %v2257_v52 = vpack.c.bf16 %v10033_v30, %v10030_v19 }
 0x197   : > { %2009 = vst [vmem:[%s9949_s26 + $0x28] sm:$0xff] %v1833_v27  ;;  %8165 = vmatmul.mubr.bf16.gmra.mrb[116].mxu0 %v2255_v18  ;;  %v10027_v21 = vpop.f32.mrb[27].mxu1  ;;  %v2170_v18 = vld [vmem:[%s9296_s16 + $0x189] sm:$0xff] }
 0x198   : > { %8168 = vmatprep.mubr.bf16.mxu0 %v2256_v29  ;;  %v2258_v29 = vpack.c.bf16 %v10039_v63, %v10036_v45 }
 0x199   : > { %2662 = vmatmul.mubr.bf16.gmra.mrb[132].mxu1 %v2121_v32  ;;  %v2122_v32 = vpack.c.bf16 %v2097_v59, %v9829_v50  ;;  %v10068_v50 = vld [vmem:[%s9296_s16 + $0x11a] sm:$0xff]  ;;  %v10071_v59 = vld [vmem:[%s9296_s16 + $0x122] sm:$0xff] }
 0x19a   : > { %v1612_v58 = vpop.f32.mrb[12].mxu0  ;;  %2669 = vmatprep.mubr.bf16.mxu1 %v2194_v1  ;;  %14419 = vst [vmem:[#allocation18_spill] sm:$0xff] %v10071_v59  ;;  %v2260_v63 = vpack.c.bf16 %v10071_v59, %v10068_v50 }
 0x19b   : > { %v1838_v62 = vadd.f32 %v9860_v43, %v1612_v58  ;;  %v1614_v31 = vpop.f32.mrb[13].mxu0  ;;  %v2195_v58 = vpack.c.bf16 %v2171_v42, %v2170_v18  ;;  %v2098_v42 = vld [vmem:[%s9296_s16 + $0x188] sm:$0xff] }
 0x19c   : > { %v1615_v55 = vpop.f32.mrb[14].mxu0  ;;  %v10049_v27 = vpop.f32.mrb[28].mxu1 }
 0x19d   : > { %14415 = vst [vmem:[#allocation14_spill] sm:$0xff] %v10049_v27  ;;  %2010 = vst [vmem:[%s9949_s26 + $0x30] sm:$0xff] %v1838_v62  ;;  %v1841_v15 = vadd.f32 %v9868_v36, %v1615_v55  ;;  %v1617_v43 = vpop.f32.mrb[15].mxu0  ;;  %v10054_v1 = vpop.f32.mrb[29].mxu1  ;;  %v10062_v62 = vld [vmem:[%s9296_s16 + $0x10a] sm:$0xff]  ;;  %v10065_v36 = vld [vmem:[%s9296_s16 + $0x112] sm:$0xff] }
 0x19e   : > { %v10056_v31 = vpop.f32.mrb[30].mxu1  ;;  %14417 = vst [vmem:[#allocation16_spill] sm:$0xff] %v10062_v62  ;;  %14418 = vst [vmem:[#allocation17_spill] sm:$0xff] %v10065_v36  ;;  %v2099_v55 = vld [vmem:[%s9296_s16 + $0x190] sm:$0xff] }
 0x19f   : > { %14416 = vst [vmem:[#allocation15_spill] sm:$0xff] %v10056_v31  ;;  %2011 = vst [vmem:[%s9949_s26 + $0x38] sm:$0xff] %v1841_v15  ;;  %8169 = vmatmul.mubr.bf16.gmra.mrb[120].mxu0 %v2257_v52  ;;  %v10059_v0 = vpop.f32.mrb[31].mxu1  ;;  %v3127_v43 = vld [vmem:[%s9296_s16 + $0x31] sm:$0xff]  ;;  %v3128_v31 = vld [vmem:[%s9296_s16 + $0x39] sm:$0xff] }
 0x1a0   : > { %8172 = vmatprep.mubr.bf16.mxu0 %v2258_v29  ;;  %v2259_v29 = vpack.c.bf16 %v10065_v36, %v10062_v62  ;;  %v3175_v36 = vpack.c.bf16 %v3128_v31, %v3127_v43  ;;  %v3056_v43 = vld [vmem:[%s9296_s16 + $0x38] sm:$0xff] }
 0x1a1   : > { %2670 = vmatmul.mubr.bf16.gmra.mrb[136].mxu1 %v2122_v32 }
 0x1a2   : > { %v1620_v18 = vpop.f32.mrb[16].mxu0  ;;  %2677 = vmatprep.mubr.bf16.mxu1 %v2195_v58 }
 0x1a3   : > { %v1846_v52 = vadd.f32 %v9893_v53, %v1620_v18  ;;  %v1622_v15 = vpop.f32.mrb[17].mxu0  ;;  %v2123_v18 = vpack.c.bf16 %v2099_v55, %v2098_v42  ;;  %v10103_v42 = vld [vmem:[%s9296_s16 + $0x142] sm:$0xff]  ;;  %v3055_v55 = vld [vmem:[%s9296_s16 + $0x30] sm:$0xff] }
 0x1a4   : > { %v1623_v32 = vpop.f32.mrb[18].mxu0  ;;  %v10082_v27 = vpop.f32.mrb[32].mxu1  ;;  %14425 = vst [vmem:[#allocation24_spill] sm:$0xff] %v10103_v42 }
 0x1a5   : > { %14420 = vst [vmem:[#allocation19_spill] sm:$0xff] %v10082_v27  ;;  %2012 = vst [vmem:[%s9949_s26 + $0x40] sm:$0xff] %v1846_v52  ;;  %v1849_v58 = vadd.f32 %v9899_v5, %v1623_v32  ;;  %v1625_v53 = vpop.f32.mrb[19].mxu0  ;;  %v10086_v15 = vpop.f32.mrb[33].mxu1  ;;  %v10094_v27 = vld [vmem:[%s9296_s16 + $0x12a] sm:$0xff]  ;;  %v10097_v52 = vld [vmem:[%s9296_s16 + $0x132] sm:$0xff] }
 0x1a6   : > { %v10088_v62 = vpop.f32.mrb[34].mxu1  ;;  %14423 = vst [vmem:[#allocation22_spill] sm:$0xff] %v10094_v27  ;;  %14424 = vst [vmem:[#allocation23_spill] sm:$0xff] %v10097_v52  ;;  %v10100_v5 = vld [vmem:[%s9296_s16 + $0x13a] sm:$0xff]  ;;  %v3130_v53 = vld [vmem:[%s9296_s16 + $0x49] sm:$0xff] }
 0x1a7   : > { %14421 = vst [vmem:[#allocation20_spill] sm:$0xff] %v10088_v62  ;;  %2013 = vst [vmem:[%s9949_s26 + $0x48] sm:$0xff] %v1849_v58  ;;  %8173 = vmatmul.mubr.bf16.gmra.mrb[124].mxu0 %v2259_v29  ;;  %v10091_v59 = vpop.f32.mrb[35].mxu1  ;;  %v3129_v58 = vld [vmem:[%s9296_s16 + $0x41] sm:$0xff]  ;;  %v2262_v62 = vpack.c.bf16 %v10103_v42, %v10100_v5 }
 0x1a8   : > { %14422 = vst [vmem:[#allocation21_spill] sm:$0xff] %v10091_v59  ;;  %8176 = vmatprep.mubr.bf16.mxu0 %v2260_v63  ;;  %v2261_v63 = vpack.c.bf16 %v10097_v52, %v10094_v27  ;;  %v3176_v52 = vpack.c.bf16 %v3130_v53, %v3129_v58  ;;  %v3057_v58 = vld [vmem:[%s9296_s16 + $0x40] sm:$0xff]  ;;  %v3058_v53 = vld [vmem:[%s9296_s16 + $0x48] sm:$0xff] }
 0x1a9   : > { %2678 = vmatmul.mubr.bf16.gmra.mrb[140].mxu1 %v2123_v18 }
 0x1aa   : > { %v1628_v31 = vpop.f32.mrb[20].mxu0  ;;  %3496 = vmatprep.mubr.bf16.mxu1 %v3175_v36 }
 0x1ab   : > { %v1854_v29 = vadd.f32 %v9889_v48, %v1628_v31  ;;  %v1630_v32 = vpop.f32.mrb[21].mxu0  ;;  %v3103_v31 = vpack.c.bf16 %v3056_v43, %v3055_v55  ;;  %v10135_v55 = vld [vmem:[%s9296_s16 + $0x162] sm:$0xff] }
 0x1ac   : > { %v1631_v18 = vpop.f32.mrb[22].mxu0  ;;  %v10114_v59 = vpop.f32.mrb[36].mxu1  ;;  %14431 = vst [vmem:[#allocation30_spill] sm:$0xff] %v10135_v55 }
 0x1ad   : > { %14426 = vst [vmem:[#allocation25_spill] sm:$0xff] %v10114_v59  ;;  %2014 = vst [vmem:[%s9949_s26 + $0x50] sm:$0xff] %v1854_v29  ;;  %v1857_v36 = vadd.f32 %v9897_v56, %v1631_v18  ;;  %v1633_v48 = vpop.f32.mrb[23].mxu0  ;;  %v10118_v32 = vpop.f32.mrb[37].mxu1  ;;  %v10126_v59 = vld [vmem:[%s9296_s16 + $0x14a] sm:$0xff]  ;;  %v10129_v29 = vld [vmem:[%s9296_s16 + $0x152] sm:$0xff] }
 0x1ae   : > { %14427 = vst [vmem:[#allocation26_spill] sm:$0xff] %v10118_v32  ;;  %v10120_v27 = vpop.f32.mrb[38].mxu1  ;;  %14430 = vst [vmem:[#allocation29_spill] sm:$0xff] %v10129_v29  ;;  %v10132_v56 = vld [vmem:[%s9296_s16 + $0x15a] sm:$0xff] }
 0x1af   : > { %14428 = vst [vmem:[#allocation27_spill] sm:$0xff] %v10120_v27  ;;  %2015 = vst [vmem:[%s9949_s26 + $0x58] sm:$0xff] %v1857_v36  ;;  %8177 = vmatmul.mubr.bf16.gmra.mrb[128].mxu0 %v2261_v63  ;;  %v10123_v42 = vpop.f32.mrb[39].mxu1  ;;  %v3131_v36 = vld [vmem:[%s9296_s16 + $0x51] sm:$0xff]  ;;  %v3132_v48 = vld [vmem:[%s9296_s16 + $0x59] sm:$0xff]  ;;  %v2264_v27 = vpack.c.bf16 %v10135_v55, %v10132_v56 }
 0x1b0   : > { %14429 = vst [vmem:[#allocation28_spill] sm:$0xff] %v10123_v42  ;;  %8180 = vmatprep.mubr.bf16.mxu0 %v2262_v62  ;;  %v2263_v62 = vpack.c.bf16 %v10129_v29, %v10126_v59  ;;  %v3177_v32 = vpack.c.bf16 %v3132_v48, %v3131_v36  ;;  %v3059_v36 = vld [vmem:[%s9296_s16 + $0x50] sm:$0xff]  ;;  %v3060_v48 = vld [vmem:[%s9296_s16 + $0x58] sm:$0xff] }
 0x1b1   : > { %3497 = vmatmul.mubr.bf16.vlgmr.msra.gmra.mrb[144].mxu1 %v3103_v31 }
 0x1b2   : > { %v1636_v43 = vpop.f32.mrb[24].mxu0  ;;  %3504 = vmatprep.mubr.bf16.mxu1 %v3176_v52 }
 0x1b3   : > { %v1862_v63 = vadd.f32 %v9921_v46, %v1636_v43  ;;  %v1638_v18 = vpop.f32.mrb[25].mxu0  ;;  %v3104_v43 = vpack.c.bf16 %v3058_v53, %v3057_v58  ;;  %v10167_v58 = vld [vmem:[%s9296_s16 + $0x182] sm:$0xff] }
 0x1b4   : > { %v1639_v31 = vpop.f32.mrb[26].mxu0  ;;  %v10146_v42 = vpop.f32.mrb[40].mxu1 }
 0x1b5   : > { %14432 = vst [vmem:[#allocation31_spill] sm:$0xff] %v10146_v42  ;;  %2016 = vst [vmem:[%s9949_s26 + $0x60] sm:$0xff] %v1862_v63  ;;  %v1865_v52 = vadd.f32 %v9928_v25, %v1639_v31  ;;  %v1641_v46 = vpop.f32.mrb[27].mxu0  ;;  %v10150_v18 = vpop.f32.mrb[41].mxu1  ;;  %v10158_v42 = vld [vmem:[%s9296_s16 + $0x16a] sm:$0xff]  ;;  %v10161_v63 = vld [vmem:[%s9296_s16 + $0x172] sm:$0xff] }
 0x1b6   : > { %14433 = vst [vmem:[#allocation32_spill] sm:$0xff] %v10150_v18  ;;  %v10152_v29 = vpop.f32.mrb[42].mxu1  ;;  %14436 = vst [vmem:[#allocation35_spill] sm:$0xff] %v10158_v42  ;;  %v10164_v25 = vld [vmem:[%s9296_s16 + $0x17a] sm:$0xff]  ;;  %v3134_v46 = vld [vmem:[%s9296_s16 + $0x69] sm:$0xff] }
 0x1b7   : > { %14434 = vst [vmem:[#allocation33_spill] sm:$0xff] %v10152_v29  ;;  %2017 = vst [vmem:[%s9949_s26 + $0x68] sm:$0xff] %v1865_v52  ;;  %8181 = vmatmul.mubr.bf16.gmra.mrb[132].mxu0 %v2263_v62  ;;  %v10155_v55 = vpop.f32.mrb[43].mxu1  ;;  %v3133_v52 = vld [vmem:[%s9296_s16 + $0x61] sm:$0xff]  ;;  %v2266_v29 = vpack.c.bf16 %v10167_v58, %v10164_v25 }
 0x1b8   : > { %14435 = vst [vmem:[#allocation34_spill] sm:$0xff] %v10155_v55  ;;  %8184 = vmatprep.mubr.bf16.mxu0 %v2264_v27  ;;  %14437 = vst [vmem:[#allocation36_spill] sm:$0xff] %v10161_v63  ;;  %v2265_v27 = vpack.c.bf16 %v10161_v63, %v10158_v42  ;;  %v3178_v18 = vpack.c.bf16 %v3134_v46, %v3133_v52 }
 0x1b9   : > { %3505 = vmatmul.mubr.bf16.gmra.mrb[148].mxu1 %v3104_v43 }
 0x1ba   : > { %v1644_v53 = vpop.f32.mrb[28].mxu0  ;;  %3512 = vmatprep.mubr.bf16.mxu1 %v3177_v32 }
 0x1bb   : > { %v1870_v62 = vadd.f32 %v9917_v20, %v1644_v53  ;;  %v1646_v31 = vpop.f32.mrb[29].mxu0  ;;  %v3105_v53 = vpack.c.bf16 %v3060_v48, %v3059_v36  ;;  %v3061_v36 = vld [vmem:[%s9296_s16 + $0x60] sm:$0xff]  ;;  %v3062_v48 = vld [vmem:[%s9296_s16 + $0x68] sm:$0xff] }
 0x1bc   : > { %v1647_v43 = vpop.f32.mrb[30].mxu0  ;;  %v10178_v55 = vpop.f32.mrb[44].mxu1 }
 0x1bd   : > { %14438 = vst [vmem:[#allocation37_spill] sm:$0xff] %v10178_v55  ;;  %2018 = vst [vmem:[%s9949_s26 + $0x70] sm:$0xff] %v1870_v62  ;;  %v1873_v32 = vadd.f32 %v9926_v23, %v1647_v43  ;;  %v1649_v20 = vpop.f32.mrb[31].mxu0  ;;  %v10182_v31 = vpop.f32.mrb[45].mxu1  ;;  %v10190_v62 = vld [vmem:[%s9296_s16 + $0x18a] sm:$0xff]  ;;  %v2243_v55 = vld [vmem:[%s9296_s16 + $0x192] sm:$0xff] }
 0x1be   : > { %v10184_v63 = vpop.f32.mrb[46].mxu1  ;;  %v2267_v43 = vpack.c.bf16 %v2243_v55, %v10190_v62 }
 0x1bf   : > { %14439 = vst [vmem:[#allocation38_spill] sm:$0xff] %v10184_v63  ;;  %2019 = vst [vmem:[%s9949_s26 + $0x78] sm:$0xff] %v1873_v32  ;;  %8185 = vmatmul.mubr.bf16.gmra.mrb[136].mxu0 %v2265_v27  ;;  %v10187_v42 = vpop.f32.mrb[47].mxu1  ;;  %v3135_v32 = vld [vmem:[%s9296_s16 + $0x71] sm:$0xff]  ;;  %v3136_v27 = vld [vmem:[%s9296_s16 + $0x79] sm:$0xff] }
 0x1c0   : > { %14440 = vst [vmem:[#allocation39_spill] sm:$0xff] %v10187_v42  ;;  %8188 = vmatprep.mubr.bf16.mxu0 %v2266_v29  ;;  %v3247_v29 = vpack.c.bf16 %v9852_v17, %v9849_v14  ;;  %v3106_v42 = vpack.c.bf16 %v3062_v48, %v3061_v36  ;;  %v3063_v17 = vld [vmem:[%s9296_s16 + $0x70] sm:$0xff]  ;;  %v3248_v48 = vpack.c.bf16 %v9874_v39, %v9855_v26 }
 0x1c1   : > { %3513 = vmatmul.mubr.bf16.gmra.mrb[152].mxu1 %v3105_v53 }
 0x1c2   : > { %v1652_v23 = vpop.f32.mrb[32].mxu0  ;;  %3520 = vmatprep.mubr.bf16.mxu1 %v3178_v18 }
 0x1c3   : > { %v1878_v52 = vadd.f32 %v9955_v10, %v1652_v23  ;;  %v1654_v46 = vpop.f32.mrb[33].mxu0  ;;  %v3179_v23 = vpack.c.bf16 %v3136_v27, %v3135_v32  ;;  %v3137_v32 = vld [vmem:[%s9296_s16 + $0x81] sm:$0xff]  ;;  %v3138_v27 = vld [vmem:[%s9296_s16 + $0x89] sm:$0xff] }
 0x1c4   : > { %v1655_v20 = vpop.f32.mrb[34].mxu0  ;;  %v10201_v63 = vpop.f32.mrb[48].mxu1 }
 0x1c5   : > { %2020 = vst [vmem:[%s9949_s26 + $0x80] sm:$0xff] %v1878_v52  ;;  %v1881_v18 = vadd.f32 %v9962_v7, %v1655_v20  ;;  %v1657_v53 = vpop.f32.mrb[35].mxu0  ;;  %v2497_v10 = vpop.f32.mrb[49].mxu1  ;;  %v3064_v52 = vld [vmem:[%s9296_s16 + $0x78] sm:$0xff] }
 0x1c6   : > { %v10205_v55 = vpop.f32.mrb[50].mxu1  ;;  %v3107_v53 = vpack.c.bf16 %v3064_v52, %v3063_v17  ;;  %v3180_v10 = vpack.c.bf16 %v3138_v27, %v3137_v32  ;;  %v3139_v17 = vld [vmem:[%s9296_s16 + $0x91] sm:$0xff]  ;;  %v3140_v52 = vld [vmem:[%s9296_s16 + $0x99] sm:$0xff] }
 0x1c7   : > { %2021 = vst [vmem:[%s9949_s26 + $0x88] sm:$0xff] %v1881_v18  ;;  %8189 = vmatmul.mubr.bf16.gmra.mrb[140].mxu0 %v2267_v43  ;;  %v2500_v46 = vpop.f32.mrb[51].mxu1  ;;  %v3249_v43 = vpack.c.bf16 %v9880_v40, %v9877_v41  ;;  %v3065_v40 = vld [vmem:[%s9296_s16 + $0x80] sm:$0xff] }
 0x1c8   : > { %8208 = vmatprep.mubr.bf16.mxu0 %v3247_v29 }
 0x1c9   : > { %3521 = vmatmul.mubr.bf16.gmra.mrb[156].mxu1 %v3106_v42 }
 0x1ca   : > { %v1660_v14 = vpop.f32.mrb[36].mxu0  ;;  %3528 = vmatprep.mubr.bf16.mxu1 %v3179_v23  ;;  %v3066_v23 = vld [vmem:[%s9296_s16 + $0x88] sm:$0xff] }
 0x1cb   : > { %v1886_v7 = vadd.f32 %v9947_v28, %v1660_v14  ;;  %v1662_v36 = vpop.f32.mrb[37].mxu0  ;;  %v3250_v14 = vpack.c.bf16 %v9902_v6, %v9883_v3  ;;  %v8696_v6 = vld [vmem:[#allocation8 + $0x80] sm:$0xff]  }
 0x1cc   : > { %v1663_v20 = vpop.f32.mrb[38].mxu0  ;;  %v10217_v29 = vpop.f32.mrb[52].mxu1  ;;  %v3251_v36 = vpack.c.bf16 %v9908_v12, %v9905_v16  ;;  %v8697_v16 = vld [vmem:[#allocation8] sm:$0xff]   ;;  %8256 = vmatprep.subr.bf16.mxu1 %v8696_v6 }
 0x1cd   : > { %2022 = vst [vmem:[%s9949_s26 + $0x90] sm:$0xff] %v1886_v7  ;;  %v1889_v42 = vadd.f32 %v9959_v60, %v1663_v20  ;;  %v1665_v18 = vpop.f32.mrb[39].mxu0  ;;  %v2505_v28 = vpop.f32.mrb[53].mxu1  ;;  %v3108_v20 = vpack.c.bf16 %v3066_v23, %v3065_v40  ;;  %8257 = vmatpush3.bf16.msra.mxu1 %v8696_v6  ;;  %v3253_v23 = vpack.c.bf16 %v9937_v13, %v9934_v11  ;;  %v8698_v13 = vld [vmem:[#allocation8 + $0x8] sm:$0xff]  }
 0x1ce   : > { %v10221_v26 = vpop.f32.mrb[54].mxu1  ;;  %v3068_v18 = vld [vmem:[%s9296_s16 + $0x98] sm:$0xff]  ;;  %v3255_v6 = vpack.c.bf16 %v9971_v4, %v9968_v54  ;;  %v3071_v4 = vld [vmem:[%s9296_s16 + $0xb0] sm:$0xff] }
 0x1cf   : > { %2023 = vst [vmem:[%s9949_s26 + $0x98] sm:$0xff] %v1889_v42  ;;  %8209 = vmatmul.mubr.bf16.vlgmr.msra.gmra.mrb[144].mxu0 %v3248_v48  ;;  %v2508_v39 = vpop.f32.mrb[55].mxu1 }
 0x1d0   : > { %8212 = vmatprep.mubr.bf16.mxu0 %v3249_v43  ;;  %v3181_v43 = vpack.c.bf16 %v3140_v52, %v3139_v17  ;;  %v3141_v39 = vld [vmem:[%s9296_s16 + $0xa1] sm:$0xff]  ;;  %4810 = vmatpush1.bf16.msra.mxu0 %v8697_v16 }
 0x1d1   : > { %3529 = vmatmul.mubr.bf16.gmra.mrb[160].mxu1 %v3107_v53 }
 0x1d2   : > { %v1668_v41 = vpop.f32.mrb[40].mxu0  ;;  %3536 = vmatprep.mubr.bf16.mxu1 %v3180_v10  ;;  %v3252_v10 = vpack.c.bf16 %v9931_v35, %v9911_v57 }
 0x1d3   : > { %v1894_v60 = vadd.f32 %v9987_v8, %v1668_v41  ;;  %v1670_v46 = vpop.f32.mrb[41].mxu0  ;;  %v3142_v41 = vld [vmem:[%s9296_s16 + $0xa9] sm:$0xff] }
 0x1d4   : > { %v1671_v7 = vpop.f32.mrb[42].mxu0  ;;  %v10233_v48 = vpop.f32.mrb[56].mxu1  ;;  %v14441_v46 = vmov 0   ;;  %v3182_v17 = vpack.c.bf16 %v3142_v41, %v3141_v39  ;;  %v3256_v41 = vpack.c.bf16 %v9998_v51, %v9974_v38 }
 0x1d5   : > { %2024 = vst [vmem:[%s9949_s26 + $0xa0] sm:$0xff] %v1894_v60  ;;  %v1897_v32 = vadd.f32 %v9995_v22, %v1671_v7  ;;  %v1673_v27 = vpop.f32.mrb[43].mxu0  ;;  %v2513_v8 = vpop.f32.mrb[57].mxu1  ;;  %v3067_v22 = vld [vmem:[%s9296_s16 + $0x90] sm:$0xff]  ;;  %4811 = vmatprep.subr.bf16.mxu0 %v14441_v46 }
 0x1d6   : > { %v10237_v42 = vpop.f32.mrb[58].mxu1  ;;  %v3109_v57 = vpack.c.bf16 %v3068_v18, %v3067_v22  ;;  %4812 = vmatpush1.bf16.msra.mxu0 %v8698_v13  ;;  %v3143_v8 = vld [vmem:[%s9296_s16 + $0xb1] sm:$0xff] }
 0x1d7   : > { %2025 = vst [vmem:[%s9949_s26 + $0xa8] sm:$0xff] %v1897_v32  ;;  %8213 = vmatmul.mubr.bf16.gmra.mrb[148].mxu0 %v3250_v14  ;;  %v2516_v3 = vpop.f32.mrb[59].mxu1  ;;  %v3070_v32 = vld [vmem:[%s9296_s16 + $0xa8] sm:$0xff]  ;;  %4813 = vmatprep.subr.bf16.mxu0 %v14441_v46 }
 0x1d8   : > { %8216 = vmatprep.mubr.bf16.mxu0 %v3251_v36  ;;  %v3069_v36 = vld [vmem:[%s9296_s16 + $0xa0] sm:$0xff] }
 0x1d9   : > { %3537 = vmatmul.mubr.bf16.gmra.mrb[164].mxu1 %v3108_v20  ;;  %v3254_v20 = vpack.c.bf16 %v9965_v61, %v9940_v37  ;;  %v3110_v22 = vpack.c.bf16 %v3070_v32, %v3069_v36  ;;  %v8701_v36 = vld [vmem:[#allocation8 + $0x88] sm:$0xff]   ;;  %v8702_v32 = vld [vmem:[#allocation8 + $0x20] sm:$0xff]  }
 0x1da   : > { %v1676_v12 = vpop.f32.mrb[44].mxu0  ;;  %3544 = vmatprep.mubr.bf16.mxu1 %v3181_v43  ;;  %v3144_v43 = vld [vmem:[%s9296_s16 + $0xb9] sm:$0xff]  ;;  %8258 = vmatprep.subr.bf16.mxu1 %v8701_v36 }
 0x1db   : > { %v1902_v53 = vadd.f32 %v9981_v9, %v1676_v12  ;;  %v1678_v28 = vpop.f32.mrb[45].mxu0  ;;  %v3183_v37 = vpack.c.bf16 %v3144_v43, %v3143_v8  ;;  %v3148_v8 = vld [vmem:[%s9296_s16 + $0xd9] sm:$0xff]  ;;  %v3258_v43 = vpack.c.bf16 %v10030_v19, %v10007_v34  ;;  %8259 = vmatpush3.bf16.msra.mxu1 %v8701_v36 }
 0x1dc   : > { %v1679_v40 = vpop.f32.mrb[46].mxu0  ;;  %v10249_v60 = vpop.f32.mrb[60].mxu1  ;;  %v3072_v28 = vld [vmem:[%s9296_s16 + $0xb8] sm:$0xff] }
 0x1dd   : > { %2026 = vst [vmem:[%s9949_s26 + $0xb0] sm:$0xff] %v1902_v53  ;;  %v1905_v9 = vadd.f32 %v9992_v24, %v1679_v40  ;;  %v1681_v14 = vpop.f32.mrb[47].mxu0  ;;  %v2521_v35 = vpop.f32.mrb[61].mxu1  ;;  %v3145_v40 = vld [vmem:[%s9296_s16 + $0xc1] sm:$0xff] }
 0x1de   : > { %v10254_v52 = vpop.f32.mrb[62].mxu1  ;;  %v3257_v14 = vpack.c.bf16 %v10004_v44, %v10001_v47  ;;  %v8700_v47 = vld [vmem:[#allocation8 + $0x18] sm:$0xff]   ;;  %v3073_v44 = vld [vmem:[%s9296_s16 + $0xc0] sm:$0xff] }
 0x1df   : > { %2027 = vst [vmem:[%s9949_s26 + $0xb8] sm:$0xff] %v1905_v9  ;;  %8217 = vmatmul.mubr.bf16.gmra.mrb[152].mxu0 %v3252_v10  ;;  %v2524_v11 = vpop.f32.mrb[63].mxu1  ;;  %v8699_v10 = vld [vmem:[#allocation8 + $0x10] sm:$0xff]  }
 0x1e0   : > { %8220 = vmatprep.mubr.bf16.mxu0 %v3253_v23  ;;  %v3146_v23 = vld [vmem:[%s9296_s16 + $0xc9] sm:$0xff]  ;;  %4814 = vmatpush1.bf16.msra.mxu0 %v8699_v10  ;;  %v3149_v10 = vld [vmem:[%s9296_s16 + $0xe1] sm:$0xff] }
 0x1e1   : > { %3545 = vmatmul.mubr.bf16.gmra.mrb[168].mxu1 %v3109_v57  ;;  %4815 = vmatprep.subr.bf16.mxu0 %v14441_v46  ;;  %v3184_v38 = vpack.c.bf16 %v3146_v23, %v3145_v40  ;;  %v14444_v40 = vld [vmem:[#allocation16_spill] sm:$0xff] }
 0x1e2   : > { %v1684_v7 = vpop.f32.mrb[48].mxu0  ;;  %3552 = vmatprep.mubr.bf16.mxu1 %v3182_v17  ;;  %v3111_v17 = vpack.c.bf16 %v3072_v28, %v3071_v4 }
 0x1e3   : > { %v1910_v24 = vadd.f32 %v10021_v33, %v1684_v7  ;;  %v1686_v27 = vpop.f32.mrb[49].mxu0 }
 0x1e4   : > { %v1687_v3 = vpop.f32.mrb[50].mxu0  ;;  %v10267_v16 = vpop.f32.mrb[64].mxu1  ;;  %4816 = vmatpush1.bf16.msra.mxu0 %v8700_v47 }
 0x1e5   : > { %2028 = vst [vmem:[%s9949_s26 + $0xc0] sm:$0xff] %v1910_v24  ;;  %v1913_v33 = vadd.f32 %v10027_v21, %v1687_v3  ;;  %v1689_v12 = vpop.f32.mrb[51].mxu0  ;;  %v2529_v18 = vpop.f32.mrb[65].mxu1  ;;  %4817 = vmatprep.subr.bf16.mxu0 %v14441_v46 }
 0x1e6   : > { %v10271_v61 = vpop.f32.mrb[66].mxu1 }
 0x1e7   : > { %2029 = vst [vmem:[%s9949_s26 + $0xc8] sm:$0xff] %v1913_v33  ;;  %8221 = vmatmul.mubr.bf16.gmra.mrb[156].mxu0 %v3254_v20  ;;  %v2532_v53 = vpop.f32.mrb[67].mxu1  ;;  %v3147_v20 = vld [vmem:[%s9296_s16 + $0xd1] sm:$0xff] }
 0x1e8   : > { %8224 = vmatprep.mubr.bf16.mxu0 %v3255_v6  ;;  %v3259_v6 = vpack.c.bf16 %v10036_v45, %v10033_v30  ;;  %4818 = vmatpush1.bf16.msra.mxu0 %v8702_v32  ;;  %v3075_v30 = vld [vmem:[%s9296_s16 + $0xd0] sm:$0xff]  ;;  %v3076_v45 = vld [vmem:[%s9296_s16 + $0xd8] sm:$0xff]  ;;  %v3077_v32 = vld [vmem:[%s9296_s16 + $0xe0] sm:$0xff] }
 0x1e9   : > { %3553 = vmatmul.mubr.bf16.gmra.mrb[172].mxu1 %v3110_v22  ;;  %4819 = vmatprep.subr.bf16.mxu0 %v14441_v46  ;;  %v8703_v53 = vld [vmem:[#allocation8 + $0x28] sm:$0xff]   ;;  %v3113_v47 = vpack.c.bf16 %v3076_v45, %v3075_v30  ;;  %v14450_v30 = vld [vmem:[#allocation21_spill] sm:$0xff] }
 0x1ea   : > { %v1692_v54 = vpop.f32.mrb[52].mxu0  ;;  %3560 = vmatprep.mubr.bf16.mxu1 %v3183_v37  ;;  %v3185_v37 = vpack.c.bf16 %v3148_v8, %v3147_v20  ;;  %v8704_v20 = vld [vmem:[#allocation8 + $0x30] sm:$0xff]  }
 0x1eb   : > { %v10277_v21 = vadd.f32 %v10015_v49, %v1692_v54  ;;  %v1694_v39 = vpop.f32.mrb[53].mxu0  ;;  %v14442_v54 = vld [vmem:[#allocation14_spill] sm:$0xff] }
 0x1ec   : > { %v1695_v9 = vpop.f32.mrb[54].mxu0  ;;  %v10285_v57 = vpop.f32.mrb[68].mxu1  ;;  %v3150_v39 = vld [vmem:[%s9296_s16 + $0xe9] sm:$0xff]  ;;  %4820 = vmatpush1.bf16.msra.mxu0 %v8703_v53 }
 0x1ed   : > { %v10288_v35 = vadd.f32 %v10024_v2, %v1695_v9  ;;  %v1697_v49 = vpop.f32.mrb[55].mxu0  ;;  %v2537_v11 = vpop.f32.mrb[69].mxu1  ;;  %v3074_v2 = vld [vmem:[%s9296_s16 + $0xc8] sm:$0xff]  ;;  %4821 = vmatprep.subr.bf16.mxu0 %v14441_v46 }
 0x1ee   : > { %v10291_v51 = vpop.f32.mrb[70].mxu1  ;;  %v3112_v22 = vpack.c.bf16 %v3074_v2, %v3073_v44  ;;  %v14445_v49 = vld [vmem:[#allocation17_spill] sm:$0xff]  ;;  %v14446_v11 = vld [vmem:[#allocation15_spill] sm:$0xff] }
 0x1ef   : > { %8225 = vmatmul.mubr.bf16.gmra.mrb[160].mxu0 %v3256_v41  ;;  %v2540_v13 = vpop.f32.mrb[71].mxu1  ;;  %v14443_v41 = vld [vmem:[#allocation13_spill] sm:$0xff] }
 0x1f0   : > { %8228 = vmatprep.mubr.bf16.mxu0 %v3257_v14  ;;  %v3260_v23 = vpack.c.bf16 %v14444_v40, %v14443_v41  ;;  %4822 = vmatpush1.bf16.msra.mxu0 %v8704_v20  ;;  %v8705_v41 = vld [vmem:[#allocation8 + $0x38] sm:$0xff]  }
 0x1f1   : > { %3561 = vmatmul.mubr.bf16.gmra.mrb[176].mxu1 %v3111_v17  ;;  %v3261_v17 = vpack.c.bf16 %v10068_v50, %v14445_v49  ;;  %4823 = vmatprep.subr.bf16.mxu0 %v14441_v46  ;;  %v8707_v49 = vld [vmem:[#allocation8 + $0x40] sm:$0xff]  }
 0x1f2   : > { %v1700_v7 = vpop.f32.mrb[56].mxu0  ;;  %3568 = vmatprep.mubr.bf16.mxu1 %v3184_v38 }
 0x1f3   : > { %v10296_v24 = vadd.f32 %v10054_v1, %v1700_v7  ;;  %v1702_v27 = vpop.f32.mrb[57].mxu0  ;;  %v3186_v7 = vpack.c.bf16 %v3150_v39, %v3149_v10 }
 0x1f4   : > { %v1703_v3 = vpop.f32.mrb[58].mxu0  ;;  %v10305_v33 = vpop.f32.mrb[72].mxu1  ;;  %v3078_v27 = vld [vmem:[%s9296_s16 + $0xe8] sm:$0xff]  ;;  %4824 = vmatpush1.bf16.msra.mxu0 %v8705_v41  ;;  %v14457_v41 = vld [vmem:[#allocation30_spill] sm:$0xff] }
 0x1f5   : > { %v1929_v12 = vadd.f32 %v10059_v0, %v1703_v3  ;;  %v1705_v1 = vpop.f32.mrb[59].mxu0  ;;  %v2545_v18 = vpop.f32.mrb[73].mxu1  ;;  %v3151_v3 = vld [vmem:[%s9296_s16 + $0xf1] sm:$0xff]  ;;  %v3114_v53 = vpack.c.bf16 %v3078_v27, %v3077_v32  ;;  %4825 = vmatprep.subr.bf16.mxu0 %v14441_v46 }
 0x1f6   : > { %v10308_v34 = vpop.f32.mrb[74].mxu1  ;;  %v14448_v1 = vld [vmem:[#allocation22_spill] sm:$0xff]  ;;  %v14453_v27 = vld [vmem:[#allocation29_spill] sm:$0xff] }
 0x1f7   : > { %2033 = vst [vmem:[%s9949_s26 + $0xe8] sm:$0xff] %v1929_v12  ;;  %8229 = vmatmul.mubr.bf16.gmra.mrb[164].mxu0 %v3258_v43  ;;  %v2548_v19 = vpop.f32.mrb[75].mxu1  ;;  %v14447_v12 = vld [vmem:[#allocation18_spill] sm:$0xff]  ;;  %v3265_v20 = vpack.c.bf16 %v10132_v56, %v14453_v27 }
 0x1f8   : > { %8232 = vmatprep.mubr.bf16.mxu0 %v3259_v6  ;;  %v3152_v6 = vld [vmem:[%s9296_s16 + $0xf9] sm:$0xff]  ;;  %4826 = vmatpush1.bf16.msra.mxu0 %v8707_v49  ;;  %v14459_v49 = vld [vmem:[#allocation36_spill] sm:$0xff] }
 0x1f9   : > { %3569 = vmatmul.mubr.bf16.gmra.mrb[180].mxu1 %v3112_v22  ;;  %v3262_v22 = vpack.c.bf16 %v14448_v1, %v14447_v12  ;;  %v14449_v19 = vld [vmem:[#allocation23_spill] sm:$0xff]  ;;  %4827 = vmatprep.subr.bf16.mxu0 %v14441_v46  ;;  %v8708_v56 = vld [vmem:[#allocation8 + $0x48] sm:$0xff]  }
 0x1fa   : > { %v1708_v0 = vpop.f32.mrb[60].mxu0  ;;  %3576 = vmatprep.mubr.bf16.mxu1 %v3185_v37 }
 0x1fb   : > { %v10315_v4 = vadd.f32 %v14442_v54, %v1708_v0  ;;  %v1710_v28 = vpop.f32.mrb[61].mxu0  ;;  %v3263_v0 = vpack.c.bf16 %v10100_v5, %v14449_v19  ;;  %v3079_v5 = vld [vmem:[%s9296_s16 + $0xf0] sm:$0xff] }
 0x1fc   : > { %v1711_v9 = vpop.f32.mrb[62].mxu0  ;;  %v10321_v14 = vpop.f32.mrb[76].mxu1  ;;  %v3187_v28 = vpack.c.bf16 %v3152_v6, %v3151_v3  ;;  %4828 = vmatpush1.bf16.msra.mxu0 %v8708_v56  ;;  %v14462_v56 = vld [vmem:[#allocation25_spill] sm:$0xff] }
 0x1fd   : > { %v10326_v38 = vadd.f32 %v14446_v11, %v1711_v9  ;;  %v1713_v13 = vpop.f32.mrb[63].mxu0  ;;  %v2553_v44 = vpop.f32.mrb[77].mxu1  ;;  %v8706_v9 = vld [vmem:[#allocation8 + $0x90] sm:$0xff]   ;;  %4829 = vmatprep.subr.bf16.mxu0 %v14441_v46 }
 0x1fe   : > { %v10329_v2 = vpop.f32.mrb[78].mxu1  ;;  %v3154_v44 = vld [vmem:[%s9296_s16 + $0x109] sm:$0xff]  ;;  %8260 = vmatprep.subr.bf16.mxu1 %v8706_v9 }
 0x1ff   : > { %8233 = vmatmul.mubr.bf16.gmra.mrb[168].mxu0 %v3260_v23  ;;  %v2556_v36 = vpop.f32.mrb[79].mxu1  ;;  %v3080_v23 = vld [vmem:[%s9296_s16 + $0xf8] sm:$0xff]  ;;  %8261 = vmatpush3.bf16.msra.mxu1 %v8706_v9 }
 0x200   : > { %8236 = vmatprep.mubr.bf16.mxu0 %v3261_v17  ;;  %v14451_v17 = vld [vmem:[#allocation19_spill] sm:$0xff]  ;;  %v3115_v12 = vpack.c.bf16 %v3080_v23, %v3079_v5 }
 0x201   : > { %3577 = vmatmul.mubr.bf16.gmra.mrb[184].mxu1 %v3113_v47  ;;  %v3153_v47 = vld [vmem:[%s9296_s16 + $0x101] sm:$0xff] }
 0x202   : > { %v1716_v50 = vpop.f32.mrb[64].mxu0  ;;  %3584 = vmatprep.mubr.bf16.mxu1 %v3186_v7  ;;  %v14452_v7 = vld [vmem:[#allocation24_spill] sm:$0xff]  ;;  %v14458_v5 = vld [vmem:[#allocation35_spill] sm:$0xff] }
 0x203   : > { %v10334_v8 = vadd.f32 %v10086_v15, %v1716_v50  ;;  %v1718_v43 = vpop.f32.mrb[65].mxu0  ;;  %v3264_v36 = vpack.c.bf16 %v10126_v59, %v14452_v7 }
 0x204   : > { %v1719_v18 = vpop.f32.mrb[66].mxu0  ;;  %v10340_v37 = vpop.f32.mrb[80].mxu1  ;;  %v14454_v43 = vld [vmem:[#allocation20_spill] sm:$0xff] }
 0x205   : > { %v10345_v45 = vadd.f32 %v14450_v30, %v1719_v18  ;;  %v1721_v15 = vpop.f32.mrb[67].mxu0  ;;  %v2561_v54 = vpop.f32.mrb[81].mxu1  ;;  %v3082_v30 = vld [vmem:[%s9296_s16 + $0x108] sm:$0xff] }
 0x206   : > { %v10348_v10 = vpop.f32.mrb[82].mxu1  ;;  %v14455_v15 = vld [vmem:[#allocation26_spill] sm:$0xff] }
 0x207   : > { %8237 = vmatmul.mubr.bf16.gmra.mrb[172].mxu0 %v3262_v22  ;;  %v2564_v39 = vpop.f32.mrb[83].mxu1  ;;  %v3188_v22 = vpack.c.bf16 %v3154_v44, %v3153_v47  ;;  %v14460_v47 = vld [vmem:[#allocation28_spill] sm:$0xff] }
 0x208   : > { %8240 = vmatprep.mubr.bf16.mxu0 %v3263_v0  ;;  %v3081_v0 = vld [vmem:[%s9296_s16 + $0x100] sm:$0xff] }
 0x209   : > { %3585 = vmatmul.mubr.bf16.gmra.mrb[188].mxu1 %v3114_v53  ;;  %v3156_v39 = vld [vmem:[%s9296_s16 + $0x119] sm:$0xff] }
 0x20a   : > { %v1724_v40 = vpop.f32.mrb[68].mxu0  ;;  %3592 = vmatprep.mubr.bf16.mxu1 %v3187_v28  ;;  %v3155_v28 = vld [vmem:[%s9296_s16 + $0x111] sm:$0xff] }
 0x20b   : > { %v10353_v11 = vadd.f32 %v14451_v17, %v1724_v40  ;;  %v1726_v13 = vpop.f32.mrb[69].mxu0  ;;  %v3266_v40 = vpack.c.bf16 %v14458_v5, %v14457_v41  ;;  %v3267_v17 = vpack.c.bf16 %v10164_v25, %v14459_v49  ;;  %v3189_v27 = vpack.c.bf16 %v3156_v39, %v3155_v28  ;;  %v8710_v25 = vld [vmem:[#allocation8 + $0x58] sm:$0xff]   ;;  %v8712_v5 = vld [vmem:[#allocation8 + $0x60] sm:$0xff]  }
 0x20c   : > { %v1727_v50 = vpop.f32.mrb[70].mxu0  ;;  %v10360_v32 = vpop.f32.mrb[84].mxu1  ;;  %v8709_v13 = vld [vmem:[#allocation8 + $0x50] sm:$0xff]  }
 0x20d   : > { %v10365_v3 = vadd.f32 %v14454_v43, %v1727_v50  ;;  %v1729_v6 = vpop.f32.mrb[71].mxu0  ;;  %v2569_v1 = vpop.f32.mrb[85].mxu1  ;;  %4830 = vmatpush1.bf16.msra.mxu0 %v8709_v13 }
 0x20e   : > { %v10367_v59 = vpop.f32.mrb[86].mxu1  ;;  %4831 = vmatprep.subr.bf16.mxu0 %v14441_v46  ;;  %v3243_v6 = vld [vmem:[%s9296_s16 + $0x192] sm:$0xff] }
 0x20f   : > { %v2572_v18 = vpop.f32.mrb[87].mxu1  ;;  %8241 = vmatmul.mubr.bf16.gmra.mrb[176].mxu0 %v3264_v36  ;;  %v3116_v36 = vpack.c.bf16 %v3082_v30, %v3081_v0  ;;  %v3157_v30 = vld [vmem:[%s9296_s16 + $0x121] sm:$0xff] }
 0x210   : > { %8244 = vmatprep.mubr.bf16.mxu0 %v3265_v20  ;;  %v3084_v18 = vld [vmem:[%s9296_s16 + $0x118] sm:$0xff] }
 0x211   : > { %3593 = vmatmul.mubr.bf16.gmra.mrb[192].mxu1 %v3115_v12  ;;  %v3244_v12 = vld [vmem:[%s9296_s16 + $0x19a] sm:$0xff]  ;;  %4832 = vmatpush1.bf16.msra.mxu0 %v8710_v25  ;;  %v3086_v25 = vld [vmem:[%s9296_s16 + $0x128] sm:$0xff] }
 0x212   : > { %v1732_v19 = vpop.f32.mrb[72].mxu0  ;;  %3600 = vmatprep.mubr.bf16.mxu1 %v3188_v22  ;;  %v3083_v22 = vld [vmem:[%s9296_s16 + $0x110] sm:$0xff]  ;;  %4833 = vmatprep.subr.bf16.mxu0 %v14441_v46  ;;  %v3269_v41 = vpack.c.bf16 %v3244_v12, %v3243_v6  ;;  %v9084_v12 = vmov 0.0  }
 0x213   : > { %v10373_v53 = vadd.f32 %v14455_v15, %v1732_v19  ;;  %v1734_v54 = vpop.f32.mrb[73].mxu0  ;;  %v3158_v15 = vld [vmem:[%s9296_s16 + $0x129] sm:$0xff]  ;;  %273 = vst [vmem:[#allocation2] sm:$0xff] %v9084_v12  ;;  %274 = vst [vmem:[#allocation2 + $0x8] sm:$0xff] %v9084_v12 }
 0x214   : > { %v1735_v23 = vpop.f32.mrb[74].mxu0  ;;  %v10380_v9 = vpop.f32.mrb[88].mxu1  ;;  %v3268_v54 = vpack.c.bf16 %v10190_v62, %v10167_v58  ;;  %v3245_v62 = vld [vmem:[%s9296_s16 + $0x1a2] sm:$0xff]  ;;  %275 = vst [vmem:[#allocation2 + $0x10] sm:$0xff] %v9084_v12  ;;  %276 = vst [vmem:[#allocation2 + $0x18] sm:$0xff] %v9084_v12 }
 0x215   : > { %14456 = vst [vmem:[#allocation14_spill] sm:$0xff] %v10373_v53  ;;  %v10385_v44 = vadd.f32 %v14460_v47, %v1735_v23  ;;  %v1737_v7 = vpop.f32.mrb[75].mxu0  ;;  %v2577_v50 = vpop.f32.mrb[89].mxu1  ;;  %v3190_v47 = vpack.c.bf16 %v3158_v15, %v3157_v30  ;;  %4834 = vmatpush1.bf16.msra.mxu0 %v8712_v5  ;;  %v8711_v6 = vld [vmem:[#allocation8 + $0x98] sm:$0xff]   ;;  %277 = vst [vmem:[#allocation2 + $0x198] sm:$0xff] %v9084_v12 }
 0x216   : > { %v10387_v20 = vpop.f32.mrb[90].mxu1  ;;  %4835 = vmatprep.subr.bf16.mxu0 %v14441_v46  ;;  %v8713_v50 = vld [vmem:[#allocation8 + $0x68] sm:$0xff]   ;;  %278 = vst [vmem:[#allocation2 + $0x1a0] sm:$0xff] %v9084_v12  ;;  %279 = vst [vmem:[#allocation2 + $0x1a8] sm:$0xff] %v9084_v12  ;;  %8262 = vmatprep.subr.bf16.mxu1 %v8711_v6 }
 0x217   : > { %14461 = vst [vmem:[#allocation13_spill] sm:$0xff] %v10385_v44  ;;  %v2580_v43 = vpop.f32.mrb[91].mxu1  ;;  %8245 = vmatmul.mubr.bf16.gmra.mrb[180].mxu0 %v3266_v40  ;;  %v14464_v40 = vld [vmem:[#allocation27_spill] sm:$0xff]  ;;  %280 = vst [vmem:[#allocation2 + $0x1b0] sm:$0xff] %v9084_v12  ;;  %8263 = vmatpush3.bf16.msra.mxu1 %v8711_v6  ;;  %v3088_v12 = vld [vmem:[%s9296_s16 + $0x138] sm:$0xff] }
 0x218   : > { %8248 = vmatprep.mubr.bf16.mxu0 %v3267_v17  ;;  %v3117_v17 = vpack.c.bf16 %v3084_v18, %v3083_v22  ;;  %v3085_v43 = vld [vmem:[%s9296_s16 + $0x120] sm:$0xff] }
 0x219   : > { %3601 = vmatmul.mubr.bf16.gmra.mrb[196].mxu1 %v3116_v36  ;;  %v3246_v36 = vld [vmem:[%s9296_s16 + $0x1aa] sm:$0xff]  ;;  %4836 = vmatpush1.bf16.msra.mxu0 %v8713_v50 }
 0x21a   : > { %v1740_v1 = vpop.f32.mrb[76].mxu0  ;;  %3608 = vmatprep.mubr.bf16.mxu1 %v3189_v27  ;;  %v3270_v30 = vpack.c.bf16 %v3246_v36, %v3245_v62  ;;  %4837 = vmatprep.subr.bf16.mxu0 %v14441_v46  ;;  %v8715_v62 = vld [vmem:[#allocation8 + $0xa0] sm:$0xff]   ;;  %v8716_v36 = vld [vmem:[#allocation8 + $0x78] sm:$0xff]  }
 0x21b   : > { %v10395_v19 = vadd.f32 %v14462_v56, %v1740_v1  ;;  %v1742_v0 = vpop.f32.mrb[77].mxu0  ;;  %v14466_v1 = vld [vmem:[#allocation32_spill] sm:$0xff]  ;;  %8264 = vmatprep.subr.bf16.mxu1 %v8715_v62 }
 0x21c   : > { %v1743_v28 = vpop.f32.mrb[78].mxu0  ;;  %v10402_v39 = vpop.f32.mrb[92].mxu1  ;;  %v3159_v56 = vld [vmem:[%s9296_s16 + $0x131] sm:$0xff]  ;;  %v3160_v0 = vld [vmem:[%s9296_s16 + $0x139] sm:$0xff]  ;;  %8265 = vmatpush3.bf16.msra.mxu1 %v8715_v62 }
 0x21d   : > { %14463 = vst [vmem:[#allocation16_spill] sm:$0xff] %v10395_v19  ;;  %v10405_v23 = vadd.f32 %v14464_v40, %v1743_v28  ;;  %v1745_v49 = vpop.f32.mrb[79].mxu0  ;;  %v2585_v13 = vpop.f32.mrb[93].mxu1  ;;  %v8714_v28 = vld [vmem:[#allocation8 + $0x70] sm:$0xff]   ;;  %v4473_v50 = vld [vmem:[#allocation2 + $0x1] sm:$0xff] }
 0x21e   : > { %v10407_v7 = vpop.f32.mrb[94].mxu1  ;;  %v3118_v49 = vpack.c.bf16 %v3086_v25, %v3085_v43  ;;  %v3191_v13 = vpack.c.bf16 %v3160_v0, %v3159_v56  ;;  %4838 = vmatpush1.bf16.msra.mxu0 %v8714_v28  ;;  %v3087_v25 = vld [vmem:[%s9296_s16 + $0x130] sm:$0xff]  ;;  %v3161_v0 = vld [vmem:[%s9296_s16 + $0x141] sm:$0xff] }
 0x21f   : > { %14465 = vst [vmem:[#allocation17_spill] sm:$0xff] %v10405_v23  ;;  %v2588_v58 = vpop.f32.mrb[95].mxu1  ;;  %8249 = vmatmul.mubr.bf16.gmra.mrb[184].mxu0 %v3268_v54  ;;  %4839 = vmatprep.subr.bf16.mxu0 %v14441_v46 }
 0x220   : > { %8252 = vmatprep.mubr.bf16.mxu0 %v3269_v41  ;;  %v14468_v41 = vld [vmem:[#allocation34_spill] sm:$0xff] }
 0x221   : > { %3609 = vmatmul.mubr.bf16.gmra.mrb[200].mxu1 %v3117_v17 }
 0x222   : > { %v1748_v27 = vpop.f32.mrb[80].mxu0  ;;  %3616 = vmatprep.mubr.bf16.mxu1 %v3190_v47  ;;  %4840 = vmatpush1.bf16.msra.mxu0 %v8716_v36  ;;  %v9085_v36 = vmov 0.0|0.0  }
 0x223   : > { %v10415_v22 = vadd.f32 %v14466_v1, %v1748_v27  ;;  %v1750_v18 = vpop.f32.mrb[81].mxu0  ;;  %v4474_v27 = vld [vmem:[#allocation2 + $0x9] sm:$0xff]  ;;  %v14470_v1 = vld [vmem:[#allocation31_spill] sm:$0xff] }
 0x224   : > { %v1751_v15 = vpop.f32.mrb[82].mxu0  ;;  %v10420_v54 = vpop.f32.mrb[96].mxu1  ;;  %v4521_v6 = vpack.c.bf16 %v4474_v27, %v4473_v50 }
 0x225   : > { %14467 = vst [vmem:[#allocation15_spill] sm:$0xff] %v10415_v22  ;;  %v10423_v5 = vadd.f32 %v14468_v41, %v1751_v15  ;;  %v1753_v40 = vpop.f32.mrb[83].mxu0  ;;  %v2593_v17 = vpop.f32.mrb[97].mxu1  ;;  %v8717_v41 = vld [vmem:[#allocation8 + $0xa8] sm:$0xff]  }
 0x226   : > { %v10425_v47 = vpop.f32.mrb[98].mxu1  ;;  %v14472_v40 = vld [vmem:[#allocation33_spill] sm:$0xff]  ;;  %8266 = vmatprep.subr.bf16.mxu1 %v8717_v41 }
 0x227   : > { %14469 = vst [vmem:[#allocation18_spill] sm:$0xff] %v10423_v5  ;;  %v2596_v58 = vpop.f32.mrb[99].mxu1  ;;  %8253 = vmatmul.mubr.bf16.gmra.mrb[188].mxu0 %v3270_v30  ;;  %v3162_v30 = vld [vmem:[%s9296_s16 + $0x149] sm:$0xff]  ;;  %8267 = vmatpush3.bf16.msra.mxu1 %v8717_v41  ;;  %v3167_v22 = vld [vmem:[%s9296_s16 + $0x171] sm:$0xff] }
 0x228   : > { %4841 = vmatprep.mubr.bf16.mxu0 %v4521_v6  ;;  %v3192_v50 = vpack.c.bf16 %v3162_v30, %v3161_v0  ;;  %v3163_v0 = vld [vmem:[%s9296_s16 + $0x151] sm:$0xff]  ;;  %v3164_v30 = vld [vmem:[%s9296_s16 + $0x159] sm:$0xff] }
 0x229   : > { %3617 = vmatmul.mubr.bf16.gmra.mrb[204].mxu1 %v3118_v49  ;;  %v14475_v41 = vld [vmem:[#allocation39_spill] sm:$0xff] }
 0x22a   : > { %v1756_v43 = vpop.f32.mrb[84].mxu0  ;;  %3624 = vmatprep.mubr.bf16.mxu1 %v3191_v13  ;;  %v3119_v13 = vpack.c.bf16 %v3088_v12, %v3087_v25 }
 0x22b   : > { %v10431_v18 = vadd.f32 %v14470_v1, %v1756_v43  ;;  %v1758_v56 = vpop.f32.mrb[85].mxu0  ;;  %v8719_v43 = vld [vmem:[#allocation8 + $0xb0] sm:$0xff]  }
 0x22c   : > { %v1759_v15 = vpop.f32.mrb[86].mxu0  ;;  %v10435_v28 = vpop.f32.mrb[100].mxu1  ;;  %v3089_v1 = vld [vmem:[%s9296_s16 + $0x140] sm:$0xff]  ;;  %v3090_v56 = vld [vmem:[%s9296_s16 + $0x148] sm:$0xff]  ;;  %8268 = vmatprep.subr.bf16.mxu1 %v8719_v43 }
 0x22d   : > { %14471 = vst [vmem:[#allocation22_spill] sm:$0xff] %v10431_v18  ;;  %v10438_v49 = vadd.f32 %v14472_v40, %v1759_v15  ;;  %v1761_v17 = vpop.f32.mrb[87].mxu0  ;;  %v2601_v58 = vpop.f32.mrb[101].mxu1  ;;  %8269 = vmatpush3.bf16.msra.mxu1 %v8719_v43  ;;  %v8718_v43 = vld [vmem:[#allocation8 + $0x140] sm:$0xff]  }
 0x22e   : > { %v10440_v27 = vpop.f32.mrb[102].mxu1  ;;  %v8720_v17 = vld [vmem:[#allocation8 + $0xb8] sm:$0xff]   ;;  %8320 = vmatprep.subr.bf16.mxu0 %v8718_v43  ;;  %v3168_v18 = vld [vmem:[%s9296_s16 + $0x179] sm:$0xff] }
 0x22f   : > { %14473 = vst [vmem:[#allocation23_spill] sm:$0xff] %v10438_v49  ;;  %v2604_v62 = vpop.f32.mrb[103].mxu1  ;;  %4842 = vmatmul.mubr.bf16.vlgmr.msra.gmra.mrb[192].mxu0 %v9085_v36  ;;  %v3193_v36 = vpack.c.bf16 %v3164_v30, %v3163_v0  ;;  %8270 = vmatprep.subr.bf16.mxu1 %v8720_v17  ;;  %v3165_v0 = vld [vmem:[%s9296_s16 + $0x161] sm:$0xff]  ;;  %v3166_v30 = vld [vmem:[%s9296_s16 + $0x169] sm:$0xff] }
 0x230   : > { %8321 = vmatpush3.bf16.msra.mxu0 %v8718_v43  ;;  %v3094_v43 = vld [vmem:[%s9296_s16 + $0x168] sm:$0xff] }
 0x231   : > { %3625 = vmatmul.mubr.bf16.gmra.mrb[208].mxu1 %v3119_v13 }
 0x232   : > { %v1764_v6 = vpop.f32.mrb[88].mxu0  ;;  %3632 = vmatprep.mubr.bf16.mxu1 %v3192_v50  ;;  %v3120_v50 = vpack.c.bf16 %v3090_v56, %v3089_v1  ;;  %8271 = vmatpush3.bf16.msra.mxu1 %v8720_v17 }
 0x233   : > { %v10445_v25 = vadd.f32 %v10182_v31, %v1764_v6  ;;  %v1766_v12 = vpop.f32.mrb[89].mxu0  ;;  %5716 = vmatprep.subr.bf16.mxu1 %v14441_v46 }
 0x234   : > { %v1767_v15 = vpop.f32.mrb[90].mxu0  ;;  %v10449_v40 = vpop.f32.mrb[104].mxu1 }
 0x235   : > { %14474 = vst [vmem:[#allocation21_spill] sm:$0xff] %v10445_v25  ;;  %v10452_v13 = vadd.f32 %v14475_v41, %v1767_v15  ;;  %v1769_v58 = vpop.f32.mrb[91].mxu0  ;;  %v2609_v62 = vpop.f32.mrb[105].mxu1  ;;  %v3091_v25 = vld [vmem:[%s9296_s16 + $0x150] sm:$0xff]  ;;  %v3092_v15 = vld [vmem:[%s9296_s16 + $0x158] sm:$0xff] }
 0x236   : > { %v10454_v31 = vpop.f32.mrb[106].mxu1  ;;  %v14477_v41 = vld [vmem:[#allocation37_spill] sm:$0xff]  ;;  %v14479_v62 = vld [vmem:[#allocation38_spill] sm:$0xff] }
 0x237   : > { %14476 = vst [vmem:[#allocation19_spill] sm:$0xff] %v10452_v13  ;;  %v2612_v6 = vpop.f32.mrb[107].mxu1  ;;  %v3194_v13 = vpack.c.bf16 %v3166_v30, %v3165_v0  ;;  %v281_v30 = vlaneseq }
 0x238   : > { %v3121_v6 = vpack.c.bf16 %v3092_v15, %v3091_v25 }
 0x239   : > { %3633 = vmatmul.mubr.bf16.gmra.mrb[212].mxu1 %v3120_v50 }
 0x23a   : > { %v1772_v12 = vpop.f32.mrb[92].mxu0  ;;  %3640 = vmatprep.mubr.bf16.mxu1 %v3193_v36 }
 0x23b   : > { %v10460_v1 = vadd.f32 %v14477_v41, %v1772_v12  ;;  %v1774_v56 = vpop.f32.mrb[93].mxu0 }
 0x23c   : > { %v1775_v58 = vpop.f32.mrb[94].mxu0  ;;  %v10464_v17 = vpop.f32.mrb[108].mxu1 }
 0x23d   : > { %14478 = vst [vmem:[#allocation24_spill] sm:$0xff] %v10460_v1  ;;  %v10467_v50 = vadd.f32 %v14479_v62, %v1775_v58  ;;  %v1777_v36 = vpop.f32.mrb[95].mxu0  ;;  %v2617_v46 = vpop.f32.mrb[109].mxu1  ;;  %v3093_v1 = vld [vmem:[%s9296_s16 + $0x160] sm:$0xff] }
 0x23e   : > { %v10469_v12 = vpop.f32.mrb[110].mxu1  ;;  %v3122_v0 = vpack.c.bf16 %v3094_v43, %v3093_v1  ;;  %v3195_v36 = vpack.c.bf16 %v3168_v18, %v3167_v22  ;;  %v3169_v43 = vld [vmem:[%s9296_s16 + $0x181] sm:$0xff] }
 0x23f   : > { %14480 = vst [vmem:[#allocation29_spill] sm:$0xff] %v10467_v50  ;;  %v2620_v41 = vpop.f32.mrb[111].mxu1  ;;  %v3097_v50 = vld [vmem:[%s9296_s16 + $0x180] sm:$0xff] }
 0x241   : > { %3641 = vmatmul.mubr.bf16.gmra.mrb[216].mxu1 %v3121_v6  ;;  %v10491_v6 = vshrl.u32 %v281_v30, 7 }
 0x242   : > { %v8146_v56 = vpop.f32.mrb[96].mxu0  ;;  %3648 = vmatprep.mubr.bf16.mxu1 %v3194_v13 }
 0x243   : > { %v10474_v5 = vadd.f32 %v8146_v56, %v10217_v29  ;;  %v2720_v49 = vpop.f32.mrb[97].mxu0  ;;  %14484 = vst [vmem:[#allocation35_spill] sm:$0xff] %v10491_v6  ;;  %v3096_v56 = vld [vmem:[%s9296_s16 + $0x178] sm:$0xff] }
 0x244   : > { %v10479_v58 = vadd.f32 %v2720_v49, %v10201_v63  ;;  %v8147_v46 = vpop.f32.mrb[98].mxu0  ;;  %v10481_v25 = vpop.f32.mrb[112].mxu1 }
 0x245   : > { %v10484_v15 = vadd.f32 %v8147_v46, %v10221_v26  ;;  %v2723_v13 = vpop.f32.mrb[99].mxu0  ;;  %v2625_v29 = vpop.f32.mrb[113].mxu1  ;;  %v3095_v26 = vld [vmem:[%s9296_s16 + $0x170] sm:$0xff] }
 0x246   : > { %14481 = vst [vmem:[#allocation20_spill] sm:$0xff] %v10479_v58  ;;  %v10487_v62 = vadd.f32 %v2723_v13, %v10205_v55  ;;  %v10489_v63 = vpop.f32.mrb[114].mxu1  ;;  %v3170_v29 = vld [vmem:[%s9296_s16 + $0x189] sm:$0xff]  ;;  %v3123_v30 = vpack.c.bf16 %v3096_v56, %v3095_v26  ;;  %v10521_v26 = vadd.s32 24, %v10491_v6  ;;  %v8721_v56 = vld [vmem:[#allocation8 + $0x148] sm:$0xff]  }
 0x247   : > { %14482 = vst [vmem:[#allocation26_spill] sm:$0xff] %v10484_v15  ;;  %v2628_v49 = vpop.f32.mrb[115].mxu1  ;;  %8322 = vmatprep.subr.bf16.mxu0 %v8721_v56 }
 0x248   : > { %14483 = vst [vmem:[#allocation30_spill] sm:$0xff] %v10487_v62  ;;  %8323 = vmatpush3.bf16.msra.mxu0 %v8721_v56 }
 0x249   : > { %3649 = vmatmul.mubr.bf16.gmra.mrb[220].mxu1 %v3122_v0 }
 0x24a   : > { %v8150_v41 = vpop.f32.mrb[100].mxu0  ;;  %3656 = vmatprep.mubr.bf16.mxu1 %v3195_v36 }
 0x24b   : > { %v10496_v46 = vadd.f32 %v8150_v41, %v10249_v60  ;;  %v2736_v1 = vpop.f32.mrb[101].mxu0  ;;  %v10509_v60 = vadd.s32 16, %v10491_v6 }
 0x24c   : > { %v10501_v55 = vadd.f32 %v2736_v1, %v10233_v48  ;;  %v8151_v22 = vpop.f32.mrb[102].mxu0  ;;  %v10503_v18 = vpop.f32.mrb[116].mxu1  ;;  %v3196_v48 = vpack.c.bf16 %v3170_v29, %v3169_v43  ;;  %v3171_v29 = vld [vmem:[%s9296_s16 + $0x191] sm:$0xff] }
 0x24d   : > { %14485 = vst [vmem:[#allocation36_spill] sm:$0xff] %v10496_v46  ;;  %v10506_v13 = vadd.f32 %v8151_v22, %v10254_v52  ;;  %v2739_v0 = vpop.f32.mrb[103].mxu0  ;;  %v2633_v36 = vpop.f32.mrb[117].mxu1  ;;  %v10517_v52 = vmul.u32.u64.low 2863311531, %v10509_v60  ;;  %v10518_v22 = vmul.u32.u64.high 2863311531, %v10509_v60, %v10517_v52 }
 0x24e   : > { %14486 = vst [vmem:[#allocation28_spill] sm:$0xff] %v10501_v55  ;;  %v10512_v49 = vadd.f32 %v2739_v0, %v10237_v42  ;;  %v10514_v41 = vpop.f32.mrb[118].mxu1  ;;  %v3172_v0 = vld [vmem:[%s9296_s16 + $0x199] sm:$0xff]  ;;  %v10535_v52 = vadd.s32 8, %v10491_v6  ;;  %v10546_v46 = vmul.u32.u64.low 2863311531, %v10521_v26  ;;  %v10547_v44 = vmul.u32.u64.high 2863311531, %v10521_v26, %v10546_v46 }
 0x24f   : > { %14487 = vst [vmem:[#allocation25_spill] sm:$0xff] %v10506_v13  ;;  %v2636_v1 = vpop.f32.mrb[119].mxu1  ;;  %v3098_v13 = vld [vmem:[%s9296_s16 + $0x188] sm:$0xff] }
 0x250   : > { %14488 = vst [vmem:[#allocation27_spill] sm:$0xff] %v10512_v49  ;;  %v3174_v46 = vld [vmem:[%s9296_s16 + $0x1a9] sm:$0xff] }
 0x251   : > { %3657 = vmatmul.mubr.bf16.gmra.mrb[224].mxu1 %v3123_v30  ;;  %v10531_v30 = vmul.u32.u64.low 2863311531, %v10491_v6  ;;  %v10532_v1 = vmul.u32.u64.high 2863311531, %v10491_v6, %v10531_v30 }
 0x252   : > { %v8154_v36 = vpop.f32.mrb[104].mxu0  ;;  %3664 = vmatprep.mubr.bf16.mxu1 %v3196_v48  ;;  %v3124_v30 = vpack.c.bf16 %v3098_v13, %v3097_v50  ;;  %v358_v50 = vshrl.u32 %v10518_v22, 4 }
 0x253   : > { %v10526_v42 = vadd.f32 %v8154_v36, %v10285_v57  ;;  %v2752_v43 = vpop.f32.mrb[105].mxu0 }
 0x254   : > { %v10538_v49 = vadd.f32 %v2752_v43, %v10267_v16  ;;  %v8155_v48 = vpop.f32.mrb[106].mxu0  ;;  %v10540_v55 = vpop.f32.mrb[120].mxu1  ;;  %v3197_v43 = vpack.c.bf16 %v3172_v0, %v3171_v29  ;;  %v336_v0 = vshrl.u32 %v10532_v1, 4 }
 0x255   : > { %14489 = vst [vmem:[#allocation32_spill] sm:$0xff] %v10526_v42  ;;  %v10543_v57 = vadd.f32 %v8155_v48, %v10291_v51  ;;  %v2755_v36 = vpop.f32.mrb[107].mxu0  ;;  %v2641_v42 = vpop.f32.mrb[121].mxu1  ;;  %v10555_v56 = vmul.u32.u64.low 2863311531, %v10535_v52  ;;  %v10556_v51 = vmul.u32.u64.high 2863311531, %v10535_v52, %v10555_v56  ;;  %v3099_v48 = vld [vmem:[%s9296_s16 + $0x190] sm:$0xff] }
 0x256   : > { %14490 = vst [vmem:[#allocation34_spill] sm:$0xff] %v10538_v49  ;;  %v10550_v16 = vadd.f32 %v2755_v36, %v10271_v61  ;;  %v10552_v49 = vpop.f32.mrb[122].mxu1  ;;  %v3173_v42 = vld [vmem:[%s9296_s16 + $0x1a1] sm:$0xff]  ;;  %v10564_v61 = vadd.s32 32, %v10491_v6 }
 0x257   : > { %14491 = vst [vmem:[#allocation31_spill] sm:$0xff] %v10543_v57  ;;  %14493 = vst [vmem:[#allocation39_spill] sm:$0xff] %v10552_v49  ;;  %v2644_v62 = vpop.f32.mrb[123].mxu1  ;;  %v3100_v57 = vld [vmem:[%s9296_s16 + $0x198] sm:$0xff]  ;;  %v3198_v15 = vpack.c.bf16 %v3174_v46, %v3173_v42  ;;  %v337_v42 = vmul.u32 24, %v336_v0 }
 0x258   : > { %14492 = vst [vmem:[#allocation33_spill] sm:$0xff] %v10550_v16  ;;  %v3125_v22 = vpack.c.bf16 %v3100_v57, %v3099_v48  ;;  %v10589_v57 = vadd.s32 48, %v10491_v6  ;;  %v3102_v48 = vld [vmem:[%s9296_s16 + $0x1a8] sm:$0xff] }
 0x259   : > { %3665 = vmatmul.mubr.bf16.gmra.mrb[228].mxu1 %v3124_v30 }
 0x25a   : > { %v8158_v13 = vpop.f32.mrb[108].mxu0  ;;  %3672 = vmatprep.mubr.bf16.mxu1 %v3197_v43 }
 0x25b   : > { %v10567_v29 = vadd.f32 %v8158_v13, %v10321_v14  ;;  %v2768_v62 = vpop.f32.mrb[109].mxu0  ;;  %v359_v14 = vmul.u32 24, %v358_v50  ;;  %v369_v13 = vshrl.u32 %v10547_v44, 4  ;;  %v10595_v44 = vadd.s32 40, %v10491_v6 }
 0x25c   : > { %v10571_v36 = vadd.f32 %v2768_v62, %v10305_v33  ;;  %v8159_v30 = vpop.f32.mrb[110].mxu0  ;;  %v10573_v56 = vpop.f32.mrb[124].mxu1  ;;  %v10585_v33 = vmul.u32.u64.low 2863311531, %v10564_v61  ;;  %v10586_v62 = vmul.u32.u64.high 2863311531, %v10564_v61, %v10585_v33 }
 0x25d   : > { %14494 = vst [vmem:[#allocation37_spill] sm:$0xff] %v10567_v29  ;;  %v10576_v43 = vadd.f32 %v8159_v30, %v10329_v2  ;;  %v2771_v16 = vpop.f32.mrb[111].mxu0  ;;  %v2649_v23 = vpop.f32.mrb[125].mxu1  ;;  %v3101_v2 = vld [vmem:[%s9296_s16 + $0x1a0] sm:$0xff]  ;;  %v370_v46 = vmul.u32 24, %v369_v13 }
 0x25e   : > { %14495 = vst [vmem:[#allocation38_spill] sm:$0xff] %v10571_v36  ;;  %v10580_v29 = vadd.f32 %v2771_v16, %v10308_v34  ;;  %v10582_v1 = vpop.f32.mrb[126].mxu1  ;;  %v347_v23 = vshrl.u32 %v10556_v51, 4  ;;  %v10598_v34 = vsub.s32 %v10509_v60, %v359_v14  ;;  %v3126_v50 = vpack.c.bf16 %v3102_v48, %v3101_v2 }
 0x25f   : > { %14496 = vst [vmem:[#allocation40_spill] sm:$0xff] %v10576_v43  ;;  %14498 = vst [vmem:[#allocation42_spill] sm:$0xff] %v10582_v1  ;;  %v2652_v30 = vpop.f32.mrb[127].mxu1  ;;  %v4545_v43 = vld [vmem:[#allocation2 + $0x2] sm:$0xff]  ;;  %v10609_v60 = vadd.s32 56, %v10491_v6 }
 0x260   : > { %14497 = vst [vmem:[#allocation41_spill] sm:$0xff] %v10580_v29  ;;  %v10601_v33 = vmul.u32.u64.low 2863311531, %v10589_v57  ;;  %v10602_v29 = vmul.u32.u64.high 2863311531, %v10589_v57, %v10601_v33  ;;  %v10606_v30 = vsub.s32 %v10491_v6, %v337_v42  ;;  %v348_v36 = vmul.u32 24, %v347_v23 }
 0x261   : > { %3673 = vmatmul.mubr.bf16.gmra.mrb[232].mxu1 %v3125_v22  ;;  %v4546_v22 = vld [vmem:[#allocation2 + $0xa] sm:$0xff]  ;;  %v10620_v42 = vadd.s32 64, %v10491_v6  ;;  %vm860_vm0 = vcmp.ne.s32.totalorder %v10598_v34, 0  ;;  %vm908_vm1 = vcmp.lt.s32.totalorder %v10598_v34, 0 }
 0x262   : > { %v8162_v16 = vpop.f32.mrb[112].mxu0  ;;  %3680 = vmatprep.mubr.bf16.mxu1 %v3198_v15  ;;  %14499 = vst [vmem:[#allocation43_spill] sm:$0xff] %v10606_v30  ;;  %v2929_v15 = vld [vmem:[%s9949_s26 + $0x90] sm:$0xff]  ;;  %v4593_v1 = vpack.c.bf16 %v4546_v22, %v4545_v43  ;;  %vm858_vm2 = vcmp.ne.s32.totalorder %v10606_v30, 0  ;;  %vm906_vm3 = vcmp.lt.s32.totalorder %v10606_v30, 0  ;;  %vm10660_vm4 = vmand %vm908_vm1, %vm860_vm0 }
 0x263   : > { %v2793_v0 = vadd.f32 %v8162_v16, %v10360_v32  ;;  %v2784_v51 = vpop.f32.mrb[113].mxu0  ;;  %v10616_v32 = vmul.u32.u64.low 2863311531, %v10595_v44  ;;  %v10617_v48 = vmul.u32.u64.high 2863311531, %v10595_v44, %v10616_v32  ;;  %v2927_v16 = vld [vmem:[%s9949_s26 + $0x80] sm:$0xff]  ;;  %vm10680_vm5 = vmand %vm906_vm3, %vm858_vm2 }
 0x264   : > { %v2785_v14 = vadd.f32 %v2784_v51, %v10340_v37  ;;  %v8163_v13 = vpop.f32.mrb[114].mxu0  ;;  %v10613_v2 = vpop.f32.mrb[128].mxu1  ;;  %v10626_v37 = vadd.s32 72, %v10491_v6 }
 0x265   : > { %14500 = vst [vmem:[#allocation44_spill] sm:$0xff] %v10613_v2  ;;  %v2977_v23 = vadd.f32 %v2929_v15, %v2793_v0  ;;  %v2796_v33 = vadd.f32 %v8163_v13, %v10367_v59  ;;  %v2787_v58 = vpop.f32.mrb[115].mxu0  ;;  %v2657_v49 = vpop.f32.mrb[129].mxu1  ;;  %v2930_v2 = vld [vmem:[%s9949_s26 + $0x98] sm:$0xff]  ;;  %v380_v0 = vshrl.u32 %v10586_v62, 4  ;;  %v2928_v15 = vld [vmem:[%s9949_s26 + $0x88] sm:$0xff] }
 0x266   : > { %v2975_v51 = vadd.f32 %v2927_v16, %v2785_v14  ;;  %v2788_v32 = vadd.f32 %v2787_v58, %v10348_v10  ;;  %v10630_v53 = vpop.f32.mrb[130].mxu1  ;;  %v10637_v13 = vmul.u32.u64.low 2863311531, %v10609_v60  ;;  %v10638_v19 = vmul.u32.u64.high 2863311531, %v10609_v60, %v10637_v13 }
 0x267   : > { %3025 = vst [vmem:[%s9949_s26 + $0x90] sm:$0xff] %v2977_v23  ;;  %v2978_v59 = vadd.f32 %v2930_v2, %v2796_v33  ;;  %v2660_v49 = vpop.f32.mrb[131].mxu1  ;;  %v10642_v10 = vadd.s32 24, %v10598_v34  ;;  %v10645_v58 = vmul.u32.u64.low 2863311531, %v10620_v42  ;;  %v10646_v43 = vmul.u32.u64.high 2863311531, %v10620_v42, %v10645_v58 }
 0x268   : > { %3023 = vst [vmem:[%s9949_s26 + $0x80] sm:$0xff] %v2975_v51  ;;  %v2976_v14 = vadd.f32 %v2928_v15, %v2788_v32  ;;  %v10652_v62 = vmul.u32.u64.low 2863311531, %v10626_v37  ;;  %v10653_v22 = vmul.u32.u64.high 2863311531, %v10626_v37, %v10652_v62  ;;  %v381_v16 = vmul.u32 24, %v380_v0 }
 0x269   : > { %3026 = vst [vmem:[%s9949_s26 + $0x98] sm:$0xff] %v2978_v59  ;;  %3681 = vmatmul.mubr.bf16.gmra.mrb[236].mxu1 %v3126_v50  ;;  %v10665_v50 = vsub.s32 %v10521_v26, %v370_v46  ;;  %v402_v33 = vshrl.u32 %v10602_v29, 4  ;;  %v2933_v59 = vld [vmem:[%s9949_s26 + $0xb0] sm:$0xff]  ;;  %v14504_v26 = vmov 0  ;;  %v2931_v46 = vld [vmem:[%s9949_s26 + $0xa0] sm:$0xff]  ;;  %v391_v62 = vshrl.u32 %v10617_v48, 4 }
 0x26a   : > { %3024 = vst [vmem:[%s9949_s26 + $0x88] sm:$0xff] %v2976_v14  ;;  %v8166_v2 = vpop.f32.mrb[116].mxu0  ;;  %8272 = vmatprep.mubr.bf16.mxu1 %v4593_v1  ;;  %v10670_v1 = vadd.s32 24, %v10606_v30  ;;  %v14505_v26 = vsel %vm10680_vm5, 4294967295, %v14504_v26 }
 0x26b   : > { %v2809_v51 = vadd.f32 %v8166_v2, %v10402_v39  ;;  %v2800_v32 = vpop.f32.mrb[117].mxu0  ;;  %14506 = vst [vmem:[#allocation46_spill] sm:$0xff] %v14505_v26  ;;  %v10685_v39 = vsub.s32 %v10535_v52, %v348_v36  ;;  %vm861_vm6 = vcmp.ne.s32.totalorder %v10665_v50, 0  ;;  %vm909_vm7 = vcmp.lt.s32.totalorder %v10665_v50, 0 }
 0x26c   : > { %14503 = vst [vmem:[#allocation45_spill] sm:$0xff] %v10670_v1  ;;  %v2801_v15 = vadd.f32 %v2800_v32, %v10380_v9  ;;  %v8167_v49 = vpop.f32.mrb[118].mxu0  ;;  %v10674_v13 = vpop.f32.mrb[132].mxu1  ;;  %v2934_v32 = vld [vmem:[%s9949_s26 + $0xb8] sm:$0xff]  ;;  %vm10784_vm13 = vmand %vm909_vm7, %vm861_vm6 }
 0x26d   : > { %v2981_v29 = vadd.f32 %v2933_v59, %v2809_v51  ;;  %v2812_v9 = vadd.f32 %v8167_v49, %v10407_v7  ;;  %v2803_v0 = vpop.f32.mrb[119].mxu0  ;;  %v2665_v14 = vpop.f32.mrb[133].mxu1  ;;  %v10701_v7 = vsub.s32 %v10564_v61, %v381_v16  ;;  %v403_v51 = vmul.u32 24, %v402_v33  ;;  %v2932_v49 = vld [vmem:[%s9949_s26 + $0xa8] sm:$0xff]  ;;  %v8722_v16 = vld [vmem:[#allocation8 + $0x150] sm:$0xff]  }
 0x26e   : > { %v2979_v2 = vadd.f32 %v2931_v46, %v2801_v15  ;;  %v2804_v52 = vadd.f32 %v2803_v0, %v10387_v20  ;;  %v10696_v36 = vpop.f32.mrb[134].mxu1  ;;  %v413_v15 = vshrl.u32 %v10638_v19, 4  ;;  %v10711_v46 = vadd.s32 80, %v10491_v6  ;;  %8324 = vmatprep.subr.bf16.mxu0 %v8722_v16 }
 0x26f   : > { %14507 = vst [vmem:[#allocation47_spill] sm:$0xff] %v10701_v7  ;;  %3029 = vst [vmem:[%s9949_s26 + $0xb0] sm:$0xff] %v2981_v29  ;;  %v2982_v59 = vadd.f32 %v2934_v32, %v2812_v9  ;;  %v2668_v48 = vpop.f32.mrb[135].mxu1  ;;  %vm859_vm8 = vcmp.ne.s32.totalorder %v10685_v39, 0  ;;  %vm907_vm9 = vcmp.lt.s32.totalorder %v10685_v39, 0  ;;  %v424_v61 = vshrl.u32 %v10646_v43, 4  ;;  %8325 = vmatpush3.bf16.msra.mxu0 %v8722_v16 }
 0x270   : > { %3027 = vst [vmem:[%s9949_s26 + $0xa0] sm:$0xff] %v2979_v2  ;;  %v2980_v0 = vadd.f32 %v2932_v49, %v2804_v52  ;;  %v10719_v33 = vadd.s32 24, %v10685_v39  ;;  %v10722_v29 = vadd.s32 24, %v10665_v50  ;;  %v392_v19 = vmul.u32 24, %v391_v62  ;;  %vm10801_vm0 = vmand %vm907_vm9, %vm859_vm8 }
 0x271   : > { %3030 = vst [vmem:[%s9949_s26 + $0xb8] sm:$0xff] %v2982_v59  ;;  %v435_v9 = vshrl.u32 %v10653_v22, 4  ;;  %v10727_v2 = vadd.s32 128, %v10491_v6  ;;  %vm862_vm10 = vcmp.ne.s32.totalorder %v10701_v7, 0  ;;  %v10731_v43 = vsub.s32 %v10589_v57, %v403_v51 }
 0x272   : > { %3028 = vst [vmem:[%s9949_s26 + $0xa8] sm:$0xff] %v2980_v0  ;;  %v8170_v14 = vpop.f32.mrb[120].mxu0  ;;  %v10734_v32 = vadd.s32 88, %v10491_v6  ;;  %v414_v59 = vmul.u32 24, %v413_v15  ;;  %v10738_v22 = vmul.u32.u64.low 2863311531, %v10711_v46  ;;  %v10739_v49 = vmul.u32.u64.high 2863311531, %v10711_v46, %v10738_v22 }
 0x273   : > { %v2825_v52 = vadd.f32 %v8170_v14, %v10435_v28  ;;  %v2816_v62 = vpop.f32.mrb[121].mxu0  ;;  %v10745_v57 = vadd.s32 136, %v10491_v6  ;;  %vm910_vm11 = vcmp.lt.s32.totalorder %v10701_v7, 0  ;;  %v425_v28 = vmul.u32 24, %v424_v61  ;;  %v2935_v15 = vld [vmem:[%s9949_s26 + $0xc0] sm:$0xff] }
 0x274   : > { %v2817_v48 = vadd.f32 %v2816_v62, %v10420_v54  ;;  %v8171_v0 = vpop.f32.mrb[122].mxu0  ;;  %v10742_v20 = vpop.f32.mrb[136].mxu1  ;;  %v10752_v54 = vsub.s32 %v10595_v44, %v392_v19  ;;  %v436_v62 = vmul.u32 24, %v435_v9  ;;  %v10765_v44 = vadd.s32 24, %v10701_v7  ;;  %vm10818_vm2 = vmand %vm910_vm11, %vm862_vm10  ;;  %v14603_v23 = vld [vmem:[#allocation45_spill] sm:$0xff] }
 0x275   : > { %v2985_v51 = vadd.f32 %v2825_v52, %v10277_v21  ;;  %v2828_v14 = vadd.f32 %v8171_v0, %v10440_v27  ;;  %v2819_v16 = vpop.f32.mrb[123].mxu0  ;;  %v2673_v22 = vpop.f32.mrb[137].mxu1  ;;  %v10758_v61 = vmul.u32.u64.low 2863311531, %v10727_v2  ;;  %v10759_v26 = vmul.u32.u64.high 2863311531, %v10727_v2, %v10758_v61  ;;  %v2936_v27 = vld [vmem:[%s9949_s26 + $0xc8] sm:$0xff] }
 0x276   : > { %14508 = vst [vmem:[#allocation48_spill] sm:$0xff] %v10752_v54  ;;  %v2983_v58 = vadd.f32 %v2935_v15, %v2817_v48  ;;  %v2820_v30 = vadd.f32 %v2819_v16, %v10425_v47  ;;  %v10755_v1 = vpop.f32.mrb[138].mxu1  ;;  %14509 = vst [vmem:[#allocation49_spill] sm:$0xff] %v10765_v44  ;;  %v10768_v19 = vsub.s32 %v10609_v60, %v414_v59  ;;  %vm864_vm12 = vcmp.ne.s32.totalorder %v10731_v43, 0 }
 0x277   : > { %3033 = vst [vmem:[%s9949_s26 + $0xd0] sm:$0xff] %v2985_v51  ;;  %v2986_v21 = vadd.f32 %v2828_v14, %v10288_v35  ;;  %v2676_v52 = vpop.f32.mrb[139].mxu1  ;;  %v10773_v9 = vmul.u32.u64.low 2863311531, %v10745_v57  ;;  %v10774_v48 = vmul.u32.u64.high 2863311531, %v10745_v57, %v10773_v9  ;;  %v10777_v0 = vsub.s32 %v10620_v42, %v425_v28 }
 0x278   : > { %14510 = vst [vmem:[#allocation50_spill] sm:$0xff] %v10768_v19  ;;  %3031 = vst [vmem:[%s9949_s26 + $0xc0] sm:$0xff] %v2983_v58  ;;  %v2984_v47 = vadd.f32 %v2936_v27, %v2820_v30  ;;  %vm863_vm14 = vcmp.ne.s32.totalorder %v10752_v54, 0  ;;  %vm912_vm15 = vcmp.lt.s32.totalorder %v10731_v43, 0  ;;  %v10791_v30 = vadd.s32 24, %v10731_v43 }
 0x279   : > { %14511 = vst [vmem:[#allocation51_spill] sm:$0xff] %v10777_v0  ;;  %3034 = vst [vmem:[%s9949_s26 + $0xd8] sm:$0xff] %v2986_v21  ;;  %v10794_v60 = vsub.s32 %v10626_v37, %v436_v62  ;;  %vm911_vm1 = vcmp.lt.s32.totalorder %v10752_v54, 0  ;;  %v10807_v59 = vadd.s32 24, %v10752_v54  ;;  %vm865_vm3 = vcmp.ne.s32.totalorder %v10768_v19, 0 }
 0x27a   : > { %3032 = vst [vmem:[%s9949_s26 + $0xc8] sm:$0xff] %v2984_v47  ;;  %v8174_v42 = vpop.f32.mrb[124].mxu0  ;;  %v10810_v28 = vmul.u32.u64.low 2863311531, %v10734_v32  ;;  %v10811_v51 = vmul.u32.u64.high 2863311531, %v10734_v32, %v10810_v28  ;;  %vm913_vm6 = vcmp.lt.s32.totalorder %v10768_v19, 0  ;;  %v446_v16 = vshrl.u32 %v10739_v49, 4  ;;  %vm10832_vm7 = vmand %vm912_vm15, %vm864_vm12 }
 0x27b   : > { %14514 = vst [vmem:[#allocation52_spill] sm:$0xff] %v10794_v60  ;;  %v2841_v37 = vadd.f32 %v8174_v42, %v10464_v17  ;;  %v2832_v15 = vpop.f32.mrb[125].mxu0  ;;  %vm866_vm8 = vcmp.ne.s32.totalorder %v10777_v0, 0  ;;  %vm914_vm9 = vcmp.lt.s32.totalorder %v10777_v0, 0  ;;  %v10839_v49 = vadd.s32 96, %v10491_v6  ;;  %vm10847_vm10 = vmand %vm911_vm1, %vm863_vm14 }
 0x27c   : > { %v2833_v22 = vadd.f32 %v2832_v15, %v10449_v40  ;;  %v8175_v62 = vpop.f32.mrb[126].mxu0  ;;  %v10826_v61 = vpop.f32.mrb[140].mxu1  ;;  %vm867_vm11 = vcmp.ne.s32.totalorder %v10794_v60, 0  ;;  %vm915_vm12 = vcmp.lt.s32.totalorder %v10794_v60, 0  ;;  %v512_v42 = vshrl.u32 %v10759_v26, 4  ;;  %vm10862_vm14 = vmand %vm913_vm6, %vm865_vm3 }
 0x27d   : > { %v2989_v40 = vadd.f32 %v2841_v37, %v10315_v4  ;;  %v2844_v21 = vadd.f32 %v8175_v62, %v10469_v12  ;;  %v2835_v27 = vpop.f32.mrb[127].mxu0  ;;  %v2681_v52 = vpop.f32.mrb[141].mxu1  ;;  %v14523_v28 = vmov 0  ;;  %v10867_v37 = vadd.s32 24, %v10768_v19  ;;  %vm10876_vm15 = vmand %vm914_vm9, %vm866_vm8 }
 0x27e   : > { %v2987_v9 = vadd.f32 %v2833_v22, %v10296_v24  ;;  %v2836_v4 = vadd.f32 %v2835_v27, %v10454_v31  ;;  %v10855_v12 = vpop.f32.mrb[142].mxu1  ;;  %v14524_v28 = vsel %vm10862_vm14, 4294967295, %v14523_v28  ;;  %v2940_v31 = vld [vmem:[%s9949_s26 + $0xe8] sm:$0xff]  ;;  %v14527_v26 = vmov 0  ;;  %vm10892_vm1 = vmand %vm915_vm12, %vm867_vm11 }
 0x27f   : > { %14525 = vst [vmem:[#allocation53_spill] sm:$0xff] %v14524_v28  ;;  %14526 = vst [vmem:[#allocation54_spill] sm:$0xff] %v10867_v37  ;;  %v2990_v24 = vadd.f32 %v2844_v21, %v10326_v38  ;;  %v2684_v15 = vpop.f32.mrb[143].mxu1  ;;  %v14528_v26 = vsel %vm10876_vm15, 4294967295, %v14527_v26  ;;  %v10881_v22 = vadd.s32 24, %v10777_v0  ;;  %v10884_v62 = vadd.s32 24, %v10794_v60 }
 0x280   : > { %3037 = vst [vmem:[%s9949_s26 + $0xf0] sm:$0xff] %v2989_v40  ;;  %14529 = vst [vmem:[#allocation55_spill] sm:$0xff] %v14528_v26  ;;  %v447_v40 = vmul.u32 24, %v446_v16  ;;  %v2988_v38 = vadd.f32 %v2940_v31, %v2836_v4  ;;  %v523_v21 = vshrl.u32 %v10774_v48, 4  ;;  %v14532_v27 = vmov 0  ;;  %v2913_v48 = vld [vmem:[%s9949_s26 + $0x10] sm:$0xff] }
 0x281   : > { %14530 = vst [vmem:[#allocation56_spill] sm:$0xff] %v10881_v22  ;;  %14531 = vst [vmem:[#allocation57_spill] sm:$0xff] %v10884_v62  ;;  %v14533_v27 = vsel %vm10892_vm1, 4294967295, %v14532_v27  ;;  %v10897_v52 = vmul.u32.u64.low 2863311531, %v10839_v49  ;;  %v10898_v15 = vmul.u32.u64.high 2863311531, %v10839_v49, %v10897_v52  ;;  %v10937_v16 = vadd.s32 104, %v10491_v6 }
 0x282   : > { %3035 = vst [vmem:[%s9949_s26 + $0xe0] sm:$0xff] %v2987_v9  ;;  %14534 = vst [vmem:[#allocation58_spill] sm:$0xff] %v14533_v27  ;;  %v8178_v31 = vpop.f32.mrb[128].mxu0  ;;  %v513_v52 = vmul.u32 24, %v512_v42  ;;  %v457_v9 = vshrl.u32 %v10811_v51, 4  ;;  %v10944_v26 = vsub.s32 %v10711_v46, %v447_v40  ;;  %v10947_v42 = vadd.s32 112, %v10491_v6 }
 0x283   : > { %3038 = vst [vmem:[%s9949_s26 + $0xf8] sm:$0xff] %v2990_v24  ;;  %v8723_v24 = vld [vmem:[#allocation8 + $0x158] sm:$0xff]   ;;  %3036 = vst [vmem:[%s9949_s26 + $0xe8] sm:$0xff] %v2988_v38  ;;  %v2857_v7 = vadd.f32 %v8178_v31, %v10503_v18  ;;  %v2848_v44 = vpop.f32.mrb[129].mxu0  ;;  %v524_v31 = vmul.u32 24, %v523_v21  ;;  %v10950_v38 = vadd.f32 %v2913_v48, %v10474_v5  ;;  %v10955_v27 = vadd.s32 160, %v10491_v6 }
 0x284   : > { %8326 = vmatprep.subr.bf16.mxu0 %v8723_v24  ;;  %v2849_v51 = vadd.f32 %v2848_v44, %v10481_v25  ;;  %v8179_v4 = vpop.f32.mrb[130].mxu0  ;;  %v10941_v18 = vpop.f32.mrb[144].mxu1  ;;  %14535 = vst [vmem:[#allocation59_spill] sm:$0xff] %v10944_v26  ;;  %v10962_v5 = vsub.s32 %v10727_v2, %v513_v52  ;;  %v458_v48 = vmul.u32 24, %v457_v9  ;;  %vm868_vm3 = vcmp.ne.s32.totalorder %v10944_v26, 0  ;;  %v14543_v0 = vld [vmem:[#allocation39_spill] sm:$0xff] }
 0x285   : > { %8327 = vmatpush3.bf16.msra.mxu0 %v8723_v24  ;;  %v2993_v60 = vadd.f32 %v2857_v7, %v10353_v11  ;;  %v2860_v25 = vadd.f32 %v8179_v4, %v10514_v41  ;;  %v2851_v44 = vpop.f32.mrb[131].mxu0  ;;  %v3500_v62 = vpop.f32.mrb[145].mxu1  ;;  %v10967_v7 = vadd.s32 168, %v10491_v6  ;;  %v468_v2 = vshrl.u32 %v10898_v15, 4 }
 0x286   : > { %v2991_v46 = vadd.f32 %v2849_v51, %v10334_v8  ;;  %v2852_v40 = vadd.f32 %v2851_v44, %v10489_v63  ;;  %v10959_v21 = vpop.f32.mrb[146].mxu1  ;;  %14536 = vst [vmem:[#allocation60_spill] sm:$0xff] %v10962_v5  ;;  %v10970_v62 = vmul.u32.u64.low 2863311531, %v10937_v16  ;;  %v10971_v4 = vmul.u32.u64.high 2863311531, %v10937_v16, %v10970_v62 }
 0x287   : > { %3041 = vst [vmem:[%s9949_s26 + $0x110] sm:$0xff] %v2993_v60  ;;  %v2994_v11 = vadd.f32 %v2860_v25, %v10365_v3  ;;  %v3503_v41 = vpop.f32.mrb[147].mxu1  ;;  %v10976_v63 = vsub.s32 %v10745_v57, %v524_v31  ;;  %vm916_vm6 = vcmp.lt.s32.totalorder %v10944_v26, 0  ;;  %v10983_v3 = vadd.s32 24, %v10944_v26 }
 0x288   : > { %3039 = vst [vmem:[%s9949_s26 + $0x100] sm:$0xff] %v2991_v46  ;;  %v2992_v8 = vadd.f32 %v2852_v40, %v10345_v45  ;;  %v10986_v60 = vmul.u32.u64.low 2863311531, %v10955_v27  ;;  %v10987_v9 = vmul.u32.u64.high 2863311531, %v10955_v27, %v10986_v60  ;;  %vm874_vm8 = vcmp.ne.s32.totalorder %v10962_v5, 0  ;;  %vm11026_vm12 = vmand %vm916_vm6, %vm868_vm3 }
 0x289   : > { %14537 = vst [vmem:[#allocation61_spill] sm:$0xff] %v10976_v63  ;;  %3042 = vst [vmem:[%s9949_s26 + $0x118] sm:$0xff] %v2994_v11  ;;  %vm922_vm9 = vcmp.lt.s32.totalorder %v10962_v5, 0  ;;  %v10993_v45 = vadd.s32 24, %v10962_v5  ;;  %v10996_v57 = vadd.s32 120, %v10491_v6  ;;  %v11000_v51 = vsub.s32 %v10734_v32, %v458_v48  ;;  %v14540_v11 = vld [vmem:[#allocation16_spill] sm:$0xff] }
 0x28a   : > { %3040 = vst [vmem:[%s9949_s26 + $0x108] sm:$0xff] %v2992_v8  ;;  %v8182_v24 = vpop.f32.mrb[132].mxu0  ;;  %v11003_v31 = vmul.u32.u64.low 2863311531, %v10967_v7  ;;  %v11004_v25 = vmul.u32.u64.high 2863311531, %v10967_v7, %v11003_v31  ;;  %vm875_vm11 = vcmp.ne.s32.totalorder %v10976_v63, 0  ;;  %v14541_v48 = vld [vmem:[#allocation42_spill] sm:$0xff]  ;;  %vm11045_vm3 = vmand %vm922_vm9, %vm874_vm8 }
 0x28b   : > { %14538 = vst [vmem:[#allocation62_spill] sm:$0xff] %v10993_v45  ;;  %v2873_v15 = vadd.f32 %v8182_v24, %v10573_v56  ;;  %v2864_v52 = vpop.f32.mrb[133].mxu0  ;;  %14539 = vst [vmem:[#allocation63_spill] sm:$0xff] %v11000_v51  ;;  %v469_v56 = vmul.u32 24, %v468_v2  ;;  %v2911_v24 = vld [vmem:[%s9949_s26] sm:$0xff]  ;;  %v14544_v2 = vmov 0 }
 0x28c   : > { %v2865_v44 = vadd.f32 %v2864_v52, %v10540_v55  ;;  %v8183_v46 = vpop.f32.mrb[134].mxu0  ;;  %v11007_v40 = vpop.f32.mrb[148].mxu1  ;;  %v11014_v60 = vmul.u32.u64.low 2863311531, %v10947_v42  ;;  %v11015_v55 = vmul.u32.u64.high 2863311531, %v10947_v42, %v11014_v60  ;;  %v14542_v52 = vld [vmem:[#allocation14_spill] sm:$0xff]  ;;  %v14545_v2 = vsel %vm11026_vm12, 4294967295, %v14544_v2 }
 0x28d   : > { %v2997_v32 = vadd.f32 %v2873_v15, %v14540_v11  ;;  %v2876_v41 = vadd.f32 %v8183_v46, %v14541_v48  ;;  %v2867_v62 = vpop.f32.mrb[135].mxu0  ;;  %v3508_v8 = vpop.f32.mrb[149].mxu1  ;;  %14546 = vst [vmem:[#allocation16_spill] sm:$0xff] %v14545_v2  ;;  %v11031_v15 = vmul.u32.u64.low 2863311531, %v10996_v57  ;;  %v11032_v46 = vmul.u32.u64.high 2863311531, %v10996_v57, %v11031_v15  ;;  %v14547_v11 = vld [vmem:[#allocation20_spill] sm:$0xff] }
 0x28e   : > { %v2995_v31 = vadd.f32 %v2865_v44, %v14542_v52  ;;  %v2868_v22 = vadd.f32 %v2867_v62, %v14543_v0  ;;  %v11020_v19 = vpop.f32.mrb[150].mxu1  ;;  %v11035_v44 = vadd.f32 %v2911_v24, %v14547_v11  ;;  %v2914_v0 = vld [vmem:[%s9949_s26 + $0x18] sm:$0xff]  ;;  %v2912_v48 = vld [vmem:[%s9949_s26 + $0x8] sm:$0xff]  ;;  %v14548_v62 = vld [vmem:[#allocation17_spill] sm:$0xff]  ;;  %v14549_v52 = vmov 0 }
 0x28f   : > { %3045 = vst [vmem:[%s9949_s26 + $0x130] sm:$0xff] %v2997_v32  ;;  %v2998_v8 = vadd.f32 %v2876_v41, %v14548_v62  ;;  %v3511_v60 = vpop.f32.mrb[151].mxu1  ;;  %v14550_v52 = vsel %vm11045_vm3, 4294967295, %v14549_v52  ;;  %v11050_v15 = vadd.s32 24, %v10976_v63  ;;  %v479_v24 = vshrl.u32 %v10971_v4, 4  ;;  %v14553_v11 = vld [vmem:[#allocation26_spill] sm:$0xff] }
 0x290   : > { %14551 = vst [vmem:[#allocation42_spill] sm:$0xff] %v14550_v52  ;;  %v11054_v37 = vadd.f32 %v2914_v0, %v14553_v11  ;;  %v14554_v32 = vld [vmem:[#allocation30_spill] sm:$0xff]  ;;  %3043 = vst [vmem:[%s9949_s26 + $0x120] sm:$0xff] %v2995_v31  ;;  %v14555_v62 = vld [vmem:[#allocation13_spill] sm:$0xff]  ;;  %vm14556_vm6 = vcmp.lt.s32.totalorder %v10976_v63, 0  ;;  %v14557_v28 = vmov 0  ;;  %v11070_v4 = vsub.s32 %v10839_v49, %v469_v56 }
 0x291   : > { %14552 = vst [vmem:[#allocation14_spill] sm:$0xff] %v11050_v15  ;;  %v11057_v41 = vadd.f32 %v2912_v48, %v14554_v32  ;;  %v2996_v60 = vadd.f32 %v2868_v22, %v14555_v62  ;;  %vm11065_vm8 = vmand %vm14556_vm6, %vm875_vm11  ;;  %v2917_v0 = vld [vmem:[%s9949_s26 + $0x30] sm:$0xff]  ;;  %v2915_v11 = vld [vmem:[%s9949_s26 + $0x20] sm:$0xff]  ;;  %vm869_vm9 = vcmp.ne.s32.totalorder %v11000_v51, 0  ;;  %vm917_vm1 = vcmp.lt.s32.totalorder %v11000_v51, 0 }
 0x292   : > { %v14558_v28 = vsel %vm11065_vm8, 4294967295, %v14557_v28  ;;  %14560 = vst [vmem:[#allocation20_spill] sm:$0xff] %v11070_v4  ;;  %3046 = vst [vmem:[%s9949_s26 + $0x138] sm:$0xff] %v2998_v8  ;;  %v556_v31 = vshrl.u32 %v10987_v9, 4  ;;  %v14561_v48 = vld [vmem:[#allocation36_spill] sm:$0xff]  ;;  %v8186_v56 = vpop.f32.mrb[136].mxu0 }
 0x293   : > { %14559 = vst [vmem:[#allocation39_spill] sm:$0xff] %v14558_v28  ;;  %v11083_v32 = vadd.f32 %v2917_v0, %v14561_v48  ;;  %v14562_v62 = vld [vmem:[#allocation28_spill] sm:$0xff]  ;;  %3044 = vst [vmem:[%s9949_s26 + $0x128] sm:$0xff] %v2996_v60  ;;  %v11094_v54 = vadd.s32 24, %v11000_v51  ;;  %v2889_v22 = vadd.f32 %v8186_v56, %v10674_v13  ;;  %v2880_v9 = vpop.f32.mrb[137].mxu0  ;;  %v567_v60 = vshrl.u32 %v11004_v25, 4 }
 0x294   : > { %v11086_v49 = vadd.f32 %v2915_v11, %v14562_v62  ;;  %v2918_v2 = vld [vmem:[%s9949_s26 + $0x38] sm:$0xff]  ;;  %v480_v11 = vmul.u32 24, %v479_v24  ;;  %v14563_v48 = vld [vmem:[#allocation25_spill] sm:$0xff]  ;;  %v8187_v5 = vpop.f32.mrb[138].mxu0  ;;  %v11107_v45 = vpop.f32.mrb[152].mxu1  ;;  %vm11113_vm11 = vmand %vm917_vm1, %vm869_vm9  ;;  %vm870_vm6 = vcmp.ne.s32.totalorder %v11070_v4, 0 }
 0x295   : > { %v11104_v62 = vadd.f32 %v2918_v2, %v14563_v48  ;;  %v14564_v52 = vld [vmem:[#allocation44_spill] sm:$0xff]  ;;  %v11119_v25 = vadd.s32 192, %v10491_v6  ;;  %v14567_v2 = vld [vmem:[#allocation22_spill] sm:$0xff]  ;;  %v2883_v56 = vpop.f32.mrb[139].mxu0  ;;  %v557_v48 = vmul.u32 24, %v556_v31  ;;  %vm918_vm1 = vcmp.lt.s32.totalorder %v11070_v4, 0 }
 0x296   : > { %v2881_v8 = vadd.f32 %v2880_v9, %v14564_v52  ;;  %v3001_v24 = vadd.f32 %v2889_v22, %v14567_v2  ;;  %v2892_v52 = vadd.f32 %v8187_v5, %v10696_v36  ;;  %v3516_v9 = vpop.f32.mrb[153].mxu1  ;;  %v14568_v0 = vld [vmem:[#allocation15_spill] sm:$0xff]  ;;  %v2884_v15 = vadd.f32 %v2883_v56, %v10630_v53  ;;  %v2919_v56 = vld [vmem:[%s9949_s26 + $0x40] sm:$0xff]  ;;  %v14575_v31 = vld [vmem:[#allocation34_spill] sm:$0xff] }
 0x297   : > { %v11126_v28 = vpop.f32.mrb[154].mxu1  ;;  %v490_v26 = vshrl.u32 %v11015_v55, 4  ;;  %v501_v22 = vshrl.u32 %v11032_v46, 4  ;;  %v14569_v36 = vld [vmem:[#allocation23_spill] sm:$0xff]  ;;  %v11137_v53 = vsub.s32 %v10937_v16, %v480_v11  ;;  %v14570_v46 = vld [vmem:[#allocation18_spill] sm:$0xff]  ;;  %v14573_v16 = vld [vmem:[#allocation32_spill] sm:$0xff]  ;;  %v11158_v51 = vadd.f32 %v2919_v56, %v14575_v31 }
 0x298   : > { %v2999_v63 = vadd.f32 %v2881_v8, %v14568_v0  ;;  %3049 = vst [vmem:[%s9949_s26 + $0x150] sm:$0xff] %v3001_v24  ;;  %v3002_v5 = vadd.f32 %v2892_v52, %v14569_v36  ;;  %v3519_v2 = vpop.f32.mrb[155].mxu1  ;;  %v568_v8 = vmul.u32 24, %v567_v60  ;;  %v2916_v0 = vld [vmem:[%s9949_s26 + $0x28] sm:$0xff]  ;;  %v2921_v55 = vld [vmem:[%s9949_s26 + $0x50] sm:$0xff]  ;;  %v3000_v24 = vadd.f32 %v2884_v15, %v14570_v46  ;;  %vm11166_vm9 = vmand %vm918_vm1, %vm870_vm6 }
 0x299   : > { %v11145_v52 = vadd.s32 24, %v11070_v4  ;;  %v11148_v9 = vmul.u32.u64.low 2863311531, %v11119_v25  ;;  %v11149_v36 = vmul.u32.u64.high 2863311531, %v11119_v25, %v11148_v9  ;;  %v14572_v2 = vld [vmem:[#allocation27_spill] sm:$0xff]  ;;  %v11155_v11 = vadd.f32 %v2921_v55, %v14573_v16  ;;  %14576 = vst [vmem:[#allocation30_spill] sm:$0xff] %v11158_v51 }
 0x29a   : > { %3047 = vst [vmem:[%s9949_s26 + $0x140] sm:$0xff] %v2999_v63  ;;  %v11152_v60 = vadd.f32 %v2916_v0, %v14572_v2  ;;  %v2922_v63 = vld [vmem:[%s9949_s26 + $0x58] sm:$0xff]  ;;  %3050 = vst [vmem:[%s9949_s26 + $0x158] sm:$0xff] %v3002_v5  ;;  %v14577_v15 = vmov 0  ;;  %v11171_v46 = vadd.s32 144, %v10491_v6  ;;  %v14580_v0 = vld [vmem:[#allocation31_spill] sm:$0xff]  ;;  %v11178_v31 = vsub.s32 %v10955_v27, %v557_v48 }
 0x29b   : > { %14571 = vst [vmem:[#allocation17_spill] sm:$0xff] %v11145_v52  ;;  %14574 = vst [vmem:[#allocation26_spill] sm:$0xff] %v11155_v11  ;;  %v14578_v15 = vsel %vm11166_vm9, 4294967295, %v14577_v15  ;;  %v11174_v9 = vadd.f32 %v2922_v63, %v14580_v0  ;;  %v8190_v55 = vpop.f32.mrb[140].mxu0  ;;  %v491_v5 = vmul.u32 24, %v490_v26  ;;  %v502_v56 = vmul.u32 24, %v501_v22 }
 0x29c   : > { %14579 = vst [vmem:[#allocation13_spill] sm:$0xff] %v14578_v15  ;;  %3048 = vst [vmem:[%s9949_s26 + $0x148] sm:$0xff] %v3000_v24  ;;  %v2920_v2 = vld [vmem:[%s9949_s26 + $0x48] sm:$0xff]  ;;  %v2905_v16 = vadd.f32 %v8190_v55, %v10826_v61  ;;  %v2896_v51 = vpop.f32.mrb[141].mxu0  ;;  %v11183_v11 = vsub.s32 %v10967_v7, %v568_v8  ;;  %vm871_vm6 = vcmp.ne.s32.totalorder %v11137_v53, 0  ;;  %vm919_vm1 = vcmp.lt.s32.totalorder %v11137_v53, 0 }
 0x29d   : > { %v14582_v63 = vld [vmem:[#allocation33_spill] sm:$0xff]  ;;  %v2897_v24 = vadd.f32 %v2896_v51, %v10742_v20  ;;  %v8191_v27 = vpop.f32.mrb[142].mxu0  ;;  %v11191_v26 = vpop.f32.mrb[156].mxu1  ;;  %v11198_v7 = vadd.s32 152, %v10491_v6  ;;  %v14584_v48 = vld [vmem:[#allocation24_spill] sm:$0xff]  ;;  %v11203_v51 = vadd.s32 24, %v11137_v53  ;;  %vm11216_vm8 = vmand %vm919_vm1, %vm871_vm6 }
 0x29e   : > { %14581 = vst [vmem:[#allocation36_spill] sm:$0xff] %v11183_v11  ;;  %v11188_v0 = vadd.f32 %v2920_v2, %v14582_v63  ;;  %v3005_v22 = vadd.f32 %v2905_v16, %v14584_v48  ;;  %v2908_v8 = vadd.f32 %v8191_v27, %v10855_v12  ;;  %v2899_v55 = vpop.f32.mrb[143].mxu0  ;;  %v3524_v20 = vpop.f32.mrb[157].mxu1  ;;  %v11206_v2 = vadd.s32 176, %v10491_v6  ;;  %v14586_v63 = vld [vmem:[#allocation21_spill] sm:$0xff]  ;;  %v2925_v27 = vld [vmem:[%s9949_s26 + $0x70] sm:$0xff] }
 0x29f   : > { %v3003_v15 = vadd.f32 %v2897_v24, %v14586_v63  ;;  %v2900_v61 = vadd.f32 %v2899_v55, %v10755_v1  ;;  %v11210_v4 = vpop.f32.mrb[158].mxu1  ;;  %v14587_v12 = vmov 0  ;;  %v11221_v16 = vsub.s32 %v10947_v42, %v491_v5  ;;  %v2923_v1 = vld [vmem:[%s9949_s26 + $0x60] sm:$0xff]  ;;  %v14594_v5 = vld [vmem:[#allocation38_spill] sm:$0xff] }
 0x2a0   : > { %14583 = vst [vmem:[#allocation28_spill] sm:$0xff] %v11188_v0  ;;  %14585 = vst [vmem:[#allocation25_spill] sm:$0xff] %v11206_v2  ;;  %v14588_v12 = vsel %vm11216_vm8, 4294967295, %v14587_v12  ;;  %v11224_v24 = vsub.s32 %v10996_v57, %v502_v56  ;;  %v14589_v48 = vld [vmem:[#allocation29_spill] sm:$0xff]  ;;  %v3527_v20 = vpop.f32.mrb[159].mxu1  ;;  %v11231_v63 = vadd.s32 24, %v11178_v31  ;;  %v11243_v56 = vadd.f32 %v2923_v1, %v14594_v5 }
 0x2a1   : > { %3053 = vst [vmem:[%s9949_s26 + $0x170] sm:$0xff] %v3005_v22  ;;  %v3006_v55 = vadd.f32 %v2908_v8, %v14589_v48  ;;  %v11234_v52 = vadd.s32 24, %v11183_v11  ;;  %v11237_v0 = vadd.s32 200, %v10491_v6  ;;  %v14592_v42 = vld [vmem:[#allocation37_spill] sm:$0xff]  ;;  %v2926_v22 = vld [vmem:[%s9949_s26 + $0x78] sm:$0xff]  ;;  %v2924_v8 = vld [vmem:[%s9949_s26 + $0x68] sm:$0xff] }
 0x2a2   : > { %14590 = vst [vmem:[#allocation44_spill] sm:$0xff] %v11231_v63  ;;  %v11240_v57 = vadd.f32 %v2925_v27, %v14592_v42  ;;  %3051 = vst [vmem:[%s9949_s26 + $0x160] sm:$0xff] %v3003_v15  ;;  %v14595_v48 = vld [vmem:[#allocation19_spill] sm:$0xff]  ;;  %v600_v27 = vshrl.u32 %v11149_v36, 4  ;;  %v8725_v42 = vld [vmem:[#allocation8 + $0x160] sm:$0xff]   ;;  %v8210_v36 = vpop.f32.mrb[144].mxu0 }
 0x2a3   : > { %14591 = vst [vmem:[#allocation22_spill] sm:$0xff] %v11234_v52  ;;  %v3004_v20 = vadd.f32 %v2900_v61, %v14595_v48  ;;  %v14596_v52 = vsel %vm10660_vm4, %v10642_v10, %v10598_v34  ;;  %v14599_v11 = vld [vmem:[#allocation40_spill] sm:$0xff]  ;;  %v14601_v5 = vld [vmem:[#allocation41_spill] sm:$0xff]  ;;  %3054 = vst [vmem:[%s9949_s26 + $0x178] sm:$0xff] %v3006_v55  ;;  %vm872_vm1 = vcmp.ne.s32.totalorder %v11221_v16, 0  ;;  %vm920_vm8 = vcmp.lt.s32.totalorder %v11221_v16, 0  ;;  %8328 = vmatprep.subr.bf16.mxu0 %v8725_v42 }
 0x2a4   : > { %14593 = vst [vmem:[#allocation15_spill] sm:$0xff] %v11240_v57  ;;  %vm11254_vm6 = vcmp.lt.s32.totalorder %v14596_v52, 16  ;;  %v11260_v1 = vadd.f32 %v2926_v22, %v14599_v11  ;;  %v11263_v57 = vadd.f32 %v2924_v8, %v14601_v5  ;;  %v14604_v61 = vld [vmem:[#allocation43_spill] sm:$0xff]  ;;  %v11280_v52 = vadd.s32 184, %v10491_v6  ;;  %v3723_v35 = vpop.f32.mrb[145].mxu0  ;;  %8329 = vmatpush3.bf16.msra.mxu0 %v8725_v42 }
 0x2a5   : > { %v14605_v48 = vsel %vm10680_vm5, %v14603_v23, %v14604_v61  ;;  %3052 = vst [vmem:[%s9949_s26 + $0x168] sm:$0xff] %v3004_v20  ;;  %v14609_v11 = vsel %vm10784_vm13, %v10722_v29, %v10665_v50  ;;  %v11296_v22 = vadd.s32 24, %v11221_v16  ;;  %v3732_v8 = vadd.f32 %v8210_v36, %v11007_v40  ;;  %v11302_v50 = vld [vmem:[%s14217_s2] ss:$0 sm:$0xff]  ;;  %v8211_v23 = vpop.f32.mrb[146].mxu0  ;;  %v11319_v61 = vpop.f32.mrb[160].mxu1 }
 0x2a6   : > { %14600 = vst [vmem:[#allocation23_spill] sm:$0xff] %v11260_v1  ;;  %vm11271_vm4 = vcmp.lt.s32.totalorder %v14605_v48, 16  ;;  %14608 = vst [vmem:[#allocation18_spill] sm:$0xff] %v11280_v52  ;;  %vm11288_vm5 = vcmp.lt.s32.totalorder %v14609_v11, 16  ;;  %v14612_v29 = vsel %vm10801_vm0, %v10719_v33, %v10685_v39  ;;  %vm921_vm3 = vcmp.lt.s32.totalorder %v11224_v24, 0  ;;  %v3726_v11 = vpop.f32.mrb[147].mxu0 }
 0x2a7   : > { %vm11309_vm13 = vcmp.lt.s32.totalorder %v14612_v29, 16  ;;  %v11315_v5 = vmul.u32.u64.low 2863311531, %v11237_v0  ;;  %v11316_v40 = vmul.u32.u64.high 2863311531, %v11237_v0, %v11315_v5  ;;  %v3724_v15 = vadd.f32 %v3723_v35, %v10941_v18  ;;  %v3532_v29 = vpop.f32.mrb[161].mxu1  ;;  %vm11331_vm0 = vmand %vm920_vm8, %vm872_vm1 }
 0x2a8   : > { %v601_v58 = vmul.u32 24, %v600_v27  ;;  %v11322_v48 = vmul.u32.u64.low 2863311531, %v11171_v46  ;;  %v11323_v39 = vmul.u32.u64.high 2863311531, %v11171_v46, %v11322_v48  ;;  %v3964_v33 = vadd.f32 %v3732_v8, %v10950_v38  ;;  %v11343_v8 = vpop.f32.mrb[162].mxu1 }
 0x2a9   : > { %v3735_v36 = vadd.f32 %v8211_v23, %v11020_v19  ;;  %v11336_v27 = vadd.s32 24, %v11224_v24  ;;  %v11339_v42 = vadd.s32 208, %v10491_v6  ;;  %v3962_v38 = vadd.f32 %v3724_v15, %v11035_v44  ;;  %v3535_v48 = vpop.f32.mrb[163].mxu1 }
 0x2aa   : > { %v3727_v19 = vadd.f32 %v3726_v11, %v10959_v21  ;;  %v11346_v35 = vmul.u32.u64.low 2863311531, %v11198_v7  ;;  %v11347_v5 = vmul.u32.u64.high 2863311531, %v11198_v7, %v11346_v35  ;;  %v11351_v29 = vadd.f32 %v11302_v50, %v3964_v33 }
 0x2ab   : > { %14617 = vst [vmem:[#allocation27_spill] sm:$0xff] %v11339_v42  ;;  %v3965_v23 = vadd.f32 %v3735_v36, %v11054_v37  ;;  %v11354_v10 = vmul.u32.u64.low 2863311531, %v11206_v2  ;;  %v11355_v1 = vmul.u32.u64.high 2863311531, %v11206_v2, %v11354_v10  ;;  %v4113_v21 = vadd.f32 %v11302_v50, %v3962_v38  ;;  %v4475_v35 = vld [vmem:[#allocation2 + $0x11] sm:$0xff] }
 0x2ac   : > { %v3963_v44 = vadd.f32 %v3727_v19, %v11057_v41  ;;  %v14618_v15 = vsel %vm10832_vm7, %v10791_v30, %v10731_v43  ;;  %v14619_v11 = vmov 0  ;;  %v11373_v10 = vsub.s32 %v11119_v25, %v601_v58  ;;  %v14623_v43 = vld [vmem:[#allocation49_spill] sm:$0xff]  ;;  %v14624_v30 = vld [vmem:[#allocation47_spill] sm:$0xff]  ;;  %v8214_v25 = vpop.f32.mrb[148].mxu0 }
 0x2ad   : > { %vm11364_vm8 = vcmp.lt.s32.totalorder %v14618_v15, 16  ;;  %v14272_v41 = vmax.f32 %v11351_v29, 0.0  ;;  %v11377_v33 = vadd.f32 %v11302_v50, %v3965_v23  ;;  %v14625_v17 = vsel %vm10818_vm2, %v14623_v43, %v14624_v30  ;;  %v3739_v43 = vpop.f32.mrb[149].mxu0  ;;  %v14701_v55 = vld [vmem:[#allocation23_spill] sm:$0xff] }
 0x2ae   : > { %v14620_v11 = vsel %vm11364_vm8, 4294967295, %v14619_v11  ;;  %14622 = vst [vmem:[#allocation34_spill] sm:$0xff] %v11373_v10  ;;  %vm11384_vm7 = vcmp.lt.s32.totalorder %v14625_v17, 16  ;;  %v11389_v38 = vmul.u32.u64.low 2863311531, %v11280_v52  ;;  %v11390_v19 = vmul.u32.u64.high 2863311531, %v11280_v52, %v11389_v38  ;;  %v8215_v17 = vpop.f32.mrb[150].mxu0 }
 0x2af   : > { %14621 = vst [vmem:[#allocation32_spill] sm:$0xff] %v14620_v11  ;;  %v4161_v58 = vmax.f32 %v4113_v21, 0.0  ;;  %v11394_v23 = vadd.f32 %v11302_v50, %v3963_v44  ;;  %v11397_v14 = vmul.u32.u64.low 2863311531, %v11339_v42  ;;  %v11398_v48 = vmul.u32.u64.high 2863311531, %v11339_v42, %v11397_v14  ;;  %v14629_v44 = vld [vmem:[#allocation48_spill] sm:$0xff]  ;;  %v3538_v52 = vpop.f32.mrb[164].mxu1 }
 0x2b0   : > { %v3748_v15 = vadd.f32 %v8214_v25, %v11191_v26  ;;  %v4307_v30 = vsel %vm11254_vm6, %v14272_v41, 0.0  ;;  %v14630_v21 = vsel %vm10847_vm10, %v10807_v59, %v14629_v44  ;;  %v14634_v26 = vld [vmem:[#allocation54_spill] sm:$0xff]  ;;  %v611_v41 = vshrl.u32 %v11316_v40, 4  ;;  %v3540_v14 = vpop.f32.mrb[165].mxu1 }
 0x2b1   : > { %14628 = vst [vmem:[#allocation31_spill] sm:$0xff] %v11398_v48  ;;  %vm11412_vm2 = vcmp.lt.s32.totalorder %v14630_v21, 16  ;;  %v14635_v25 = vld [vmem:[#allocation50_spill] sm:$0xff]  ;;  %v3740_v47 = vadd.f32 %v3739_v43, %v11107_v45  ;;  %v4305_v59 = vsel %vm11271_vm4, %v4161_v58, 0.0  ;;  %4355 = vst [vmem:[#allocation2 + $0x29] sm:$0xff] %v4307_v30  ;;  %vm14639_vm10 = vcmp.ne.s32.totalorder %v11224_v24, 0 }
 0x2b2   : > { %v14636_v37 = vsel %vm10862_vm14, %v14634_v26, %v14635_v25  ;;  %vm11434_vm14 = vmand %vm921_vm3, %vm14639_vm10  ;;  %v534_v40 = vshrl.u32 %v11323_v39, 4  ;;  %v3968_v45 = vadd.f32 %v3748_v15, %v11083_v32  ;;  %v3751_v43 = vadd.f32 %v8215_v17, %v11210_v4  ;;  %v3742_v21 = vpop.f32.mrb[151].mxu0  ;;  %4353 = vst [vmem:[#allocation2 + $0x19] sm:$0xff] %v4305_v59  ;;  %v3541_v48 = vpop.f32.mrb[166].mxu1  ;;  %v14648_v59 = vld [vmem:[#allocation56_spill] sm:$0xff] }
 0x2b3   : > { %vm11421_vm1 = vcmp.lt.s32.totalorder %v14636_v37, 16  ;;  %v14642_v26 = vmax.f32 %v11377_v33, 0.0  ;;  %v3966_v25 = vadd.f32 %v3740_v47, %v11086_v49  ;;  %v3743_v44 = vadd.f32 %v3742_v21, %v11126_v28  ;;  %v3543_v15 = vpop.f32.mrb[167].mxu1  ;;  %v8218_v14 = vpop.f32.mrb[152].mxu0 }
 0x2b4   : > { %v14643_v2 = vmax.f32 %v11394_v23, 0.0  ;;  %v545_v4 = vshrl.u32 %v11347_v5, 4  ;;  %v3969_v39 = vadd.f32 %v3751_v43, %v11104_v62  ;;  %vm14285_vm3 = vmmov 1  }
 0x2b5   : > { %v4308_v30 = vsel %vm11288_vm5, %v14642_v26, 0.0  ;;  %vm8846_vm10 = vmpackc.low %vm11271_vm4, %vm14285_vm3  ;;  %v8847_v49 = vpack.c.bf16 %v4161_v58, %v4475_v35  ;;  %v11457_v28 = vadd.f32 %v11302_v50, %v3968_v45  ;;  %v3967_v5 = vadd.f32 %v3743_v44, %v11152_v60  ;;  %v14649_v45 = vld [vmem:[#allocation51_spill] sm:$0xff] }
 0x2b6   : > { %v4306_v32 = vsel %vm11309_vm13, %v14643_v2, 0.0  ;;  %4356 = vst [vmem:[#allocation2 + $0x31] sm:$0xff] %v4308_v30  ;;  %v11465_v62 = vadd.f32 %v11302_v50, %v3966_v25  ;;  %v535_v17 = vmul.u32 24, %v534_v40  ;;  %v11468_v34 = vadd.s32 216, %v10491_v6  ;;  %v8731_v40 = vld [vmem:[#allocation8 + $0x168] sm:$0xff]  }
 0x2b7   : > { %8848 = vmatprep.mubr.msk.bf16.mxu0 %vm8846_vm10, %v8847_v49  ;;  %4354 = vst [vmem:[#allocation2 + $0x21] sm:$0xff] %v4306_v32  ;;  %14644 = vst [vmem:[#allocation33_spill] sm:$0xff] %v11457_v28  ;;  %v11471_v58 = vadd.f32 %v11302_v50, %v3969_v39  ;;  %v14276_v35 = vmax.f32 %v11457_v28, 0.0  ;;  %v14650_v43 = vsel %vm10876_vm15, %v14648_v59, %v14649_v45  ;;  %v11484_v60 = vadd.s32 24, %v11373_v10  ;;  %v14655_v32 = vld [vmem:[#allocation59_spill] sm:$0xff]  ;;  %v14663_v25 = vld [vmem:[#allocation58_spill] sm:$0xff] }
 0x2b8   : > { %14645 = vst [vmem:[#allocation24_spill] sm:$0xff] %v11465_v62  ;;  %14646 = vst [vmem:[#allocation21_spill] sm:$0xff] %v11468_v34  ;;  %vm11479_vm4 = vcmp.lt.s32.totalorder %v14650_v43, 16  ;;  %v11486_v44 = vmul.u32 24, %v611_v41  ;;  %v14283_v26 = vmax.f32 %v11465_v62, 0.0  ;;  %v11490_v30 = vadd.f32 %v11302_v50, %v3967_v5  ;;  %v14659_v41 = vld [vmem:[#allocation63_spill] sm:$0xff]  ;;  %8330 = vmatprep.subr.bf16.mxu0 %v8731_v40 }
 0x2b9   : > { %14653 = vst [vmem:[#allocation29_spill] sm:$0xff] %v11484_v60  ;;  %v14656_v39 = vsel %vm11026_vm12, %v10983_v3, %v14655_v32  ;;  %v14660_v49 = vsel %vm11113_vm11, %v11094_v54, %v14659_v41  ;;  %v14661_v47 = vmov 0  ;;  %v11510_v5 = vmul.u32 24, %v545_v4  ;;  %v3755_v3 = vpop.f32.mrb[153].mxu0  ;;  %v14665_v54 = vld [vmem:[#allocation57_spill] sm:$0xff]  ;;  %v14666_v32 = vld [vmem:[#allocation52_spill] sm:$0xff]  ;;  %8331 = vmatpush3.bf16.msra.mxu0 %v8731_v40 }
 0x2ba   : > { %vm11497_vm15 = vcmp.lt.s32.totalorder %v14656_v39, 16  ;;  %vm11506_vm10 = vcmp.lt.s32.totalorder %v14660_v49, 16  ;;  %v11513_v59 = vadd.s32 224, %v10491_v6  ;;  %v3764_v45 = vadd.f32 %v8218_v14, %v3538_v52  ;;  %v8219_v14 = vpop.f32.mrb[154].mxu0  ;;  %v11531_v49 = vpop.f32.mrb[168].mxu1  ;;  %v4404_v2 = vld [vmem:[#allocation2 + $0x18] sm:$0xff] }
 0x2bb   : > { %v14662_v47 = vsel %vm11506_vm10, 4294967295, %v14661_v47  ;;  %v4311_v13 = vsel %vm11364_vm8, %v14276_v35, 0.0  ;;  %vm14664_vm12 = vnez %v14663_v25  ;;  %v3756_v52 = vadd.f32 %v3755_v3, %v11319_v61  ;;  %v3758_v61 = vpop.f32.mrb[155].mxu0  ;;  %v3548_v3 = vpop.f32.mrb[169].mxu1  ;;  %v8768_v43 = vld [vmem:[#allocation2] sm:$0xff]  ;;  %v8724_v10 = vld [vmem:[#allocation8 + $0xc0] sm:$0xff]  }
 0x2bc   : > { %v14667_v39 = vsel %vm14664_vm12, %v14665_v54, %v14666_v32  ;;  %v4309_v25 = vsel %vm11384_vm7, %v14283_v26, 0.0  ;;  %4359 = vst [vmem:[#allocation2 + $0x49] sm:$0xff] %v4311_v13  ;;  %v11539_v32 = vsub.s32 %v11171_v46, %v535_v17  ;;  %v3767_v41 = vadd.f32 %v8219_v14, %v3541_v48  ;;  %v14671_v28 = vld [vmem:[#allocation30_spill] sm:$0xff]  ;;  %v3549_v54 = vpop.f32.mrb[170].mxu1  ;;  %vm8849_vm12 = vmpackc.low %vm11254_vm6, %vm11309_vm13  ;;  %v8222_v3 = vpop.f32.mrb[156].mxu0  ;;  %v3936_v4 = vld [vmem:[%s9949_s26 + $0xb0] sm:$0xff] }
 0x2bd   : > { %vm11525_vm11 = vcmp.lt.s32.totalorder %v14667_v39, 16  ;;  %v14670_v39 = vld [vmem:[#allocation26_spill] sm:$0xff]  ;;  %v4450_v60 = vpack.c.bf16 %v4404_v2, %v8768_v43  ;;  %4357 = vst [vmem:[#allocation2 + $0x39] sm:$0xff] %v4309_v25  ;;  %v3970_v11 = vadd.f32 %v3756_v52, %v14671_v28  ;;  %v3759_v26 = vadd.f32 %v3758_v61, %v11343_v8  ;;  %v3551_v43 = vpop.f32.mrb[171].mxu1  ;;  %v14674_v52 = vld [vmem:[#allocation28_spill] sm:$0xff] }
 0x2be   : > { %v3972_v35 = vadd.f32 %v3764_v45, %v14670_v39  ;;  %v4550_v34 = vld [vmem:[#allocation2 + $0x2a] sm:$0xff]  ;;  %v4547_v13 = vld [vmem:[#allocation2 + $0x12] sm:$0xff]  ;;  %v4548_v62 = vld [vmem:[#allocation2 + $0x1a] sm:$0xff]  ;;  %v14672_v17 = vmax.f32 %v11490_v30, 0.0  ;;  %v14673_v40 = vmax.f32 %v11471_v58, 0.0  ;;  %v3973_v45 = vadd.f32 %v3767_v41, %v11174_v9 }
 0x2bf   : > { %v4549_v46 = vld [vmem:[#allocation2 + $0x22] sm:$0xff]  ;;  %4850 = vmatmul.mubr.bf16.gmra.mrb[196].mxu0 %v4450_v60  ;;  %v4594_v28 = vpack.c.bf16 %v4548_v62, %v4547_v13  ;;  %v3971_v14 = vadd.f32 %v3759_v26, %v14674_v52  ;;  %v14675_v25 = vmax.f32 %v11394_v23, 0.0  ;;  %v14676_v39 = vmax.f32 %v11351_v29, 0.0 }
 0x2c0   : > { %v4310_v48 = vsel %vm11412_vm2, %v14672_v17, 0.0  ;;  %v4312_v2 = vsel %vm11421_vm1, %v14673_v40, 0.0  ;;  %v4595_v8 = vpack.c.bf16 %v4550_v34, %v4549_v46  ;;  %v11563_v9 = vadd.f32 %v11302_v50, %v3970_v11  ;;  %v14678_v23 = vld [vmem:[#allocation17_spill] sm:$0xff]  ;;  %v14679_v60 = vld [vmem:[#allocation20_spill] sm:$0xff] }
 0x2c1   : > { %4358 = vst [vmem:[#allocation2 + $0x41] sm:$0xff] %v4310_v48  ;;  %4360 = vst [vmem:[#allocation2 + $0x51] sm:$0xff] %v4312_v2  ;;  %v8850_v61 = vpack.c.bf16 %v14676_v39, %v14675_v25  ;;  %v11566_v62 = vadd.f32 %v11302_v50, %v3972_v35  ;;  %v11569_v34 = vadd.s32 232, %v10491_v6  ;;  %8273 = vmatmul.mubr.bf16.vlgmr.msra.gmra.mrb[240].mxu1 %v4594_v28  ;;  %v589_v41 = vshrl.u32 %v11390_v19, 4  ;;  %v4405_v13 = vld [vmem:[#allocation2 + $0x20] sm:$0xff]  ;;  %v4406_v46 = vld [vmem:[#allocation2 + $0x28] sm:$0xff] }
 0x2c2   : > { %v11572_v20 = vadd.f32 %v11302_v50, %v3973_v45  ;;  %v14680_v29 = vsel %vm11166_vm9, %v14678_v23, %v14679_v60  ;;  %v11584_v11 = vmul.u32.u64.low 2863311531, %v11513_v59  ;;  %v11585_v35 = vmul.u32.u64.high 2863311531, %v11513_v59, %v11584_v11  ;;  %8276 = vmatprep.mubr.bf16.mxu1 %v4595_v8  ;;  %5717 = vmatpush1.bf16.msra.mxu1 %v8724_v10  ;;  %v8726_v28 = vld [vmem:[#allocation8 + $0xc8] sm:$0xff]   ;;  %v3771_v8 = vpop.f32.mrb[157].mxu0 }
 0x2c3   : > { %8851 = vmatprep.mubr.msk.bf16.mxu0 %vm8849_vm12, %v8850_v61  ;;  %vm11579_vm6 = vcmp.lt.s32.totalorder %v14680_v29, 16  ;;  %v11589_v17 = vadd.f32 %v11302_v50, %v3971_v14  ;;  %v14293_v48 = vmax.f32 %v11563_v9, 0.0  ;;  %v14291_v40 = vmax.f32 %v11566_v62, 0.0  ;;  %v8727_v29 = vld [vmem:[#allocation8 + $0xd0] sm:$0xff]  }
 0x2c4   : > { %v14683_v2 = vsel %vm11331_vm0, %v11296_v22, %v11221_v16  ;;  %v14684_v45 = vmov 0  ;;  %v11604_v43 = vsub.s32 %v11237_v0, %v11486_v44  ;;  %v14290_v52 = vmax.f32 %v11572_v20, 0.0  ;;  %v4551_v61 = vld [vmem:[#allocation2 + $0x32] sm:$0xff]  ;;  %vm8852_vm0 = vmpackc.low %vm11384_vm7, %vm11288_vm5 }
 0x2c5   : > { %vm11598_vm9 = vcmp.lt.s32.totalorder %v14683_v2, 16  ;;  %vm14686_vm13 = vnez %v14588_v12  ;;  %v11618_v22 = vsub.s32 %v11198_v7, %v11510_v5  ;;  %v14690_v0 = vshrl.u32 %v11355_v1, 4  ;;  %v3554_v12 = vpop.f32.mrb[172].mxu1 }
 0x2c6   : > { %v14685_v45 = vsel %vm11598_vm9, 4294967295, %v14684_v45  ;;  %v14687_v18 = vsel %vm14686_vm13, %v11203_v51, %v11137_v53  ;;  %v14691_v44 = vmov 0   ;;  %v3772_v14 = vadd.f32 %v3771_v8, %v11531_v49  ;;  %v8223_v53 = vpop.f32.mrb[158].mxu0  ;;  %v3556_v25 = vpop.f32.mrb[173].mxu1 }
 0x2c7   : > { %vm11612_vm12 = vcmp.lt.s32.totalorder %v14687_v18, 16  ;;  %v11623_v10 = vmul.u32 24, %v14690_v0  ;;  %5718 = vmatprep.subr.bf16.mxu1 %v14691_v44  ;;  %v14292_v51 = vmax.f32 %v11589_v17, 0.0  ;;  %v4313_v7 = vsel %vm11479_vm4, %v14293_v48, 0.0  ;;  %v3774_v1 = vpop.f32.mrb[159].mxu0  ;;  %v3931_v48 = vld [vmem:[%s9949_s26 + $0x88] sm:$0xff] }
 0x2c8   : > { %v3780_v5 = vadd.f32 %v8222_v3, %v3554_v12  ;;  %v4451_v39 = vpack.c.bf16 %v4406_v46, %v4405_v13  ;;  %4361 = vst [vmem:[#allocation2 + $0x59] sm:$0xff] %v4313_v7  ;;  %v4315_v49 = vsel %vm11497_vm15, %v14291_v40, 0.0  ;;  %v4316_v63 = vsel %vm11506_vm10, %v14290_v52, 0.0  ;;  %v3557_v3 = vpop.f32.mrb[174].mxu1  ;;  %v4552_v46 = vld [vmem:[#allocation2 + $0x3a] sm:$0xff]  ;;  %v4553_v2 = vld [vmem:[#allocation2 + $0x42] sm:$0xff]  ;;  %5719 = vmatpush1.bf16.msra.mxu1 %v8726_v28 }
 0x2c9   : > { %v14692_v23 = vsel %vm11434_vm14, %v11336_v27, %v11224_v24  ;;  %v14693_v60 = vmov 0  ;;  %v3974_v11 = vadd.f32 %v3772_v14, %v11243_v56  ;;  %v3775_v13 = vadd.f32 %v3774_v1, %v3549_v54  ;;  %v4554_v8 = vld [vmem:[#allocation2 + $0x4a] sm:$0xff]  ;;  %4363 = vst [vmem:[#allocation2 + $0x69] sm:$0xff] %v4315_v49  ;;  %4364 = vst [vmem:[#allocation2 + $0x71] sm:$0xff] %v4316_v63  ;;  %v14696_v24 = vld [vmem:[#allocation15_spill] sm:$0xff]  ;;  %v3559_v18 = vpop.f32.mrb[175].mxu1  ;;  %5720 = vmatprep.subr.bf16.mxu1 %v14691_v44 }
 0x2ca   : > { %vm11646_vm3 = vcmp.lt.s32.totalorder %v14692_v23, 16  ;;  %v4314_v37 = vsel %vm11525_vm11, %v14292_v51, 0.0  ;;  %v3976_v27 = vadd.f32 %v3780_v5, %v14696_v24  ;;  %v3783_v56 = vadd.f32 %v8223_v53, %v3557_v3  ;;  %4858 = vmatmul.mubr.bf16.gmra.mrb[200].mxu0 %v4451_v39  ;;  %v14698_v7 = vld [vmem:[#allocation24_spill] sm:$0xff]  ;;  %v11690_v39 = vpop.f32.mrb[160].mxu0  ;;  %v14708_v49 = vld [vmem:[#allocation62_spill] sm:$0xff]  ;;  %v4408_v3 = vld [vmem:[#allocation2 + $0x38] sm:$0xff] }
 0x2cb   : > { %v14694_v60 = vsel %vm11646_vm3, 4294967295, %v14693_v60  ;;  %v4596_v54 = vpack.c.bf16 %v4552_v46, %v4551_v61  ;;  %v4597_v0 = vpack.c.bf16 %v4554_v8, %v4553_v2  ;;  %4362 = vst [vmem:[#allocation2 + $0x61] sm:$0xff] %v4314_v37  ;;  %v3975_v12 = vadd.f32 %v3775_v13, %v11263_v57  ;;  %v14700_v5 = vld [vmem:[#allocation36_spill] sm:$0xff]  ;;  %v14706_v61 = vld [vmem:[#allocation42_spill] sm:$0xff]  ;;  %v3787_v24 = vpop.f32.mrb[161].mxu0 }
 0x2cc   : > { %14695 = vst [vmem:[#allocation37_spill] sm:$0xff] %v14694_v60  ;;  %v14697_v14 = vmax.f32 %v11377_v33, 0.0  ;;  %v14699_v25 = vmax.f32 %v14698_v7, 0.0  ;;  %v11670_v53 = vadd.f32 %v11302_v50, %v3974_v11  ;;  %v11673_v57 = vadd.s32 24, %v11539_v32  ;;  %v14709_v63 = vld [vmem:[#allocation60_spill] sm:$0xff]  ;;  %5721 = vmatpush1.bf16.msra.mxu1 %v8727_v29  ;;  %v14714_v7 = vld [vmem:[#allocation39_spill] sm:$0xff] }
 0x2cd   : > { %v3977_v1 = vadd.f32 %v3783_v56, %v14701_v55  ;;  %8277 = vmatmul.mubr.bf16.gmra.mrb[244].mxu1 %v4596_v54  ;;  %v11677_v36 = vadd.f32 %v11302_v50, %v3976_v27  ;;  %vm925_vm7 = vcmp.lt.s32.totalorder %v11618_v22, 0  ;;  %vm14703_vm14 = vcmp.lt.s32.totalorder %v11539_v32, 0  ;;  %v8728_v37 = vld [vmem:[#allocation8 + $0xd8] sm:$0xff]   ;;  %5722 = vmatprep.subr.bf16.mxu1 %v14691_v44  ;;  %v14717_v29 = vld [vmem:[#allocation61_spill] sm:$0xff]  ;;  %v4407_v55 = vld [vmem:[#allocation2 + $0x30] sm:$0xff] }
 0x2ce   : > { %v8853_v28 = vpack.c.bf16 %v14699_v25, %v14697_v14  ;;  %vm14707_vm10 = vnez %v14706_v61  ;;  %8280 = vmatprep.mubr.bf16.mxu1 %v4597_v0  ;;  %v11702_v13 = vadd.f32 %v11302_v50, %v3975_v12  ;;  %v14288_v46 = vmax.f32 %v11670_v53, 0.0  ;;  %v3562_v0 = vpop.f32.mrb[176].mxu1  ;;  %v3930_v12 = vld [vmem:[%s9949_s26 + $0x80] sm:$0xff]  ;;  %v11719_v14 = vpop.f32.mrb[162].mxu0 }
 0x2cf   : > { %v14710_v23 = vsel %vm14707_vm10, %v14708_v49, %v14709_v63  ;;  %v11706_v2 = vadd.s32 24, %v11618_v22  ;;  %v644_v8 = vshrl.u32 %v11585_v35, 4  ;;  %v11710_v27 = vadd.f32 %v11302_v50, %v3977_v1  ;;  %v14716_v35 = vld [vmem:[#allocation14_spill] sm:$0xff] }
 0x2d0   : > { %8854 = vmatprep.mubr.msk.bf16.mxu0 %vm8852_vm0, %v8853_v28  ;;  %vm14702_vm0 = vcmp.ne.s32.totalorder %v11539_v32, 0  ;;  %vm11697_vm5 = vcmp.lt.s32.totalorder %v14710_v23, 16  ;;  %v14289_v56 = vmax.f32 %v11677_v36, 0.0  ;;  %vm14715_vm10 = vnez %v14714_v7  ;;  %v3790_v7 = vpop.f32.mrb[163].mxu0  ;;  %5723 = vmatpush1.bf16.msra.mxu1 %v8728_v37 }
 0x2d1   : > { %vm11685_vm13 = vmand %vm14703_vm14, %vm14702_vm0  ;;  %14713 = vst [vmem:[#allocation38_spill] sm:$0xff] %v11710_v27  ;;  %v11714_v18 = vmul.u32.u64.low 2863311531, %v11569_v34  ;;  %v11715_v54 = vmul.u32.u64.high 2863311531, %v11569_v34, %v11714_v18  ;;  %v14718_v25 = vsel %vm14715_vm10, %v14716_v35, %v14717_v29  ;;  %v14294_v1 = vmax.f32 %v11702_v13, 0.0  ;;  %v4558_v29 = vld [vmem:[#allocation2 + $0x6a] sm:$0xff]  ;;  %5724 = vmatprep.subr.bf16.mxu1 %v14691_v44 }
 0x2d2   : > { %vm11726_vm14 = vcmp.lt.s32.totalorder %v14718_v25, 16  ;;  %v4317_v61 = vsel %vm11579_vm6, %v14288_v46, 0.0  ;;  %v1068_v49 = vsel %vm11685_vm13, %v11673_v57, %v11539_v32  ;;  %v590_v63 = vmul.u32 24, %v589_v41  ;;  %v3564_v18 = vpop.f32.mrb[177].mxu1  ;;  %v8729_v32 = vld [vmem:[#allocation8 + $0xe0] sm:$0xff]   ;;  %v4555_v57 = vld [vmem:[#allocation2 + $0x52] sm:$0xff] }
 0x2d3   : > { %v3788_v23 = vadd.f32 %v3787_v24, %v3562_v0  ;;  %v4452_v35 = vpack.c.bf16 %v4408_v3, %v4407_v55  ;;  %4365 = vst [vmem:[#allocation2 + $0x79] sm:$0xff] %v4317_v61  ;;  %v4319_v46 = vsel %vm11598_vm9, %v14289_v56, 0.0  ;;  %vm14721_vm0 = vcmp.ne.s32.totalorder %v11618_v22, 0  ;;  %v3565_v41 = vpop.f32.mrb[178].mxu1  ;;  %v4556_v33 = vld [vmem:[#allocation2 + $0x5a] sm:$0xff]  ;;  %v4557_v3 = vld [vmem:[#allocation2 + $0x62] sm:$0xff] }
 0x2d4   : > { %vm11750_vm13 = vmand %vm925_vm7, %vm14721_vm0  ;;  %v4318_v24 = vsel %vm11612_vm12, %v14294_v1, 0.0  ;;  %4367 = vst [vmem:[#allocation2 + $0x89] sm:$0xff] %v4319_v46  ;;  %v645_v0 = vmul.u32 24, %v644_v8  ;;  %v14724_v55 = vld [vmem:[#allocation25_spill] sm:$0xff]  ;;  %v3791_v56 = vadd.f32 %v3790_v7, %v3565_v41  ;;  %v3567_v52 = vpop.f32.mrb[179].mxu1  ;;  %v4598_v40 = vpack.c.bf16 %v4556_v33, %v4555_v57  ;;  %v4409_v25 = vld [vmem:[#allocation2 + $0x40] sm:$0xff]  ;;  %5725 = vmatpush1.bf16.msra.mxu1 %v8729_v32 }
 0x2d5   : > { %v11760_v61 = vsub.s32 %v14724_v55, %v11623_v10  ;;  %v3978_v18 = vadd.f32 %v3930_v12, %v3788_v23  ;;  %4866 = vmatmul.mubr.bf16.gmra.mrb[204].mxu0 %v4452_v35  ;;  %v4599_v51 = vpack.c.bf16 %v4558_v29, %v4557_v3  ;;  %4366 = vst [vmem:[#allocation2 + $0x81] sm:$0xff] %v4318_v24  ;;  %vm8855_vm7 = vmpackc.low %vm11364_vm8, %vm11412_vm2  ;;  %v14726_v46 = vmax.f32 %v11490_v30, 0.0  ;;  %v14727_v8 = vld [vmem:[#allocation33_spill] sm:$0xff]  ;;  %v14730_v12 = vld [vmem:[#allocation34_spill] sm:$0xff]  ;;  %v3570_v24 = vpop.f32.mrb[180].mxu1 }
 0x2d6   : > { %v14728_v1 = vmax.f32 %v14727_v8, 0.0  ;;  %v14729_v37 = vmax.f32 %v11710_v27, 0.0  ;;  %v11778_v38 = vadd.s32 24, %v11604_v43  ;;  %v11781_v23 = vadd.s32 256, %v10491_v6  ;;  %v8738_v30 = vld [vmem:[#allocation8 + $0x170] sm:$0xff]   ;;  %8281 = vmatmul.mubr.bf16.gmra.mrb[248].mxu1 %v4598_v40  ;;  %v4410_v41 = vld [vmem:[#allocation2 + $0x48] sm:$0xff]  ;;  %5726 = vmatprep.subr.bf16.mxu1 %v14691_v44 }
 0x2d7   : > { %v3979_v7 = vadd.f32 %v3931_v48, %v3791_v56  ;;  %vm14731_vm8 = vcmp.ne.s32.totalorder %v11178_v31, 0  ;;  %vm14732_vm2 = vcmp.lt.s32.totalorder %v11178_v31, 0  ;;  %v1069_v29 = vsel %vm11750_vm13, %v11706_v2, %v11618_v22  ;;  %v14735_v48 = vld [vmem:[#allocation31_spill] sm:$0xff]  ;;  %v11800_v56 = vpop.f32.mrb[164].mxu0  ;;  %8284 = vmatprep.mubr.bf16.mxu1 %v4599_v51  ;;  %v14739_v33 = vld [vmem:[#allocation18_spill] sm:$0xff]  ;;  %8332 = vmatprep.subr.bf16.mxu0 %v8738_v30 }
 0x2d8   : > { %v8856_v10 = vpack.c.bf16 %v14728_v1, %v14726_v46  ;;  %v4320_v52 = vsel %vm11646_vm3, %v14729_v37, 0.0  ;;  %v4129_v1 = vadd.f32 %v11302_v50, %v3978_v18  ;;  %v14736_v57 = vmov 0  ;;  %v8730_v22 = vld [vmem:[#allocation8 + $0xe8] sm:$0xff]   ;;  %v11812_v51 = vpop.f32.mrb[165].mxu0  ;;  %8333 = vmatpush3.bf16.msra.mxu0 %v8738_v30  ;;  %v8732_v40 = vld [vmem:[#allocation8 + $0xf0] sm:$0xff]  }
 0x2d9   : > { %4368 = vst [vmem:[#allocation2 + $0x91] sm:$0xff] %v4320_v52  ;;  %v11807_v3 = vsub.s32 %v14739_v33, %v590_v63  ;;  %v4130_v19 = vadd.f32 %v11302_v50, %v3979_v7  ;;  %vm14740_vm13 = vcmp.ne.s32.totalorder %v14700_v5, 0  ;;  %vm14741_vm0 = vcmp.lt.s32.totalorder %v14700_v5, 0  ;;  %v11827_v55 = vpop.f32.mrb[166].mxu0  ;;  %v3572_v7 = vpop.f32.mrb[181].mxu1  ;;  %v14749_v30 = vld [vmem:[#allocation22_spill] sm:$0xff]  ;;  %5727 = vmatpush1.bf16.msra.mxu1 %v8730_v22 }
 0x2da   : > { %8857 = vmatprep.mubr.msk.bf16.mxu0 %vm8855_vm7, %v8856_v10  ;;  %vm11789_vm7 = vmand %vm14732_vm2, %vm14731_vm8  ;;  %vm11802_vm8 = vcmp.lt.s32.totalorder %v1068_v49, 16  ;;  %vm880_vm2 = vcmp.ne.s32.totalorder %v11760_v61, 0  ;;  %v4177_v2 = vmax.f32 %v4129_v1, 0.0  ;;  %v11823_v63 = vsub.s32 %v11513_v59, %v645_v0  ;;  %v14747_v10 = vld [vmem:[#allocation21_spill] sm:$0xff]  ;;  %v3932_v1 = vld [vmem:[%s9949_s26 + $0x90] sm:$0xff]  ;;  %v3573_v27 = vpop.f32.mrb[182].mxu1  ;;  %5728 = vmatprep.subr.bf16.mxu1 %v14691_v44 }
 0x2db   : > { %v14737_v57 = vsel %vm11802_vm8, 4294967295, %v14736_v57  ;;  %vm11818_vm3 = vmand %vm14741_vm0, %vm14740_vm13  ;;  %v655_v32 = vshrl.u32 %v11715_v54, 4  ;;  %vm11829_vm10 = vcmp.lt.s32.totalorder %v1069_v29, 16  ;;  %v14744_v18 = vmov 0  ;;  %v11845_v29 = vpop.f32.mrb[167].mxu0 }
 0x2dc   : > { %14738 = vst [vmem:[#allocation19_spill] sm:$0xff] %v14737_v57  ;;  %v14745_v18 = vsel %vm11829_vm10, 4294967295, %v14744_v18  ;;  %v11834_v46 = vmul.u32.u64.low 2863311531, %v11781_v23  ;;  %v11835_v8 = vmul.u32.u64.high 2863311531, %v11781_v23, %v11834_v46  ;;  %v4321_v54 = vsel %vm11697_vm5, %v4177_v2, 0.0  ;;  %v4560_v2 = vld [vmem:[#allocation2 + $0x7a] sm:$0xff] }
 0x2dd   : > { %14746 = vst [vmem:[#allocation40_spill] sm:$0xff] %v14745_v18  ;;  %v11838_v37 = vmul.u32.u64.low 2863311531, %v14747_v10  ;;  %v11839_v59 = vmul.u32.u64.high 2863311531, %v14747_v10, %v11838_v37  ;;  %v4178_v0 = vmax.f32 %v4130_v19, 0.0  ;;  %v3796_v52 = vadd.f32 %v11690_v39, %v3570_v24  ;;  %4369 = vst [vmem:[#allocation2 + $0x99] sm:$0xff] %v4321_v54  ;;  %v14748_v46 = vld [vmem:[#allocation44_spill] sm:$0xff]  ;;  %5729 = vmatpush1.bf16.msra.mxu1 %v8732_v40 }
 0x2de   : > { %v4453_v33 = vpack.c.bf16 %v4410_v41, %v4409_v25  ;;  %v1070_v37 = vsel %vm11789_vm7, %v14748_v46, %v11178_v31  ;;  %v1071_v11 = vsel %vm11818_vm3, %v14749_v30, %v14700_v5  ;;  %v4559_v39 = vld [vmem:[#allocation2 + $0x72] sm:$0xff]  ;;  %v4561_v19 = vld [vmem:[#allocation2 + $0x82] sm:$0xff]  ;;  %v11856_v24 = vadd.s32 24, %v11760_v61  ;;  %v3575_v54 = vpop.f32.mrb[183].mxu1  ;;  %vm8858_vm3 = vmpackc.low %vm11479_vm4, %vm11421_vm1  ;;  %v11896_v7 = vpop.f32.mrb[168].mxu0  ;;  %5730 = vmatprep.subr.bf16.mxu1 %v14691_v44 }
 0x2df   : > { %v11859_v25 = vadd.s32 264, %v10491_v6  ;;  %v4322_v35 = vsel %vm11726_vm14, %v4178_v0, 0.0  ;;  %v3980_v31 = vadd.f32 %v3932_v1, %v3796_v52  ;;  %v3799_v41 = vadd.f32 %v11719_v14, %v3573_v27  ;;  %v3933_v5 = vld [vmem:[%s9949_s26 + $0x98] sm:$0xff]  ;;  %v4412_v1 = vld [vmem:[#allocation2 + $0x58] sm:$0xff]  ;;  %v4411_v54 = vld [vmem:[#allocation2 + $0x50] sm:$0xff] }
 0x2e0   : > { %4874 = vmatmul.mubr.bf16.gmra.mrb[208].mxu0 %v4453_v33  ;;  %v4600_v49 = vpack.c.bf16 %v4560_v2, %v4559_v39  ;;  %4370 = vst [vmem:[#allocation2 + $0xa1] sm:$0xff] %v4322_v35  ;;  %v14750_v22 = vmax.f32 %v11471_v58, 0.0  ;;  %v14751_v28 = vmax.f32 %v11563_v9, 0.0  ;;  %v4562_v52 = vld [vmem:[#allocation2 + $0x8a] sm:$0xff]  ;;  %vm881_vm0 = vcmp.ne.s32.totalorder %v11807_v3, 0  ;;  %v8733_v2 = vld [vmem:[#allocation8 + $0xf8] sm:$0xff]  }
 0x2e1   : > { %vm929_vm7 = vcmp.lt.s32.totalorder %v11807_v3, 0  ;;  %v3981_v27 = vadd.f32 %v3933_v5, %v3799_v41  ;;  %v4601_v42 = vpack.c.bf16 %v4562_v52, %v4561_v19  ;;  %v11879_v21 = vadd.f32 %v11302_v50, %v3980_v31  ;;  %v11911_v19 = vpop.f32.mrb[169].mxu0  ;;  %v3578_v31 = vpop.f32.mrb[184].mxu1  ;;  %v14777_v9 = vld [vmem:[#allocation27_spill] sm:$0xff]  ;;  %5731 = vmatpush1.bf16.msra.mxu1 %v8733_v2 }
 0x2e2   : > { %v8859_v0 = vpack.c.bf16 %v14751_v28, %v14750_v22  ;;  %8285 = vmatmul.mubr.bf16.gmra.mrb[252].mxu1 %v4600_v49  ;;  %v11882_v58 = vadd.s32 24, %v11823_v63  ;;  %vm14753_vm1 = vcmp.lt.s32.totalorder %v11760_v61, 0  ;;  %vm11892_vm13 = vcmp.lt.s32.totalorder %v1070_v37, 16  ;;  %v11926_v49 = vpop.f32.mrb[170].mxu0  ;;  %5732 = vmatprep.subr.bf16.mxu1 %v14691_v44 }
 0x2e3   : > { %14752 = vst [vmem:[#allocation41_spill] sm:$0xff] %v11879_v21  ;;  %vm11888_vm4 = vmand %vm14753_vm1, %vm880_vm2  ;;  %v14756_v14 = vmov 0  ;;  %v656_v33 = vmul.u32 24, %v655_v32  ;;  %v14759_v46 = vshrl.u32 %v14735_v48, 4  ;;  %v11901_v39 = vadd.s32 240, %v10491_v6  ;;  %8288 = vmatprep.mubr.bf16.mxu1 %v4601_v42 }
 0x2e4   : > { %8860 = vmatprep.mubr.msk.bf16.mxu0 %vm8858_vm3, %v8859_v0  ;;  %v14757_v14 = vsel %vm11892_vm13, 4294967295, %v14756_v14  ;;  %vm14760_vm2 = vcmp.ne.s32.totalorder %v14730_v12, 0  ;;  %vm14761_vm3 = vcmp.lt.s32.totalorder %v14730_v12, 0  ;;  %v11914_v32 = vadd.f32 %v11302_v50, %v3981_v27  ;;  %v3580_v27 = vpop.f32.mrb[185].mxu1 }
 0x2e5   : > { %14758 = vst [vmem:[#allocation46_spill] sm:$0xff] %v14757_v14  ;;  %v623_v30 = vmul.u32 24, %v14759_v46  ;;  %vm11907_vm1 = vmand %vm14761_vm3, %vm14760_vm2  ;;  %v14299_v48 = vmax.f32 %v11879_v21, 0.0  ;;  %v11918_v35 = vmul.u32.u64.low 2863311531, %v11859_v25  ;;  %v11919_v40 = vmul.u32.u64.high 2863311531, %v11859_v25, %v11918_v35  ;;  %v11946_v46 = vpop.f32.mrb[171].mxu0 }
 0x2e6   : > { %14764 = vst [vmem:[#allocation45_spill] sm:$0xff] %v11914_v32  ;;  %vm11922_vm14 = vcmp.lt.s32.totalorder %v1071_v11, 16  ;;  %v14765_v41 = vmov 0  ;;  %vm14767_vm2 = vcmp.ne.s32.totalorder %v11604_v43, 0  ;;  %vm14768_vm3 = vcmp.lt.s32.totalorder %v11604_v43, 0  ;;  %v4563_v35 = vld [vmem:[#allocation2 + $0x92] sm:$0xff] }
 0x2e7   : > { %v14766_v41 = vsel %vm11922_vm14, 4294967295, %v14765_v41  ;;  %vm11932_vm5 = vmand %vm14768_vm3, %vm14767_vm2  ;;  %v11937_v22 = vadd.s32 24, %v11807_v3  ;;  %v1072_v11 = vsel %vm11888_vm4, %v11856_v24, %v11760_v61  ;;  %v688_v28 = vshrl.u32 %v11835_v8, 4  ;;  %v3581_v8 = vpop.f32.mrb[186].mxu1  ;;  %v4564_v21 = vld [vmem:[#allocation2 + $0x9a] sm:$0xff] }
 0x2e8   : > { %v633_v0 = vshrl.u32 %v11839_v59, 4  ;;  %v3804_v52 = vadd.f32 %v11812_v51, %v3578_v31  ;;  %v4454_v42 = vpack.c.bf16 %v4412_v1, %v4411_v54  ;;  %v4323_v60 = vsel %vm11802_vm8, %v14299_v48, 0.0  ;;  %vm11957_vm4 = vmand %vm929_vm7, %vm881_vm0  ;;  %v3934_v51 = vld [vmem:[%s9949_s26 + $0xa0] sm:$0xff]  ;;  %v3583_v48 = vpop.f32.mrb[187].mxu1 }
 0x2e9   : > { %4371 = vst [vmem:[#allocation2 + $0xa9] sm:$0xff] %v4323_v60  ;;  %vm14773_vm2 = vcmp.ne.s32.totalorder %v11823_v63, 0  ;;  %vm14774_vm3 = vcmp.lt.s32.totalorder %v11823_v63, 0  ;;  %v11971_v24 = vsub.s32 %v11569_v34, %v656_v33  ;;  %v11974_v1 = vsub.s32 %v14777_v9, %v623_v30  ;;  %v8734_v30 = vld [vmem:[#allocation8 + $0x100] sm:$0xff]   ;;  %v3935_v9 = vld [vmem:[%s9949_s26 + $0xa8] sm:$0xff]  ;;  %vm8861_vm0 = vmpackc.low %vm11497_vm15, %vm11525_vm11 }
 0x2ea   : > { %vm11966_vm9 = vmand %vm14774_vm3, %vm14773_vm2  ;;  %v11977_v31 = vmul.u32.u64.low 2863311531, %v11901_v39  ;;  %v11978_v54 = vmul.u32.u64.high 2863311531, %v11901_v39, %v11977_v31  ;;  %v3982_v60 = vadd.f32 %v3934_v51, %v3804_v52  ;;  %v3807_v27 = vadd.f32 %v11845_v29, %v3581_v8  ;;  %4882 = vmatmul.mubr.bf16.gmra.mrb[212].mxu0 %v4454_v42  ;;  %v8743_v51 = vld [vmem:[#allocation8 + $0x178] sm:$0xff]   ;;  %5733 = vmatpush1.bf16.msra.mxu1 %v8734_v30 }
 0x2eb   : > { %v14778_v57 = vmax.f32 %v11914_v32, 0.0  ;;  %v11986_v33 = vadd.s32 248, %v10491_v6  ;;  %v14779_v29 = vmax.f32 %v11589_v17, 0.0  ;;  %v14780_v2 = vmax.f32 %v11566_v62, 0.0  ;;  %v4413_v8 = vld [vmem:[#allocation2 + $0x60] sm:$0xff]  ;;  %v4414_v31 = vld [vmem:[#allocation2 + $0x68] sm:$0xff]  ;;  %8334 = vmatprep.subr.bf16.mxu0 %v8743_v51  ;;  %5734 = vmatprep.subr.bf16.mxu1 %v14691_v44 }
 0x2ec   : > { %v4602_v52 = vpack.c.bf16 %v4564_v21, %v4563_v35  ;;  %v634_v15 = vmul.u32 24, %v633_v0  ;;  %v12007_v17 = vadd.f32 %v11302_v50, %v3982_v60  ;;  %v3983_v62 = vadd.f32 %v3935_v9, %v3807_v27  ;;  %8335 = vmatpush3.bf16.msra.mxu0 %v8743_v51  ;;  %v3586_v9 = vpop.f32.mrb[188].mxu1 }
 0x2ed   : > { %v4324_v34 = vsel %vm11829_vm10, %v14778_v57, 0.0  ;;  %v8862_v48 = vpack.c.bf16 %v14780_v2, %v14779_v29  ;;  %v14781_v57 = vld [vmem:[#allocation29_spill] sm:$0xff]  ;;  %v1073_v21 = vsel %vm11957_vm4, %v11937_v22, %v11807_v3  ;;  %v689_v35 = vmul.u32 24, %v688_v28  ;;  %v12013_v29 = vpop.f32.mrb[172].mxu0  ;;  %6719 = vmatprep.subr.bf16.mxu0 %v14691_v44 }
 0x2ee   : > { %4372 = vst [vmem:[#allocation2 + $0xb1] sm:$0xff] %v4324_v34  ;;  %14782 = vst [vmem:[#allocation43_spill] sm:$0xff] %v12007_v17  ;;  %8289 = vmatmul.mubr.bf16.gmra.mrb[0].mxu1 %v4602_v52  ;;  %vm887_vm15 = vcmp.ne.s32.totalorder %v11971_v24, 0  ;;  %vm935_vm11 = vcmp.lt.s32.totalorder %v11971_v24, 0  ;;  %vm12021_vm7 = vcmp.lt.s32.totalorder %v1072_v11, 16  ;;  %v14783_v60 = vmov 0 }
 0x2ef   : > { %8863 = vmatprep.mubr.msk.bf16.mxu0 %vm8861_vm0, %v8862_v48  ;;  %v14784_v60 = vsel %vm12021_vm7, 4294967295, %v14783_v60  ;;  %vm884_vm4 = vcmp.ne.s32.totalorder %v11974_v1, 0  ;;  %vm932_vm2 = vcmp.lt.s32.totalorder %v11974_v1, 0  ;;  %v12028_v3 = vadd.s32 288, %v10491_v6  ;;  %v12034_v61 = vpop.f32.mrb[173].mxu0  ;;  %v8735_v34 = vld [vmem:[#allocation8 + $0x108] sm:$0xff]  }
 0x2f0   : > { %v14303_v22 = vmax.f32 %v12007_v17, 0.0  ;;  %v12032_v28 = vadd.f32 %v11302_v50, %v3983_v62  ;;  %v12037_v11 = vmul.u32.u64.low 2863311531, %v11986_v33  ;;  %v12038_v27 = vmul.u32.u64.high 2863311531, %v11986_v33, %v12037_v11  ;;  %v12040_v2 = vpop.f32.mrb[174].mxu0  ;;  %vm12071_vm0 = vmand %vm932_vm2, %vm884_vm4  ;;  %v4565_v32 = vld [vmem:[#allocation2 + $0xa2] sm:$0xff]  ;;  %5735 = vmatpush1.bf16.msra.mxu1 %v8735_v34 }
 0x2f1   : > { %14785 = vst [vmem:[#allocation49_spill] sm:$0xff] %v12040_v2  ;;  %vm12042_vm3 = vcmp.lt.s32.totalorder %v1073_v21, 16  ;;  %v14786_v48 = vmov 0  ;;  %v699_v52 = vshrl.u32 %v11919_v40, 4  ;;  %v12048_v62 = vsub.s32 %v14747_v10, %v634_v15  ;;  %v3588_v15 = vpop.f32.mrb[189].mxu1  ;;  %v12064_v11 = vpop.f32.mrb[175].mxu0  ;;  %5736 = vmatprep.subr.bf16.mxu1 %v14691_v44 }
 0x2f2   : > { %v14787_v48 = vsel %vm12042_vm3, 4294967295, %v14786_v48  ;;  %v12051_v0 = vadd.s32 24, %v11974_v1  ;;  %v12054_v30 = vadd.s32 296, %v10491_v6  ;;  %v4325_v51 = vsel %vm11892_vm13, %v14303_v22, 0.0  ;;  %v3589_v42 = vpop.f32.mrb[190].mxu1  ;;  %v8736_v2 = vld [vmem:[#allocation8 + $0x110] sm:$0xff]  }
 0x2f3   : > { %14788 = vst [vmem:[#allocation47_spill] sm:$0xff] %v14787_v48  ;;  %v3812_v10 = vadd.f32 %v11800_v56, %v3586_v9  ;;  %v4455_v21 = vpack.c.bf16 %v4414_v31, %v4413_v8  ;;  %4373 = vst [vmem:[#allocation2 + $0xb9] sm:$0xff] %v4325_v51  ;;  %v12076_v22 = vmul.u32.u64.low 2863311531, %v12028_v3  ;;  %v12077_v40 = vmul.u32.u64.high 2863311531, %v12028_v3, %v12076_v22  ;;  %v3591_v15 = vpop.f32.mrb[191].mxu1  ;;  %v8742_v48 = vld [vmem:[#allocation8 + $0x138] sm:$0xff]  }
 0x2f4   : > { %v666_v56 = vshrl.u32 %v11978_v54, 4  ;;  %v14791_v8 = vmax.f32 %v12032_v28, 0.0  ;;  %v3815_v51 = vadd.f32 %v11827_v55, %v3589_v42  ;;  %v12086_v18 = vadd.s32 24, %v11971_v24  ;;  %v3937_v22 = vld [vmem:[%s9949_s26 + $0xb8] sm:$0xff]  ;;  %5737 = vmatpush1.bf16.msra.mxu1 %v8736_v2  ;;  %v3594_v15 = vpop.f32.mrb[192].mxu1 }
 0x2f5   : > { %v3984_v9 = vadd.f32 %v3936_v4, %v3812_v10  ;;  %4890 = vmatmul.mubr.bf16.gmra.mrb[216].mxu0 %v4455_v21  ;;  %v4566_v14 = vld [vmem:[#allocation2 + $0xaa] sm:$0xff]  ;;  %vm14792_vm4 = vnez %v14662_v47  ;;  %v14793_v54 = vmax.f32 %v11572_v20, 0.0  ;;  %v14794_v55 = vmax.f32 %v11670_v53, 0.0  ;;  %5738 = vmatprep.subr.bf16.mxu1 %v14691_v44 }
 0x2f6   : > { %v4326_v31 = vsel %vm11922_vm14, %v14791_v8, 0.0  ;;  %vm8864_vm2 = vmpackc.low %vm11579_vm6, %vm14792_vm4  ;;  %v4603_v4 = vpack.c.bf16 %v4566_v14, %v4565_v32  ;;  %v12098_v10 = vsub.s32 %v11781_v23, %v689_v35  ;;  %v700_v21 = vmul.u32 24, %v699_v52  ;;  %v4416_v32 = vld [vmem:[#allocation2 + $0x78] sm:$0xff]  ;;  %v12123_v35 = vpop.f32.mrb[176].mxu0 }
 0x2f7   : > { %4374 = vst [vmem:[#allocation2 + $0xc1] sm:$0xff] %v4326_v31  ;;  %v8865_v42 = vpack.c.bf16 %v14794_v55, %v14793_v54  ;;  %v12101_v34 = vadd.s32 272, %v10491_v6  ;;  %v3985_v47 = vadd.f32 %v3937_v22, %v3815_v51  ;;  %v12105_v26 = vadd.f32 %v11302_v50, %v3984_v9  ;;  %14799 = vst [vmem:[#allocation53_spill] sm:$0xff] %v12123_v35  ;;  %v8737_v51 = vld [vmem:[#allocation8 + $0x118] sm:$0xff]   ;;  %v3939_v35 = vld [vmem:[%s9949_s26 + $0xc8] sm:$0xff] }
 0x2f8   : > { %v12112_v53 = vadd.s32 280, %v10491_v6  ;;  %v14795_v23 = vsel %vm11907_vm1, %v14781_v57, %v14730_v12  ;;  %v14796_v14 = vmov 0  ;;  %8292 = vmatprep.mubr.bf16.mxu1 %v4603_v4  ;;  %v667_v31 = vmul.u32 24, %v666_v56  ;;  %v12134_v57 = vpop.f32.mrb[177].mxu0  ;;  %v4415_v56 = vld [vmem:[#allocation2 + $0x70] sm:$0xff]  ;;  %5739 = vmatpush1.bf16.msra.mxu1 %v8737_v51  ;;  %v8744_v55 = vld [vmem:[#allocation8 + $0x200] sm:$0xff]  }
 0x2f9   : > { %8866 = vmatprep.mubr.msk.bf16.mxu0 %vm8864_vm2, %v8865_v42  ;;  %vm12119_vm6 = vcmp.lt.s32.totalorder %v14795_v23, 16  ;;  %v12127_v52 = vmul.u32.u64.low 2863311531, %v12054_v30  ;;  %v12128_v8 = vmul.u32.u64.high 2863311531, %v12054_v30, %v12127_v52  ;;  %v12131_v37 = vadd.f32 %v11302_v50, %v3985_v47  ;;  %v12149_v54 = vpop.f32.mrb[178].mxu0  ;;  %5740 = vmatprep.subr.bf16.mxu1 %v14691_v44 }
 0x2fa   : > { %v14797_v14 = vsel %vm12119_vm6, 4294967295, %v14796_v14  ;;  %v14307_v12 = vmax.f32 %v12105_v26, 0.0  ;;  %v677_v9 = vshrl.u32 %v12038_v27, 4  ;;  %v14801_v22 = vsel %vm11932_vm5, %v11778_v38, %v11604_v43  ;;  %14805 = vst [vmem:[#allocation55_spill] sm:$0xff] %v12149_v54  ;;  %v3596_v38 = vpop.f32.mrb[193].mxu1  ;;  %vm12161_vm5 = vmand %vm935_vm11, %vm887_vm15  ;;  %v12170_v4 = vpop.f32.mrb[179].mxu0 }
 0x2fb   : > { %14798 = vst [vmem:[#allocation48_spill] sm:$0xff] %v14797_v14  ;;  %14800 = vst [vmem:[#allocation54_spill] sm:$0xff] %v12131_v37  ;;  %vm12143_vm2 = vcmp.lt.s32.totalorder %v14801_v22, 16  ;;  %v14802_v50 = vmov 0  ;;  %v12152_v27 = vsub.s32 %v11859_v25, %v700_v21  ;;  %v1029_v5 = vadd.s32 24, %v12048_v62  ;;  %v3597_v21 = vpop.f32.mrb[194].mxu1 }
 0x2fc   : > { %v14803_v50 = vsel %vm12143_vm2, 4294967295, %v14802_v50  ;;  %v3820_v43 = vadd.f32 %v11911_v19, %v3594_v15  ;;  %v4456_v2 = vpack.c.bf16 %v4416_v32, %v4415_v56  ;;  %v14309_v42 = vmax.f32 %v12131_v37, 0.0  ;;  %v3938_v19 = vld [vmem:[%s9949_s26 + $0xc0] sm:$0xff]  ;;  %v3599_v56 = vpop.f32.mrb[195].mxu1  ;;  %v4567_v38 = vld [vmem:[#allocation2 + $0xb2] sm:$0xff] }
 0x2fd   : > { %14804 = vst [vmem:[#allocation50_spill] sm:$0xff] %v14803_v50  ;;  %14806 = vst [vmem:[#allocation56_spill] sm:$0xff] %v12152_v27  ;;  %v4327_v25 = vsel %vm12021_vm7, %v14307_v12, 0.0  ;;  %v12174_v47 = vadd.s32 24, %v12098_v10  ;;  %vm14809_vm15 = vcmp.ne.s32.totalorder %v12048_v62, 0  ;;  %vm14810_vm11 = vcmp.lt.s32.totalorder %v12048_v62, 0 }
 0x2fe   : > { %4375 = vst [vmem:[#allocation2 + $0xc9] sm:$0xff] %v4327_v25  ;;  %vm12180_vm1 = vmand %vm14810_vm11, %vm14809_vm15  ;;  %v732_v32 = vshrl.u32 %v12077_v40, 4  ;;  %v12186_v52 = vsub.s32 %v11901_v39, %v667_v31  ;;  %v3986_v15 = vadd.f32 %v3938_v19, %v3820_v43  ;;  %v3823_v22 = vadd.f32 %v11946_v46, %v3597_v21  ;;  %4898 = vmatmul.mubr.bf16.gmra.mrb[220].mxu0 %v4456_v2  ;;  %v4568_v25 = vld [vmem:[#allocation2 + $0xba] sm:$0xff]  ;;  %v8739_v54 = vld [vmem:[#allocation8 + $0x120] sm:$0xff]   ;;  %v3602_v56 = vpop.f32.mrb[196].mxu1 }
 0x2ff   : > { %v4328_v12 = vsel %vm12042_vm3, %v14309_v42, 0.0  ;;  %v678_v20 = vmul.u32 24, %v677_v9  ;;  %vm14813_vm15 = vnez %v14685_v45  ;;  %v14814_v39 = vmax.f32 %v11702_v13, 0.0  ;;  %v12211_v45 = vld [vmem:[%s14217_s2] ss:$0 sm:$0xff]  ;;  %v4418_v2 = vld [vmem:[#allocation2 + $0x88] sm:$0xff]  ;;  %5741 = vmatpush1.bf16.msra.mxu1 %v8739_v54 }
 0x300   : > { %vm8867_vm11 = vmpackc.low %vm14813_vm15, %vm11612_vm12  ;;  %v14815_v46 = vmax.f32 %v11677_v36, 0.0  ;;  %v4604_v31 = vpack.c.bf16 %v4568_v25, %v4567_v38  ;;  %4376 = vst [vmem:[#allocation2 + $0xd1] sm:$0xff] %v4328_v12  ;;  %vm891_vm4 = vcmp.ne.s32.totalorder %v12152_v27, 0  ;;  %vm939_vm3 = vcmp.lt.s32.totalorder %v12152_v27, 0  ;;  %v4417_v43 = vld [vmem:[#allocation2 + $0x80] sm:$0xff]  ;;  %5742 = vmatprep.subr.bf16.mxu1 %v14691_v44  ;;  %v3940_v42 = vld [vmem:[%s9949_s26 + $0xd0] sm:$0xff] }
 0x301   : > { %v12205_v9 = vadd.s32 24, %v12152_v27  ;;  %v12214_v16 = vadd.f32 %v12211_v45, %v3986_v15  ;;  %v3987_v36 = vadd.f32 %v3939_v35, %v3823_v22  ;;  %v1077_v13 = vsel %vm12180_vm1, %v1029_v5, %v12048_v62  ;;  %v12235_v62 = vpop.f32.mrb[180].mxu0  ;;  %v4492_v22 = vld [vmem:[#allocation2 + $0x99] sm:$0xff]  ;;  %v4493_v50 = vld [vmem:[#allocation2 + $0xa1] sm:$0xff] }
 0x302   : > { %v8868_v40 = vpack.c.bf16 %v14815_v46, %v14814_v39  ;;  %v12220_v12 = vadd.s32 304, %v10491_v6  ;;  %8293 = vmatmul.mubr.bf16.gmra.mrb[4].mxu1 %v4604_v31  ;;  %v14817_v35 = vsel %vm12071_vm0, %v12051_v0, %v11974_v1  ;;  %v14818_v19 = vmov 0  ;;  %14821 = vst [vmem:[#allocation59_spill] sm:$0xff] %v12235_v62  ;;  %v12247_v1 = vpop.f32.mrb[181].mxu0  ;;  %v3604_v31 = vpop.f32.mrb[197].mxu1  ;;  %v8741_v62 = vld [vmem:[#allocation8 + $0x130] sm:$0xff]  }
 0x303   : > { %14816 = vst [vmem:[#allocation51_spill] sm:$0xff] %v12214_v16  ;;  %vm12231_vm12 = vcmp.lt.s32.totalorder %v14817_v35, 16  ;;  %v12237_v5 = vmul.u32 24, %v732_v32  ;;  %v12241_v23 = vadd.s32 312, %v10491_v6  ;;  %v14310_v15 = vmax.f32 %v12214_v16, 0.0  ;;  %14823 = vst [vmem:[#allocation58_spill] sm:$0xff] %v12247_v1 }
 0x304   : > { %8869 = vmatprep.mubr.msk.bf16.mxu0 %vm8867_vm11, %v8868_v40  ;;  %v14819_v19 = vsel %vm12231_vm12, 4294967295, %v14818_v19  ;;  %v12245_v17 = vadd.f32 %v12211_v45, %v3987_v36  ;;  %v12250_v0 = vsub.s32 %v11986_v33, %v678_v20  ;;  %v8740_v32 = vld [vmem:[#allocation8 + $0x128] sm:$0xff]   ;;  %vm12253_vm1 = vcmp.lt.s32.totalorder %v1077_v13, 16  ;;  %v12257_v25 = vpop.f32.mrb[182].mxu0  ;;  %v14836_v1 = vld [vmem:[#allocation37_spill] sm:$0xff] }
 0x305   : > { %14820 = vst [vmem:[#allocation16_spill] sm:$0xff] %v14819_v19  ;;  %14826 = vst [vmem:[#allocation57_spill] sm:$0xff] %v12257_v25  ;;  %v12261_v39 = vadd.s32 24, %v12186_v52  ;;  %v12264_v33 = vadd.s32 320, %v10491_v6  ;;  %v12267_v20 = vadd.s32 328, %v10491_v6  ;;  %v4329_v54 = vsel %vm12119_vm6, %v14310_v15, 0.0  ;;  %5743 = vmatpush1.bf16.msra.mxu1 %v8740_v32 }
 0x306   : > { %14822 = vst [vmem:[#allocation63_spill] sm:$0xff] %v12245_v17  ;;  %v14313_v46 = vmax.f32 %v12245_v17, 0.0  ;;  %v3828_v40 = vadd.f32 %v11896_v7, %v3602_v56  ;;  %v4457_v36 = vpack.c.bf16 %v4418_v2, %v4417_v43  ;;  %vm14829_vm11 = vcmp.ne.s32.totalorder %v12098_v10, 0  ;;  %v12284_v35 = vpop.f32.mrb[183].mxu0  ;;  %4377 = vst [vmem:[#allocation2 + $0xd9] sm:$0xff] %v4329_v54  ;;  %v3605_v15 = vpop.f32.mrb[198].mxu1  ;;  %5744 = vmatprep.subr.bf16.mxu1 %v14691_v44 }
 0x307   : > { %14827 = vst [vmem:[#allocation52_spill] sm:$0xff] %v12264_v33  ;;  %14828 = vst [vmem:[#allocation26_spill] sm:$0xff] %v12267_v20  ;;  %vm14830_vm15 = vcmp.lt.s32.totalorder %v12098_v10, 0  ;;  %v12296_v43 = vmul.u32.u64.low 2863311531, %v12101_v34  ;;  %v12297_v2 = vmul.u32.u64.high 2863311531, %v12101_v34, %v12296_v43  ;;  %v3831_v31 = vadd.f32 %v11926_v49, %v3605_v15  ;;  %v3607_v51 = vpop.f32.mrb[199].mxu1 }
 0x308   : > { %vm12280_vm0 = vmand %vm14830_vm15, %vm14829_vm11  ;;  %14833 = vst [vmem:[#allocation30_spill] sm:$0xff] %v12284_v35  ;;  %v4330_v56 = vsel %vm12143_vm2, %v14313_v46, 0.0  ;;  %v3988_v54 = vadd.f32 %v3940_v42, %v3828_v40  ;;  %4906 = vmatmul.mubr.bf16.gmra.mrb[224].mxu0 %v4457_v36  ;;  %v4569_v21 = vld [vmem:[#allocation2 + $0xc2] sm:$0xff]  ;;  %v4570_v25 = vld [vmem:[#allocation2 + $0xca] sm:$0xff]  ;;  %vm14838_vm15 = vmmov 1   ;;  %vm937_vm2 = vcmp.lt.s32.totalorder %v12250_v0, 0 }
 0x309   : > { %vm12291_vm6 = vmand %vm939_vm3, %vm891_vm4  ;;  %4378 = vst [vmem:[#allocation2 + $0xe1] sm:$0xff] %v4330_v56  ;;  %v3941_v35 = vld [vmem:[%s9949_s26 + $0xd8] sm:$0xff]  ;;  %vm14837_vm4 = vnez %v14836_v1  ;;  %v14839_v43 = vld [vmem:[#allocation38_spill] sm:$0xff]  ;;  %v4605_v42 = vpack.c.bf16 %v4570_v25, %v4569_v21  ;;  %vm14841_vm7 = vcmp.ne.s32.totalorder %v12186_v52, 0  ;;  %vm14842_vm14 = vcmp.lt.s32.totalorder %v12186_v52, 0  ;;  %5745 = vmatpush1.bf16.msra.mxu1 %v8741_v62  ;;  %v3610_v6 = vpop.f32.mrb[200].mxu1 }
 0x30a   : > { %vm8870_vm11 = vmpackc.low %vm14838_vm15, %vm14837_vm4  ;;  %v14840_v17 = vmax.f32 %v14839_v43, 0.0  ;;  %v12322_v51 = vmul.u32.u64.low 2863311531, %v12264_v33  ;;  %v12323_v15 = vmul.u32.u64.high 2863311531, %v12264_v33, %v12322_v51  ;;  %v3989_v21 = vadd.f32 %v3941_v35, %v3831_v31  ;;  %v12339_v40 = vld [vmem:[#allocation2 + $0x30] sm:$0xff]  ;;  %v12341_v36 = vld [vmem:[#allocation2 + $0x41] sm:$0xff]  ;;  %5746 = vmatprep.subr.bf16.mxu1 %v14691_v44 }
 0x30b   : > { %vm12317_vm3 = vmand %vm14842_vm14, %vm14841_vm7  ;;  %v12330_v1 = vadd.f32 %v12211_v45, %v3988_v54  ;;  %v12333_v32 = vmul.u32.u64.low 2863311531, %v12267_v20  ;;  %v12334_v25 = vmul.u32.u64.high 2863311531, %v12267_v20, %v12333_v32  ;;  %14848 = vst [vmem:[#allocation20_spill] sm:$0xff] %v12339_v40  ;;  %v12343_v56 = vld [vmem:[#allocation2 + $0x38] sm:$0xff]  ;;  %v14851_v35 = vsel %vm11966_vm9, %v11882_v58, %v11823_v63  ;;  %8296 = vmatprep.mubr.bf16.mxu1 %v4605_v42  ;;  %v12362_v51 = vpop.f32.mrb[184].mxu0  ;;  %v12368_v58 = vld [vmem:[#allocation2 + $0x40] sm:$0xff] }
 0x30c   : > { %v8871_v46 = vpack.c.bf16 %v4492_v22, %v14840_v17  ;;  %v12327_v17 = vld [vmem:[#allocation2 + $0x39] sm:$0xff]  ;;  %14849 = vst [vmem:[#allocation15_spill] sm:$0xff] %v12341_v36  ;;  %14850 = vst [vmem:[#allocation24_spill] sm:$0xff] %v12343_v56  ;;  %vm12350_vm14 = vcmp.lt.s32.totalorder %v14851_v35, 16  ;;  %v12365_v59 = vmul.u32.u64.low 2863311531, %v12112_v53  ;;  %v12366_v63 = vmul.u32.u64.high 2863311531, %v12112_v53, %v12365_v59 }
 0x30d   : > { %14845 = vst [vmem:[#allocation28_spill] sm:$0xff] %v12327_v17  ;;  %v4420_v22 = vld [vmem:[#allocation2 + $0x98] sm:$0xff]  ;;  %14846 = vst [vmem:[#allocation13_spill] sm:$0xff] %v12330_v1  ;;  %v12370_v42 = vld [vmem:[#allocation2 + $0x49] sm:$0xff]  ;;  %v12377_v16 = vadd.f32 %v12211_v45, %v3989_v21  ;;  %v14859_v59 = vshrl.u32 %v12128_v8, 4  ;;  %v12386_v14 = vpop.f32.mrb[185].mxu0  ;;  %v14862_v21 = vsel %vm12161_vm5, %v12086_v18, %v11971_v24  ;;  %5747 = vmatpush1.bf16.msra.mxu1 %v8742_v48 }
 0x30e   : > { %8872 = vmatprep.mubr.msk.bf16.mxu0 %vm8870_vm11, %v8871_v46  ;;  %v12337_v46 = vld [vmem:[#allocation2 + $0x31] sm:$0xff]  ;;  %14854 = vst [vmem:[#allocation36_spill] sm:$0xff] %v12362_v51  ;;  %14855 = vst [vmem:[#allocation23_spill] sm:$0xff] %v12368_v58  ;;  %v12372_v32 = vld [vmem:[#allocation2 + $0x48] sm:$0xff]  ;;  %v12382_v51 = vsub.s32 %v12028_v3, %v12237_v5  ;;  %vm12396_vm9 = vcmp.lt.s32.totalorder %v14862_v21, 16  ;;  %v12404_v62 = vpop.f32.mrb[186].mxu0  ;;  %8384 = vmatprep.subr.bf16.mxu1 %v8744_v55 }
 0x30f   : > { %14847 = vst [vmem:[#allocation17_spill] sm:$0xff] %v12337_v46  ;;  %14856 = vst [vmem:[#allocation42_spill] sm:$0xff] %v12370_v42  ;;  %v12374_v35 = vld [vmem:[#allocation2 + $0x59] sm:$0xff]  ;;  %v4419_v31 = vld [vmem:[#allocation2 + $0x90] sm:$0xff]  ;;  %v744_v37 = vmul.u32 24, %v14859_v59  ;;  %v14868_v8 = vmax.f32 %v12330_v1, 0.0 }
 0x310   : > { %14857 = vst [vmem:[#allocation62_spill] sm:$0xff] %v12372_v32  ;;  %14858 = vst [vmem:[#allocation60_spill] sm:$0xff] %v12374_v35  ;;  %v12388_v20 = vld [vmem:[#allocation2 + $0x51] sm:$0xff]  ;;  %v3942_v33 = vld [vmem:[%s9949_s26 + $0xe0] sm:$0xff]  ;;  %v4458_v3 = vpack.c.bf16 %v4420_v22, %v4419_v31  ;;  %v3836_v22 = vadd.f32 %v12034_v61, %v3610_v6  ;;  %v3612_v31 = vpop.f32.mrb[201].mxu1  ;;  %vm14869_vm7 = vcmp.ne.s32.totalorder %v12250_v0, 0 }
 0x311   : > { %14860 = vst [vmem:[#allocation39_spill] sm:$0xff] %v12386_v14  ;;  %14861 = vst [vmem:[#allocation14_spill] sm:$0xff] %v12388_v20  ;;  %v12407_v5 = vld [vmem:[#allocation2 + $0x61] sm:$0xff]  ;;  %v12409_v59 = vld [vmem:[#allocation2 + $0x58] sm:$0xff]  ;;  %v4331_v44 = vsel %vm12231_vm12, %v14868_v8, 0.0  ;;  %v12429_v18 = vpop.f32.mrb[187].mxu0  ;;  %v12456_v27 = vsub.s32 %v12054_v30, %v744_v37 }
 0x312   : > { %14865 = vst [vmem:[#allocation61_spill] sm:$0xff] %v12404_v62  ;;  %14866 = vst [vmem:[#allocation25_spill] sm:$0xff] %v12407_v5  ;;  %v12431_v24 = vld [vmem:[#allocation2 + $0x50] sm:$0xff]  ;;  %v12433_v6 = vld [vmem:[#allocation2 + $0x60] sm:$0xff]  ;;  %v3613_v8 = vpop.f32.mrb[202].mxu1  ;;  %v3990_v14 = vadd.f32 %v3942_v33, %v3836_v22  ;;  %4914 = vmatmul.mubr.bf16.gmra.mrb[228].mxu0 %v4458_v3  ;;  %v12470_v30 = vadd.s32 24, %v12382_v51 }
 0x313   : > { %14867 = vst [vmem:[#allocation32_spill] sm:$0xff] %v12409_v59  ;;  %vm12425_vm5 = vmand %vm937_vm2, %vm14869_vm7  ;;  %v12435_v61 = vld [vmem:[#allocation2 + $0x69] sm:$0xff]  ;;  %v12442_v56 = vld [vmem:[#allocation2 + $0x79] sm:$0xff]  ;;  %v3839_v1 = vadd.f32 %v12064_v11, %v3613_v8  ;;  %v3615_v19 = vpop.f32.mrb[203].mxu1  ;;  %v710_v55 = vshrl.u32 %v12297_v2, 4  ;;  %vm942_vm4 = vcmp.lt.s32.totalorder %v12382_v51, 0 }
 0x314   : > { %14872 = vst [vmem:[#allocation33_spill] sm:$0xff] %v12429_v18  ;;  %14873 = vst [vmem:[#allocation34_spill] sm:$0xff] %v12431_v24  ;;  %v3943_v21 = vld [vmem:[%s9949_s26 + $0xe8] sm:$0xff]  ;;  %v12440_v40 = vld [vmem:[#allocation2 + $0x68] sm:$0xff]  ;;  %vm895_vm11 = vcmp.ne.s32.totalorder %v12456_v27, 0  ;;  %vm943_vm7 = vcmp.lt.s32.totalorder %v12456_v27, 0 }
 0x315   : > { %14874 = vst [vmem:[#allocation31_spill] sm:$0xff] %v12433_v6  ;;  %14875 = vst [vmem:[#allocation18_spill] sm:$0xff] %v12435_v61  ;;  %v12444_v46 = vld [vmem:[#allocation2 + $0x81] sm:$0xff]  ;;  %v4571_v31 = vld [vmem:[#allocation2 + $0xd2] sm:$0xff]  ;;  %v776_v62 = vshrl.u32 %v12323_v15, 4  ;;  %v14910_v15 = vsel %vm12317_vm3, %v12261_v39, %v12186_v52 }
 0x316   : > { %4379 = vst [vmem:[#allocation2 + $0xe9] sm:$0xff] %v4331_v44  ;;  %14876 = vst [vmem:[#allocation21_spill] sm:$0xff] %v12440_v40  ;;  %v4572_v36 = vld [vmem:[#allocation2 + $0xda] sm:$0xff]  ;;  %v14879_v44 = vmax.f32 %v12377_v16, 0.0  ;;  %v12458_v17 = vld [vmem:[#allocation2 + $0x71] sm:$0xff] }
 0x317   : > { %14877 = vst [vmem:[#allocation44_spill] sm:$0xff] %v12442_v56  ;;  %14878 = vst [vmem:[#allocation22_spill] sm:$0xff] %v12444_v46  ;;  %v12460_v58 = vld [vmem:[#allocation2 + $0x70] sm:$0xff]  ;;  %v12462_v33 = vld [vmem:[#allocation2 + $0x78] sm:$0xff]  ;;  %v4606_v8 = vpack.c.bf16 %v4572_v36, %v4571_v31  ;;  %v3991_v36 = vadd.f32 %v3943_v21, %v3839_v1  ;;  %v12486_v31 = vadd.s32 24, %v12250_v0 }
 0x318   : > { %v4332_v42 = vsel %vm12253_vm1, %v14879_v44, 0.0  ;;  %14880 = vst [vmem:[#allocation27_spill] sm:$0xff] %v12458_v17  ;;  %14881 = vst [vmem:[#allocation29_spill] sm:$0xff] %v12460_v58  ;;  %v14884_v19 = vld [vmem:[#allocation41_spill] sm:$0xff]  ;;  %v12472_v48 = vld [vmem:[#allocation2 + $0x80] sm:$0xff]  ;;  %v3618_v17 = vpop.f32.mrb[204].mxu1 }
 0x319   : > { %14882 = vst [vmem:[#allocation37_spill] sm:$0xff] %v12462_v33  ;;  %vm8873_vm2 = vmpackc.low %vm11802_vm8, %vm14838_vm15  ;;  %v14885_v3 = vmax.f32 %v14884_v19, 0.0  ;;  %v12474_v37 = vld [vmem:[#allocation2 + $0x88] sm:$0xff]  ;;  %v12476_v44 = vld [vmem:[#allocation2 + $0x99] sm:$0xff]  ;;  %8297 = vmatmul.mubr.bf16.gmra.mrb[8].mxu1 %v4606_v8  ;;  %vm894_vm8 = vcmp.ne.s32.totalorder %v12382_v51, 0  ;;  %v721_v19 = vshrl.u32 %v12366_v63, 4  ;;  %v12512_v63 = vadd.f32 %v12211_v45, %v3991_v36 }
 0x31a   : > { %4380 = vst [vmem:[#allocation2 + $0xf1] sm:$0xff] %v4332_v42  ;;  %14886 = vst [vmem:[#allocation38_spill] sm:$0xff] %v12472_v48  ;;  %v4422_v42 = vld [vmem:[#allocation2 + $0xa8] sm:$0xff]  ;;  %v12500_v21 = vld [vmem:[#allocation2 + $0x91] sm:$0xff]  ;;  %v3620_v48 = vpop.f32.mrb[205].mxu1 }
 0x31b   : > { %v8874_v22 = vpack.c.bf16 %v14885_v3, %v4493_v50  ;;  %14887 = vst [vmem:[#allocation19_spill] sm:$0xff] %v12474_v37  ;;  %14888 = vst [vmem:[#allocation41_spill] sm:$0xff] %v12476_v44  ;;  %v12483_v50 = vadd.f32 %v12211_v45, %v3990_v14  ;;  %v12489_v3 = vld [vmem:[#allocation2 + $0x98] sm:$0xff]  ;;  %v12496_v14 = vpop.f32.mrb[188].mxu0  ;;  %v12498_v1 = vld [vmem:[#allocation2 + $0x89] sm:$0xff] }
 0x31c   : > { %14889 = vst [vmem:[#allocation64_spill] sm:$0xff] %v12489_v3  ;;  %14891 = vst [vmem:[#allocation66_spill] sm:$0xff] %v12498_v1  ;;  %v12502_v11 = vld [vmem:[#allocation2 + $0xa8] sm:$0xff]  ;;  %v4421_v61 = vld [vmem:[#allocation2 + $0xa0] sm:$0xff]  ;;  %v12514_v24 = vpop.f32.mrb[189].mxu0 }
 0x31d   : > { %8875 = vmatprep.mubr.msk.bf16.mxu0 %vm8873_vm2, %v8874_v22  ;;  %v12491_v22 = vld [vmem:[#allocation2 + $0xa9] sm:$0xff]  ;;  %14892 = vst [vmem:[#allocation67_spill] sm:$0xff] %v12500_v21  ;;  %14893 = vst [vmem:[#allocation68_spill] sm:$0xff] %v12502_v11  ;;  %v12518_v20 = vld [vmem:[#allocation2 + $0xa1] sm:$0xff]  ;;  %v4459_v18 = vpack.c.bf16 %v4422_v42, %v4421_v61  ;;  %v12524_v5 = vpop.f32.mrb[190].mxu0  ;;  %v14897_v2 = vmax.f32 %v12483_v50, 0.0  ;;  %v3844_v42 = vadd.f32 %v12013_v29, %v3618_v17 }
 0x31e   : > { %14890 = vst [vmem:[#allocation65_spill] sm:$0xff] %v12491_v22  ;;  %v12516_v59 = vld [vmem:[#allocation2 + $0x90] sm:$0xff]  ;;  %14895 = vst [vmem:[#allocation70_spill] sm:$0xff] %v12518_v20  ;;  %v12526_v36 = vld [vmem:[#allocation2 + $0xa0] sm:$0xff]  ;;  %v12542_v58 = vpop.f32.mrb[191].mxu0  ;;  %v3621_v22 = vpop.f32.mrb[206].mxu1  ;;  %v1081_v29 = vsel %vm12425_vm5, %v12486_v31, %v12250_v0 }
 0x31f   : > { %14894 = vst [vmem:[#allocation69_spill] sm:$0xff] %v12516_v59  ;;  %14896 = vst [vmem:[#allocation71_spill] sm:$0xff] %v12526_v36  ;;  %v4333_v8 = vsel %vm12350_vm14, %v14897_v2, 0.0  ;;  %v12544_v33 = vld [vmem:[#allocation2 + $0xb9] sm:$0xff]  ;;  %v12550_v2 = vadd.s32 24, %v12456_v27  ;;  %v711_v17 = vmul.u32 24, %v710_v55  ;;  %4922 = vmatmul.mubr.bf16.gmra.mrb[232].mxu0 %v4459_v18 }
 0x320   : > { %14898 = vst [vmem:[#allocation72_spill] sm:$0xff] %v12544_v33  ;;  %4381 = vst [vmem:[#allocation2 + $0xf9] sm:$0xff] %v4333_v8  ;;  %v3944_v20 = vld [vmem:[%s9949_s26 + $0xf0] sm:$0xff]  ;;  %v14901_v59 = vmax.f32 %v12512_v63, 0.0  ;;  %v14902_v36 = vld [vmem:[#allocation49_spill] sm:$0xff]  ;;  %v3623_v3 = vpop.f32.mrb[207].mxu1 }
 0x321   : > { %v12556_v48 = vld [vmem:[#allocation2 + $0xb1] sm:$0xff]  ;;  %v3992_v56 = vadd.f32 %v3944_v20, %v3844_v42  ;;  %v3847_v11 = vadd.f32 %v14902_v36, %v3621_v22  ;;  %v4573_v21 = vld [vmem:[#allocation2 + $0xe2] sm:$0xff]  ;;  %vm8876_vm5 = vmpackc.low %vm11892_vm13, %vm11829_vm10  ;;  %vm12582_vm2 = vcmp.lt.s32.totalorder %v14910_v15, 16  ;;  %vm12590_vm10 = vcmp.lt.s32.totalorder %v1081_v29, 16  ;;  %v3626_v13 = vpop.f32.mrb[208].mxu1 }
 0x322   : > { %14899 = vst [vmem:[#allocation73_spill] sm:$0xff] %v12556_v48  ;;  %v12558_v61 = vld [vmem:[#allocation2 + $0xb8] sm:$0xff]  ;;  %v4334_v8 = vsel %vm12396_vm9, %v14901_v59, 0.0  ;;  %v4574_v44 = vld [vmem:[#allocation2 + $0xea] sm:$0xff]  ;;  %v3945_v31 = vld [vmem:[%s9949_s26 + $0xf8] sm:$0xff]  ;;  %v12632_v15 = vsub.s32 %v12101_v34, %v711_v17 }
 0x323   : > { %14900 = vst [vmem:[#allocation74_spill] sm:$0xff] %v12558_v61  ;;  %v12566_v0 = vld [vmem:[#allocation2 + $0xc9] sm:$0xff]  ;;  %4382 = vst [vmem:[#allocation2 + $0x101] sm:$0xff] %v4334_v8  ;;  %v14908_v20 = vld [vmem:[#allocation43_spill] sm:$0xff]  ;;  %v4607_v18 = vpack.c.bf16 %v4574_v44, %v4573_v21  ;;  %v722_v8 = vmul.u32 24, %v721_v19  ;;  %v3993_v55 = vadd.f32 %v3945_v31, %v3847_v11  ;;  %v12595_v49 = vadd.f32 %v12211_v45, %v3992_v56 }
 0x324   : > { %14903 = vst [vmem:[#allocation49_spill] sm:$0xff] %v12566_v0  ;;  %v14906_v46 = vld [vmem:[#allocation45_spill] sm:$0xff]  ;;  %v14909_v42 = vmax.f32 %v14908_v20, 0.0  ;;  %v4424_v3 = vld [vmem:[#allocation2 + $0xb8] sm:$0xff]  ;;  %v12586_v37 = vld [vmem:[#allocation2 + $0xb0] sm:$0xff]  ;;  %v14919_v11 = vsel %vm12280_vm0, %v12174_v47, %v12098_v10  ;;  %v12617_v20 = vpop.f32.mrb[192].mxu0 }
 0x325   : > { %v14907_v59 = vmax.f32 %v14906_v46, 0.0  ;;  %14913 = vst [vmem:[#allocation40_spill] sm:$0xff] %v12586_v37  ;;  %v12598_v39 = vld [vmem:[#allocation2 + $0xc1] sm:$0xff]  ;;  %v12602_v19 = vld [vmem:[#allocation2 + $0xd9] sm:$0xff]  ;;  %vm12609_vm13 = vcmp.lt.s32.totalorder %v14919_v11, 16  ;;  %8300 = vmatprep.mubr.bf16.mxu1 %v4607_v18  ;;  %v4423_v56 = vld [vmem:[#allocation2 + $0xb0] sm:$0xff]  ;;  %v12626_v47 = vadd.f32 %v12211_v45, %v3993_v55  ;;  %v12642_v55 = vsub.s32 %v12112_v53, %v722_v8 }
 0x326   : > { %14916 = vst [vmem:[#allocation46_spill] sm:$0xff] %v12598_v39  ;;  %v12600_v44 = vld [vmem:[#allocation2 + $0xc8] sm:$0xff]  ;;  %14918 = vst [vmem:[#allocation43_spill] sm:$0xff] %v12602_v19  ;;  %v12614_v29 = vmul.u32.u64.low 2863311531, %v12220_v12  ;;  %v12615_v31 = vmul.u32.u64.high 2863311531, %v12220_v12, %v12614_v29  ;;  %v12629_v18 = vmul.u32 24, %v776_v62  ;;  %v4460_v10 = vpack.c.bf16 %v4424_v3, %v4423_v56 }
 0x327   : > { %v8877_v22 = vpack.c.bf16 %v14909_v42, %v14907_v59  ;;  %14917 = vst [vmem:[#allocation45_spill] sm:$0xff] %v12600_v44  ;;  %14922 = vst [vmem:[#allocation75_spill] sm:$0xff] %v12617_v20  ;;  %v12619_v42 = vld [vmem:[#allocation2 + $0xd8] sm:$0xff]  ;;  %v4845_v11 = vpop.f32.mrb[193].mxu0  ;;  %v12634_v29 = vld [vmem:[#allocation2 + $0xc0] sm:$0xff]  ;;  %v14931_v8 = vmax.f32 %v12595_v49, 0.0 }
 0x328   : > { %14923 = vst [vmem:[#allocation76_spill] sm:$0xff] %v12619_v42  ;;  %14924 = vst [vmem:[#allocation77_spill] sm:$0xff] %v12634_v29  ;;  %v12636_v46 = vld [vmem:[#allocation2 + $0xd1] sm:$0xff]  ;;  %v12638_v52 = vld [vmem:[#allocation2 + $0xe9] sm:$0xff]  ;;  %v12644_v39 = vpop.f32.mrb[194].mxu0  ;;  %v3852_v11 = vadd.f32 %v12134_v57, %v3626_v13  ;;  %v14937_v42 = vmax.f32 %v12626_v47, 0.0 }
 0x329   : > { %8878 = vmatprep.mubr.msk.bf16.mxu0 %vm8876_vm5, %v8877_v22  ;;  %14925 = vst [vmem:[#allocation78_spill] sm:$0xff] %v12636_v46  ;;  %14926 = vst [vmem:[#allocation79_spill] sm:$0xff] %v12638_v52  ;;  %v3946_v37 = vld [vmem:[%s9949_s26 + $0x100] sm:$0xff]  ;;  %v12646_v62 = vld [vmem:[#allocation2 + $0xd0] sm:$0xff]  ;;  %v3628_v22 = vpop.f32.mrb[209].mxu1  ;;  %v4335_v56 = vsel %vm12582_vm2, %v14931_v8, 0.0 }
 0x32a   : > { %14927 = vst [vmem:[#allocation80_spill] sm:$0xff] %v12644_v39  ;;  %14928 = vst [vmem:[#allocation81_spill] sm:$0xff] %v12646_v62  ;;  %v4848_v34 = vpop.f32.mrb[195].mxu0  ;;  %v12666_v17 = vld [vmem:[#allocation2 + $0xe1] sm:$0xff]  ;;  %v3629_v22 = vpop.f32.mrb[210].mxu1  ;;  %v12678_v29 = vld [vmem:[#allocation2 + $0xf1] sm:$0xff]  ;;  %v3994_v44 = vadd.f32 %v3946_v37, %v3852_v11  ;;  %4930 = vmatmul.mubr.bf16.gmra.mrb[236].mxu0 %v4460_v10 }
 0x32b   : > { %vm12657_vm0 = vmand %vm942_vm4, %vm894_vm8  ;;  %14932 = vst [vmem:[#allocation82_spill] sm:$0xff] %v12666_v17  ;;  %v12668_v57 = vld [vmem:[#allocation2 + $0xe8] sm:$0xff]  ;;  %v12673_v46 = vmul.u32.u64.low 2863311531, %v12241_v23  ;;  %v12674_v19 = vmul.u32.u64.high 2863311531, %v12241_v23, %v12673_v46  ;;  %v12676_v3 = vld [vmem:[#allocation2 + $0xe0] sm:$0xff]  ;;  %v3855_v0 = vadd.f32 %v12170_v4, %v3629_v22  ;;  %v3631_v13 = vpop.f32.mrb[211].mxu1  ;;  %vm14939_vm8 = vnez %v14766_v41 }
 0x32c   : > { %14933 = vst [vmem:[#allocation83_spill] sm:$0xff] %v12668_v57  ;;  %4383 = vst [vmem:[#allocation2 + $0x109] sm:$0xff] %v4335_v56  ;;  %v12680_v8 = vld [vmem:[#allocation2 + $0xf9] sm:$0xff]  ;;  %v4336_v46 = vsel %vm12590_vm10, %v14937_v42, 0.0  ;;  %v3947_v48 = vld [vmem:[%s9949_s26 + $0x108] sm:$0xff]  ;;  %vm14940_vm4 = vnez %v14784_v60  ;;  %v14941_v4 = vmax.f32 %v12032_v28, 0.0  ;;  %v12715_v28 = vadd.f32 %v12211_v45, %v3994_v44 }
 0x32d   : > { %14934 = vst [vmem:[#allocation84_spill] sm:$0xff] %v12676_v3  ;;  %14935 = vst [vmem:[#allocation85_spill] sm:$0xff] %v12678_v29  ;;  %v4575_v62 = vld [vmem:[#allocation2 + $0xf2] sm:$0xff]  ;;  %v4576_v56 = vld [vmem:[#allocation2 + $0xfa] sm:$0xff]  ;;  %v14942_v37 = vmax.f32 %v12105_v26, 0.0  ;;  %vm940_vm15 = vcmp.lt.s32.totalorder %v12632_v15, 0  ;;  %v3995_v22 = vadd.f32 %v3947_v48, %v3855_v0 }
 0x32e   : > { %14936 = vst [vmem:[#allocation86_spill] sm:$0xff] %v12680_v8  ;;  %v12690_v61 = vld [vmem:[#allocation2 + $0xf8] sm:$0xff]  ;;  %vm8879_vm5 = vmpackc.low %vm14940_vm4, %vm14939_vm8  ;;  %v4608_v11 = vpack.c.bf16 %v4576_v56, %v4575_v62  ;;  %v14945_v26 = vld [vmem:[#allocation56_spill] sm:$0xff]  ;;  %v14947_v13 = vmov 0  ;;  %v14949_v56 = vshrl.u32 %v12334_v25, 4  ;;  %vm941_vm8 = vcmp.lt.s32.totalorder %v12642_v55, 0 }
 0x32f   : > { %14938 = vst [vmem:[#allocation87_spill] sm:$0xff] %v12690_v61  ;;  %v8880_v10 = vpack.c.bf16 %v14942_v37, %v14941_v4  ;;  %vm12705_vm3 = vmand %vm943_vm7, %vm895_vm11  ;;  %v14946_v62 = vsel %vm12291_vm6, %v12205_v9, %v14945_v26  ;;  %v12728_v4 = vld [vmem:[#allocation2 + $0xf0] sm:$0xff]  ;;  %v4426_v37 = vld [vmem:[#allocation2 + $0xc8] sm:$0xff]  ;;  %vm893_vm7 = vcmp.ne.s32.totalorder %v12642_v55, 0  ;;  %v1036_v7 = vadd.s32 24, %v12632_v15 }
 0x330   : > { %4384 = vst [vmem:[#allocation2 + $0x111] sm:$0xff] %v4336_v46  ;;  %vm12722_vm11 = vcmp.lt.s32.totalorder %v14946_v62, 16  ;;  %v788_v46 = vmul.u32 24, %v14949_v56  ;;  %14950 = vst [vmem:[#allocation56_spill] sm:$0xff] %v12728_v4  ;;  %8301 = vmatmul.mubr.bf16.gmra.mrb[12].mxu1 %v4608_v11  ;;  %v14370_v44 = vmax.f32 %v12715_v28, 0.0  ;;  %v12737_v48 = vadd.f32 %v12211_v45, %v3995_v22  ;;  %v3634_v11 = vpop.f32.mrb[212].mxu1 }
 0x331   : > { %8881 = vmatprep.mubr.msk.bf16.mxu0 %vm8879_vm5, %v8880_v10  ;;  %v14948_v13 = vsel %vm12722_vm11, 4294967295, %v14947_v13  ;;  %v1086_v25 = vsel %vm12657_vm0, %v12470_v30, %v12382_v51  ;;  %v1087_v0 = vsel %vm12705_vm3, %v12550_v2, %v12456_v27  ;;  %vm14951_vm6 = vcmp.ne.s32.totalorder %v12632_v15, 0  ;;  %v4425_v26 = vld [vmem:[#allocation2 + $0xc0] sm:$0xff]  ;;  %v14955_v53 = vld [vmem:[#allocation35_spill] sm:$0xff]  ;;  %v14956_v56 = vld [vmem:[#allocation53_spill] sm:$0xff]  ;;  %v3636_v41 = vpop.f32.mrb[213].mxu1 }
 0x332   : > { %vm12751_vm4 = vmand %vm940_vm15, %vm14951_vm6  ;;  %v14954_v62 = vld [vmem:[#allocation52_spill] sm:$0xff]  ;;  %v1037_v51 = vadd.s32 24, %v12642_v55  ;;  %v754_v30 = vshrl.u32 %v12615_v31, 4  ;;  %v12762_v27 = vadd.s32 336, %v14955_v53  ;;  %v4337_v2 = vsel %vm12609_vm13, %v14370_v44, 0.0  ;;  %v3948_v60 = vld [vmem:[%s9949_s26 + $0x110] sm:$0xff] }
 0x333   : > { %v12757_v22 = vsub.s32 %v14954_v62, %v12629_v18  ;;  %v14375_v42 = vmax.f32 %v12737_v48, 0.0  ;;  %v3860_v9 = vadd.f32 %v14956_v56, %v3634_v11  ;;  %v4461_v18 = vpack.c.bf16 %v4426_v37, %v4425_v26  ;;  %vm12775_vm15 = vmand %vm941_vm8, %vm893_vm7  ;;  %4385 = vst [vmem:[#allocation2 + $0x119] sm:$0xff] %v4337_v2  ;;  %v3637_v62 = vpop.f32.mrb[214].mxu1  ;;  %v14959_v34 = vld [vmem:[#allocation26_spill] sm:$0xff]  ;;  %v12786_v37 = vld [vmem:[#allocation2 + $0x101] sm:$0xff] }
 0x334   : > { %v12780_v4 = vsub.s32 %v14959_v34, %v788_v46  ;;  %v1084_v11 = vsel %vm12751_vm4, %v1036_v7, %v12632_v15  ;;  %v765_v41 = vshrl.u32 %v12674_v19, 4  ;;  %14960 = vst [vmem:[#allocation52_spill] sm:$0xff] %v12786_v37  ;;  %v12788_v26 = vld [vmem:[#allocation2 + $0x109] sm:$0xff]  ;;  %v14963_v46 = vld [vmem:[#allocation55_spill] sm:$0xff]  ;;  %v3639_v61 = vpop.f32.mrb[215].mxu1  ;;  %v12797_v7 = vld [vmem:[#allocation2 + $0x100] sm:$0xff] }
 0x335   : > { %14961 = vst [vmem:[#allocation35_spill] sm:$0xff] %v12788_v26  ;;  %v12790_v56 = vld [vmem:[#allocation2 + $0x108] sm:$0xff]  ;;  %v4338_v2 = vsel %vm12722_vm11, %v14375_v42, 0.0  ;;  %v3996_v34 = vadd.f32 %v3948_v60, %v3860_v9  ;;  %v3863_v44 = vadd.f32 %v14963_v46, %v3637_v62  ;;  %4938 = vmatmul.mubr.bf16.gmra.mrb[240].mxu0 %v4461_v18  ;;  %14964 = vst [vmem:[#allocation26_spill] sm:$0xff] %v12797_v7  ;;  %v3949_v29 = vld [vmem:[%s9949_s26 + $0x118] sm:$0xff]  ;;  %vm898_vm7 = vcmp.ne.s32.totalorder %v12757_v22, 0 }
 0x336   : > { %14962 = vst [vmem:[#allocation53_spill] sm:$0xff] %v12790_v56  ;;  %v4577_v10 = vld [vmem:[#allocation2 + $0x102] sm:$0xff]  ;;  %4386 = vst [vmem:[#allocation2 + $0x121] sm:$0xff] %v4338_v2  ;;  %v14965_v8 = vld [vmem:[#allocation47_spill] sm:$0xff]  ;;  %v12812_v46 = vadd.s32 352, %v14955_v53  ;;  %v755_v19 = vmul.u32 24, %v754_v30 }
 0x337   : > { %v4578_v15 = vld [vmem:[#allocation2 + $0x10a] sm:$0xff]  ;;  %vm14966_vm0 = vnez %v14965_v8  ;;  %v14967_v3 = vld [vmem:[#allocation48_spill] sm:$0xff]  ;;  %v14971_v9 = vld [vmem:[#allocation51_spill] sm:$0xff]  ;;  %v3997_v8 = vadd.f32 %v3949_v29, %v3863_v44  ;;  %vm12819_vm8 = vcmp.lt.s32.totalorder %v1084_v11, 16  ;;  %vm12826_vm6 = vcmp.lt.s32.totalorder %v1086_v25, 16  ;;  %v3642_v11 = vpop.f32.mrb[216].mxu1 }
 0x338   : > { %vm14968_vm3 = vnez %v14967_v3  ;;  %v14969_v42 = vld [vmem:[#allocation54_spill] sm:$0xff]  ;;  %v14972_v62 = vmax.f32 %v14971_v9, 0.0  ;;  %v4609_v18 = vpack.c.bf16 %v4578_v15, %v4577_v10  ;;  %v1085_v3 = vsel %vm12775_vm15, %v1037_v51, %v12642_v55  ;;  %v4428_v30 = vld [vmem:[#allocation2 + $0xd8] sm:$0xff]  ;;  %v3950_v2 = vld [vmem:[%s9949_s26 + $0x120] sm:$0xff]  ;;  %v3644_v25 = vpop.f32.mrb[217].mxu1 }
 0x339   : > { %vm8882_vm5 = vmpackc.low %vm14968_vm3, %vm14966_vm0  ;;  %v14970_v60 = vmax.f32 %v14969_v42, 0.0  ;;  %v14973_v42 = vmov 0  ;;  %v12824_v10 = vadd.f32 %v12211_v45, %v3996_v34  ;;  %v12831_v29 = vadd.s32 344, %v14955_v53  ;;  %v4427_v34 = vld [vmem:[#allocation2 + $0xd0] sm:$0xff]  ;;  %v3645_v37 = vpop.f32.mrb[218].mxu1  ;;  %v15011_v32 = vld [vmem:[#allocation57_spill] sm:$0xff] }
 0x33a   : > { %v14974_v42 = vsel %vm12819_vm8, 4294967295, %v14973_v42  ;;  %8304 = vmatprep.mubr.bf16.mxu1 %v4609_v18  ;;  %v12834_v55 = vmul.u32.u64.low 2863311531, %v12762_v27  ;;  %v12835_v44 = vmul.u32.u64.high 2863311531, %v12762_v27, %v12834_v55  ;;  %v12839_v51 = vadd.f32 %v12211_v45, %v3997_v8  ;;  %v14982_v8 = vld [vmem:[#allocation58_spill] sm:$0xff]  ;;  %v12878_v25 = vld [vmem:[#allocation2 + $0x118] sm:$0xff] }
 0x33b   : > { %v8883_v61 = vpack.c.bf16 %v14972_v62, %v14970_v60  ;;  %v766_v60 = vmul.u32 24, %v765_v41  ;;  %v12843_v31 = vadd.s32 360, %v14955_v53  ;;  %vm12845_vm15 = vcmp.lt.s32.totalorder %v1087_v0, 16  ;;  %14986 = vst [vmem:[#allocation54_spill] sm:$0xff] %v12878_v25  ;;  %v4579_v26 = vld [vmem:[#allocation2 + $0x112] sm:$0xff] }
 0x33c   : > { %14977 = vst [vmem:[#allocation55_spill] sm:$0xff] %v12839_v51  ;;  %vm12849_vm0 = vcmp.lt.s32.totalorder %v1085_v3, 16  ;;  %v14980_v9 = vmov 0  ;;  %v12858_v18 = vsub.s32 %v12220_v12, %v755_v19  ;;  %v3868_v55 = vadd.f32 %v14982_v8, %v3642_v11  ;;  %v12874_v11 = vld [vmem:[#allocation2 + $0x111] sm:$0xff]  ;;  %v13168_v59 = vld [vmem:[%s14217_s2] ss:$0 sm:$0xff] }
 0x33d   : > { %8884 = vmatprep.mubr.msk.bf16.mxu0 %vm8882_vm5, %v8883_v61  ;;  %v14981_v9 = vsel %vm12849_vm0, 4294967295, %v14980_v9  ;;  %v12854_v62 = vmul.u32.u64.low 2863311531, %v12812_v46  ;;  %v12855_v61 = vmul.u32.u64.high 2863311531, %v12812_v46, %v12854_v62  ;;  %v4462_v0 = vpack.c.bf16 %v4428_v30, %v4427_v34  ;;  %14984 = vst [vmem:[#allocation47_spill] sm:$0xff] %v12874_v11  ;;  %v12876_v30 = vld [vmem:[#allocation2 + $0x119] sm:$0xff]  ;;  %v14987_v8 = vld [vmem:[#allocation30_spill] sm:$0xff] }
 0x33e   : > { %v14983_v56 = vmax.f32 %v12824_v10, 0.0  ;;  %v12868_v62 = vsub.s32 %v12241_v23, %v766_v60  ;;  %v12871_v12 = vmul.u32.u64.low 2863311531, %v12831_v29  ;;  %v12872_v19 = vmul.u32.u64.high 2863311531, %v12831_v29, %v12871_v12  ;;  %14985 = vst [vmem:[#allocation48_spill] sm:$0xff] %v12876_v30  ;;  %v12885_v57 = vld [vmem:[#allocation2 + $0x110] sm:$0xff]  ;;  %v3952_v25 = vld [vmem:[%s9949_s26 + $0x130] sm:$0xff] }
 0x33f   : > { %v3998_v34 = vadd.f32 %v3950_v2, %v3868_v55  ;;  %v3871_v7 = vadd.f32 %v14987_v8, %v3645_v37  ;;  %4946 = vmatmul.mubr.bf16.gmra.mrb[244].mxu0 %v4462_v0  ;;  %v14988_v23 = vmax.f32 %v12839_v51, 0.0  ;;  %14989 = vst [vmem:[#allocation51_spill] sm:$0xff] %v12885_v57  ;;  %v3951_v17 = vld [vmem:[%s9949_s26 + $0x128] sm:$0xff]  ;;  %v14993_v37 = vld [vmem:[#allocation63_spill] sm:$0xff]  ;;  %v14995_v0 = vld [vmem:[#allocation13_spill] sm:$0xff]  ;;  %vm947_vm4 = vcmp.lt.s32.totalorder %v12780_v4, 0 }
 0x340   : > { %v4339_v3 = vsel %vm12819_vm8, %v14983_v56, 0.0  ;;  %v3647_v56 = vpop.f32.mrb[219].mxu1  ;;  %v14990_v52 = vld [vmem:[#allocation50_spill] sm:$0xff]  ;;  %v14994_v55 = vmax.f32 %v14993_v37, 0.0  ;;  %v14996_v8 = vmax.f32 %v14995_v0, 0.0  ;;  %v12910_v37 = vadd.s32 24, %v12757_v22 }
 0x341   : > { %4387 = vst [vmem:[#allocation2 + $0x129] sm:$0xff] %v4339_v3  ;;  %v4580_v3 = vld [vmem:[#allocation2 + $0x11a] sm:$0xff]  ;;  %v4340_v60 = vsel %vm12849_vm0, %v14988_v23, 0.0  ;;  %vm14991_vm3 = vnez %v14990_v52  ;;  %v12899_v23 = vmul.u32.u64.low 2863311531, %v12843_v31  ;;  %v12900_v1 = vmul.u32.u64.high 2863311531, %v12843_v31, %v12899_v23 }
 0x342   : > { %vm8885_vm5 = vmpackc.low %vm12231_vm12, %vm14991_vm3  ;;  %v8886_v56 = vpack.c.bf16 %v14996_v8, %v14994_v55  ;;  %v4610_v33 = vpack.c.bf16 %v4580_v3, %v4579_v26  ;;  %4388 = vst [vmem:[#allocation2 + $0x131] sm:$0xff] %v4340_v60  ;;  %v12905_v52 = vadd.f32 %v12211_v45, %v3998_v34  ;;  %v3999_v2 = vadd.f32 %v3951_v17, %v3871_v7  ;;  %v4430_v26 = vld [vmem:[#allocation2 + $0xe8] sm:$0xff]  ;;  %v3650_v60 = vpop.f32.mrb[220].mxu1  ;;  %v4429_v55 = vld [vmem:[#allocation2 + $0xe0] sm:$0xff] }
 0x343   : > { %v798_v3 = vshrl.u32 %v12835_v44, 4  ;;  %vm14998_vm3 = vcmp.lt.s32.totalorder %v12757_v22, 0  ;;  %v1040_v7 = vadd.s32 24, %v12858_v18  ;;  %v12931_v44 = vadd.s32 24, %v12780_v4  ;;  %v15005_v12 = vld [vmem:[#allocation59_spill] sm:$0xff]  ;;  %v3652_v11 = vpop.f32.mrb[221].mxu1 }
 0x344   : > { %8887 = vmatprep.mubr.msk.bf16.mxu0 %vm8885_vm5, %v8886_v56  ;;  %14997 = vst [vmem:[#allocation58_spill] sm:$0xff] %v12905_v52  ;;  %8305 = vmatmul.mubr.bf16.gmra.mrb[16].mxu1 %v4610_v33  ;;  %v14395_v34 = vmax.f32 %v12905_v52, 0.0  ;;  %v12917_v17 = vadd.f32 %v12211_v45, %v3999_v2  ;;  %vm12923_vm12 = vmand %vm14998_vm3, %vm898_vm7  ;;  %vm899_vm5 = vcmp.ne.s32.totalorder %v12780_v4, 0  ;;  %vm15001_vm0 = vcmp.ne.s32.totalorder %v12858_v18, 0  ;;  %v3653_v40 = vpop.f32.mrb[222].mxu1  ;;  %v12961_v2 = vld [vmem:[#allocation2 + $0x121] sm:$0xff] }
 0x345   : > { %vm15002_vm8 = vcmp.lt.s32.totalorder %v12858_v18, 0  ;;  %v1041_v8 = vadd.s32 24, %v12868_v62  ;;  %v12943_v56 = vadd.s32 376, %v14955_v53  ;;  %v3876_v57 = vadd.f32 %v15005_v12, %v3650_v60  ;;  %v12975_v52 = vld [vmem:[#allocation2 + $0x120] sm:$0xff]  ;;  %vm12982_vm3 = vmand %vm947_vm4, %vm899_vm5  ;;  %v4432_v54 = vld [vmem:[#allocation2 + $0xf8] sm:$0xff] }
 0x346   : > { %vm12937_vm11 = vmand %vm15002_vm8, %vm15001_vm0  ;;  %v4341_v23 = vsel %vm12826_vm6, %v14395_v34, 0.0  ;;  %v4463_v30 = vpack.c.bf16 %v4430_v26, %v4429_v55  ;;  %vm15006_vm7 = vcmp.ne.s32.totalorder %v12868_v62, 0  ;;  %vm15007_vm8 = vcmp.lt.s32.totalorder %v12868_v62, 0  ;;  %v3953_v51 = vld [vmem:[%s9949_s26 + $0x138] sm:$0xff] }
 0x347   : > { %vm12956_vm0 = vmand %vm15007_vm8, %vm15006_vm7  ;;  %4389 = vst [vmem:[#allocation2 + $0x139] sm:$0xff] %v4341_v23  ;;  %v799_v35 = vmul.u32 24, %v798_v3  ;;  %v809_v34 = vshrl.u32 %v12872_v19, 4  ;;  %v15010_v26 = vmax.f32 %v12917_v17, 0.0  ;;  %v4000_v55 = vadd.f32 %v3952_v25, %v3876_v57  ;;  %v3655_v23 = vpop.f32.mrb[223].mxu1 }
 0x348   : > { %v12963_v12 = vld [vmem:[#allocation2 + $0x129] sm:$0xff]  ;;  %v3879_v39 = vadd.f32 %v15011_v32, %v3653_v40  ;;  %4954 = vmatmul.mubr.bf16.gmra.mrb[248].mxu0 %v4463_v30  ;;  %v1088_v19 = vsel %vm12937_vm11, %v1040_v7, %v12858_v18  ;;  %vm8888_vm7 = vmpackc.low %vm12350_vm14, %vm12253_vm1  ;;  %v15014_v40 = vmax.f32 %v12377_v16, 0.0  ;;  %v15015_v32 = vmax.f32 %v12483_v50, 0.0 }
 0x349   : > { %v12965_v11 = vld [vmem:[#allocation2 + $0x128] sm:$0xff]  ;;  %v4342_v60 = vsel %vm12845_vm15, %v15010_v26, 0.0  ;;  %v820_v25 = vshrl.u32 %v12855_v61, 4  ;;  %v1089_v38 = vsel %vm12956_vm0, %v1041_v8, %v12868_v62  ;;  %v13003_v16 = vadd.f32 %v12211_v45, %v4000_v55  ;;  %v3658_v8 = vpop.f32.mrb[224].mxu1  ;;  %vm8891_vm4 = vmpackc.low %vm12582_vm2, %vm12396_vm9 }
 0x34a   : > { %v4581_v20 = vld [vmem:[#allocation2 + $0x122] sm:$0xff]  ;;  %v4582_v3 = vld [vmem:[#allocation2 + $0x12a] sm:$0xff]  ;;  %4390 = vst [vmem:[#allocation2 + $0x141] sm:$0xff] %v4342_v60  ;;  %v8889_v18 = vpack.c.bf16 %v15015_v32, %v15014_v40  ;;  %v4001_v26 = vadd.f32 %v3953_v51, %v3879_v39  ;;  %v831_v50 = vshrl.u32 %v12900_v1, 4  ;;  %vm13006_vm1 = vcmp.lt.s32.totalorder %v1088_v19, 16 }
 0x34b   : > { %v4611_v30 = vpack.c.bf16 %v4582_v3, %v4581_v20  ;;  %v13011_v61 = vsub.s32 %v12762_v27, %v799_v35  ;;  %v810_v39 = vmul.u32 24, %v809_v34  ;;  %v1090_v6 = vsel %vm12923_vm12, %v12910_v37, %v12757_v22  ;;  %v4431_v60 = vld [vmem:[#allocation2 + $0xf0] sm:$0xff]  ;;  %v15020_v37 = vld [vmem:[#allocation39_spill] sm:$0xff]  ;;  %v3954_v55 = vld [vmem:[%s9949_s26 + $0x140] sm:$0xff] }
 0x34c   : > { %8890 = vmatprep.mubr.msk.bf16.mxu0 %vm8888_vm7, %v8889_v18  ;;  %v1091_v51 = vsel %vm12982_vm3, %v12931_v44, %v12780_v4  ;;  %v13022_v1 = vadd.f32 %v12211_v45, %v4001_v26  ;;  %v4199_v62 = vmax.f32 %v13003_v16, 0.0  ;;  %v821_v35 = vmul.u32 24, %v820_v25  ;;  %v3660_v4 = vpop.f32.mrb[225].mxu1  ;;  %v13044_v32 = vld [vmem:[#allocation2 + $0x131] sm:$0xff]  ;;  %v15021_v26 = vld [vmem:[#allocation33_spill] sm:$0xff] }
 0x34d   : > { %8308 = vmatprep.mubr.bf16.mxu1 %v4611_v30  ;;  %vm13025_vm14 = vcmp.lt.s32.totalorder %v1089_v38, 16  ;;  %v13030_v34 = vmul.u32.u64.low 2863311531, %v12943_v56  ;;  %v13031_v22 = vmul.u32.u64.high 2863311531, %v12943_v56, %v13030_v34  ;;  %v3884_v33 = vadd.f32 %v15020_v37, %v3658_v8  ;;  %v3661_v19 = vpop.f32.mrb[226].mxu1  ;;  %v15120_v20 = vld [vmem:[#allocation71_spill] sm:$0xff] }
 0x34e   : > { %v4464_v44 = vpack.c.bf16 %v4432_v54, %v4431_v60  ;;  %v4200_v23 = vmax.f32 %v13022_v1, 0.0  ;;  %v4343_v3 = vsel %vm13006_vm1, %v4199_v62, 0.0  ;;  %v832_v57 = vmul.u32 24, %v831_v50  ;;  %v13046_v18 = vld [vmem:[#allocation2 + $0x139] sm:$0xff]  ;;  %v3663_v54 = vpop.f32.mrb[227].mxu1  ;;  %v3955_v34 = vld [vmem:[%s9949_s26 + $0x148] sm:$0xff] }
 0x34f   : > { %4391 = vst [vmem:[#allocation2 + $0x149] sm:$0xff] %v4343_v3  ;;  %v13041_v40 = vsub.s32 %v12831_v29, %v810_v39  ;;  %vm900_vm11 = vcmp.ne.s32.totalorder %v13011_v61, 0  ;;  %v13048_v30 = vld [vmem:[#allocation2 + $0x138] sm:$0xff]  ;;  %v4002_v25 = vadd.f32 %v3954_v55, %v3884_v33  ;;  %v3887_v38 = vadd.f32 %v15021_v26, %v3661_v19  ;;  %v13055_v39 = vld [vmem:[#allocation2 + $0x130] sm:$0xff] }
 0x350   : > { %4962 = vmatmul.mubr.bf16.gmra.mrb[252].mxu0 %v4464_v44  ;;  %v4583_v8 = vld [vmem:[#allocation2 + $0x132] sm:$0xff]  ;;  %v4344_v29 = vsel %vm13025_vm14, %v4200_v23, 0.0  ;;  %v15022_v37 = vmax.f32 %v12512_v63, 0.0  ;;  %v15023_v33 = vmax.f32 %v12595_v49, 0.0  ;;  %vm948_vm12 = vcmp.lt.s32.totalorder %v13011_v61, 0 }
 0x351   : > { %v4584_v50 = vld [vmem:[#allocation2 + $0x13a] sm:$0xff]  ;;  %4392 = vst [vmem:[#allocation2 + $0x151] sm:$0xff] %v4344_v29  ;;  %v13070_v44 = vadd.s32 368, %v14955_v53  ;;  %v13075_v43 = vadd.f32 %v12211_v45, %v4002_v25  ;;  %v4003_v36 = vadd.f32 %v3955_v34, %v3887_v38  ;;  %vm13077_vm9 = vcmp.lt.s32.totalorder %v1090_v6, 16  ;;  %v4434_v53 = vld [vmem:[#allocation2 + $0x108] sm:$0xff]  ;;  %vm13099_vm0 = vmand %vm948_vm12, %vm900_vm11  ;;  %v3666_v6 = vpop.f32.mrb[228].mxu1 }
 0x352   : > { %v8892_v55 = vpack.c.bf16 %v15023_v33, %v15022_v37  ;;  %v4612_v4 = vpack.c.bf16 %v4584_v50, %v4583_v8  ;;  %vm13081_vm2 = vcmp.lt.s32.totalorder %v1091_v51, 16  ;;  %v13086_v19 = vsub.s32 %v12812_v46, %v821_v35  ;;  %v4433_v35 = vld [vmem:[#allocation2 + $0x100] sm:$0xff]  ;;  %v3956_v33 = vld [vmem:[%s9949_s26 + $0x150] sm:$0xff] }
 0x353   : > { %v1044_v26 = vadd.s32 24, %v13011_v61  ;;  %v14401_v25 = vmax.f32 %v13075_v43, 0.0  ;;  %v13091_v38 = vadd.f32 %v12211_v45, %v4003_v36  ;;  %vm901_vm5 = vcmp.ne.s32.totalorder %v13041_v40, 0  ;;  %v15030_v34 = vld [vmem:[#allocation36_spill] sm:$0xff]  ;;  %v4440_v15 = vld [vmem:[#allocation2 + $0x138] sm:$0xff] }
 0x354   : > { %8893 = vmatprep.mubr.msk.bf16.mxu0 %vm8891_vm4, %v8892_v55  ;;  %8309 = vmatmul.mubr.bf16.gmra.mrb[20].mxu1 %v4612_v4  ;;  %vm949_vm8 = vcmp.lt.s32.totalorder %v13041_v40, 0  ;;  %v13104_v51 = vsub.s32 %v12843_v31, %v832_v57  ;;  %v1045_v45 = vadd.s32 24, %v13041_v40  ;;  %v3892_v37 = vadd.f32 %v15030_v34, %v3666_v6  ;;  %v3668_v55 = vpop.f32.mrb[229].mxu1  ;;  %v13118_v57 = vld [vmem:[#allocation2 + $0x141] sm:$0xff]  ;;  %vm8894_vm4 = vmpackc.low %vm12609_vm13, %vm12590_vm10  ;;  %v8754_v63 = vld [vmem:[#allocation8 + $0x210] sm:$0xff]  }
 0x355   : > { %v13108_v54 = vmul.u32.u64.low 2863311531, %v13070_v44  ;;  %v13109_v8 = vmul.u32.u64.high 2863311531, %v13070_v44, %v13108_v54  ;;  %v4345_v50 = vsel %vm13077_vm9, %v14401_v25, 0.0  ;;  %v14399_v29 = vmax.f32 %v13091_v38, 0.0  ;;  %v3669_v36 = vpop.f32.mrb[230].mxu1  ;;  %vm13127_vm3 = vmand %vm949_vm8, %vm901_vm5  ;;  %v13134_v6 = vld [vmem:[#allocation2 + $0x140] sm:$0xff] }
 0x356   : > { %v4465_v31 = vpack.c.bf16 %v4434_v53, %v4433_v35  ;;  %v13120_v4 = vld [vmem:[#allocation2 + $0x149] sm:$0xff]  ;;  %4393 = vst [vmem:[#allocation2 + $0x159] sm:$0xff] %v4345_v50  ;;  %v853_v54 = vshrl.u32 %v13031_v22, 4  ;;  %v1092_v53 = vsel %vm13099_vm0, %v1044_v26, %v13011_v61  ;;  %v4004_v34 = vadd.f32 %v3956_v33, %v3892_v37  ;;  %v3671_v0 = vpop.f32.mrb[231].mxu1  ;;  %v3957_v46 = vld [vmem:[%s9949_s26 + $0x158] sm:$0xff] }
 0x357   : > { %v13136_v35 = vld [vmem:[#allocation2 + $0x148] sm:$0xff]  ;;  %v4346_v22 = vsel %vm13081_vm2, %v14399_v29, 0.0  ;;  %vm902_vm7 = vcmp.ne.s32.totalorder %v13086_v19, 0  ;;  %vm950_vm11 = vcmp.lt.s32.totalorder %v13086_v19, 0  ;;  %v15034_v0 = vmax.f32 %v12626_v47, 0.0  ;;  %v4441_v16 = vld [vmem:[#allocation2 + $0x140] sm:$0xff] }
 0x358   : > { %v15033_v55 = vld [vmem:[#allocation61_spill] sm:$0xff]  ;;  %4970 = vmatmul.mubr.bf16.gmra.mrb[0].mxu0 %v4465_v31  ;;  %4394 = vst [vmem:[#allocation2 + $0x161] sm:$0xff] %v4346_v22  ;;  %v15035_v37 = vmax.f32 %v12715_v28, 0.0  ;;  %v1046_v22 = vadd.s32 24, %v13086_v19  ;;  %v13171_v21 = vadd.f32 %v13168_v59, %v4004_v34  ;;  %vm903_vm10 = vcmp.ne.s32.totalorder %v13104_v51, 0  ;;  %v4436_v28 = vld [vmem:[#allocation2 + $0x118] sm:$0xff]  ;;  %vm13183_vm5 = vmand %vm950_vm11, %vm902_vm7 }
 0x359   : > { %v3895_v60 = vadd.f32 %v15033_v55, %v3669_v36  ;;  %v13145_v7 = vld [vmem:[#allocation2 + $0x142] sm:$0xff]  ;;  %v4586_v61 = vld [vmem:[#allocation2 + $0x14a] sm:$0xff]  ;;  %v1093_v55 = vsel %vm13127_vm3, %v1045_v45, %v13041_v40  ;;  %vm951_vm13 = vcmp.lt.s32.totalorder %v13104_v51, 0  ;;  %v854_v47 = vmul.u32 24, %v853_v54  ;;  %v3674_v34 = vpop.f32.mrb[232].mxu1 }
 0x35a   : > { %v8895_v33 = vpack.c.bf16 %v15035_v37, %v15034_v0  ;;  %v4613_v31 = vpack.c.bf16 %v4586_v61, %v13145_v7  ;;  %vm13175_vm12 = vcmp.lt.s32.totalorder %v1092_v53, 16  ;;  %v14400_v45 = vmax.f32 %v13171_v21, 0.0  ;;  %v4435_v53 = vld [vmem:[#allocation2 + $0x110] sm:$0xff]  ;;  %v3958_v37 = vld [vmem:[%s9949_s26 + $0x160] sm:$0xff]  ;;  %vm13203_vm0 = vmand %vm951_vm13, %vm903_vm10 }
 0x35b   : > { %v4005_v36 = vadd.f32 %v3957_v46, %v3895_v60  ;;  %v1047_v54 = vadd.s32 24, %v13104_v51  ;;  %vm13192_vm8 = vcmp.lt.s32.totalorder %v1093_v55, 16  ;;  %v842_v46 = vshrl.u32 %v13109_v8, 4  ;;  %v13218_v26 = vld [vmem:[#allocation2 + $0x151] sm:$0xff]  ;;  %v4442_v41 = vld [vmem:[#allocation2 + $0x148] sm:$0xff]  ;;  %v5451_v61 = vld [vmem:[#allocation2 + $0x1a] sm:$0xff] }
 0x35c   : > { %8896 = vmatprep.mubr.msk.bf16.mxu0 %vm8894_vm4, %v8895_v33  ;;  %8312 = vmatprep.mubr.bf16.mxu1 %v4613_v31  ;;  %v3900_v0 = vadd.f32 %v12514_v24, %v3674_v34  ;;  %v3676_v33 = vpop.f32.mrb[233].mxu1  ;;  %v4347_v8 = vsel %vm13175_vm12, %v14400_v45, 0.0  ;;  %v1094_v24 = vsel %vm13183_vm5, %v1046_v22, %v13086_v19  ;;  %v13233_v22 = vld [vmem:[#allocation2 + $0x150] sm:$0xff]  ;;  %vm15044_vm3 = vnez %v14948_v13  ;;  %v4437_v31 = vld [vmem:[#allocation2 + $0x120] sm:$0xff]  ;;  %v8764_v60 = vld [vmem:[#allocation8 + $0x220] sm:$0xff]  }
 0x35d   : > { %v13188_v3 = vadd.f32 %v13168_v59, %v4005_v36  ;;  %v4466_v36 = vpack.c.bf16 %v4436_v28, %v4435_v53  ;;  %v3677_v34 = vpop.f32.mrb[234].mxu1  ;;  %v13216_v33 = vsub.s32 %v12943_v56, %v854_v47  ;;  %4395 = vst [vmem:[#allocation2 + $0x169] sm:$0xff] %v4347_v8  ;;  %v13220_v28 = vld [vmem:[#allocation2 + $0x159] sm:$0xff]  ;;  %v3959_v40 = vld [vmem:[%s9949_s26 + $0x168] sm:$0xff]  ;;  %vm15045_vm7 = vnez %v14974_v42 }
 0x35e   : > { %v13222_v53 = vld [vmem:[#allocation2 + $0x158] sm:$0xff]  ;;  %v4006_v50 = vadd.f32 %v3958_v37, %v3900_v0  ;;  %v3903_v29 = vadd.f32 %v12542_v58, %v3677_v34  ;;  %v3679_v45 = vpop.f32.mrb[235].mxu1  ;;  %vm8897_vm11 = vmpackc.low %vm15045_vm7, %vm15044_vm3  ;;  %v15046_v58 = vmax.f32 %v12737_v48, 0.0  ;;  %v1095_v48 = vsel %vm13203_vm0, %v1047_v54, %v13104_v51  ;;  %v4438_v34 = vld [vmem:[#allocation2 + $0x128] sm:$0xff] }
 0x35f   : > { %v14403_v55 = vmax.f32 %v13188_v3, 0.0  ;;  %v13225_v25 = vld [vmem:[#allocation2 + $0x152] sm:$0xff]  ;;  %v13227_v19 = vld [vmem:[#allocation2 + $0x15a] sm:$0xff]  ;;  %v15047_v45 = vmax.f32 %v12824_v10, 0.0  ;;  %vm13256_vm4 = vcmp.lt.s32.totalorder %v1094_v24, 16  ;;  %vm905_vm10 = vcmp.ne.s32.totalorder %v13216_v33, 0 }
 0x360   : > { %4978 = vmatmul.mubr.bf16.gmra.mrb[4].mxu0 %v4466_v36  ;;  %v4614_v37 = vpack.c.bf16 %v13227_v19, %v13225_v25  ;;  %v843_v36 = vmul.u32 24, %v842_v46  ;;  %v13251_v13 = vadd.f32 %v13168_v59, %v4006_v50  ;;  %v4007_v42 = vadd.f32 %v3959_v40, %v3903_v29  ;;  %v3682_v51 = vpop.f32.mrb[236].mxu1  ;;  %v3960_v29 = vld [vmem:[%s9949_s26 + $0x170] sm:$0xff]  ;;  %v4443_v27 = vld [vmem:[#allocation2 + $0x150] sm:$0xff]  ;;  %v4445_v49 = vld [vmem:[#allocation2 + $0x160] sm:$0xff] }
 0x361   : > { %v4348_v56 = vsel %vm13192_vm8, %v14403_v55, 0.0  ;;  %v8898_v0 = vpack.c.bf16 %v15047_v45, %v15046_v58  ;;  %vm953_vm13 = vcmp.lt.s32.totalorder %v13216_v33, 0  ;;  %vm13264_vm5 = vcmp.lt.s32.totalorder %v1095_v48, 16  ;;  %v3961_v55 = vld [vmem:[%s9949_s26 + $0x178] sm:$0xff] }
 0x362   : > { %4396 = vst [vmem:[#allocation2 + $0x171] sm:$0xff] %v4348_v56  ;;  %8313 = vmatmul.mubr.bf16.gmra.mrb[24].mxu1 %v4614_v37  ;;  %v14402_v56 = vmax.f32 %v13251_v13, 0.0  ;;  %v4158_v46 = vadd.f32 %v13168_v59, %v4007_v42  ;;  %v1049_v54 = vadd.s32 24, %v13216_v33  ;;  %v13271_v24 = vsub.s32 %v13070_v44, %v843_v36  ;;  %v13280_v42 = vld [vmem:[#allocation2 + $0x161] sm:$0xff]  ;;  %vm13288_vm0 = vmand %vm953_vm13, %vm905_vm10 }
 0x363   : > { %8899 = vmatprep.mubr.msk.bf16.mxu0 %vm8897_vm11, %v8898_v0  ;;  %v3908_v45 = vadd.f32 %v12496_v14, %v3682_v51  ;;  %v3684_v0 = vpop.f32.mrb[237].mxu1  ;;  %v4467_v37 = vpack.c.bf16 %v4438_v34, %v4437_v31  ;;  %v13294_v34 = vld [vmem:[#allocation2 + $0x160] sm:$0xff]  ;;  %vm15054_vm3 = vnez %v14981_v9  ;;  %v15055_v51 = vld [vmem:[#allocation55_spill] sm:$0xff] }
 0x364   : > { %v4349_v40 = vsel %vm13256_vm4, %v14402_v56, 0.0  ;;  %v4206_v58 = vmax.f32 %v4158_v46, 0.0  ;;  %v13278_v48 = vld [vmem:[#allocation2 + $0x162] sm:$0xff]  ;;  %v3685_v36 = vpop.f32.mrb[238].mxu1  ;;  %vm8900_vm7 = vmpackc.low %vm12826_vm6, %vm15054_vm3  ;;  %v15056_v50 = vmax.f32 %v15055_v51, 0.0  ;;  %vm904_vm11 = vcmp.ne.s32.totalorder %v13271_v24, 0 }
 0x365   : > { %v13282_v8 = vld [vmem:[#allocation2 + $0x169] sm:$0xff]  ;;  %4397 = vst [vmem:[#allocation2 + $0x179] sm:$0xff] %v4349_v40  ;;  %v4008_v40 = vadd.f32 %v3960_v29, %v3908_v45  ;;  %v3911_v0 = vadd.f32 %v12524_v5, %v3685_v36  ;;  %v3687_v56 = vpop.f32.mrb[239].mxu1  ;;  %vm952_vm10 = vcmp.lt.s32.totalorder %v13271_v24, 0  ;;  %v1048_v36 = vadd.s32 24, %v13271_v24 }
 0x366   : > { %v13296_v46 = vld [vmem:[#allocation2 + $0x168] sm:$0xff]  ;;  %v4350_v31 = vsel %vm13264_vm5, %v4206_v58, 0.0  ;;  %v15057_v58 = vld [vmem:[#allocation58_spill] sm:$0xff]  ;;  %v1097_v56 = vsel %vm13288_vm0, %v1049_v54, %v13216_v33  ;;  %vm13326_vm13 = vmand %vm952_vm10, %vm904_vm11 }
 0x367   : > { %v6377_v14 = vpack.c.bf16 %v13296_v46, %v13294_v34  ;;  %4398 = vst [vmem:[#allocation2 + $0x181] sm:$0xff] %v4350_v31  ;;  %v15058_v29 = vmax.f32 %v15057_v58, 0.0  ;;  %4056 = vst [vmem:[%s9949_s26 + $0x170] sm:$0xff] %v4008_v40  ;;  %vm1145_vm6 = vcmp.lt.s32.totalorder %v1097_v56, 16  ;;  %v4439_v51 = vld [vmem:[#allocation2 + $0x130] sm:$0xff]  ;;  %v5379_v31 = vld [vmem:[#allocation2 + $0x19] sm:$0xff] }
 0x368   : > { %4986 = vmatmul.mubr.bf16.gmra.mrb[8].mxu0 %v4467_v37  ;;  %v4009_v37 = vadd.f32 %v3961_v55, %v3911_v0  ;;  %v4468_v44 = vpack.c.bf16 %v4440_v15, %v4439_v51  ;;  %v5380_v0 = vld [vmem:[#allocation2 + $0x21] sm:$0xff]  ;;  %vm8903_vm5 = vmpackc.low %vm13006_vm1, %vm12845_vm15 }
 0x369   : > { %v13303_v47 = vld [vmem:[#allocation2 + $0x16a] sm:$0xff]  ;;  %v8901_v45 = vpack.c.bf16 %v15058_v29, %v15056_v50  ;;  %vm8906_vm15 = vmpackc.low %vm13077_vm9, %vm13025_vm14  ;;  %vm15118_vm9 = vmmov 1  }
 0x36a   : > { %v4615_v5 = vpack.c.bf16 %v13303_v47, %v13278_v48  ;;  %v4160_v9 = vadd.f32 %v13168_v59, %v4009_v37  ;;  %v13332_v55 = vld [vmem:[#allocation2 + $0x171] sm:$0xff]  ;;  %v1096_v37 = vsel %vm13326_vm13, %v1048_v36, %v13271_v24  ;;  %v5427_v36 = vpack.c.bf16 %v5380_v0, %v5379_v31  ;;  %vm8909_vm1 = vmpackc.low %vm13175_vm12, %vm13081_vm2 }
 0x36b   : > { %8902 = vmatprep.mubr.msk.bf16.mxu0 %vm8900_vm7, %v8901_v45  ;;  %v13338_v58 = vld [vmem:[#allocation2 + $0x170] sm:$0xff]  ;;  %vm13365_vm0 = vcmp.lt.s32.totalorder %v1096_v37, 16  ;;  %v15064_v37 = vmax.f32 %v13075_v43, 0.0  ;;  %vm8912_vm14 = vmpackc.low %vm13256_vm4, %vm13192_vm8 }
 0x36c   : > { %8316 = vmatprep.mubr.bf16.mxu1 %v4615_v5  ;;  %v4208_v40 = vmax.f32 %v4160_v9, 0.0  ;;  %v13330_v33 = vld [vmem:[#allocation2 + $0x172] sm:$0xff]  ;;  %v15061_v9 = vmax.f32 %v12917_v17, 0.0  ;;  %vm8915_vm2 = vmpackc.low %vm15118_vm9, %vm13365_vm0 }
 0x36d   : > { %v13334_v54 = vld [vmem:[#allocation2 + $0x179] sm:$0xff]  ;;  %v5520_v50 = vpack.c.bf16 %v13330_v33, %v13303_v47  ;;  %v8749_v31 = vld [vmem:[#allocation8 + $0x208] sm:$0xff]  }
 0x36e   : > { %v13340_v29 = vld [vmem:[#allocation2 + $0x178] sm:$0xff]  ;;  %v6450_v45 = vpack.c.bf16 %v13334_v54, %v13332_v55  ;;  %v4352_v5 = vsel %vm1145_vm6, %v4208_v40, 0.0  ;;  %v8904_v51 = vpack.c.bf16 %v4199_v62, %v15061_v9  ;;  %v4469_v62 = vpack.c.bf16 %v4442_v41, %v4441_v16  ;;  %v8772_v16 = vld [vmem:[#allocation8 + $0x200] sm:$0xff]   ;;  %v13382_v1 = vld [vmem:[#allocation2 + $0x180] sm:$0xff] }
 0x36f   : > { %v13344_v56 = vld [vmem:[#allocation2 + $0x17a] sm:$0xff]  ;;  %v6378_v15 = vpack.c.bf16 %v13340_v29, %v13338_v58  ;;  %4400 = vst [vmem:[#allocation2 + $0x191] sm:$0xff] %v4352_v5  ;;  %v8907_v9 = vpack.c.bf16 %v15064_v37, %v4200_v23  ;;  %v4447_v10 = vld [vmem:[#allocation2 + $0x170] sm:$0xff] }
 0x370   : > { %4994 = vmatmul.mubr.bf16.gmra.mrb[12].mxu0 %v4468_v44  ;;  %v4616_v40 = vpack.c.bf16 %v13344_v56, %v13330_v33  ;;  %v4104_v24 = vld [vmem:[%s9949_s26 + $0x170] sm:$0xff]  ;;  %v5308_v5 = vld [vmem:[#allocation2 + $0x20] sm:$0xff] }
 0x371   : > { %8905 = vmatprep.mubr.msk.bf16.mxu0 %vm8903_vm5, %v8904_v51  ;;  %v13363_v44 = vadd.f32 %v13168_v59, %v4104_v24  ;;  %v5307_v59 = vld [vmem:[#allocation2 + $0x18] sm:$0xff] }
 0x372   : > { %8317 = vmatmul.mubr.bf16.gmra.mrb[28].mxu1 %v4616_v40  ;;  %v5355_v51 = vpack.c.bf16 %v5308_v5, %v5307_v59  ;;  %v5381_v40 = vld [vmem:[#allocation2 + $0x29] sm:$0xff]  ;;  %v8771_v24 = vld [vmem:[#allocation2 + $0x31] sm:$0xff]  ;;  %v15065_v5 = vmax.f32 %v13091_v38, 0.0  ;;  %v15066_v59 = vmax.f32 %v13171_v21, 0.0  ;;  %v15067_v38 = vmax.f32 %v13188_v3, 0.0 }
 0x373   : > { %5748 = vmatprep.mubr.bf16.mxu1 %v5427_v36  ;;  %v4207_v17 = vmax.f32 %v13363_v44, 0.0  ;;  %v5428_v36 = vpack.c.bf16 %v8771_v24, %v5381_v40  ;;  %v4444_v41 = vld [vmem:[#allocation2 + $0x158] sm:$0xff]  ;;  %v8759_v40 = vld [vmem:[#allocation8 + $0x218] sm:$0xff]   ;;  %v15068_v21 = vmax.f32 %v13251_v13, 0.0  ;;  %v8765_v13 = vld [vmem:[#allocation8 + $0x228] sm:$0xff]  }
 0x374   : > { %v8910_v37 = vpack.c.bf16 %v15066_v59, %v15065_v5  ;;  %v8774_v24 = vld [vmem:[#allocation2 + $0x39] sm:$0xff]  ;;  %v8778_v5 = vld [vmem:[#allocation2 + $0x49] sm:$0xff]  ;;  %v8779_v59 = vld [vmem:[#allocation2 + $0x51] sm:$0xff] }
 0x375   : > { %v4351_v0 = vsel %vm13365_vm0, %v4207_v17, 0.0 }
 0x376   : > { %4399 = vst [vmem:[#allocation2 + $0x189] sm:$0xff] %v4351_v0  ;;  %v5309_v0 = vld [vmem:[#allocation2 + $0x28] sm:$0xff] }
 0x378   : > { %5002 = vmatmul.mubr.bf16.gmra.mrb[16].mxu0 %v4469_v62  ;;  %v4470_v62 = vpack.c.bf16 %v4444_v41, %v4443_v27  ;;  %v8913_v27 = vpack.c.bf16 %v15068_v21, %v15067_v38  ;;  %v5454_v38 = vld [vmem:[#allocation2 + $0x32] sm:$0xff]  ;;  %v5455_v21 = vld [vmem:[#allocation2 + $0x3a] sm:$0xff] }
 0x379   : > { %8908 = vmatprep.mubr.msk.bf16.mxu0 %vm8906_vm15, %v8907_v9  ;;  %v8773_v9 = vld [vmem:[#allocation2 + $0x30] sm:$0xff] }
 0x37a   : > { %5749 = vmatmul.mubr.bf16.vlgmr.msra.gmra.mrb[32].mxu1 %v5355_v51  ;;  %v5356_v51 = vpack.c.bf16 %v8773_v9, %v5309_v0  ;;  %v8777_v0 = vld [vmem:[#allocation2 + $0x40] sm:$0xff]  ;;  %v4448_v9 = vld [vmem:[#allocation2 + $0x178] sm:$0xff] }
 0x37b   : > { %5756 = vmatprep.mubr.bf16.mxu1 %v5428_v36  ;;  %8385 = vmatpush3.bf16.msra.mxu1 %v8772_v16  ;;  %v8775_v36 = vld [vmem:[#allocation2 + $0x41] sm:$0xff] }
 0x37c   : > { %8386 = vmatprep.subr.bf16.mxu1 %v8749_v31  ;;  %v5429_v41 = vpack.c.bf16 %v8775_v36, %v8774_v24  ;;  %v8780_v24 = vld [vmem:[#allocation2 + $0x48] sm:$0xff]  ;;  %v8781_v36 = vld [vmem:[#allocation2 + $0x50] sm:$0xff] }
 0x37d   : > { %v13384_v43 = vld [vmem:[#allocation2 + $0x188] sm:$0xff] }
 0x37f   : > { %8387 = vmatpush3.bf16.msra.mxu1 %v8749_v31  ;;  %v4446_v31 = vld [vmem:[#allocation2 + $0x168] sm:$0xff] }
 0x380   : > { %5010 = vmatmul.mubr.bf16.gmra.mrb[20].mxu0 %v4470_v62  ;;  %8388 = vmatprep.subr.bf16.mxu1 %v8754_v63  ;;  %v4471_v16 = vpack.c.bf16 %v4446_v31, %v4445_v49  ;;  %v8776_v62 = vld [vmem:[#allocation2 + $0x38] sm:$0xff]  ;;  %v8783_v49 = vld [vmem:[#allocation2 + $0x61] sm:$0xff] }
 0x381   : > { %8911 = vmatprep.mubr.msk.bf16.mxu0 %vm8909_vm1, %v8910_v37  ;;  %v5430_v37 = vpack.c.bf16 %v8779_v59, %v8778_v5  ;;  %v8782_v31 = vld [vmem:[#allocation2 + $0x59] sm:$0xff] }
 0x382   : > { %5757 = vmatmul.mubr.bf16.gmra.mrb[36].mxu1 %v5356_v51  ;;  %v5452_v51 = vld [vmem:[#allocation2 + $0x22] sm:$0xff]  ;;  %v8784_v5 = vld [vmem:[#allocation2 + $0x58] sm:$0xff] }
 0x383   : > { %5764 = vmatprep.mubr.bf16.mxu1 %v5429_v41  ;;  %8389 = vmatpush3.bf16.msra.mxu1 %v8754_v63  ;;  %v5357_v63 = vpack.c.bf16 %v8777_v0, %v8776_v62  ;;  %v5499_v3 = vpack.c.bf16 %v5452_v51, %v5451_v61  ;;  %v5358_v41 = vpack.c.bf16 %v8781_v36, %v8780_v24  ;;  %v8745_v62 = vld [vmem:[#allocation8 + $0x180] sm:$0xff]   ;;  %v8785_v59 = vld [vmem:[#allocation2 + $0x60] sm:$0xff]  ;;  %v8787_v51 = vld [vmem:[#allocation2 + $0x71] sm:$0xff] }
 0x384   : > { %8390 = vmatprep.subr.bf16.mxu1 %v8759_v40  ;;  %v8786_v61 = vld [vmem:[#allocation2 + $0x69] sm:$0xff] }
 0x385   : > { %v5460_v24 = vld [vmem:[#allocation2 + $0x62] sm:$0xff]  ;;  %v5457_v36 = vld [vmem:[#allocation2 + $0x4a] sm:$0xff] }
 0x387   : > { %8391 = vmatpush3.bf16.msra.mxu1 %v8759_v40  ;;  %v4472_v40 = vpack.c.bf16 %v4448_v9, %v4447_v10  ;;  %v8746_v9 = vld [vmem:[#allocation8 + $0x188] sm:$0xff]   ;;  %v5432_v10 = vpack.c.bf16 %v8787_v51, %v8786_v61 }
 0x388   : > { %5018 = vmatmul.mubr.bf16.gmra.mrb[24].mxu0 %v4471_v16  ;;  %8392 = vmatprep.subr.bf16.mxu1 %v8764_v60  ;;  %v5431_v16 = vpack.c.bf16 %v8783_v49, %v8782_v31 }
 0x389   : > { %8914 = vmatprep.mubr.msk.bf16.mxu0 %vm8912_vm14, %v8913_v27  ;;  %v5456_v27 = vld [vmem:[#allocation2 + $0x42] sm:$0xff] }
 0x38a   : > { %5765 = vmatmul.mubr.bf16.gmra.mrb[40].mxu1 %v5357_v63  ;;  %v5501_v63 = vpack.c.bf16 %v5456_v27, %v5455_v21  ;;  %v8748_v27 = vld [vmem:[#allocation8 + $0x198] sm:$0xff]  }
 0x38b   : > { %5772 = vmatprep.mubr.bf16.mxu1 %v5430_v37  ;;  %8393 = vmatpush3.bf16.msra.mxu1 %v8764_v60  ;;  %v5453_v60 = vld [vmem:[#allocation2 + $0x2a] sm:$0xff]  ;;  %v5359_v37 = vpack.c.bf16 %v8785_v59, %v8784_v5  ;;  %v5463_v5 = vld [vmem:[#allocation2 + $0x7a] sm:$0xff]  ;;  %v5464_v59 = vld [vmem:[#allocation2 + $0x82] sm:$0xff] }
 0x38c   : > { %8394 = vmatprep.subr.bf16.mxu1 %v8765_v13  ;;  %v5500_v0 = vpack.c.bf16 %v5454_v38, %v5453_v60  ;;  %v8789_v38 = vld [vmem:[#allocation2 + $0x70] sm:$0xff]  ;;  %v8790_v60 = vld [vmem:[#allocation2 + $0x79] sm:$0xff]  ;;  %v5505_v51 = vpack.c.bf16 %v5464_v59, %v5463_v5 }
 0x38d   : > { %v8797_v5 = vld [vmem:[#allocation2 + $0x90] sm:$0xff] }
 0x38f   : > { %8395 = vmatpush3.bf16.msra.mxu1 %v8765_v13  ;;  %v5459_v13 = vld [vmem:[#allocation2 + $0x5a] sm:$0xff] }
 0x390   : > { %5026 = vmatmul.mubr.bf16.gmra.mrb[28].mxu0 %v4472_v40  ;;  %v15069_v40 = vmov 0   ;;  %v5503_v49 = vpack.c.bf16 %v5460_v24, %v5459_v13  ;;  %v8751_v24 = vld [vmem:[#allocation8 + $0x1a8] sm:$0xff]  }
 0x391   : > { %8336 = vmatprep.mubr.bf16.mxu0 %v5499_v3  ;;  %v5458_v3 = vld [vmem:[#allocation2 + $0x52] sm:$0xff] }
 0x392   : > { %5773 = vmatmul.mubr.bf16.gmra.mrb[44].mxu1 %v5358_v41  ;;  %v8747_v41 = vld [vmem:[#allocation8 + $0x190] sm:$0xff]   ;;  %v5502_v31 = vpack.c.bf16 %v5458_v3, %v5457_v36  ;;  %v8793_v3 = vld [vmem:[#allocation2 + $0x80] sm:$0xff] }
 0x393   : > { %5780 = vmatprep.mubr.bf16.mxu1 %v5431_v16  ;;  %v8788_v16 = vld [vmem:[#allocation2 + $0x68] sm:$0xff]  ;;  %v8766_v36 = vld [vmem:[#allocation8 + $0x230] sm:$0xff]  }
 0x394   : > { %v5360_v21 = vpack.c.bf16 %v8789_v38, %v8788_v16  ;;  %v5466_v16 = vld [vmem:[#allocation2 + $0x92] sm:$0xff]  ;;  %8396 = vmatprep.subr.bf16.mxu1 %v8766_v36  ;;  %v5468_v38 = vld [vmem:[#allocation2 + $0xa2] sm:$0xff] }
 0x395   : > { %8397 = vmatpush3.bf16.msra.mxu1 %v8766_v36  ;;  %v8274_v36 = vpop.f32.mrb[240].mxu1 }
 0x398   : > { %8337 = vmatmul.mubr.bf16.vlgmr.msra.gmra.mrb[32].mxu0 %v5500_v0 }
 0x399   : > { %8340 = vmatprep.mubr.bf16.mxu0 %v5501_v63  ;;  %6720 = vmatpush1.bf16.msra.mxu0 %v8745_v62  ;;  %v8791_v62 = vld [vmem:[#allocation2 + $0x81] sm:$0xff]  ;;  %v5462_v63 = vld [vmem:[#allocation2 + $0x72] sm:$0xff] }
 0x39a   : > { %6721 = vmatprep.subr.bf16.mxu0 %v15069_v40  ;;  %5781 = vmatmul.mubr.bf16.gmra.mrb[48].mxu1 %v5359_v37  ;;  %v5433_v0 = vpack.c.bf16 %v8791_v62, %v8790_v60  ;;  %v5461_v37 = vld [vmem:[#allocation2 + $0x6a] sm:$0xff]  ;;  %v5467_v62 = vld [vmem:[#allocation2 + $0x9a] sm:$0xff] }
 0x39b   : > { %5788 = vmatprep.mubr.bf16.mxu1 %v5432_v10  ;;  %v5504_v61 = vpack.c.bf16 %v5462_v63, %v5461_v37  ;;  %v8792_v10 = vld [vmem:[#allocation2 + $0x78] sm:$0xff]  ;;  %v8796_v63 = vld [vmem:[#allocation2 + $0x88] sm:$0xff]  ;;  %v8753_v37 = vld [vmem:[#allocation8 + $0x1b8] sm:$0xff]  }
 0x39c   : > { %v5361_v13 = vpack.c.bf16 %v8793_v3, %v8792_v10  ;;  %v5362_v59 = vpack.c.bf16 %v8797_v5, %v8796_v63  ;;  %v4851_v10 = vpop.f32.mrb[196].mxu0  ;;  %v5470_v3 = vld [vmem:[#allocation2 + $0xb2] sm:$0xff] }
 0x39d   : > { %6722 = vmatpush1.bf16.msra.mxu0 %v8746_v9  ;;  %v8750_v9 = vld [vmem:[#allocation8 + $0x1a0] sm:$0xff]  }
 0x39e   : > { %6723 = vmatprep.subr.bf16.mxu0 %v15069_v40 }
 0x3a0   : > { %8341 = vmatmul.mubr.bf16.gmra.mrb[36].mxu0 %v5502_v31  ;;  %v8795_v31 = vld [vmem:[#allocation2 + $0x91] sm:$0xff] }
 0x3a1   : > { %8344 = vmatprep.mubr.bf16.mxu0 %v5503_v49  ;;  %6724 = vmatpush1.bf16.msra.mxu0 %v8747_v41  ;;  %v8794_v41 = vld [vmem:[#allocation2 + $0x89] sm:$0xff] }
 0x3a2   : > { %6725 = vmatprep.subr.bf16.mxu0 %v15069_v40  ;;  %5789 = vmatmul.mubr.bf16.gmra.mrb[52].mxu1 %v5360_v21  ;;  %v5434_v49 = vpack.c.bf16 %v8795_v31, %v8794_v41  ;;  %v5465_v21 = vld [vmem:[#allocation2 + $0x8a] sm:$0xff] }
 0x3a3   : > { %5796 = vmatprep.mubr.bf16.mxu1 %v5433_v0  ;;  %v5506_v60 = vpack.c.bf16 %v5466_v16, %v5465_v21  ;;  %v5507_v0 = vpack.c.bf16 %v5468_v38, %v5467_v62  ;;  %v5469_v31 = vld [vmem:[#allocation2 + $0xaa] sm:$0xff]  ;;  %v5077_v16 = vadd.f32 %v8274_v36, %v4851_v10  ;;  %v5068_v38 = vpop.f32.mrb[241].mxu1  ;;  %v15070_v62 = vld [vmem:[#allocation75_spill] sm:$0xff] }
 0x3a4   : > { %v8275_v63 = vpop.f32.mrb[242].mxu1  ;;  %v8800_v10 = vld [vmem:[#allocation2 + $0x98] sm:$0xff]  ;;  %v8756_v36 = vld [vmem:[#allocation8 + $0x1c8] sm:$0xff]  }
 0x3a5   : > { %6726 = vmatpush1.bf16.msra.mxu0 %v8748_v27  ;;  %v8752_v27 = vld [vmem:[#allocation8 + $0x1b0] sm:$0xff]   ;;  %5261 = vst [vmem:[%s9949_s26 + $0x10] sm:$0xff] %v5077_v16 }
 0x3a6   : > { %6727 = vmatprep.subr.bf16.mxu0 %v15069_v40 }
 0x3a8   : > { %8345 = vmatmul.mubr.bf16.gmra.mrb[40].mxu0 %v5504_v61  ;;  %v8799_v61 = vld [vmem:[#allocation2 + $0xa1] sm:$0xff] }
 0x3a9   : > { %8348 = vmatprep.mubr.bf16.mxu0 %v5505_v51  ;;  %6728 = vmatpush1.bf16.msra.mxu0 %v8750_v9  ;;  %v8798_v9 = vld [vmem:[#allocation2 + $0x99] sm:$0xff] }
 0x3aa   : > { %6729 = vmatprep.subr.bf16.mxu0 %v15069_v40  ;;  %5797 = vmatmul.mubr.bf16.gmra.mrb[56].mxu1 %v5361_v13  ;;  %v5435_v51 = vpack.c.bf16 %v8799_v61, %v8798_v9  ;;  %v4853_v13 = vpop.f32.mrb[197].mxu0  ;;  %v5071_v9 = vpop.f32.mrb[243].mxu1  ;;  %v15071_v61 = vld [vmem:[#allocation80_spill] sm:$0xff] }
 0x3ab   : > { %5804 = vmatprep.mubr.bf16.mxu1 %v5434_v49  ;;  %v4854_v41 = vpop.f32.mrb[198].mxu0  ;;  %v8755_v49 = vld [vmem:[#allocation8 + $0x1c0] sm:$0xff]   ;;  %v8801_v13 = vld [vmem:[#allocation2 + $0xa0] sm:$0xff] }
 0x3ac   : > { %v4856_v21 = vpop.f32.mrb[199].mxu0 }
 0x3ad   : > { %6730 = vmatpush1.bf16.msra.mxu0 %v8751_v24  ;;  %v5472_v24 = vld [vmem:[#allocation2 + $0xc2] sm:$0xff] }
 0x3ae   : > { %6731 = vmatprep.subr.bf16.mxu0 %v15069_v40 }
 0x3b0   : > { %8349 = vmatmul.mubr.bf16.gmra.mrb[44].mxu0 %v5506_v60  ;;  %v5471_v60 = vld [vmem:[#allocation2 + $0xba] sm:$0xff] }
 0x3b1   : > { %8352 = vmatprep.mubr.bf16.mxu0 %v5507_v0  ;;  %6732 = vmatpush1.bf16.msra.mxu0 %v8752_v27  ;;  %v5508_v27 = vpack.c.bf16 %v5470_v3, %v5469_v31  ;;  %v5069_v0 = vadd.f32 %v5068_v38, %v15070_v62  ;;  %v5509_v5 = vpack.c.bf16 %v5472_v24, %v5471_v60  ;;  %v8802_v31 = vld [vmem:[#allocation2 + $0xa9] sm:$0xff]  ;;  %v8803_v38 = vld [vmem:[#allocation2 + $0xb1] sm:$0xff]  ;;  %v4859_v24 = vpop.f32.mrb[200].mxu0  ;;  %v8278_v60 = vpop.f32.mrb[244].mxu1 }
 0x3b2   : > { %6733 = vmatprep.subr.bf16.mxu0 %v15069_v40  ;;  %5805 = vmatmul.mubr.bf16.gmra.mrb[60].mxu1 %v5362_v59  ;;  %v5080_v59 = vadd.f32 %v8275_v63, %v4854_v41  ;;  %v5363_v3 = vpack.c.bf16 %v8801_v13, %v8800_v10  ;;  %v5436_v21 = vpack.c.bf16 %v8803_v38, %v8802_v31  ;;  %v5474_v41 = vld [vmem:[#allocation2 + $0xd2] sm:$0xff]  ;;  %v4861_v16 = vpop.f32.mrb[201].mxu0  ;;  %v5084_v63 = vpop.f32.mrb[245].mxu1 }
 0x3b3   : > { %5812 = vmatprep.mubr.bf16.mxu1 %v5435_v51  ;;  %5259 = vst [vmem:[%s9949_s26] sm:$0xff] %v5069_v0  ;;  %v5072_v51 = vadd.f32 %v5071_v9, %v15071_v61  ;;  %v4862_v62 = vpop.f32.mrb[202].mxu0  ;;  %v8757_v0 = vld [vmem:[#allocation8 + $0x1d0] sm:$0xff]   ;;  %v5085_v61 = vadd.f32 %v5084_v63, %v4859_v24  ;;  %v8805_v31 = vld [vmem:[#allocation2 + $0xb0] sm:$0xff]  ;;  %v8807_v16 = vld [vmem:[#allocation2 + $0xc1] sm:$0xff] }
 0x3b4   : > { %5262 = vst [vmem:[%s9949_s26 + $0x18] sm:$0xff] %v5080_v59  ;;  %v5475_v9 = vld [vmem:[#allocation2 + $0xda] sm:$0xff] }
 0x3b5   : > { %6734 = vmatpush1.bf16.msra.mxu0 %v8753_v37  ;;  %v8767_v37 = vld [vmem:[#allocation8 + $0x238] sm:$0xff]   ;;  %5260 = vst [vmem:[%s9949_s26 + $0x8] sm:$0xff] %v5072_v51  ;;  %v8279_v51 = vpop.f32.mrb[246].mxu1  ;;  %5263 = vst [vmem:[%s9949_s26 + $0x20] sm:$0xff] %v5085_v61 }
 0x3b6   : > { %6735 = vmatprep.subr.bf16.mxu0 %v15069_v40  ;;  %8398 = vmatprep.subr.bf16.mxu1 %v8767_v37  ;;  %v5087_v13 = vpop.f32.mrb[247].mxu1 }
 0x3b7   : > { %8399 = vmatpush3.bf16.msra.mxu1 %v8767_v37  ;;  %v5088_v37 = vadd.f32 %v5087_v13, %v4862_v62  ;;  %v5480_v62 = vld [vmem:[#allocation2 + $0x102] sm:$0xff] }
 0x3b8   : > { %8353 = vmatmul.mubr.bf16.gmra.mrb[48].mxu0 %v5508_v27  ;;  %v5476_v27 = vld [vmem:[#allocation2 + $0xe2] sm:$0xff] }
 0x3b9   : > { %8356 = vmatprep.mubr.bf16.mxu0 %v5509_v5  ;;  %6736 = vmatpush1.bf16.msra.mxu0 %v8755_v49  ;;  %v5473_v49 = vld [vmem:[#allocation2 + $0xca] sm:$0xff]  ;;  %v4864_v5 = vpop.f32.mrb[203].mxu0  ;;  %v5511_v10 = vpack.c.bf16 %v5476_v27, %v5475_v9  ;;  %5264 = vst [vmem:[%s9949_s26 + $0x28] sm:$0xff] %v5088_v37  ;;  %v5478_v27 = vld [vmem:[#allocation2 + $0xf2] sm:$0xff]  ;;  %v5479_v37 = vld [vmem:[#allocation2 + $0xfa] sm:$0xff] }
 0x3ba   : > { %6737 = vmatprep.subr.bf16.mxu0 %v15069_v40  ;;  %5813 = vmatmul.mubr.bf16.gmra.mrb[64].mxu1 %v5363_v3  ;;  %v5510_v59 = vpack.c.bf16 %v5474_v41, %v5473_v49  ;;  %v8804_v3 = vld [vmem:[#allocation2 + $0xa8] sm:$0xff]  ;;  %v4867_v24 = vpop.f32.mrb[204].mxu0  ;;  %v13423_v5 = vpop.f32.mrb[248].mxu1 }
 0x3bb   : > { %5820 = vmatprep.mubr.bf16.mxu1 %v5436_v21  ;;  %v5364_v38 = vpack.c.bf16 %v8805_v31, %v8804_v3  ;;  %v8806_v21 = vld [vmem:[#allocation2 + $0xb9] sm:$0xff]  ;;  %v5093_v49 = vadd.f32 %v8278_v60, %v4867_v24  ;;  %v4869_v63 = vpop.f32.mrb[205].mxu0  ;;  %v8760_v9 = vld [vmem:[#allocation8 + $0x1e0] sm:$0xff]  }
 0x3bc   : > { %v5437_v41 = vpack.c.bf16 %v8807_v16, %v8806_v21  ;;  %v8808_v21 = vld [vmem:[#allocation2 + $0xb8] sm:$0xff]  ;;  %v8809_v16 = vld [vmem:[#allocation2 + $0xc0] sm:$0xff]  ;;  %v8810_v24 = vld [vmem:[#allocation2 + $0xc9] sm:$0xff] }
 0x3bd   : > { %6738 = vmatpush1.bf16.msra.mxu0 %v8756_v36  ;;  %v8758_v36 = vld [vmem:[#allocation8 + $0x1d8] sm:$0xff]   ;;  %5265 = vst [vmem:[%s9949_s26 + $0x30] sm:$0xff] %v5093_v49  ;;  %v5482_v63 = vld [vmem:[#allocation2 + $0x112] sm:$0xff] }
 0x3be   : > { %6739 = vmatprep.subr.bf16.mxu0 %v15069_v40 }
 0x3c0   : > { %8357 = vmatmul.mubr.bf16.gmra.mrb[52].mxu0 %v5510_v59  ;;  %v4870_v59 = vpop.f32.mrb[206].mxu0 }
 0x3c1   : > { %8360 = vmatprep.mubr.bf16.mxu0 %v5511_v10  ;;  %6740 = vmatpush1.bf16.msra.mxu0 %v8757_v0  ;;  %v5477_v0 = vld [vmem:[#allocation2 + $0xea] sm:$0xff]  ;;  %v5096_v61 = vadd.f32 %v8279_v51, %v4870_v59  ;;  %v5100_v10 = vpop.f32.mrb[249].mxu1  ;;  %v4872_v13 = vpop.f32.mrb[207].mxu0 }
 0x3c2   : > { %6741 = vmatprep.subr.bf16.mxu0 %v15069_v40  ;;  %5821 = vmatmul.mubr.bf16.gmra.mrb[68].mxu1 %v5364_v38  ;;  %v5512_v3 = vpack.c.bf16 %v5478_v27, %v5477_v0  ;;  %v8283_v31 = vpop.f32.mrb[250].mxu1  ;;  %v5513_v38 = vpack.c.bf16 %v5480_v62, %v5479_v37  ;;  %v8811_v51 = vld [vmem:[#allocation2 + $0xd1] sm:$0xff]  ;;  %v4875_v27 = vpop.f32.mrb[208].mxu0  ;;  %v5484_v0 = vld [vmem:[#allocation2 + $0x122] sm:$0xff] }
 0x3c3   : > { %5828 = vmatprep.mubr.bf16.mxu1 %v5437_v41  ;;  %5266 = vst [vmem:[%s9949_s26 + $0x38] sm:$0xff] %v5096_v61  ;;  %v5103_v60 = vpop.f32.mrb[251].mxu1  ;;  %v5365_v41 = vpack.c.bf16 %v8809_v16, %v8808_v21  ;;  %v5438_v49 = vpack.c.bf16 %v8811_v51, %v8810_v24  ;;  %v5101_v62 = vadd.f32 %v5100_v10, %v4875_v27  ;;  %v4877_v59 = vpop.f32.mrb[209].mxu0  ;;  %v5483_v24 = vld [vmem:[#allocation2 + $0x11a] sm:$0xff]  ;;  %v8813_v27 = vld [vmem:[#allocation2 + $0xd0] sm:$0xff] }
 0x3c4   : > { %v13429_v61 = vpop.f32.mrb[252].mxu1  ;;  %v4878_v13 = vpop.f32.mrb[210].mxu0  ;;  %v5515_v10 = vpack.c.bf16 %v5484_v0, %v5483_v24 }
 0x3c5   : > { %6742 = vmatpush1.bf16.msra.mxu0 %v8758_v36  ;;  %v8761_v36 = vld [vmem:[#allocation8 + $0x1e8] sm:$0xff]   ;;  %5267 = vst [vmem:[%s9949_s26 + $0x40] sm:$0xff] %v5101_v62  ;;  %v5104_v37 = vadd.f32 %v5103_v60, %v4878_v13  ;;  %v4880_v21 = vpop.f32.mrb[211].mxu0  ;;  %v8814_v60 = vld [vmem:[#allocation2 + $0xd9] sm:$0xff]  ;;  %v8815_v62 = vld [vmem:[#allocation2 + $0xe1] sm:$0xff] }
 0x3c6   : > { %6743 = vmatprep.subr.bf16.mxu0 %v15069_v40  ;;  %v5439_v13 = vpack.c.bf16 %v8815_v62, %v8814_v60  ;;  %v8816_v62 = vld [vmem:[#allocation2 + $0xd8] sm:$0xff] }
 0x3c7   : > { %5268 = vst [vmem:[%s9949_s26 + $0x48] sm:$0xff] %v5104_v37 }
 0x3c8   : > { %8361 = vmatmul.mubr.bf16.gmra.mrb[56].mxu0 %v5512_v3  ;;  %v5481_v3 = vld [vmem:[#allocation2 + $0x10a] sm:$0xff] }
 0x3c9   : > { %8364 = vmatprep.mubr.bf16.mxu0 %v5513_v38  ;;  %6744 = vmatpush1.bf16.msra.mxu0 %v8760_v9  ;;  %v8762_v9 = vld [vmem:[#allocation8 + $0x1f0] sm:$0xff]   ;;  %v5116_v38 = vpop.f32.mrb[253].mxu1  ;;  %v5514_v16 = vpack.c.bf16 %v5482_v63, %v5481_v3  ;;  %v4883_v63 = vpop.f32.mrb[212].mxu0 }
 0x3ca   : > { %6745 = vmatprep.subr.bf16.mxu0 %v15069_v40  ;;  %5829 = vmatmul.mubr.bf16.gmra.mrb[72].mxu1 %v5365_v41  ;;  %v13433_v41 = vpop.f32.mrb[254].mxu1  ;;  %v5486_v3 = vld [vmem:[#allocation2 + $0x132] sm:$0xff]  ;;  %v5109_v0 = vadd.f32 %v13423_v5, %v4883_v63  ;;  %v4885_v37 = vpop.f32.mrb[213].mxu0 }
 0x3cb   : > { %5836 = vmatprep.mubr.bf16.mxu1 %v5438_v49  ;;  %v5119_v51 = vpop.f32.mrb[255].mxu1  ;;  %v8812_v49 = vld [vmem:[#allocation2 + $0xc8] sm:$0xff]  ;;  %v4886_v21 = vpop.f32.mrb[214].mxu0 }
 0x3cc   : > { %v5366_v59 = vpack.c.bf16 %v8813_v27, %v8812_v49  ;;  %5269 = vst [vmem:[%s9949_s26 + $0x50] sm:$0xff] %v5109_v0  ;;  %v13439_v24 = vpop.f32.mrb[0].mxu1  ;;  %v5487_v27 = vld [vmem:[#allocation2 + $0x13a] sm:$0xff]  ;;  %v8819_v0 = vld [vmem:[#allocation2 + $0xf1] sm:$0xff] }
 0x3cd   : > { %6746 = vmatpush1.bf16.msra.mxu0 %v8761_v36  ;;  %v8763_v36 = vld [vmem:[#allocation8 + $0x1f8] sm:$0xff]   ;;  %v5132_v60 = vpop.f32.mrb[1].mxu1 }
 0x3ce   : > { %6747 = vmatprep.subr.bf16.mxu0 %v15069_v40 }
 0x3d0   : > { %8365 = vmatmul.mubr.bf16.gmra.mrb[60].mxu0 %v5514_v16  ;;  %v5485_v16 = vld [vmem:[#allocation2 + $0x12a] sm:$0xff] }
 0x3d1   : > { %8368 = vmatprep.mubr.bf16.mxu0 %v5515_v10  ;;  %6748 = vmatpush1.bf16.msra.mxu0 %v8762_v9  ;;  %v5112_v9 = vadd.f32 %v8283_v31, %v4886_v21  ;;  %v4888_v10 = vpop.f32.mrb[215].mxu0  ;;  %v5516_v49 = vpack.c.bf16 %v5486_v3, %v5485_v16  ;;  %v5489_v16 = vld [vmem:[#allocation2 + $0x14a] sm:$0xff] }
 0x3d2   : > { %6749 = vmatprep.subr.bf16.mxu0 %v15069_v40  ;;  %5837 = vmatmul.mubr.bf16.gmra.mrb[76].mxu1 %v5366_v59  ;;  %v5517_v40 = vpack.c.bf16 %v13145_v7, %v5487_v27  ;;  %v13443_v59 = vpop.f32.mrb[2].mxu1  ;;  %v4891_v3 = vpop.f32.mrb[216].mxu0  ;;  %v8820_v27 = vld [vmem:[#allocation2 + $0xe8] sm:$0xff] }
 0x3d3   : > { %5844 = vmatprep.mubr.bf16.mxu1 %v5439_v13  ;;  %5270 = vst [vmem:[%s9949_s26 + $0x58] sm:$0xff] %v5112_v9  ;;  %v5135_v5 = vpop.f32.mrb[3].mxu1  ;;  %v8817_v13 = vld [vmem:[#allocation2 + $0xe0] sm:$0xff]  ;;  %v5117_v37 = vadd.f32 %v5116_v38, %v4891_v3  ;;  %v4893_v21 = vpop.f32.mrb[217].mxu0 }
 0x3d4   : > { %v5367_v63 = vpack.c.bf16 %v8817_v13, %v8816_v62  ;;  %v4894_v7 = vpop.f32.mrb[218].mxu0  ;;  %v15072_v13 = vpack.c.bf16 %v13278_v48, %v13227_v19  ;;  %v8823_v38 = vld [vmem:[#allocation2 + $0x101] sm:$0xff] }
 0x3d5   : > { %6750 = vmatpush1.bf16.msra.mxu0 %v8763_v36  ;;  %v8818_v36 = vld [vmem:[#allocation2 + $0xe9] sm:$0xff]  ;;  %5271 = vst [vmem:[%s9949_s26 + $0x60] sm:$0xff] %v5117_v37  ;;  %v5120_v9 = vadd.f32 %v5119_v51, %v4894_v7  ;;  %v4896_v10 = vpop.f32.mrb[219].mxu0  ;;  %v13453_v37 = vpop.f32.mrb[4].mxu1 }
 0x3d6   : > { %v5440_v31 = vpack.c.bf16 %v8819_v0, %v8818_v36  ;;  %v4899_v0 = vpop.f32.mrb[220].mxu0  ;;  %v5148_v19 = vpop.f32.mrb[5].mxu1  ;;  %v8825_v10 = vld [vmem:[#allocation2 + $0x100] sm:$0xff] }
 0x3d7   : > { %5272 = vst [vmem:[%s9949_s26 + $0x68] sm:$0xff] %v5120_v9  ;;  %v5125_v51 = vadd.f32 %v13429_v61, %v4899_v0  ;;  %v8824_v9 = vld [vmem:[#allocation2 + $0xf8] sm:$0xff]  ;;  %v8828_v0 = vld [vmem:[#allocation2 + $0x108] sm:$0xff] }
 0x3d8   : > { %8369 = vmatmul.mubr.bf16.gmra.mrb[64].mxu0 %v5516_v49  ;;  %v5518_v49 = vpack.c.bf16 %v13225_v25, %v5489_v16  ;;  %v4901_v25 = vpop.f32.mrb[221].mxu0  ;;  %v13458_v16 = vpop.f32.mrb[6].mxu1 }
 0x3d9   : > { %8372 = vmatprep.mubr.bf16.mxu0 %v5517_v40  ;;  %v8821_v40 = vld [vmem:[#allocation2 + $0xf0] sm:$0xff]  ;;  %v4902_v3 = vpop.f32.mrb[222].mxu0  ;;  %5273 = vst [vmem:[%s9949_s26 + $0x70] sm:$0xff] %v5125_v51  ;;  %v5151_v61 = vpop.f32.mrb[7].mxu1 }
 0x3da   : > { %5845 = vmatmul.mubr.bf16.gmra.mrb[80].mxu1 %v5367_v63  ;;  %v5368_v62 = vpack.c.bf16 %v8821_v40, %v8820_v27  ;;  %v8822_v63 = vld [vmem:[#allocation2 + $0xf9] sm:$0xff]  ;;  %v5128_v21 = vadd.f32 %v13433_v41, %v4902_v3  ;;  %v4904_v7 = vpop.f32.mrb[223].mxu0  ;;  %v8826_v27 = vld [vmem:[#allocation2 + $0x109] sm:$0xff]  ;;  %v8827_v41 = vld [vmem:[#allocation2 + $0x111] sm:$0xff] }
 0x3db   : > { %5852 = vmatprep.mubr.bf16.mxu1 %v5440_v31  ;;  %v5441_v36 = vpack.c.bf16 %v8823_v38, %v8822_v63  ;;  %v5496_v31 = vld [vmem:[#allocation2 + $0x182] sm:$0xff]  ;;  %v5442_v40 = vpack.c.bf16 %v8827_v41, %v8826_v27  ;;  %v8829_v51 = vld [vmem:[#allocation2 + $0x110] sm:$0xff]  ;;  %v8830_v7 = vld [vmem:[#allocation2 + $0x119] sm:$0xff] }
 0x3dc   : > { %v5521_v48 = vpack.c.bf16 %v5496_v31, %v13344_v56  ;;  %5274 = vst [vmem:[%s9949_s26 + $0x78] sm:$0xff] %v5128_v21  ;;  %v5497_v56 = vld [vmem:[#allocation2 + $0x18a] sm:$0xff]  ;;  %v5370_v25 = vpack.c.bf16 %v8829_v51, %v8828_v0  ;;  %v15073_v31 = vld [vmem:[#allocation28_spill] sm:$0xff]  ;;  %v15080_v0 = vld [vmem:[#allocation15_spill] sm:$0xff] }
 0x3dd   : > { %v15074_v3 = vld [vmem:[#allocation17_spill] sm:$0xff] }
 0x3de   : > { %v15075_v21 = vpack.c.bf16 %v15073_v31, %v15074_v3 }
 0x3e0   : > { %8373 = vmatmul.mubr.bf16.gmra.mrb[68].mxu0 %v5518_v49  ;;  %v5369_v49 = vpack.c.bf16 %v8825_v10, %v8824_v9 }
 0x3e1   : > { %8376 = vmatprep.mubr.bf16.mxu0 %v15072_v13 }
 0x3e2   : > { %5853 = vmatmul.mubr.bf16.gmra.mrb[84].mxu1 %v5368_v62  ;;  %v4907_v62 = vpop.f32.mrb[224].mxu0 }
 0x3e3   : > { %5860 = vmatprep.mubr.bf16.mxu1 %v5441_v36  ;;  %v5133_v13 = vadd.f32 %v5132_v60, %v4907_v62  ;;  %v4909_v63 = vpop.f32.mrb[225].mxu0  ;;  %v5498_v36 = vld [vmem:[#allocation2 + $0x192] sm:$0xff]  ;;  %v8831_v60 = vld [vmem:[#allocation2 + $0x121] sm:$0xff] }
 0x3e4   : > { %v4910_v38 = vpop.f32.mrb[226].mxu0  ;;  %v15077_v63 = vld [vmem:[#allocation20_spill] sm:$0xff] }
 0x3e5   : > { %5275 = vst [vmem:[%s9949_s26 + $0x80] sm:$0xff] %v5133_v13  ;;  %v5136_v47 = vadd.f32 %v5135_v5, %v4910_v38  ;;  %v4912_v33 = vpop.f32.mrb[227].mxu0  ;;  %v15076_v13 = vld [vmem:[#allocation24_spill] sm:$0xff] }
 0x3e6   : > { %v4915_v9 = vpop.f32.mrb[228].mxu0  ;;  %v15078_v38 = vpack.c.bf16 %v15076_v13, %v15077_v63  ;;  %v15085_v63 = vld [vmem:[#allocation60_spill] sm:$0xff] }
 0x3e7   : > { %5276 = vst [vmem:[%s9949_s26 + $0x88] sm:$0xff] %v5136_v47  ;;  %v5141_v5 = vadd.f32 %v13439_v24, %v4915_v9  ;;  %v4917_v10 = vpop.f32.mrb[229].mxu0  ;;  %v8832_v47 = vld [vmem:[#allocation2 + $0x118] sm:$0xff]  ;;  %v8833_v24 = vld [vmem:[#allocation2 + $0x120] sm:$0xff] }
 0x3e8   : > { %8377 = vmatmul.mubr.bf16.gmra.mrb[72].mxu0 %v5520_v50  ;;  %v5522_v50 = vpack.c.bf16 %v5498_v36, %v5497_v56  ;;  %v5371_v33 = vpack.c.bf16 %v8833_v24, %v8832_v47  ;;  %v15083_v10 = vld [vmem:[#allocation23_spill] sm:$0xff]  ;;  %v8839_v24 = vld [vmem:[#allocation2 + $0x141] sm:$0xff] }
 0x3e9   : > { %8380 = vmatprep.mubr.bf16.mxu0 %v5521_v48  ;;  %v5443_v48 = vpack.c.bf16 %v8831_v60, %v8830_v7  ;;  %5277 = vst [vmem:[%s9949_s26 + $0x90] sm:$0xff] %v5141_v5  ;;  %v15082_v5 = vld [vmem:[#allocation62_spill] sm:$0xff] }
 0x3ea   : > { %5861 = vmatmul.mubr.bf16.gmra.mrb[88].mxu1 %v5369_v49  ;;  %v4918_v49 = vpop.f32.mrb[230].mxu0 }
 0x3eb   : > { %5868 = vmatprep.mubr.bf16.mxu1 %v5442_v40  ;;  %v5144_v41 = vadd.f32 %v13443_v59, %v4918_v49  ;;  %v4920_v40 = vpop.f32.mrb[231].mxu0  ;;  %v8834_v59 = vld [vmem:[#allocation2 + $0x129] sm:$0xff]  ;;  %v15084_v49 = vpack.c.bf16 %v15082_v5, %v15083_v10  ;;  %v8841_v5 = vld [vmem:[#allocation2 + $0x140] sm:$0xff] }
 0x3ec   : > { %v13470_v27 = vpop.f32.mrb[8].mxu1  ;;  %v8837_v40 = vld [vmem:[#allocation2 + $0x130] sm:$0xff] }
 0x3ed   : > { %v5164_v62 = vpop.f32.mrb[9].mxu1  ;;  %5278 = vst [vmem:[%s9949_s26 + $0x98] sm:$0xff] %v5144_v41  ;;  %v8836_v41 = vld [vmem:[#allocation2 + $0x128] sm:$0xff] }
 0x3ee   : > { %v13474_v56 = vpop.f32.mrb[10].mxu1  ;;  %v5372_v13 = vpack.c.bf16 %v8837_v40, %v8836_v41  ;;  %v15092_v41 = vld [vmem:[#allocation25_spill] sm:$0xff] }
 0x3ef   : > { %v5167_v36 = vpop.f32.mrb[11].mxu1 }
 0x3f0   : > { %8381 = vmatmul.mubr.bf16.gmra.mrb[76].mxu0 %v5522_v50  ;;  %v15079_v50 = vld [vmem:[#allocation42_spill] sm:$0xff] }
 0x3f1   : > { %6751 = vmatprep.mubr.bf16.mxu0 %v15075_v21  ;;  %v15081_v51 = vpack.c.bf16 %v15079_v50, %v15080_v0 }
 0x3f2   : > { %5869 = vmatmul.mubr.bf16.gmra.mrb[92].mxu1 %v5370_v25  ;;  %v8835_v25 = vld [vmem:[#allocation2 + $0x131] sm:$0xff]  ;;  %v4923_v3 = vpop.f32.mrb[232].mxu0 }
 0x3f3   : > { %5876 = vmatprep.mubr.bf16.mxu1 %v5443_v48  ;;  %v5444_v31 = vpack.c.bf16 %v8835_v25, %v8834_v59  ;;  %v5149_v21 = vadd.f32 %v5148_v19, %v4923_v3  ;;  %v4925_v7 = vpop.f32.mrb[233].mxu0  ;;  %v8838_v19 = vld [vmem:[#allocation2 + $0x139] sm:$0xff] }
 0x3f4   : > { %v4926_v60 = vpop.f32.mrb[234].mxu0  ;;  %v15088_v7 = vld [vmem:[#allocation32_spill] sm:$0xff] }
 0x3f5   : > { %5279 = vst [vmem:[%s9949_s26 + $0xa0] sm:$0xff] %v5149_v21  ;;  %v5152_v48 = vadd.f32 %v5151_v61, %v4926_v60  ;;  %v4928_v9 = vpop.f32.mrb[235].mxu0  ;;  %v15089_v60 = vld [vmem:[#allocation34_spill] sm:$0xff] }
 0x3f7   : > { %5280 = vst [vmem:[%s9949_s26 + $0xa8] sm:$0xff] %v5152_v48  ;;  %v15090_v48 = vpack.c.bf16 %v15088_v7, %v15089_v60  ;;  %v15098_v7 = vld [vmem:[#allocation27_spill] sm:$0xff] }
 0x3f8   : > { %6752 = vmatmul.mubr.bf16.vlgmr.msra.gmra.mrb[80].mxu0 %v15078_v38  ;;  %v15086_v38 = vld [vmem:[#allocation14_spill] sm:$0xff] }
 0x3f9   : > { %6759 = vmatprep.mubr.bf16.mxu0 %v15081_v51  ;;  %v15087_v47 = vpack.c.bf16 %v15085_v63, %v15086_v38 }
 0x3fa   : > { %5877 = vmatmul.mubr.bf16.gmra.mrb[96].mxu1 %v5371_v33  ;;  %v5445_v33 = vpack.c.bf16 %v8839_v24, %v8838_v19 }
 0x3fb   : > { %5884 = vmatprep.mubr.bf16.mxu1 %v5444_v31 }
 0x3fd   : > { %v4931_v61 = vpop.f32.mrb[236].mxu0 }
 0x3fe   : > { %v5157_v50 = vadd.f32 %v13453_v37, %v4931_v61  ;;  %v4933_v0 = vpop.f32.mrb[237].mxu0  ;;  %v8840_v37 = vld [vmem:[#allocation2 + $0x138] sm:$0xff]  ;;  %v15094_v61 = vld [vmem:[#allocation21_spill] sm:$0xff] }
 0x3ff   : > { %v4934_v51 = vpop.f32.mrb[238].mxu0  ;;  %v5373_v10 = vpack.c.bf16 %v8841_v5, %v8840_v37 }
 0x400   : > { %6760 = vmatmul.mubr.bf16.gmra.mrb[84].mxu0 %v15084_v49  ;;  %5281 = vst [vmem:[%s9949_s26 + $0xb0] sm:$0xff] %v5157_v50  ;;  %v5160_v25 = vadd.f32 %v13458_v16, %v4934_v51  ;;  %v4936_v31 = vpop.f32.mrb[239].mxu0  ;;  %v15091_v49 = vld [vmem:[#allocation18_spill] sm:$0xff]  ;;  %v15095_v50 = vld [vmem:[#allocation31_spill] sm:$0xff]  ;;  %v8843_v51 = vld [vmem:[#allocation2 + $0x148] sm:$0xff] }
 0x401   : > { %6767 = vmatprep.mubr.bf16.mxu0 %v15087_v47  ;;  %v15093_v40 = vpack.c.bf16 %v15091_v49, %v15092_v41  ;;  %v8842_v16 = vld [vmem:[#allocation2 + $0x149] sm:$0xff]  ;;  %v15096_v0 = vpack.c.bf16 %v15094_v61, %v15095_v50  ;;  %v15097_v31 = vld [vmem:[#allocation44_spill] sm:$0xff] }
 0x402   : > { %5885 = vmatmul.mubr.bf16.gmra.mrb[100].mxu1 %v5372_v13  ;;  %5282 = vst [vmem:[%s9949_s26 + $0xb8] sm:$0xff] %v5160_v25  ;;  %v5446_v13 = vpack.c.bf16 %v13218_v26, %v8842_v16  ;;  %v5374_v25 = vpack.c.bf16 %v13233_v22, %v8843_v51  ;;  %v15099_v60 = vpack.c.bf16 %v15097_v31, %v15098_v7 }
 0x403   : > { %5892 = vmatprep.mubr.bf16.mxu1 %v5445_v33  ;;  %v13492_v59 = vpop.f32.mrb[12].mxu1 }
 0x404   : > { %v5180_v3 = vpop.f32.mrb[13].mxu1 }
 0x405   : > { %v13496_v21 = vpop.f32.mrb[14].mxu1 }
 0x406   : > { %v5183_v9 = vpop.f32.mrb[15].mxu1 }
 0x408   : > { %6768 = vmatmul.mubr.bf16.gmra.mrb[88].mxu0 %v15090_v48  ;;  %v4939_v63 = vpop.f32.mrb[240].mxu0 }
 0x409   : > { %6775 = vmatprep.mubr.bf16.mxu0 %v15093_v40  ;;  %v5165_v38 = vadd.f32 %v5164_v62, %v4939_v63  ;;  %v4941_v47 = vpop.f32.mrb[241].mxu0  ;;  %v5447_v62 = vpack.c.bf16 %v13280_v42, %v13220_v28  ;;  %v15101_v63 = vld [vmem:[#allocation29_spill] sm:$0xff] }
 0x40a   : > { %5893 = vmatmul.mubr.bf16.gmra.mrb[104].mxu1 %v5373_v10  ;;  %v4942_v19 = vpop.f32.mrb[242].mxu0 }
 0x40b   : > { %5900 = vmatprep.mubr.bf16.mxu1 %v5446_v13  ;;  %5283 = vst [vmem:[%s9949_s26 + $0xc0] sm:$0xff] %v5165_v38  ;;  %v5168_v24 = vadd.f32 %v5167_v36, %v4942_v19  ;;  %v4944_v33 = vpop.f32.mrb[243].mxu0  ;;  %v15100_v13 = vld [vmem:[#allocation37_spill] sm:$0xff] }
 0x40c   : > { %v15102_v38 = vpack.c.bf16 %v15100_v13, %v15101_v63  ;;  %v15104_v33 = vld [vmem:[#allocation22_spill] sm:$0xff] }
 0x40d   : > { %5284 = vst [vmem:[%s9949_s26 + $0xc8] sm:$0xff] %v5168_v24  ;;  %v15103_v24 = vld [vmem:[#allocation66_spill] sm:$0xff] }
 0x40e   : > { %v15105_v61 = vpack.c.bf16 %v15103_v24, %v15104_v33 }
 0x410   : > { %6776 = vmatmul.mubr.bf16.gmra.mrb[92].mxu0 %v15096_v0 }
 0x411   : > { %6783 = vmatprep.mubr.bf16.mxu0 %v15099_v60  ;;  %v13534_v60 = vld [vmem:[#allocation2 + $0x181] sm:$0xff] }
 0x412   : > { %5901 = vmatmul.mubr.bf16.gmra.mrb[108].mxu1 %v5374_v25  ;;  %v4947_v48 = vpop.f32.mrb[244].mxu0 }
 0x413   : > { %5908 = vmatprep.mubr.bf16.mxu1 %v5447_v62  ;;  %v5173_v36 = vadd.f32 %v13470_v27, %v4947_v48  ;;  %v4949_v37 = vpop.f32.mrb[245].mxu0  ;;  %v8844_v27 = vld [vmem:[#allocation2 + $0x158] sm:$0xff]  ;;  %v15107_v48 = vld [vmem:[#allocation38_spill] sm:$0xff] }
 0x414   : > { %v4950_v5 = vpop.f32.mrb[246].mxu0  ;;  %v5375_v19 = vpack.c.bf16 %v13294_v34, %v8844_v27  ;;  %v15106_v62 = vld [vmem:[#allocation19_spill] sm:$0xff]  ;;  %v5376_v37 = vpack.c.bf16 %v13338_v58, %v13296_v46  ;;  %v15173_v58 = vpack.c.bf16 %v13384_v43, %v13382_v1 }
 0x415   : > { %5285 = vst [vmem:[%s9949_s26 + $0xd0] sm:$0xff] %v5173_v36  ;;  %v5176_v49 = vadd.f32 %v13474_v56, %v4950_v5  ;;  %v4952_v41 = vpop.f32.mrb[247].mxu0  ;;  %v5448_v56 = vpack.c.bf16 %v13332_v55, %v13282_v8  ;;  %v15108_v36 = vpack.c.bf16 %v15106_v62, %v15107_v48  ;;  %v15109_v5 = vld [vmem:[#allocation41_spill] sm:$0xff] }
 0x416   : > { %v5449_v41 = vpack.c.bf16 %v13534_v60, %v13334_v54 }
 0x417   : > { %v13518_v10 = vpop.f32.mrb[16].mxu1  ;;  %5286 = vst [vmem:[%s9949_s26 + $0xd8] sm:$0xff] %v5176_v49  ;;  %v15110_v49 = vld [vmem:[#allocation67_spill] sm:$0xff] }
 0x418   : > { %v5196_v40 = vpop.f32.mrb[17].mxu1  ;;  %6784 = vmatmul.mubr.bf16.gmra.mrb[96].mxu0 %v15102_v38 }
 0x419   : > { %v13522_v16 = vpop.f32.mrb[18].mxu1  ;;  %6791 = vmatprep.mubr.bf16.mxu0 %v15105_v61  ;;  %v13552_v61 = vld [vmem:[#allocation2 + $0x191] sm:$0xff] }
 0x41a   : > { %v5199_v47 = vpop.f32.mrb[19].mxu1  ;;  %5909 = vmatmul.mubr.bf16.gmra.mrb[112].mxu1 %v5375_v19  ;;  %v8916_v48 = vpack.c.bf16 %v13552_v61, %v4207_v17  ;;  %v15122_v17 = vld [vmem:[#allocation72_spill] sm:$0xff] }
 0x41b   : > { %v4955_v50 = vpop.f32.mrb[248].mxu0  ;;  %5916 = vmatprep.mubr.bf16.mxu1 %v5448_v56 }
 0x41c   : > { %v5181_v0 = vadd.f32 %v5180_v3, %v4955_v50  ;;  %v4957_v51 = vpop.f32.mrb[249].mxu0  ;;  %v15111_v3 = vpack.c.bf16 %v15109_v5, %v15110_v49  ;;  %v15112_v50 = vld [vmem:[#allocation64_spill] sm:$0xff] }
 0x41d   : > { %v4958_v25 = vpop.f32.mrb[250].mxu0 }
 0x41e   : > { %5287 = vst [vmem:[%s9949_s26 + $0xe0] sm:$0xff] %v5181_v0  ;;  %v5184_v31 = vadd.f32 %v5183_v9, %v4958_v25  ;;  %v4960_v7 = vpop.f32.mrb[251].mxu0  ;;  %v15113_v0 = vld [vmem:[#allocation69_spill] sm:$0xff]  ;;  %v5377_v25 = vpack.c.bf16 %v13382_v1, %v13340_v29 }
 0x41f   : > { %v15114_v51 = vpack.c.bf16 %v15112_v50, %v15113_v0  ;;  %v15116_v7 = vld [vmem:[#allocation70_spill] sm:$0xff] }
 0x420   : > { %5288 = vst [vmem:[%s9949_s26 + $0xe8] sm:$0xff] %v5184_v31  ;;  %6792 = vmatmul.mubr.bf16.gmra.mrb[100].mxu0 %v15108_v36  ;;  %v15115_v31 = vld [vmem:[#allocation65_spill] sm:$0xff] }
 0x421   : > { %6799 = vmatprep.mubr.bf16.mxu0 %v15111_v3 }
 0x422   : > { %5917 = vmatmul.mubr.bf16.gmra.mrb[116].mxu1 %v5376_v37 }
 0x423   : > { %v4963_v9 = vpop.f32.mrb[252].mxu0  ;;  %5924 = vmatprep.mubr.bf16.mxu1 %v5449_v41  ;;  %v13572_v41 = vld [vmem:[#allocation2 + $0x190] sm:$0xff] }
 0x424   : > { %v5189_v13 = vadd.f32 %v13492_v59, %v4963_v9  ;;  %v4965_v63 = vpop.f32.mrb[253].mxu0  ;;  %v6455_v9 = vld [vmem:[#allocation2 + $0x3a] sm:$0xff]  ;;  %v5378_v44 = vpack.c.bf16 %v13572_v41, %v13384_v43 }
 0x425   : > { %v4966_v38 = vpop.f32.mrb[254].mxu0 }
 0x426   : > { %5289 = vst [vmem:[%s9949_s26 + $0xf0] sm:$0xff] %v5189_v13  ;;  %v5192_v19 = vadd.f32 %v13496_v21, %v4966_v38  ;;  %v4968_v24 = vpop.f32.mrb[255].mxu0  ;;  %v15117_v21 = vpack.c.bf16 %v15115_v31, %v15116_v7  ;;  %v15119_v13 = vld [vmem:[#allocation68_spill] sm:$0xff]  ;;  %v15123_v38 = vld [vmem:[#allocation73_spill] sm:$0xff] }
 0x427   : > { %v13549_v27 = vpop.f32.mrb[20].mxu1  ;;  %v15121_v63 = vpack.c.bf16 %v15119_v13, %v15120_v20  ;;  %v15129_v13 = vld [vmem:[#allocation46_spill] sm:$0xff] }
 0x428   : > { %v5212_v33 = vpop.f32.mrb[21].mxu1  ;;  %5290 = vst [vmem:[%s9949_s26 + $0xf8] sm:$0xff] %v5192_v19  ;;  %6800 = vmatmul.mubr.bf16.gmra.mrb[104].mxu0 %v15114_v51  ;;  %v6454_v19 = vld [vmem:[#allocation2 + $0x32] sm:$0xff] }
 0x429   : > { %v13555_v56 = vpop.f32.mrb[22].mxu1  ;;  %6807 = vmatprep.mubr.bf16.mxu0 %v15117_v21  ;;  %v6456_v21 = vld [vmem:[#allocation2 + $0x42] sm:$0xff] }
 0x42a   : > { %v5215_v59 = vpop.f32.mrb[23].mxu1  ;;  %5925 = vmatmul.mubr.bf16.gmra.mrb[120].mxu1 %v5377_v25 }
 0x42b   : > { %v4971_v62 = vpop.f32.mrb[0].mxu0  ;;  %8917 = vmatprep.mubr.msk.bf16.mxu1 %vm8915_vm2, %v8916_v48 }
 0x42c   : > { %v5197_v36 = vadd.f32 %v5196_v40, %v4971_v62  ;;  %v4973_v37 = vpop.f32.mrb[1].mxu0  ;;  %v15124_v40 = vpack.c.bf16 %v15122_v17, %v15123_v38  ;;  %v6457_v62 = vld [vmem:[#allocation2 + $0x4a] sm:$0xff] }
 0x42d   : > { %v4974_v5 = vpop.f32.mrb[2].mxu0 }
 0x42e   : > { %5291 = vst [vmem:[%s9949_s26 + $0x100] sm:$0xff] %v5197_v36  ;;  %v5200_v49 = vadd.f32 %v5199_v47, %v4974_v5  ;;  %v4976_v3 = vpop.f32.mrb[3].mxu0  ;;  %v6502_v47 = vpack.c.bf16 %v6455_v9, %v6454_v19  ;;  %v6459_v36 = vld [vmem:[#allocation2 + $0x5a] sm:$0xff]  ;;  %v15125_v5 = vld [vmem:[#allocation74_spill] sm:$0xff]  ;;  %v15128_v9 = vld [vmem:[#allocation49_spill] sm:$0xff] }
 0x42f   : > { %v15130_v20 = vpack.c.bf16 %v15128_v9, %v15129_v13 }
 0x430   : > { %5292 = vst [vmem:[%s9949_s26 + $0x108] sm:$0xff] %v5200_v49  ;;  %6808 = vmatmul.mubr.bf16.gmra.mrb[108].mxu0 %v15121_v63  ;;  %v15126_v49 = vld [vmem:[#allocation40_spill] sm:$0xff]  ;;  %v6458_v63 = vld [vmem:[#allocation2 + $0x52] sm:$0xff] }
 0x431   : > { %6815 = vmatprep.mubr.bf16.mxu0 %v15124_v40  ;;  %v15127_v3 = vpack.c.bf16 %v15125_v5, %v15126_v49 }
 0x432   : > { %5933 = vmatmul.mubr.bf16.gmra.mrb[124].mxu1 %v5378_v44  ;;  %v6504_v44 = vpack.c.bf16 %v6459_v36, %v6458_v63 }
 0x433   : > { %v4979_v24 = vpop.f32.mrb[4].mxu0  ;;  %8400 = vmatprep.mubr.bf16.mxu1 %v6502_v47 }
 0x434   : > { %v5205_v50 = vadd.f32 %v13518_v10, %v4979_v24  ;;  %v4981_v0 = vpop.f32.mrb[5].mxu0 }
 0x435   : > { %v4982_v51 = vpop.f32.mrb[6].mxu0  ;;  %v13585_v25 = vpop.f32.mrb[24].mxu1  ;;  %v6461_v0 = vld [vmem:[#allocation2 + $0x6a] sm:$0xff] }
 0x436   : > { %5293 = vst [vmem:[%s9949_s26 + $0x110] sm:$0xff] %v5205_v50  ;;  %v5208_v31 = vadd.f32 %v13522_v16, %v4982_v51  ;;  %v4984_v7 = vpop.f32.mrb[7].mxu0  ;;  %v5228_v48 = vpop.f32.mrb[25].mxu1  ;;  %v6503_v16 = vpack.c.bf16 %v6457_v62, %v6456_v21  ;;  %v6460_v50 = vld [vmem:[#allocation2 + $0x62] sm:$0xff]  ;;  %v6463_v51 = vld [vmem:[#allocation2 + $0x7a] sm:$0xff]  ;;  %v15135_v62 = vld [vmem:[#allocation78_spill] sm:$0xff] }
 0x437   : > { %v13589_v37 = vpop.f32.mrb[26].mxu1  ;;  %v15132_v7 = vld [vmem:[#allocation77_spill] sm:$0xff]  ;;  %v15134_v21 = vld [vmem:[#allocation43_spill] sm:$0xff]  ;;  %v6505_v49 = vpack.c.bf16 %v6461_v0, %v6460_v50 }
 0x438   : > { %5294 = vst [vmem:[%s9949_s26 + $0x118] sm:$0xff] %v5208_v31  ;;  %6816 = vmatmul.mubr.bf16.gmra.mrb[112].mxu0 %v15127_v3  ;;  %v5231_v10 = vpop.f32.mrb[27].mxu1  ;;  %v15131_v31 = vld [vmem:[#allocation45_spill] sm:$0xff]  ;;  %v15136_v36 = vpack.c.bf16 %v15134_v21, %v15135_v62  ;;  %v6466_v21 = vld [vmem:[#allocation2 + $0x92] sm:$0xff] }
 0x439   : > { %6823 = vmatprep.mubr.bf16.mxu0 %v15130_v20  ;;  %v15133_v5 = vpack.c.bf16 %v15131_v31, %v15132_v7  ;;  %v15138_v50 = vld [vmem:[#allocation81_spill] sm:$0xff]  ;;  %v15141_v31 = vld [vmem:[#allocation82_spill] sm:$0xff] }
 0x43a   : > { %8401 = vmatmul.mubr.bf16.vlgmr.msra.gmra.mrb[128].mxu1 %v6503_v16 }
 0x43b   : > { %v4987_v17 = vpop.f32.mrb[8].mxu0  ;;  %8404 = vmatprep.mubr.bf16.mxu1 %v6504_v44 }
 0x43c   : > { %v5213_v38 = vadd.f32 %v5212_v33, %v4987_v17  ;;  %v4989_v40 = vpop.f32.mrb[9].mxu0  ;;  %v6462_v33 = vld [vmem:[#allocation2 + $0x72] sm:$0xff]  ;;  %v6464_v17 = vld [vmem:[#allocation2 + $0x82] sm:$0xff] }
 0x43d   : > { %v4990_v19 = vpop.f32.mrb[10].mxu0  ;;  %v6506_v3 = vpack.c.bf16 %v6463_v51, %v6462_v33  ;;  %v15140_v51 = vld [vmem:[#allocation79_spill] sm:$0xff] }
 0x43e   : > { %5295 = vst [vmem:[%s9949_s26 + $0x120] sm:$0xff] %v5213_v38  ;;  %v5216_v47 = vadd.f32 %v5215_v59, %v4990_v19  ;;  %v4992_v24 = vpop.f32.mrb[11].mxu0  ;;  %v6465_v38 = vld [vmem:[#allocation2 + $0x8a] sm:$0xff]  ;;  %v6467_v19 = vld [vmem:[#allocation2 + $0x9a] sm:$0xff]  ;;  %v15142_v7 = vpack.c.bf16 %v15140_v51, %v15141_v31 }
 0x43f   : > { %v15137_v24 = vld [vmem:[#allocation76_spill] sm:$0xff] }
 0x440   : > { %5296 = vst [vmem:[%s9949_s26 + $0x128] sm:$0xff] %v5216_v47  ;;  %6824 = vmatmul.mubr.bf16.gmra.mrb[116].mxu0 %v15133_v5  ;;  %v15139_v0 = vpack.c.bf16 %v15137_v24, %v15138_v50  ;;  %v6507_v5 = vpack.c.bf16 %v6465_v38, %v6464_v17  ;;  %v15143_v17 = vld [vmem:[#allocation83_spill] sm:$0xff]  ;;  %v15144_v38 = vld [vmem:[#allocation84_spill] sm:$0xff] }
 0x441   : > { %6831 = vmatprep.mubr.bf16.mxu0 %v15136_v36  ;;  %v6468_v24 = vld [vmem:[#allocation2 + $0xa2] sm:$0xff] }
 0x442   : > { %8405 = vmatmul.mubr.bf16.gmra.mrb[132].mxu1 %v6505_v49 }
 0x443   : > { %v4995_v59 = vpop.f32.mrb[12].mxu0  ;;  %8408 = vmatprep.mubr.bf16.mxu1 %v6506_v3 }
 0x444   : > { %v5221_v9 = vadd.f32 %v13549_v27, %v4995_v59  ;;  %v4997_v13 = vpop.f32.mrb[13].mxu0 }
 0x445   : > { %v4998_v20 = vpop.f32.mrb[14].mxu0  ;;  %v13607_v16 = vpop.f32.mrb[28].mxu1  ;;  %v6469_v13 = vld [vmem:[#allocation2 + $0xaa] sm:$0xff] }
 0x446   : > { %5297 = vst [vmem:[%s9949_s26 + $0x130] sm:$0xff] %v5221_v9  ;;  %v5224_v63 = vadd.f32 %v13555_v56, %v4998_v20  ;;  %v5000_v44 = vpop.f32.mrb[15].mxu0  ;;  %v5244_v40 = vpop.f32.mrb[29].mxu1  ;;  %v6508_v56 = vpack.c.bf16 %v6467_v19, %v6466_v21  ;;  %v15145_v19 = vpack.c.bf16 %v15143_v17, %v15144_v38  ;;  %v6509_v31 = vpack.c.bf16 %v6469_v13, %v6468_v24  ;;  %v6475_v38 = vld [vmem:[#allocation2 + $0xda] sm:$0xff] }
 0x447   : > { %v13611_v47 = vpop.f32.mrb[30].mxu1  ;;  %v15149_v13 = vld [vmem:[#allocation87_spill] sm:$0xff]  ;;  %v15150_v24 = vld [vmem:[#allocation56_spill] sm:$0xff] }
 0x448   : > { %5298 = vst [vmem:[%s9949_s26 + $0x138] sm:$0xff] %v5224_v63  ;;  %6832 = vmatmul.mubr.bf16.gmra.mrb[120].mxu0 %v15139_v0  ;;  %v5247_v27 = vpop.f32.mrb[31].mxu1  ;;  %v6471_v63 = vld [vmem:[#allocation2 + $0xba] sm:$0xff]  ;;  %v15147_v0 = vld [vmem:[#allocation85_spill] sm:$0xff] }
 0x449   : > { %6839 = vmatprep.mubr.bf16.mxu0 %v15142_v7  ;;  %v6470_v7 = vld [vmem:[#allocation2 + $0xb2] sm:$0xff] }
 0x44a   : > { %8409 = vmatmul.mubr.bf16.gmra.mrb[136].mxu1 %v6507_v5 }
 0x44b   : > { %v5003_v62 = vpop.f32.mrb[16].mxu0  ;;  %8412 = vmatprep.mubr.bf16.mxu1 %v6508_v56 }
 0x44c   : > { %v13619_v36 = vadd.f32 %v5228_v48, %v5003_v62  ;;  %v5005_v49 = vpop.f32.mrb[17].mxu0  ;;  %v15146_v48 = vld [vmem:[#allocation86_spill] sm:$0xff] }
 0x44d   : > { %v5006_v33 = vpop.f32.mrb[18].mxu0  ;;  %v13621_v3 = vpop.f32.mrb[32].mxu1  ;;  %v15148_v51 = vpack.c.bf16 %v15146_v48, %v15147_v0  ;;  %v15152_v0 = vld [vmem:[#allocation35_spill] sm:$0xff] }
 0x44e   : > { %v13623_v59 = vadd.f32 %v5231_v10, %v5006_v33  ;;  %v5008_v9 = vpop.f32.mrb[19].mxu0  ;;  %v5752_v20 = vpop.f32.mrb[33].mxu1  ;;  %v6510_v10 = vpack.c.bf16 %v6471_v63, %v6470_v7  ;;  %v15151_v63 = vpack.c.bf16 %v15149_v13, %v15150_v24  ;;  %v6474_v7 = vld [vmem:[#allocation2 + $0xd2] sm:$0xff]  ;;  %v6477_v24 = vld [vmem:[#allocation2 + $0xea] sm:$0xff] }
 0x44f   : > { %v13625_v44 = vpop.f32.mrb[34].mxu1  ;;  %v6473_v20 = vld [vmem:[#allocation2 + $0xca] sm:$0xff] }
 0x450   : > { %6840 = vmatmul.mubr.bf16.gmra.mrb[124].mxu0 %v15145_v19  ;;  %v5755_v50 = vpop.f32.mrb[35].mxu1 }
 0x451   : > { %6847 = vmatprep.mubr.bf16.mxu0 %v15148_v51  ;;  %v6472_v50 = vld [vmem:[#allocation2 + $0xc2] sm:$0xff] }
 0x452   : > { %8413 = vmatmul.mubr.bf16.gmra.mrb[140].mxu1 %v6509_v31  ;;  %v6511_v31 = vpack.c.bf16 %v6473_v20, %v6472_v50 }
 0x453   : > { %v5011_v5 = vpop.f32.mrb[20].mxu0  ;;  %8416 = vmatprep.mubr.bf16.mxu1 %v6510_v10  ;;  %v6512_v10 = vpack.c.bf16 %v6475_v38, %v6474_v7  ;;  %v6476_v38 = vld [vmem:[#allocation2 + $0xe2] sm:$0xff] }
 0x454   : > { %v13634_v21 = vadd.f32 %v13585_v25, %v5011_v5  ;;  %v5013_v56 = vpop.f32.mrb[21].mxu0  ;;  %v15153_v25 = vld [vmem:[#allocation52_spill] sm:$0xff]  ;;  %v6513_v7 = vpack.c.bf16 %v6477_v24, %v6476_v38  ;;  %v15161_v24 = vld [vmem:[#allocation54_spill] sm:$0xff]  ;;  %v15162_v38 = vld [vmem:[#allocation51_spill] sm:$0xff] }
 0x455   : > { %v5014_v62 = vpop.f32.mrb[22].mxu0  ;;  %v5758_v49 = vpop.f32.mrb[36].mxu1  ;;  %v15154_v51 = vpack.c.bf16 %v15152_v0, %v15153_v25  ;;  %v15155_v0 = vld [vmem:[#allocation53_spill] sm:$0xff]  ;;  %v15156_v25 = vld [vmem:[#allocation26_spill] sm:$0xff] }
 0x456   : > { %v13637_v33 = vadd.f32 %v13589_v37, %v5014_v62  ;;  %v5016_v9 = vpop.f32.mrb[23].mxu0  ;;  %v5760_v17 = vpop.f32.mrb[37].mxu1  ;;  %v15157_v20 = vpack.c.bf16 %v15155_v0, %v15156_v25 }
 0x457   : > { %v5761_v19 = vpop.f32.mrb[38].mxu1 }
 0x458   : > { %6848 = vmatmul.mubr.bf16.gmra.mrb[128].mxu0 %v15151_v63  ;;  %v5763_v48 = vpop.f32.mrb[39].mxu1 }
 0x459   : > { %6855 = vmatprep.mubr.bf16.mxu0 %v15154_v51  ;;  %v6479_v48 = vld [vmem:[#allocation2 + $0xfa] sm:$0xff] }
 0x45a   : > { %8417 = vmatmul.mubr.bf16.gmra.mrb[144].mxu1 %v6511_v31  ;;  %v15158_v51 = vld [vmem:[#allocation48_spill] sm:$0xff]  ;;  %v15159_v31 = vld [vmem:[#allocation47_spill] sm:$0xff] }
 0x45b   : > { %v5019_v37 = vpop.f32.mrb[24].mxu0  ;;  %8420 = vmatprep.mubr.bf16.mxu1 %v6512_v10  ;;  %v6478_v10 = vld [vmem:[#allocation2 + $0xf2] sm:$0xff] }
 0x45c   : > { %v13645_v5 = vadd.f32 %v5244_v40, %v5019_v37  ;;  %v5021_v56 = vpop.f32.mrb[25].mxu0  ;;  %v15160_v40 = vpack.c.bf16 %v15158_v51, %v15159_v31  ;;  %v6514_v37 = vpack.c.bf16 %v6479_v48, %v6478_v10  ;;  %v6483_v51 = vld [vmem:[#allocation2 + $0x11a] sm:$0xff]  ;;  %v15163_v48 = vpack.c.bf16 %v15161_v24, %v15162_v38 }
 0x45d   : > { %v5022_v62 = vpop.f32.mrb[26].mxu0  ;;  %v5766_v9 = vpop.f32.mrb[40].mxu1 }
 0x45e   : > { %v13647_v17 = vadd.f32 %v5247_v27, %v5022_v62  ;;  %v5024_v13 = vpop.f32.mrb[27].mxu0  ;;  %v5768_v63 = vpop.f32.mrb[41].mxu1 }
 0x45f   : > { %v5769_v23 = vpop.f32.mrb[42].mxu1 }
 0x460   : > { %6856 = vmatmul.mubr.bf16.gmra.mrb[132].mxu0 %v15157_v20  ;;  %v5771_v50 = vpop.f32.mrb[43].mxu1  ;;  %v6481_v20 = vld [vmem:[#allocation2 + $0x10a] sm:$0xff] }
 0x461   : > { %6863 = vmatprep.mubr.bf16.mxu0 %v15160_v40  ;;  %v6480_v40 = vld [vmem:[#allocation2 + $0x102] sm:$0xff] }
 0x462   : > { %8421 = vmatmul.mubr.bf16.gmra.mrb[148].mxu1 %v6513_v7  ;;  %v6515_v10 = vpack.c.bf16 %v6481_v20, %v6480_v40  ;;  %v6487_v20 = vld [vmem:[#allocation2 + $0x13a] sm:$0xff]  ;;  %v6484_v40 = vld [vmem:[#allocation2 + $0x122] sm:$0xff] }
 0x463   : > { %v5027_v27 = vpop.f32.mrb[28].mxu0  ;;  %8424 = vmatprep.mubr.bf16.mxu1 %v6514_v37  ;;  %v6482_v37 = vld [vmem:[#allocation2 + $0x112] sm:$0xff] }
 0x464   : > { %v13656_v56 = vadd.f32 %v13607_v16, %v5027_v27  ;;  %v5029_v62 = vpop.f32.mrb[29].mxu0  ;;  %v15164_v16 = vpack.c.bf16 %v12963_v12, %v12961_v2  ;;  %v6516_v27 = vpack.c.bf16 %v6483_v51, %v6482_v37 }
 0x465   : > { %v5030_v13 = vpop.f32.mrb[30].mxu0  ;;  %v5774_v63 = vpop.f32.mrb[44].mxu1 }
 0x466   : > { %v13659_v0 = vadd.f32 %v13611_v47, %v5030_v13  ;;  %v5032_v25 = vpop.f32.mrb[31].mxu0  ;;  %v5776_v50 = vpop.f32.mrb[45].mxu1 }
 0x467   : > { %v5777_v31 = vpop.f32.mrb[46].mxu1 }
 0x468   : > { %6864 = vmatmul.mubr.bf16.gmra.mrb[136].mxu0 %v15163_v48  ;;  %v5779_v7 = vpop.f32.mrb[47].mxu1 }
 0x469   : > { %6871 = vmatprep.mubr.bf16.mxu0 %v15164_v16  ;;  %v6485_v7 = vld [vmem:[#allocation2 + $0x12a] sm:$0xff] }
 0x46a   : > { %8425 = vmatmul.mubr.bf16.gmra.mrb[152].mxu1 %v6515_v10  ;;  %v6486_v10 = vld [vmem:[#allocation2 + $0x132] sm:$0xff] }
 0x46b   : > { %v8338_v47 = vpop.f32.mrb[32].mxu0  ;;  %8428 = vmatprep.mubr.bf16.mxu1 %v6516_v27  ;;  %v6518_v37 = vpack.c.bf16 %v6487_v20, %v6486_v10  ;;  %v15167_v20 = vpack.c.bf16 %v13048_v30, %v13055_v39 }
 0x46c   : > { %v13667_v62 = vadd.f32 %v8338_v47, %v5758_v49  ;;  %v5975_v13 = vpop.f32.mrb[33].mxu0  ;;  %v15165_v49 = vpack.c.bf16 %v12965_v11, %v12975_v52 }
 0x46d   : > { %v13670_v25 = vadd.f32 %v5975_v13, %v13621_v3  ;;  %v8339_v50 = vpop.f32.mrb[34].mxu0  ;;  %v5782_v24 = vpop.f32.mrb[48].mxu1  ;;  %v15166_v3 = vpack.c.bf16 %v13046_v18, %v13044_v32  ;;  %v6491_v18 = vld [vmem:[#allocation2 + $0x15a] sm:$0xff] }
 0x46e   : > { %v13672_v38 = vadd.f32 %v8339_v50, %v5761_v19  ;;  %v5978_v48 = vpop.f32.mrb[35].mxu0  ;;  %v5784_v2 = vpop.f32.mrb[49].mxu1  ;;  %v6517_v19 = vpack.c.bf16 %v6485_v7, %v6484_v40 }
 0x46f   : > { %v13675_v12 = vadd.f32 %v5978_v48, %v13625_v44  ;;  %v5785_v51 = vpop.f32.mrb[50].mxu1  ;;  %v6489_v2 = vld [vmem:[#allocation2 + $0x14a] sm:$0xff] }
 0x470   : > { %6872 = vmatmul.mubr.bf16.gmra.mrb[140].mxu0 %v15165_v49  ;;  %v5787_v16 = vpop.f32.mrb[51].mxu1 }
 0x471   : > { %6879 = vmatprep.mubr.bf16.mxu0 %v15166_v3 }
 0x472   : > { %8429 = vmatmul.mubr.bf16.gmra.mrb[156].mxu1 %v6517_v19 }
 0x473   : > { %v8342_v27 = vpop.f32.mrb[36].mxu0  ;;  %8432 = vmatprep.mubr.bf16.mxu1 %v6518_v37 }
 0x474   : > { %v13683_v44 = vadd.f32 %v8342_v27, %v5774_v63  ;;  %v5991_v47 = vpop.f32.mrb[37].mxu0  ;;  %v6488_v63 = vld [vmem:[#allocation2 + $0x142] sm:$0xff] }
 0x475   : > { %v13685_v13 = vadd.f32 %v5991_v47, %v5766_v9  ;;  %v8343_v50 = vpop.f32.mrb[38].mxu0  ;;  %v5790_v52 = vpop.f32.mrb[52].mxu1  ;;  %v15168_v9 = vpack.c.bf16 %v13120_v4, %v13118_v57  ;;  %v6519_v16 = vpack.c.bf16 %v6489_v2, %v6488_v63  ;;  %v6495_v4 = vld [vmem:[#allocation2 + $0x17a] sm:$0xff] }
 0x476   : > { %v13687_v11 = vadd.f32 %v8343_v50, %v5777_v31  ;;  %v5994_v48 = vpop.f32.mrb[39].mxu0  ;;  %v5792_v49 = vpop.f32.mrb[53].mxu1  ;;  %v6490_v31 = vld [vmem:[#allocation2 + $0x152] sm:$0xff]  ;;  %v6493_v50 = vld [vmem:[#allocation2 + $0x16a] sm:$0xff] }
 0x477   : > { %v13689_v32 = vadd.f32 %v5994_v48, %v5769_v23  ;;  %v5793_v7 = vpop.f32.mrb[54].mxu1  ;;  %v6520_v3 = vpack.c.bf16 %v6491_v18, %v6490_v31  ;;  %v15169_v49 = vpack.c.bf16 %v13136_v35, %v13134_v6  ;;  %v6496_v6 = vld [vmem:[#allocation2 + $0x182] sm:$0xff]  ;;  %v6497_v35 = vld [vmem:[#allocation2 + $0x18a] sm:$0xff] }
 0x478   : > { %6880 = vmatmul.mubr.bf16.gmra.mrb[144].mxu0 %v15167_v20  ;;  %v5795_v40 = vpop.f32.mrb[55].mxu1 }
 0x479   : > { %6887 = vmatprep.mubr.bf16.mxu0 %v15168_v9 }
 0x47a   : > { %8433 = vmatmul.mubr.bf16.gmra.mrb[160].mxu1 %v6519_v16 }
 0x47b   : > { %v8346_v19 = vpop.f32.mrb[40].mxu0  ;;  %8436 = vmatprep.mubr.bf16.mxu1 %v6520_v3 }
 0x47c   : > { %v13697_v23 = vadd.f32 %v8346_v19, %v5790_v52  ;;  %v6007_v10 = vpop.f32.mrb[41].mxu0  ;;  %v6492_v52 = vld [vmem:[#allocation2 + $0x162] sm:$0xff] }
 0x47d   : > { %v13699_v37 = vadd.f32 %v6007_v10, %v5782_v24  ;;  %v8347_v27 = vpop.f32.mrb[42].mxu0  ;;  %v5798_v30 = vpop.f32.mrb[56].mxu1  ;;  %v15170_v24 = vpack.c.bf16 %v13220_v28, %v13218_v26  ;;  %v6521_v20 = vpack.c.bf16 %v6493_v50, %v6492_v52  ;;  %v6498_v26 = vld [vmem:[#allocation2 + $0x192] sm:$0xff]  ;;  %v6499_v28 = vld [vmem:[#allocation2 + $0x19a] sm:$0xff]  ;;  %v15171_v50 = vpack.c.bf16 %v13222_v53, %v13233_v22 }
 0x47e   : > { %v13701_v39 = vadd.f32 %v8347_v27, %v5793_v7  ;;  %v6010_v47 = vpop.f32.mrb[43].mxu0  ;;  %v5800_v48 = vpop.f32.mrb[57].mxu1  ;;  %v6494_v7 = vld [vmem:[#allocation2 + $0x172] sm:$0xff]  ;;  %v6524_v52 = vpack.c.bf16 %v6499_v28, %v6498_v26 }
 0x47f   : > { %v13703_v57 = vadd.f32 %v6010_v47, %v5785_v51  ;;  %v5801_v2 = vpop.f32.mrb[58].mxu1  ;;  %v6522_v63 = vpack.c.bf16 %v6495_v4, %v6494_v7  ;;  %v15172_v4 = vpack.c.bf16 %v13282_v8, %v13280_v42 }
 0x480   : > { %6888 = vmatmul.mubr.bf16.gmra.mrb[148].mxu0 %v15169_v49  ;;  %v5803_v18 = vpop.f32.mrb[59].mxu1  ;;  %v6523_v49 = vpack.c.bf16 %v6497_v35, %v6496_v6 }
 0x481   : > { %6895 = vmatprep.mubr.bf16.mxu0 %v15170_v24  ;;  %v6500_v24 = vld [vmem:[#allocation2 + $0x1a2] sm:$0xff] }
 0x482   : > { %8437 = vmatmul.mubr.bf16.gmra.mrb[164].mxu1 %v6521_v20  ;;  %v6501_v20 = vld [vmem:[#allocation2 + $0x1aa] sm:$0xff] }
 0x483   : > { %v8350_v40 = vpop.f32.mrb[44].mxu0  ;;  %8440 = vmatprep.mubr.bf16.mxu1 %v6522_v63 }
 0x484   : > { %v6023_v51 = vpop.f32.mrb[45].mxu0 }
 0x485   : > { %v13711_v9 = vadd.f32 %v6023_v51, %v5798_v30  ;;  %v8351_v16 = vpop.f32.mrb[46].mxu0  ;;  %v5806_v31 = vpop.f32.mrb[60].mxu1  ;;  %v6525_v51 = vpack.c.bf16 %v6501_v20, %v6500_v24 }
 0x486   : > { %v6026_v3 = vpop.f32.mrb[47].mxu0  ;;  %v13713_v19 = vadd.f32 %v8350_v40, %v5806_v31  ;;  %v5808_v10 = vpop.f32.mrb[61].mxu1  ;;  %v6183_v31 = vld [vmem:[%s9949_s26 + $0x88] sm:$0xff] }
 0x487   : > { %v13715_v27 = vadd.f32 %v6026_v3, %v5801_v2  ;;  %v5809_v47 = vpop.f32.mrb[62].mxu1  ;;  %v6425_v10 = vld [vmem:[#allocation2 + $0x189] sm:$0xff] }
 0x488   : > { %6896 = vmatmul.mubr.bf16.gmra.mrb[152].mxu0 %v15171_v50  ;;  %v13720_v48 = vadd.f32 %v8351_v16, %v5809_v47  ;;  %v5811_v30 = vpop.f32.mrb[63].mxu1 }
 0x489   : > { %6903 = vmatprep.mubr.bf16.mxu0 %v15172_v4  ;;  %v6427_v4 = vld [vmem:[#allocation2 + $0x199] sm:$0xff] }
 0x48a   : > { %8441 = vmatmul.mubr.bf16.gmra.mrb[168].mxu1 %v6523_v49  ;;  %v6452_v24 = vpack.c.bf16 %v6427_v4, %v13552_v61 }
 0x48b   : > { %v8354_v18 = vpop.f32.mrb[48].mxu0  ;;  %8444 = vmatprep.mubr.bf16.mxu1 %v6524_v52 }
 0x48c   : > { %v6039_v2 = vpop.f32.mrb[49].mxu0 }
 0x48d   : > { %v8355_v7 = vpop.f32.mrb[50].mxu0  ;;  %v5814_v63 = vpop.f32.mrb[64].mxu1 }
 0x48e   : > { %v6042_v53 = vpop.f32.mrb[51].mxu0  ;;  %v13725_v22 = vadd.f32 %v6039_v2, %v5814_v63  ;;  %v5816_v40 = vpop.f32.mrb[65].mxu1  ;;  %v6428_v63 = vld [vmem:[#allocation2 + $0x1a1] sm:$0xff] }
 0x48f   : > { %v5817_v16 = vpop.f32.mrb[66].mxu1 }
 0x490   : > { %6904 = vmatmul.mubr.bf16.gmra.mrb[156].mxu0 %v6377_v14  ;;  %v6043_v8 = vadd.f32 %v6042_v53, %v5817_v16  ;;  %v5819_v42 = vpop.f32.mrb[67].mxu1  ;;  %v6451_v14 = vpack.c.bf16 %v6425_v10, %v13534_v60  ;;  %v6429_v53 = vld [vmem:[#allocation2 + $0x1a9] sm:$0xff] }
 0x491   : > { %6911 = vmatprep.mubr.bf16.mxu0 %v6450_v45  ;;  %v6355_v42 = vld [vmem:[#allocation2 + $0x198] sm:$0xff] }
 0x492   : > { %v6231_v3 = vadd.f32 %v6183_v31, %v6043_v8  ;;  %8445 = vmatmul.mubr.bf16.gmra.mrb[172].mxu1 %v6525_v51  ;;  %v6453_v31 = vpack.c.bf16 %v6429_v53, %v6428_v63 }
 0x493   : > { %v8358_v6 = vpop.f32.mrb[52].mxu0 }
 0x494   : > { %v6055_v35 = vpop.f32.mrb[53].mxu0  ;;  %6279 = vst [vmem:[%s9949_s26 + $0x88] sm:$0xff] %v6231_v3 }
 0x495   : > { %v8359_v26 = vpop.f32.mrb[54].mxu0  ;;  %v5822_v28 = vpop.f32.mrb[68].mxu1 }
 0x496   : > { %v6058_v47 = vpop.f32.mrb[55].mxu0  ;;  %v13735_v50 = vadd.f32 %v8354_v18, %v5822_v28  ;;  %v5824_v34 = vpop.f32.mrb[69].mxu1 }
 0x497   : > { %v5825_v46 = vpop.f32.mrb[70].mxu1 }
 0x498   : > { %6912 = vmatmul.mubr.bf16.gmra.mrb[160].mxu0 %v6378_v15  ;;  %v13741_v55 = vadd.f32 %v8355_v7, %v5825_v46  ;;  %v5827_v54 = vpop.f32.mrb[71].mxu1  ;;  %v6187_v7 = vld [vmem:[%s9949_s26 + $0xa8] sm:$0xff]  ;;  %v8845_v46 = vld [vmem:[#allocation2] sm:$0xff] }
 0x499   : > { %6919 = vmatprep.mubr.bf16.mxu0 %v6451_v14  ;;  %v6381_v54 = vpack.c.bf16 %v8845_v46, %v8845_v46 }
 0x49b   : > { %v8362_v45 = vpop.f32.mrb[56].mxu0 }
 0x49c   : > { %v6071_v30 = vpop.f32.mrb[57].mxu0 }
 0x49d   : > { %v8363_v49 = vpop.f32.mrb[58].mxu0  ;;  %v5830_v52 = vpop.f32.mrb[72].mxu1 }
 0x49e   : > { %v6074_v18 = vpop.f32.mrb[59].mxu0  ;;  %v13743_v2 = vadd.f32 %v6055_v35, %v5830_v52  ;;  %v5832_v60 = vpop.f32.mrb[73].mxu1  ;;  %v6380_v35 = vpack.c.bf16 %v6355_v42, %v13572_v41 }
 0x49f   : > { %v5833_v20 = vpop.f32.mrb[74].mxu1 }
 0x4a0   : > { %6920 = vmatmul.mubr.bf16.gmra.mrb[164].mxu0 %v15173_v58  ;;  %v6059_v29 = vadd.f32 %v6058_v47, %v5833_v20  ;;  %v5835_v15 = vpop.f32.mrb[75].mxu1  ;;  %v6191_v58 = vld [vmem:[%s9949_s26 + $0xc8] sm:$0xff] }
 0x4a1   : > { %6927 = vmatprep.mubr.bf16.mxu0 %v6452_v24 }
 0x4a2   : > { %v6235_v40 = vadd.f32 %v6187_v7, %v6059_v29 }
 0x4a3   : > { %v8366_v51 = vpop.f32.mrb[60].mxu0 }
 0x4a4   : > { %v6087_v16 = vpop.f32.mrb[61].mxu0  ;;  %6283 = vst [vmem:[%s9949_s26 + $0xa8] sm:$0xff] %v6235_v40 }
 0x4a5   : > { %v8367_v8 = vpop.f32.mrb[62].mxu0  ;;  %v5838_v3 = vpop.f32.mrb[76].mxu1 }
 0x4a6   : > { %v6090_v61 = vpop.f32.mrb[63].mxu0  ;;  %v13752_v10 = vadd.f32 %v8358_v6, %v5838_v3  ;;  %v5840_v1 = vpop.f32.mrb[77].mxu1 }
 0x4a7   : > { %v5841_v43 = vpop.f32.mrb[78].mxu1 }
 0x4a8   : > { %6928 = vmatmul.mubr.bf16.gmra.mrb[168].mxu0 %v6380_v35  ;;  %v13754_v28 = vadd.f32 %v8359_v26, %v5841_v43  ;;  %v5843_v47 = vpop.f32.mrb[79].mxu1 }
 0x4a9   : > { %6935 = vmatprep.mubr.bf16.mxu0 %v6453_v31 }
 0x4ab   : > { %v13756_v34 = vpop.f32.mrb[64].mxu0 }
 0x4ac   : > { %v6103_v14 = vpop.f32.mrb[65].mxu0 }
 0x4ad   : > { %v13758_v4 = vpop.f32.mrb[66].mxu0  ;;  %v5846_v52 = vpop.f32.mrb[80].mxu1 }
 0x4ae   : > { %v6106_v41 = vpop.f32.mrb[67].mxu0  ;;  %v13760_v6 = vadd.f32 %v6071_v30, %v5846_v52  ;;  %v5848_v60 = vpop.f32.mrb[81].mxu1 }
 0x4af   : > { %v5849_v24 = vpop.f32.mrb[82].mxu1 }
 0x4b0   : > { %15174 = vst [vmem:[#allocation30_spill] sm:$0xff] %v13760_v6  ;;  %6936 = vmatmul.mubr.bf16.gmra.mrb[172].mxu0 %v6381_v54  ;;  %v6075_v26 = vadd.f32 %v6074_v18, %v5849_v24  ;;  %v5851_v20 = vpop.f32.mrb[83].mxu1  ;;  %v6199_v6 = vld [vmem:[%s9949_s26 + $0x108] sm:$0xff] }
 0x4b2   : > { %v6239_v29 = vadd.f32 %v6191_v58, %v6075_v26  ;;  %v6195_v26 = vld [vmem:[%s9949_s26 + $0xe8] sm:$0xff] }
 0x4b3   : > { %v13763_v15 = vpop.f32.mrb[68].mxu0 }
 0x4b4   : > { %v13765_v7 = vpop.f32.mrb[69].mxu0  ;;  %6287 = vst [vmem:[%s9949_s26 + $0xc8] sm:$0xff] %v6239_v29 }
 0x4b5   : > { %v13768_v63 = vpop.f32.mrb[70].mxu0  ;;  %v5854_v53 = vpop.f32.mrb[84].mxu1 }
 0x4b6   : > { %v13770_v40 = vpop.f32.mrb[71].mxu0  ;;  %v13772_v30 = vadd.f32 %v8362_v45, %v5854_v53  ;;  %v5856_v42 = vpop.f32.mrb[85].mxu1 }
 0x4b7   : > { %v5857_v31 = vpop.f32.mrb[86].mxu1 }
 0x4b8   : > { %v13774_v3 = vadd.f32 %v8363_v49, %v5857_v31  ;;  %v5859_v18 = vpop.f32.mrb[87].mxu1 }
 0x4ba   : > { %15175 = vst [vmem:[#allocation50_spill] sm:$0xff] %v13774_v3  ;;  %v6198_v3 = vld [vmem:[%s9949_s26 + $0x100] sm:$0xff] }
 0x4bb   : > { %v13776_v35 = vpop.f32.mrb[72].mxu0 }
 0x4bc   : > { %v13778_v1 = vpop.f32.mrb[73].mxu0 }
 0x4bd   : > { %v13780_v43 = vpop.f32.mrb[74].mxu0  ;;  %v5862_v47 = vpop.f32.mrb[88].mxu1 }
 0x4be   : > { %v13782_v46 = vpop.f32.mrb[75].mxu0  ;;  %v13784_v54 = vadd.f32 %v6087_v16, %v5862_v47  ;;  %v5864_v52 = vpop.f32.mrb[89].mxu1 }
 0x4bf   : > { %v5865_v45 = vpop.f32.mrb[90].mxu1 }
 0x4c0   : > { %15176 = vst [vmem:[#allocation16_spill] sm:$0xff] %v13784_v54  ;;  %v6091_v60 = vadd.f32 %v6090_v61, %v5865_v45  ;;  %v5867_v24 = vpop.f32.mrb[91].mxu1 }
 0x4c2   : > { %v6243_v49 = vadd.f32 %v6195_v26, %v6091_v60 }
 0x4c3   : > { %v13787_v20 = vpop.f32.mrb[76].mxu0 }
 0x4c4   : > { %v13789_v58 = vpop.f32.mrb[77].mxu0  ;;  %6291 = vst [vmem:[%s9949_s26 + $0xe8] sm:$0xff] %v6243_v49 }
 0x4c5   : > { %v13792_v29 = vpop.f32.mrb[78].mxu0  ;;  %v5870_v53 = vpop.f32.mrb[92].mxu1 }
 0x4c6   : > { %v13794_v42 = vpop.f32.mrb[79].mxu0  ;;  %v13796_v31 = vadd.f32 %v8366_v51, %v5870_v53  ;;  %v5872_v16 = vpop.f32.mrb[93].mxu1 }
 0x4c7   : > { %v5873_v18 = vpop.f32.mrb[94].mxu1 }
 0x4c8   : > { %15177 = vst [vmem:[#allocation63_spill] sm:$0xff] %v13796_v31  ;;  %v13798_v61 = vadd.f32 %v8367_v8, %v5873_v18  ;;  %v5875_v47 = vpop.f32.mrb[95].mxu1 }
 0x4cb   : > { %v13800_v52 = vpop.f32.mrb[80].mxu0 }
 0x4cc   : > { %v6755_v45 = vpop.f32.mrb[81].mxu0 }
 0x4cd   : > { %v13802_v60 = vpop.f32.mrb[82].mxu0  ;;  %v5878_v24 = vpop.f32.mrb[96].mxu1 }
 0x4ce   : > { %v6758_v26 = vpop.f32.mrb[83].mxu0  ;;  %v6104_v49 = vadd.f32 %v6103_v14, %v5878_v24  ;;  %v5880_v54 = vpop.f32.mrb[97].mxu1 }
 0x4cf   : > { %v5881_v51 = vpop.f32.mrb[98].mxu1 }
 0x4d0   : > { %v6246_v53 = vadd.f32 %v6198_v3, %v6104_v49  ;;  %v6107_v16 = vadd.f32 %v6106_v41, %v5881_v51  ;;  %v5883_v31 = vpop.f32.mrb[99].mxu1  ;;  %v6200_v3 = vld [vmem:[%s9949_s26 + $0x110] sm:$0xff] }
 0x4d2   : > { %6294 = vst [vmem:[%s9949_s26 + $0x100] sm:$0xff] %v6246_v53  ;;  %v6247_v8 = vadd.f32 %v6199_v6, %v6107_v16  ;;  %v6201_v6 = vld [vmem:[%s9949_s26 + $0x118] sm:$0xff] }
 0x4d3   : > { %v13807_v18 = vpop.f32.mrb[84].mxu0 }
 0x4d4   : > { %v6763_v47 = vpop.f32.mrb[85].mxu0  ;;  %6295 = vst [vmem:[%s9949_s26 + $0x108] sm:$0xff] %v6247_v8 }
 0x4d5   : > { %v13810_v45 = vpop.f32.mrb[86].mxu0  ;;  %v5886_v14 = vpop.f32.mrb[100].mxu1 }
 0x4d6   : > { %v6766_v54 = vpop.f32.mrb[87].mxu0  ;;  %v6112_v24 = vadd.f32 %v13756_v34, %v5886_v14  ;;  %v5888_v26 = vpop.f32.mrb[101].mxu1 }
 0x4d7   : > { %v5889_v41 = vpop.f32.mrb[102].mxu1  ;;  %v6202_v26 = vld [vmem:[%s9949_s26 + $0x120] sm:$0xff] }
 0x4d8   : > { %v6248_v31 = vadd.f32 %v6200_v3, %v6112_v24  ;;  %v6115_v49 = vadd.f32 %v13758_v4, %v5889_v41  ;;  %v5891_v51 = vpop.f32.mrb[103].mxu1 }
 0x4da   : > { %6296 = vst [vmem:[%s9949_s26 + $0x110] sm:$0xff] %v6248_v31  ;;  %v6249_v53 = vadd.f32 %v6201_v6, %v6115_v49  ;;  %v6203_v49 = vld [vmem:[%s9949_s26 + $0x128] sm:$0xff] }
 0x4db   : > { %v13817_v16 = vpop.f32.mrb[88].mxu0 }
 0x4dc   : > { %v6771_v8 = vpop.f32.mrb[89].mxu0  ;;  %6297 = vst [vmem:[%s9949_s26 + $0x118] sm:$0xff] %v6249_v53 }
 0x4dd   : > { %v13820_v47 = vpop.f32.mrb[90].mxu0  ;;  %v5894_v34 = vpop.f32.mrb[104].mxu1 }
 0x4de   : > { %v6774_v14 = vpop.f32.mrb[91].mxu0  ;;  %v6120_v54 = vadd.f32 %v13765_v7, %v5894_v34  ;;  %v5896_v24 = vpop.f32.mrb[105].mxu1 }
 0x4df   : > { %v5897_v4 = vpop.f32.mrb[106].mxu1  ;;  %v6204_v24 = vld [vmem:[%s9949_s26 + $0x130] sm:$0xff] }
 0x4e0   : > { %v6250_v3 = vadd.f32 %v6202_v26, %v6120_v54  ;;  %v6123_v41 = vadd.f32 %v13770_v40, %v5897_v4  ;;  %v5899_v31 = vpop.f32.mrb[107].mxu1 }
 0x4e2   : > { %6298 = vst [vmem:[%s9949_s26 + $0x120] sm:$0xff] %v6250_v3  ;;  %v6251_v51 = vadd.f32 %v6203_v49, %v6123_v41  ;;  %v6205_v41 = vld [vmem:[%s9949_s26 + $0x138] sm:$0xff] }
 0x4e3   : > { %v13827_v6 = vpop.f32.mrb[92].mxu0 }
 0x4e4   : > { %v6779_v53 = vpop.f32.mrb[93].mxu0  ;;  %6299 = vst [vmem:[%s9949_s26 + $0x128] sm:$0xff] %v6251_v51 }
 0x4e5   : > { %v13830_v8 = vpop.f32.mrb[94].mxu0  ;;  %v5902_v7 = vpop.f32.mrb[108].mxu1 }
 0x4e6   : > { %v6782_v34 = vpop.f32.mrb[95].mxu0  ;;  %v6128_v14 = vadd.f32 %v13763_v15, %v5902_v7  ;;  %v5904_v54 = vpop.f32.mrb[109].mxu1 }
 0x4e7   : > { %v5905_v40 = vpop.f32.mrb[110].mxu1 }
 0x4e8   : > { %v6252_v26 = vadd.f32 %v6204_v24, %v6128_v14  ;;  %v6131_v4 = vadd.f32 %v13768_v63, %v5905_v40  ;;  %v5907_v3 = vpop.f32.mrb[111].mxu1 }
 0x4ea   : > { %6300 = vst [vmem:[%s9949_s26 + $0x130] sm:$0xff] %v6252_v26  ;;  %v6253_v31 = vadd.f32 %v6205_v41, %v6131_v4 }
 0x4eb   : > { %v13837_v49 = vpop.f32.mrb[96].mxu0 }
 0x4ec   : > { %v6787_v51 = vpop.f32.mrb[97].mxu0  ;;  %6301 = vst [vmem:[%s9949_s26 + $0x138] sm:$0xff] %v6253_v31 }
 0x4ed   : > { %v13840_v53 = vpop.f32.mrb[98].mxu0  ;;  %v5910_v34 = vpop.f32.mrb[112].mxu1 }
 0x4ee   : > { %v6790_v15 = vpop.f32.mrb[99].mxu0  ;;  %v6136_v7 = vadd.f32 %v13778_v1, %v5910_v34  ;;  %v5912_v54 = vpop.f32.mrb[113].mxu1 }
 0x4ef   : > { %v5913_v14 = vpop.f32.mrb[114].mxu1 }
 0x4f0   : > { %v6254_v63 = vadd.f32 %v6136_v7, %v13619_v36  ;;  %v6139_v24 = vadd.f32 %v13782_v46, %v5913_v14  ;;  %v5915_v40 = vpop.f32.mrb[115].mxu1 }
 0x4f2   : > { %6302 = vst [vmem:[%s9949_s26 + $0x140] sm:$0xff] %v6254_v63  ;;  %v6255_v26 = vadd.f32 %v6139_v24, %v13623_v59 }
 0x4f3   : > { %v13847_v4 = vpop.f32.mrb[100].mxu0 }
 0x4f4   : > { %v6795_v3 = vpop.f32.mrb[101].mxu0  ;;  %6303 = vst [vmem:[%s9949_s26 + $0x148] sm:$0xff] %v6255_v26 }
 0x4f5   : > { %v13850_v41 = vpop.f32.mrb[102].mxu0  ;;  %v5918_v31 = vpop.f32.mrb[116].mxu1 }
 0x4f6   : > { %v6798_v1 = vpop.f32.mrb[103].mxu0  ;;  %v6144_v51 = vadd.f32 %v13776_v35, %v5918_v31  ;;  %v5920_v34 = vpop.f32.mrb[117].mxu1 }
 0x4f7   : > { %v5921_v36 = vpop.f32.mrb[118].mxu1 }
 0x4f8   : > { %v6256_v46 = vadd.f32 %v6144_v51, %v13634_v21  ;;  %v6147_v15 = vadd.f32 %v13780_v43, %v5921_v36  ;;  %v5923_v7 = vpop.f32.mrb[119].mxu1 }
 0x4fa   : > { %6304 = vst [vmem:[%s9949_s26 + $0x150] sm:$0xff] %v6256_v46  ;;  %v6257_v59 = vadd.f32 %v6147_v15, %v13637_v33 }
 0x4fb   : > { %v13857_v54 = vpop.f32.mrb[104].mxu0 }
 0x4fc   : > { %v6803_v14 = vpop.f32.mrb[105].mxu0  ;;  %6305 = vst [vmem:[%s9949_s26 + $0x158] sm:$0xff] %v6257_v59 }
 0x4fd   : > { %v13860_v63 = vpop.f32.mrb[106].mxu0  ;;  %v5926_v24 = vpop.f32.mrb[120].mxu1 }
 0x4fe   : > { %v6806_v35 = vpop.f32.mrb[107].mxu0  ;;  %v6152_v40 = vadd.f32 %v13789_v58, %v5926_v24  ;;  %v5928_v26 = vpop.f32.mrb[121].mxu1 }
 0x4ff   : > { %v5929_v21 = vpop.f32.mrb[122].mxu1 }
 0x500   : > { %v6258_v43 = vadd.f32 %v6152_v40, %v13645_v5  ;;  %v6155_v3 = vadd.f32 %v13794_v42, %v5929_v21  ;;  %v5931_v31 = vpop.f32.mrb[123].mxu1  ;;  %v6166_v21 = vld [vmem:[%s9949_s26] sm:$0xff] }
 0x501   : > { %v13891_v31 = vld [vmem:[%s14219_s4] ss:$0 sm:$0xff] }
 0x502   : > { %6306 = vst [vmem:[%s9949_s26 + $0x160] sm:$0xff] %v6258_v43  ;;  %v6259_v33 = vadd.f32 %v6155_v3, %v13647_v17  ;;  %v6169_v3 = vld [vmem:[%s9949_s26 + $0x18] sm:$0xff] }
 0x503   : > { %v13867_v1 = vpop.f32.mrb[108].mxu0 }
 0x504   : > { %v6811_v51 = vpop.f32.mrb[109].mxu0  ;;  %6307 = vst [vmem:[%s9949_s26 + $0x168] sm:$0xff] %v6259_v33 }
 0x505   : > { %v13870_v34 = vpop.f32.mrb[110].mxu0  ;;  %v5934_v58 = vpop.f32.mrb[124].mxu1 }
 0x506   : > { %v6814_v36 = vpop.f32.mrb[111].mxu0  ;;  %v6160_v46 = vadd.f32 %v13787_v20, %v5934_v58  ;;  %v5936_v5 = vpop.f32.mrb[125].mxu1  ;;  %v6168_v20 = vld [vmem:[%s9949_s26 + $0x10] sm:$0xff]  ;;  %v6217_v58 = vadd.f32 %v6169_v3, %v13672_v38 }
 0x507   : > { %v5937_v42 = vpop.f32.mrb[126].mxu1  ;;  %v7315_v5 = vld [vmem:[%s9296_s16 + $0x29] sm:$0xff] }
 0x508   : > { %v6260_v15 = vadd.f32 %v6160_v46, %v13656_v56  ;;  %v6163_v7 = vadd.f32 %v13792_v29, %v5937_v42  ;;  %v5939_v17 = vpop.f32.mrb[127].mxu1  ;;  %v6216_v56 = vadd.f32 %v6168_v20, %v13667_v62  ;;  %v6167_v62 = vld [vmem:[%s9949_s26 + $0x8] sm:$0xff] }
 0x50a   : > { %6308 = vst [vmem:[%s9949_s26 + $0x170] sm:$0xff] %v6260_v15  ;;  %v6261_v59 = vadd.f32 %v6163_v7, %v13659_v0  ;;  %v6214_v0 = vadd.f32 %v6166_v21, %v13670_v25  ;;  %v6215_v25 = vadd.f32 %v6167_v62, %v13675_v12 }
 0x50b   : > { %v13877_v14 = vpop.f32.mrb[112].mxu0 }
 0x50c   : > { %v6819_v24 = vpop.f32.mrb[113].mxu0  ;;  %6309 = vst [vmem:[%s9949_s26 + $0x178] sm:$0xff] %v6261_v59 }
 0x50d   : > { %v13880_v35 = vpop.f32.mrb[114].mxu0  ;;  %v8402_v40 = vpop.f32.mrb[128].mxu1  ;;  %v7316_v24 = vld [vmem:[%s9296_s16 + $0x31] sm:$0xff] }
 0x50e   : > { %v6822_v26 = vpop.f32.mrb[115].mxu0  ;;  %v6987_v29 = vadd.f32 %v8402_v40, %v13807_v18  ;;  %v6978_v43 = vpop.f32.mrb[129].mxu1 }
 0x50f   : > { %v6979_v33 = vadd.f32 %v6978_v43, %v13800_v52  ;;  %v8403_v51 = vpop.f32.mrb[130].mxu1  ;;  %v7313_v52 = vld [vmem:[%s9296_s16 + $0x19] sm:$0xff]  ;;  %v7314_v26 = vld [vmem:[%s9296_s16 + $0x21] sm:$0xff] }
 0x510   : > { %v7219_v36 = vadd.f32 %v6987_v29, %v6216_v56  ;;  %v6990_v18 = vadd.f32 %v8403_v51, %v13810_v45  ;;  %v6981_v46 = vpop.f32.mrb[131].mxu1 }
 0x511   : > { %v7217_v42 = vadd.f32 %v6979_v33, %v6214_v0  ;;  %v6982_v15 = vadd.f32 %v6981_v46, %v13802_v60  ;;  %v6172_v60 = vld [vmem:[%s9949_s26 + $0x30] sm:$0xff]  ;;  %v6170_v33 = vld [vmem:[%s9949_s26 + $0x20] sm:$0xff]  ;;  %v6173_v46 = vld [vmem:[%s9949_s26 + $0x38] sm:$0xff] }
 0x512   : > { %v7418_v7 = vadd.f32 %v13891_v31, %v7219_v36  ;;  %v7220_v17 = vadd.f32 %v6990_v18, %v6217_v58  ;;  %v6220_v3 = vadd.f32 %v6172_v60, %v13683_v44  ;;  %v6218_v18 = vadd.f32 %v6170_v33, %v13685_v13 }
 0x513   : > { %v13902_v59 = vpop.f32.mrb[116].mxu0  ;;  %v7416_v38 = vadd.f32 %v13891_v31, %v7217_v42  ;;  %v7218_v45 = vadd.f32 %v6982_v15, %v6215_v25  ;;  %v6221_v44 = vadd.f32 %v6173_v46, %v13687_v11 }
 0x514   : > { %v6827_v20 = vpop.f32.mrb[117].mxu0  ;;  %v7466_v40 = vadd.f32 %v7418_v7, %v7315_v5  ;;  %v7419_v12 = vadd.f32 %v13891_v31, %v7220_v17  ;;  %v6171_v7 = vld [vmem:[%s9949_s26 + $0x28] sm:$0xff] }
 0x515   : > { %v13908_v56 = vpop.f32.mrb[118].mxu0  ;;  %v7464_v21 = vadd.f32 %v7416_v38, %v7313_v52  ;;  %v7417_v29 = vadd.f32 %v13891_v31, %v7218_v45  ;;  %v8406_v43 = vpop.f32.mrb[132].mxu1  ;;  %v6219_v38 = vadd.f32 %v6171_v7, %v13689_v32  ;;  %v7319_v45 = vld [vmem:[%s9296_s16 + $0x49] sm:$0xff]  ;;  %v7320_v32 = vld [vmem:[%s9296_s16 + $0x51] sm:$0xff] }
 0x516   : > { %v6830_v0 = vpop.f32.mrb[119].mxu0  ;;  %v7514_v51 = vmax.f32 %v7466_v40, 0.0  ;;  %v7467_v58 = vadd.f32 %v7419_v12, %v7316_v24  ;;  %v7003_v62 = vadd.f32 %v8406_v43, %v13827_v6  ;;  %v6994_v36 = vpop.f32.mrb[133].mxu1  ;;  %v7317_v40 = vld [vmem:[%s9296_s16 + $0x39] sm:$0xff] }
 0x517   : > { %v7512_v25 = vmax.f32 %v7464_v21, 0.0  ;;  %v7465_v5 = vadd.f32 %v7417_v29, %v7314_v26  ;;  %v6995_v42 = vadd.f32 %v6994_v36, %v13817_v16  ;;  %v8407_v15 = vpop.f32.mrb[134].mxu1  ;;  %v7318_v0 = vld [vmem:[%s9296_s16 + $0x41] sm:$0xff] }
 0x518   : > { %7562 = vst [vmem:[%s9949_s26 + $0x10] sm:$0xff] %v7514_v51  ;;  %v7515_v52 = vmax.f32 %v7467_v58, 0.0  ;;  %v7223_v6 = vadd.f32 %v7003_v62, %v6220_v3  ;;  %v7006_v17 = vadd.f32 %v8407_v15, %v13830_v8  ;;  %v6997_v13 = vpop.f32.mrb[135].mxu1  ;;  %v6176_v3 = vld [vmem:[%s9949_s26 + $0x50] sm:$0xff] }
 0x519   : > { %7560 = vst [vmem:[%s9949_s26] sm:$0xff] %v7512_v25  ;;  %v7513_v24 = vmax.f32 %v7465_v5, 0.0  ;;  %v7221_v16 = vadd.f32 %v6995_v42, %v6218_v18  ;;  %v6998_v20 = vadd.f32 %v6997_v13, %v13820_v47  ;;  %v6224_v36 = vadd.f32 %v6176_v3, %v13697_v23  ;;  %v6174_v18 = vld [vmem:[%s9949_s26 + $0x40] sm:$0xff]  ;;  %v6175_v13 = vld [vmem:[%s9949_s26 + $0x48] sm:$0xff] }
 0x51a   : > { %7563 = vst [vmem:[%s9949_s26 + $0x18] sm:$0xff] %v7515_v52  ;;  %v7422_v11 = vadd.f32 %v13891_v31, %v7223_v6  ;;  %v7224_v12 = vadd.f32 %v7006_v17, %v6221_v44  ;;  %v6222_v15 = vadd.f32 %v6174_v18, %v13699_v37  ;;  %v6177_v44 = vld [vmem:[%s9949_s26 + $0x58] sm:$0xff] }
 0x51b   : > { %v13929_v26 = vpop.f32.mrb[120].mxu0  ;;  %7561 = vst [vmem:[%s9949_s26 + $0x8] sm:$0xff] %v7513_v24  ;;  %v7420_v8 = vadd.f32 %v13891_v31, %v7221_v16  ;;  %v7222_v60 = vadd.f32 %v6998_v20, %v6219_v38  ;;  %v6225_v23 = vadd.f32 %v6177_v44, %v13701_v39  ;;  %v7323_v20 = vld [vmem:[%s9296_s16 + $0x69] sm:$0xff] }
 0x51c   : > { %v6835_v21 = vpop.f32.mrb[121].mxu0  ;;  %v7470_v29 = vadd.f32 %v7422_v11, %v7319_v45  ;;  %v7423_v43 = vadd.f32 %v13891_v31, %v7224_v12  ;;  %v6223_v45 = vadd.f32 %v6175_v13, %v13703_v57  ;;  %v7324_v57 = vld [vmem:[%s9296_s16 + $0x71] sm:$0xff] }
 0x51d   : > { %v13936_v47 = vpop.f32.mrb[122].mxu0  ;;  %v7468_v33 = vadd.f32 %v7420_v8, %v7317_v40  ;;  %v7421_v51 = vadd.f32 %v13891_v31, %v7222_v60  ;;  %v8410_v58 = vpop.f32.mrb[136].mxu1  ;;  %v7321_v40 = vld [vmem:[%s9296_s16 + $0x59] sm:$0xff] }
 0x51e   : > { %v6838_v62 = vpop.f32.mrb[123].mxu0  ;;  %v7518_v46 = vmax.f32 %v7470_v29, 0.0  ;;  %v7471_v25 = vadd.f32 %v7423_v43, %v7320_v32  ;;  %v7019_v5 = vadd.f32 %v8410_v58, %v13847_v4  ;;  %v7010_v42 = vpop.f32.mrb[137].mxu1  ;;  %v7322_v43 = vld [vmem:[%s9296_s16 + $0x61] sm:$0xff] }
 0x51f   : > { %v7516_v7 = vmax.f32 %v7468_v33, 0.0  ;;  %v7469_v52 = vadd.f32 %v7421_v51, %v7318_v0  ;;  %v7011_v6 = vadd.f32 %v7010_v42, %v13837_v49  ;;  %v8411_v17 = vpop.f32.mrb[138].mxu1  ;;  %v6180_v0 = vld [vmem:[%s9949_s26 + $0x70] sm:$0xff] }
 0x520   : > { %7566 = vst [vmem:[%s9949_s26 + $0x30] sm:$0xff] %v7518_v46  ;;  %v7519_v38 = vmax.f32 %v7471_v25, 0.0  ;;  %v7227_v4 = vadd.f32 %v7019_v5, %v6224_v36  ;;  %v7022_v24 = vadd.f32 %v8411_v17, %v13850_v41  ;;  %v7013_v37 = vpop.f32.mrb[139].mxu1  ;;  %v6228_v62 = vadd.f32 %v6180_v0, %v13713_v19  ;;  %v6178_v36 = vld [vmem:[%s9949_s26 + $0x60] sm:$0xff]  ;;  %v6179_v17 = vld [vmem:[%s9949_s26 + $0x68] sm:$0xff] }
 0x521   : > { %7564 = vst [vmem:[%s9949_s26 + $0x20] sm:$0xff] %v7516_v7  ;;  %v7517_v16 = vmax.f32 %v7469_v52, 0.0  ;;  %v7225_v49 = vadd.f32 %v7011_v6, %v6222_v15  ;;  %v7014_v11 = vadd.f32 %v7013_v37, %v13840_v53  ;;  %v6226_v42 = vadd.f32 %v6178_v36, %v13711_v9  ;;  %v6181_v15 = vld [vmem:[%s9949_s26 + $0x78] sm:$0xff] }
 0x522   : > { %7567 = vst [vmem:[%s9949_s26 + $0x38] sm:$0xff] %v7519_v38  ;;  %v7426_v39 = vadd.f32 %v13891_v31, %v7227_v4  ;;  %v7228_v12 = vadd.f32 %v7022_v24, %v6225_v23  ;;  %v6229_v19 = vadd.f32 %v6181_v15, %v13720_v48  ;;  %v6227_v38 = vadd.f32 %v6179_v17, %v13715_v27  ;;  %v7327_v24 = vld [vmem:[%s9296_s16 + $0x89] sm:$0xff]  ;;  %v7328_v27 = vld [vmem:[%s9296_s16 + $0x91] sm:$0xff] }
 0x523   : > { %v13957_v8 = vpop.f32.mrb[124].mxu0  ;;  %7565 = vst [vmem:[%s9949_s26 + $0x28] sm:$0xff] %v7517_v16  ;;  %v7424_v41 = vadd.f32 %v13891_v31, %v7225_v49  ;;  %v7226_v32 = vadd.f32 %v7014_v11, %v6223_v45  ;;  %v7325_v45 = vld [vmem:[%s9296_s16 + $0x79] sm:$0xff] }
 0x524   : > { %v6843_v60 = vpop.f32.mrb[125].mxu0  ;;  %v7474_v21 = vadd.f32 %v7426_v39, %v7323_v20  ;;  %v7427_v29 = vadd.f32 %v13891_v31, %v7228_v12  ;;  %v7326_v12 = vld [vmem:[%s9296_s16 + $0x81] sm:$0xff] }
 0x525   : > { %v13964_v53 = vpop.f32.mrb[126].mxu0  ;;  %v7472_v3 = vadd.f32 %v7424_v41, %v7321_v40  ;;  %v7425_v33 = vadd.f32 %v13891_v31, %v7226_v32  ;;  %v8414_v51 = vpop.f32.mrb[140].mxu1  ;;  %v6184_v41 = vld [vmem:[%s9949_s26 + $0x90] sm:$0xff] }
 0x526   : > { %v6846_v58 = vpop.f32.mrb[127].mxu0  ;;  %v7522_v18 = vmax.f32 %v7474_v21, 0.0  ;;  %v7475_v46 = vadd.f32 %v7427_v29, %v7324_v57  ;;  %v7035_v25 = vadd.f32 %v8414_v51, %v13867_v1  ;;  %v7026_v5 = vpop.f32.mrb[141].mxu1  ;;  %v6182_v29 = vld [vmem:[%s9949_s26 + $0x80] sm:$0xff] }
 0x527   : > { %v7520_v44 = vmax.f32 %v7472_v3, 0.0  ;;  %v7473_v7 = vadd.f32 %v7425_v33, %v7322_v43  ;;  %v7027_v52 = vadd.f32 %v7026_v5, %v13857_v54  ;;  %v8415_v6 = vpop.f32.mrb[142].mxu1  ;;  %v6232_v43 = vadd.f32 %v6184_v41, %v13735_v50 }
 0x528   : > { %7570 = vst [vmem:[%s9949_s26 + $0x50] sm:$0xff] %v7522_v18  ;;  %v7523_v23 = vmax.f32 %v7475_v46, 0.0  ;;  %v7231_v1 = vadd.f32 %v7035_v25, %v6228_v62  ;;  %v7038_v13 = vadd.f32 %v8415_v6, %v13870_v34  ;;  %v7029_v9 = vpop.f32.mrb[143].mxu1  ;;  %v6230_v58 = vadd.f32 %v6182_v29, %v13725_v22  ;;  %v6185_v62 = vld [vmem:[%s9949_s26 + $0x98] sm:$0xff] }
 0x529   : > { %7568 = vst [vmem:[%s9949_s26 + $0x40] sm:$0xff] %v7520_v44  ;;  %v7521_v4 = vmax.f32 %v7473_v7, 0.0  ;;  %v7229_v54 = vadd.f32 %v7027_v52, %v6226_v42  ;;  %v7030_v37 = vadd.f32 %v7029_v9, %v13860_v63  ;;  %v6233_v50 = vadd.f32 %v6185_v62, %v13741_v55  ;;  %v7331_v44 = vld [vmem:[%s9296_s16 + $0xa9] sm:$0xff]  ;;  %v7329_v55 = vld [vmem:[%s9296_s16 + $0x99] sm:$0xff] }
 0x52a   : > { %7571 = vst [vmem:[%s9949_s26 + $0x58] sm:$0xff] %v7523_v23  ;;  %v7430_v48 = vadd.f32 %v13891_v31, %v7231_v1  ;;  %v7232_v16 = vadd.f32 %v7038_v13, %v6229_v19  ;;  %v7186_v19 = vld [vmem:[%s9949_s26 + $0x88] sm:$0xff] }
 0x52b   : > { %v13985_v20 = vpop.f32.mrb[128].mxu0  ;;  %7569 = vst [vmem:[%s9949_s26 + $0x48] sm:$0xff] %v7521_v4  ;;  %v7428_v34 = vadd.f32 %v13891_v31, %v7229_v54  ;;  %v7230_v49 = vadd.f32 %v7030_v37, %v6227_v38  ;;  %v7332_v23 = vld [vmem:[%s9296_s16 + $0xb1] sm:$0xff] }
 0x52c   : > { %v6851_v11 = vpop.f32.mrb[129].mxu0  ;;  %v7478_v39 = vadd.f32 %v7430_v48, %v7327_v24  ;;  %v7431_v40 = vadd.f32 %v13891_v31, %v7232_v16  ;;  %v6188_v24 = vld [vmem:[%s9949_s26 + $0xb0] sm:$0xff]  ;;  %v6186_v16 = vld [vmem:[%s9949_s26 + $0xa0] sm:$0xff] }
 0x52d   : > { %v13992_v63 = vpop.f32.mrb[130].mxu0  ;;  %v7476_v57 = vadd.f32 %v7428_v34, %v7325_v45  ;;  %v7429_v32 = vadd.f32 %v13891_v31, %v7230_v49  ;;  %v8418_v60 = vpop.f32.mrb[144].mxu1  ;;  %v6236_v34 = vadd.f32 %v6188_v24, %v13752_v10  ;;  %v15179_v24 = vld [vmem:[#allocation50_spill] sm:$0xff] }
 0x52e   : > { %v6854_v21 = vpop.f32.mrb[131].mxu0  ;;  %v7526_v0 = vmax.f32 %v7478_v39, 0.0  ;;  %v7479_v3 = vadd.f32 %v7431_v40, %v7328_v27  ;;  %v7051_v33 = vadd.f32 %v8418_v60, %v13902_v59  ;;  %v7042_v51 = vpop.f32.mrb[145].mxu1  ;;  %v6234_v40 = vadd.f32 %v6186_v16, %v13743_v2  ;;  %v7339_v16 = vld [vmem:[%s9296_s16 + $0xe9] sm:$0xff] }
 0x52f   : > { %v7524_v36 = vmax.f32 %v7476_v57, 0.0  ;;  %v7477_v18 = vadd.f32 %v7429_v32, %v7326_v12  ;;  %v7043_v46 = vadd.f32 %v7042_v51, %v13877_v14  ;;  %v8419_v25 = vpop.f32.mrb[146].mxu1  ;;  %v6189_v12 = vld [vmem:[%s9949_s26 + $0xb8] sm:$0xff] }
 0x530   : > { %7574 = vst [vmem:[%s9949_s26 + $0x70] sm:$0xff] %v7526_v0  ;;  %v7527_v5 = vmax.f32 %v7479_v3, 0.0  ;;  %v7235_v42 = vadd.f32 %v7051_v33, %v6232_v43  ;;  %v7054_v59 = vadd.f32 %v8419_v25, %v13908_v56  ;;  %v7045_v15 = vpop.f32.mrb[147].mxu1  ;;  %v6237_v10 = vadd.f32 %v6189_v12, %v13754_v28  ;;  %v7335_v0 = vld [vmem:[%s9296_s16 + $0xc9] sm:$0xff]  ;;  %v7333_v28 = vld [vmem:[%s9296_s16 + $0xb9] sm:$0xff]  ;;  %v7340_v12 = vld [vmem:[%s9296_s16 + $0xf1] sm:$0xff] }
 0x531   : > { %7572 = vst [vmem:[%s9949_s26 + $0x60] sm:$0xff] %v7524_v36  ;;  %v7525_v22 = vmax.f32 %v7477_v18, 0.0  ;;  %v7233_v7 = vadd.f32 %v7043_v46, %v6230_v58  ;;  %v7046_v52 = vadd.f32 %v7045_v15, %v13880_v35  ;;  %v7330_v35 = vld [vmem:[%s9296_s16 + $0xa1] sm:$0xff]  ;;  %v7336_v36 = vld [vmem:[%s9296_s16 + $0xd1] sm:$0xff] }
 0x532   : > { %7575 = vst [vmem:[%s9949_s26 + $0x78] sm:$0xff] %v7527_v5  ;;  %v7434_v14 = vadd.f32 %v13891_v31, %v7235_v42  ;;  %v7236_v6 = vadd.f32 %v7054_v59, %v6233_v50  ;;  %v7190_v58 = vld [vmem:[%s9949_s26 + $0xa8] sm:$0xff]  ;;  %v6192_v42 = vld [vmem:[%s9949_s26 + $0xd0] sm:$0xff] }
 0x533   : > { %v6857_v17 = vpop.f32.mrb[132].mxu0  ;;  %7573 = vst [vmem:[%s9949_s26 + $0x68] sm:$0xff] %v7525_v22  ;;  %v7432_v56 = vadd.f32 %v13891_v31, %v7233_v7  ;;  %v7234_v1 = vadd.f32 %v7186_v19, %v7046_v52  ;;  %v7334_v50 = vld [vmem:[%s9296_s16 + $0xc1] sm:$0xff]  ;;  %v6190_v7 = vld [vmem:[%s9949_s26 + $0xc0] sm:$0xff]  ;;  %v6240_v52 = vadd.f32 %v6192_v42, %v13772_v30 }
 0x534   : > { %v6859_v13 = vpop.f32.mrb[133].mxu0  ;;  %v7482_v9 = vadd.f32 %v7434_v14, %v7331_v44  ;;  %v7435_v38 = vadd.f32 %v13891_v31, %v7236_v6 }
 0x535   : > { %v14017_v4 = vpop.f32.mrb[134].mxu0  ;;  %v7480_v54 = vadd.f32 %v7432_v56, %v7329_v55  ;;  %v7433_v37 = vadd.f32 %v13891_v31, %v7234_v1  ;;  %v8422_v48 = vpop.f32.mrb[148].mxu1  ;;  %v15178_v56 = vld [vmem:[#allocation30_spill] sm:$0xff]  ;;  %v6193_v1 = vld [vmem:[%s9949_s26 + $0xd8] sm:$0xff] }
 0x536   : > { %v6862_v45 = vpop.f32.mrb[135].mxu0  ;;  %v7530_v27 = vmax.f32 %v7482_v9, 0.0  ;;  %v7483_v49 = vadd.f32 %v7435_v38, %v7332_v23  ;;  %v7067_v11 = vadd.f32 %v8422_v48, %v13957_v8  ;;  %v7058_v39 = vpop.f32.mrb[149].mxu1  ;;  %v6238_v23 = vadd.f32 %v6190_v7, %v15178_v56 }
 0x537   : > { %v7528_v41 = vmax.f32 %v7480_v54, 0.0  ;;  %v7481_v57 = vadd.f32 %v7433_v37, %v7330_v35  ;;  %v7059_v32 = vadd.f32 %v7058_v39, %v13929_v26  ;;  %v8423_v60 = vpop.f32.mrb[150].mxu1  ;;  %v6241_v54 = vadd.f32 %v6193_v1, %v15179_v24  ;;  %v7194_v39 = vld [vmem:[%s9949_s26 + $0xc8] sm:$0xff] }
 0x538   : > { %7578 = vst [vmem:[%s9949_s26 + $0x90] sm:$0xff] %v7530_v27  ;;  %v7531_v21 = vmax.f32 %v7483_v49, 0.0  ;;  %v7239_v29 = vadd.f32 %v7067_v11, %v6236_v34  ;;  %v7070_v8 = vadd.f32 %v8423_v60, %v13964_v53  ;;  %v7061_v43 = vpop.f32.mrb[151].mxu1  ;;  %v7337_v49 = vld [vmem:[%s9296_s16 + $0xd9] sm:$0xff]  ;;  %v7344_v1 = vld [vmem:[%s9296_s16 + $0x111] sm:$0xff]  ;;  %v7342_v24 = vld [vmem:[%s9296_s16 + $0x101] sm:$0xff] }
 0x539   : > { %7576 = vst [vmem:[%s9949_s26 + $0x80] sm:$0xff] %v7528_v41  ;;  %v7529_v2 = vmax.f32 %v7481_v57, 0.0  ;;  %v7237_v3 = vadd.f32 %v7059_v32, %v6234_v40  ;;  %v7062_v33 = vadd.f32 %v7061_v43, %v13936_v47 }
 0x53a   : > { %7579 = vst [vmem:[%s9949_s26 + $0x98] sm:$0xff] %v7531_v21  ;;  %v7438_v26 = vadd.f32 %v13891_v31, %v7239_v29  ;;  %v7240_v51 = vadd.f32 %v7070_v8, %v6237_v10  ;;  %v6196_v21 = vld [vmem:[%s9949_s26 + $0xf0] sm:$0xff] }
 0x53b   : > { %v14037_v62 = vpop.f32.mrb[136].mxu0  ;;  %7577 = vst [vmem:[%s9949_s26 + $0x88] sm:$0xff] %v7529_v2  ;;  %v7436_v53 = vadd.f32 %v13891_v31, %v7237_v3  ;;  %v7238_v18 = vadd.f32 %v7190_v58, %v7062_v33  ;;  %v15180_v3 = vld [vmem:[#allocation63_spill] sm:$0xff] }
 0x53c   : > { %v6867_v46 = vpop.f32.mrb[137].mxu0  ;;  %v7486_v25 = vadd.f32 %v7438_v26, %v7335_v0  ;;  %v7439_v47 = vadd.f32 %v13891_v31, %v7240_v51  ;;  %v6194_v0 = vld [vmem:[%s9949_s26 + $0xe0] sm:$0xff]  ;;  %v6244_v33 = vadd.f32 %v6196_v21, %v15180_v3 }
 0x53d   : > { %v14044_v5 = vpop.f32.mrb[138].mxu0  ;;  %v7484_v59 = vadd.f32 %v7436_v53, %v7333_v28  ;;  %v7437_v15 = vadd.f32 %v13891_v31, %v7238_v18  ;;  %v8426_v22 = vpop.f32.mrb[152].mxu1  ;;  %v15181_v53 = vld [vmem:[#allocation16_spill] sm:$0xff] }
 0x53e   : > { %v6870_v44 = vpop.f32.mrb[139].mxu0  ;;  %v7534_v14 = vmax.f32 %v7486_v25, 0.0  ;;  %v7487_v55 = vadd.f32 %v7439_v47, %v7336_v36  ;;  %v7083_v6 = vadd.f32 %v8426_v22, %v6857_v17  ;;  %v7074_v19 = vpop.f32.mrb[153].mxu1  ;;  %v6242_v36 = vadd.f32 %v6194_v0, %v15181_v53  ;;  %v6197_v18 = vld [vmem:[%s9949_s26 + $0xf8] sm:$0xff] }
 0x53f   : > { %v7532_v13 = vmax.f32 %v7484_v59, 0.0  ;;  %v7485_v9 = vadd.f32 %v7437_v15, %v7334_v50  ;;  %v7075_v38 = vadd.f32 %v7074_v19, %v13985_v20  ;;  %v8427_v35 = vpop.f32.mrb[154].mxu1  ;;  %v6245_v42 = vadd.f32 %v6197_v18, %v13798_v61  ;;  %v7198_v61 = vld [vmem:[%s9949_s26 + $0xe8] sm:$0xff]  ;;  %v7204_v53 = vld [vmem:[%s9949_s26 + $0x118] sm:$0xff] }
 0x540   : > { %7582 = vst [vmem:[%s9949_s26 + $0xb0] sm:$0xff] %v7534_v14  ;;  %v7535_v30 = vmax.f32 %v7487_v55, 0.0  ;;  %v7243_v37 = vadd.f32 %v7083_v6, %v6240_v52  ;;  %v7086_v17 = vadd.f32 %v8427_v35, %v14017_v4  ;;  %v7077_v48 = vpop.f32.mrb[155].mxu1  ;;  %v7343_v52 = vld [vmem:[%s9296_s16 + $0x109] sm:$0xff]  ;;  %v7341_v6 = vld [vmem:[%s9296_s16 + $0xf9] sm:$0xff] }
 0x541   : > { %7580 = vst [vmem:[%s9949_s26 + $0xa0] sm:$0xff] %v7532_v13  ;;  %v7533_v45 = vmax.f32 %v7485_v9, 0.0  ;;  %v7241_v34 = vadd.f32 %v7075_v38, %v6238_v23  ;;  %v7078_v27 = vadd.f32 %v7077_v48, %v13992_v63  ;;  %v7338_v63 = vld [vmem:[%s9296_s16 + $0xe1] sm:$0xff] }
 0x542   : > { %7583 = vst [vmem:[%s9949_s26 + $0xb8] sm:$0xff] %v7535_v30  ;;  %v7442_v20 = vadd.f32 %v13891_v31, %v7243_v37  ;;  %v7244_v11 = vadd.f32 %v7086_v17, %v6241_v54 }
 0x543   : > { %v6873_v40 = vpop.f32.mrb[140].mxu0  ;;  %7581 = vst [vmem:[%s9949_s26 + $0xa8] sm:$0xff] %v7533_v45  ;;  %v7440_v4 = vadd.f32 %v13891_v31, %v7241_v34  ;;  %v7242_v41 = vadd.f32 %v7194_v39, %v7078_v27  ;;  %v7201_v39 = vld [vmem:[%s9949_s26 + $0x100] sm:$0xff] }
 0x544   : > { %v6875_v57 = vpop.f32.mrb[141].mxu0  ;;  %v7490_v32 = vadd.f32 %v7442_v20, %v7339_v16  ;;  %v7443_v60 = vadd.f32 %v13891_v31, %v7244_v11 }
 0x545   : > { %v6876_v10 = vpop.f32.mrb[142].mxu0  ;;  %v7488_v29 = vadd.f32 %v7440_v4, %v7337_v49  ;;  %v7441_v8 = vadd.f32 %v13891_v31, %v7242_v41  ;;  %v8430_v43 = vpop.f32.mrb[156].mxu1  ;;  %v7345_v57 = vld [vmem:[%s9296_s16 + $0x119] sm:$0xff] }
 0x546   : > { %v6878_v2 = vpop.f32.mrb[143].mxu0  ;;  %v7538_v26 = vmax.f32 %v7490_v32, 0.0  ;;  %v7491_v28 = vadd.f32 %v7443_v60, %v7340_v12  ;;  %v7099_v51 = vadd.f32 %v8430_v43, %v6873_v40  ;;  %v7090_v58 = vpop.f32.mrb[157].mxu1  ;;  %v7202_v32 = vld [vmem:[%s9949_s26 + $0x108] sm:$0xff]  ;;  %v7203_v43 = vld [vmem:[%s9949_s26 + $0x110] sm:$0xff] }
 0x547   : > { %v7536_v46 = vmax.f32 %v7488_v29, 0.0  ;;  %v7489_v25 = vadd.f32 %v7441_v8, %v7338_v63  ;;  %v7091_v47 = vadd.f32 %v7090_v58, %v14037_v62  ;;  %v8431_v50 = vpop.f32.mrb[158].mxu1  ;;  %v7346_v8 = vld [vmem:[%s9296_s16 + $0x121] sm:$0xff]  ;;  %v7347_v58 = vld [vmem:[%s9296_s16 + $0x129] sm:$0xff] }
 0x548   : > { %7586 = vst [vmem:[%s9949_s26 + $0xd0] sm:$0xff] %v7538_v26  ;;  %v7539_v59 = vmax.f32 %v7491_v28, 0.0  ;;  %v7247_v15 = vadd.f32 %v7099_v51, %v6244_v33  ;;  %v7102_v22 = vadd.f32 %v8431_v50, %v6876_v10  ;;  %v7093_v44 = vpop.f32.mrb[159].mxu1 }
 0x549   : > { %7584 = vst [vmem:[%s9949_s26 + $0xc0] sm:$0xff] %v7536_v46  ;;  %v7537_v7 = vmax.f32 %v7489_v25, 0.0  ;;  %v7245_v14 = vadd.f32 %v7091_v47, %v6242_v36  ;;  %v7094_v55 = vadd.f32 %v7093_v44, %v14044_v5 }
 0x54a   : > { %7587 = vst [vmem:[%s9949_s26 + $0xd8] sm:$0xff] %v7539_v59  ;;  %v7446_v62 = vadd.f32 %v13891_v31, %v7247_v15  ;;  %v7248_v19 = vadd.f32 %v7102_v22, %v6245_v42  ;;  %v7348_v42 = vld [vmem:[%s9296_s16 + $0x131] sm:$0xff] }
 0x54b   : > { %v6881_v56 = vpop.f32.mrb[144].mxu0  ;;  %7585 = vst [vmem:[%s9949_s26 + $0xc8] sm:$0xff] %v7537_v7  ;;  %v7444_v23 = vadd.f32 %v13891_v31, %v7245_v14  ;;  %v7246_v13 = vadd.f32 %v7198_v61, %v7094_v55 }
 0x54c   : > { %v6883_v9 = vpop.f32.mrb[145].mxu0  ;;  %v7494_v38 = vadd.f32 %v7446_v62, %v7343_v52  ;;  %v7447_v35 = vadd.f32 %v13891_v31, %v7248_v19 }
 0x54d   : > { %v6884_v5 = vpop.f32.mrb[146].mxu0  ;;  %v7492_v54 = vadd.f32 %v7444_v23, %v7341_v6  ;;  %v7445_v30 = vadd.f32 %v13891_v31, %v7246_v13  ;;  %v8434_v37 = vpop.f32.mrb[160].mxu1  ;;  %v7205_v6 = vld [vmem:[%s9949_s26 + $0x120] sm:$0xff] }
 0x54e   : > { %v6886_v17 = vpop.f32.mrb[147].mxu0  ;;  %v7542_v48 = vmax.f32 %v7494_v38, 0.0  ;;  %v7495_v45 = vadd.f32 %v7447_v35, %v7344_v1  ;;  %v7106_v16 = vpop.f32.mrb[161].mxu1  ;;  %v7349_v9 = vld [vmem:[%s9296_s16 + $0x139] sm:$0xff] }
 0x54f   : > { %v7540_v34 = vmax.f32 %v7492_v54, 0.0  ;;  %v7493_v27 = vadd.f32 %v7445_v30, %v7342_v24  ;;  %v7107_v20 = vadd.f32 %v7106_v16, %v6881_v56  ;;  %v8435_v49 = vpop.f32.mrb[162].mxu1  ;;  %v7206_v38 = vld [vmem:[%s9949_s26 + $0x128] sm:$0xff] }
 0x550   : > { %7590 = vst [vmem:[%s9949_s26 + $0xf0] sm:$0xff] %v7542_v48  ;;  %v7543_v11 = vmax.f32 %v7495_v45, 0.0  ;;  %v7109_v40 = vpop.f32.mrb[163].mxu1  ;;  %v7350_v30 = vld [vmem:[%s9296_s16 + $0x141] sm:$0xff] }
 0x551   : > { %7588 = vst [vmem:[%s9949_s26 + $0xe0] sm:$0xff] %v7540_v34  ;;  %v7541_v4 = vmax.f32 %v7493_v27, 0.0  ;;  %v7249_v12 = vadd.f32 %v7201_v39, %v7107_v20  ;;  %v7110_v41 = vadd.f32 %v7109_v40, %v6884_v5 }
 0x552   : > { %7591 = vst [vmem:[%s9949_s26 + $0xf8] sm:$0xff] %v7543_v11 }
 0x553   : > { %v6889_v60 = vpop.f32.mrb[148].mxu0  ;;  %7589 = vst [vmem:[%s9949_s26 + $0xe8] sm:$0xff] %v7541_v4  ;;  %v7448_v63 = vadd.f32 %v13891_v31, %v7249_v12  ;;  %v7250_v10 = vadd.f32 %v7202_v32, %v7110_v41  ;;  %v7208_v32 = vld [vmem:[%s9949_s26 + $0x138] sm:$0xff] }
 0x554   : > { %v7115_v21 = vadd.f32 %v8434_v37, %v6889_v60  ;;  %v6891_v29 = vpop.f32.mrb[149].mxu0 }
 0x555   : > { %v6892_v2 = vpop.f32.mrb[150].mxu0  ;;  %v7496_v0 = vadd.f32 %v7448_v63, %v7345_v57  ;;  %v7449_v3 = vadd.f32 %v13891_v31, %v7250_v10  ;;  %v8438_v26 = vpop.f32.mrb[164].mxu1  ;;  %v7351_v57 = vld [vmem:[%s9296_s16 + $0x149] sm:$0xff]  ;;  %v7352_v29 = vld [vmem:[%s9296_s16 + $0x151] sm:$0xff] }
 0x556   : > { %v7251_v33 = vadd.f32 %v7203_v43, %v7115_v21  ;;  %v7118_v28 = vadd.f32 %v8435_v49, %v6892_v2  ;;  %v6894_v51 = vpop.f32.mrb[151].mxu0  ;;  %v7122_v36 = vpop.f32.mrb[165].mxu1  ;;  %v7207_v49 = vld [vmem:[%s9949_s26 + $0x130] sm:$0xff] }
 0x557   : > { %v7544_v18 = vmax.f32 %v7496_v0, 0.0  ;;  %v7497_v46 = vadd.f32 %v7449_v3, %v7346_v8  ;;  %v8439_v50 = vpop.f32.mrb[166].mxu1  ;;  %v7209_v51 = vld [vmem:[%s9949_s26 + $0x140] sm:$0xff] }
 0x558   : > { %v7450_v25 = vadd.f32 %v13891_v31, %v7251_v33  ;;  %v7252_v47 = vadd.f32 %v7204_v53, %v7118_v28  ;;  %v7125_v59 = vpop.f32.mrb[167].mxu1 }
 0x559   : > { %7592 = vst [vmem:[%s9949_s26 + $0x100] sm:$0xff] %v7544_v18  ;;  %v7545_v15 = vmax.f32 %v7497_v46, 0.0 }
 0x55a   : > { %v7498_v22 = vadd.f32 %v7450_v25, %v7347_v58  ;;  %v7451_v44 = vadd.f32 %v13891_v31, %v7252_v47  ;;  %v7353_v25 = vld [vmem:[%s9296_s16 + $0x159] sm:$0xff] }
 0x55b   : > { %v6897_v7 = vpop.f32.mrb[152].mxu0  ;;  %7593 = vst [vmem:[%s9949_s26 + $0x108] sm:$0xff] %v7545_v15  ;;  %v7210_v47 = vld [vmem:[%s9949_s26 + $0x148] sm:$0xff] }
 0x55c   : > { %v7546_v52 = vmax.f32 %v7498_v22, 0.0  ;;  %v7499_v14 = vadd.f32 %v7451_v44, %v7348_v42  ;;  %v7123_v55 = vadd.f32 %v7122_v36, %v6897_v7  ;;  %v6899_v62 = vpop.f32.mrb[153].mxu0 }
 0x55d   : > { %v6900_v19 = vpop.f32.mrb[154].mxu0  ;;  %v8442_v23 = vpop.f32.mrb[168].mxu1  ;;  %v7211_v62 = vld [vmem:[%s9949_s26 + $0x150] sm:$0xff] }
 0x55e   : > { %7594 = vst [vmem:[%s9949_s26 + $0x110] sm:$0xff] %v7546_v52  ;;  %v7547_v61 = vmax.f32 %v7499_v14, 0.0  ;;  %v7253_v56 = vadd.f32 %v7205_v6, %v7123_v55  ;;  %v7126_v1 = vadd.f32 %v7125_v59, %v6900_v19  ;;  %v6902_v13 = vpop.f32.mrb[155].mxu0  ;;  %v7138_v35 = vpop.f32.mrb[169].mxu1  ;;  %v7354_v59 = vld [vmem:[%s9296_s16 + $0x161] sm:$0xff] }
 0x55f   : > { %v8443_v54 = vpop.f32.mrb[170].mxu1  ;;  %v7355_v13 = vld [vmem:[%s9296_s16 + $0x169] sm:$0xff] }
 0x560   : > { %7595 = vst [vmem:[%s9949_s26 + $0x118] sm:$0xff] %v7547_v61  ;;  %v7452_v24 = vadd.f32 %v13891_v31, %v7253_v56  ;;  %v7254_v5 = vadd.f32 %v7206_v38, %v7126_v1  ;;  %v7141_v37 = vpop.f32.mrb[171].mxu1 }
 0x562   : > { %v7500_v17 = vadd.f32 %v7452_v24, %v7349_v9  ;;  %v7453_v48 = vadd.f32 %v13891_v31, %v7254_v5  ;;  %v7212_v9 = vld [vmem:[%s9949_s26 + $0x158] sm:$0xff] }
 0x563   : > { %v6905_v45 = vpop.f32.mrb[156].mxu0  ;;  %v7356_v24 = vld [vmem:[%s9296_s16 + $0x171] sm:$0xff] }
 0x564   : > { %v7548_v16 = vmax.f32 %v7500_v17, 0.0  ;;  %v7501_v34 = vadd.f32 %v7453_v48, %v7350_v30  ;;  %v7131_v27 = vadd.f32 %v8438_v26, %v6905_v45  ;;  %v6907_v20 = vpop.f32.mrb[157].mxu0  ;;  %v7213_v45 = vld [vmem:[%s9949_s26 + $0x160] sm:$0xff] }
 0x565   : > { %v6908_v11 = vpop.f32.mrb[158].mxu0  ;;  %v14118_v41 = vpop.f32.mrb[172].mxu1 }
 0x566   : > { %7596 = vst [vmem:[%s9949_s26 + $0x120] sm:$0xff] %v7548_v16  ;;  %v7549_v39 = vmax.f32 %v7501_v34, 0.0  ;;  %v7255_v40 = vadd.f32 %v7207_v49, %v7131_v27  ;;  %v7134_v4 = vadd.f32 %v8439_v50, %v6908_v11  ;;  %v6910_v12 = vpop.f32.mrb[159].mxu0  ;;  %v7154_v60 = vpop.f32.mrb[173].mxu1  ;;  %v7357_v11 = vld [vmem:[%s9296_s16 + $0x179] sm:$0xff] }
 0x567   : > { %v14124_v21 = vpop.f32.mrb[174].mxu1  ;;  %v7358_v12 = vld [vmem:[%s9296_s16 + $0x181] sm:$0xff] }
 0x568   : > { %7597 = vst [vmem:[%s9949_s26 + $0x128] sm:$0xff] %v7549_v39  ;;  %v7454_v63 = vadd.f32 %v13891_v31, %v7255_v40  ;;  %v7256_v10 = vadd.f32 %v7208_v32, %v7134_v4  ;;  %v7157_v8 = vpop.f32.mrb[175].mxu1  ;;  %v7214_v39 = vld [vmem:[%s9949_s26 + $0x168] sm:$0xff] }
 0x56a   : > { %v7502_v43 = vadd.f32 %v7454_v63, %v7351_v57  ;;  %v7455_v2 = vadd.f32 %v13891_v31, %v7256_v10 }
 0x56b   : > { %v6913_v0 = vpop.f32.mrb[160].mxu0 }
 0x56c   : > { %v7550_v3 = vmax.f32 %v7502_v43, 0.0  ;;  %v7503_v33 = vadd.f32 %v7455_v2, %v7352_v29  ;;  %v7139_v26 = vadd.f32 %v7138_v35, %v6913_v0  ;;  %v6915_v28 = vpop.f32.mrb[161].mxu0  ;;  %v7215_v43 = vld [vmem:[%s9949_s26 + $0x170] sm:$0xff] }
 0x56d   : > { %v6916_v58 = vpop.f32.mrb[162].mxu0  ;;  %v7359_v28 = vld [vmem:[%s9296_s16 + $0x189] sm:$0xff] }
 0x56e   : > { %7598 = vst [vmem:[%s9949_s26 + $0x130] sm:$0xff] %v7550_v3  ;;  %v7551_v53 = vmax.f32 %v7503_v33, 0.0  ;;  %v7257_v36 = vadd.f32 %v7209_v51, %v7139_v26  ;;  %v7142_v18 = vadd.f32 %v7141_v37, %v6916_v58  ;;  %v6918_v46 = vpop.f32.mrb[163].mxu0  ;;  %v7216_v51 = vld [vmem:[%s9949_s26 + $0x178] sm:$0xff] }
 0x570   : > { %7599 = vst [vmem:[%s9949_s26 + $0x138] sm:$0xff] %v7551_v53  ;;  %v7456_v50 = vadd.f32 %v13891_v31, %v7257_v36  ;;  %v7258_v42 = vadd.f32 %v7210_v47, %v7142_v18 }
 0x572   : > { %v7504_v15 = vadd.f32 %v7456_v50, %v7353_v25  ;;  %v7457_v22 = vadd.f32 %v13891_v31, %v7258_v42 }
 0x573   : > { %v6921_v44 = vpop.f32.mrb[164].mxu0 }
 0x574   : > { %v7552_v7 = vmax.f32 %v7504_v15, 0.0  ;;  %v7505_v52 = vadd.f32 %v7457_v22, %v7354_v59  ;;  %v7147_v14 = vadd.f32 %v8442_v23, %v6921_v44  ;;  %v6923_v55 = vpop.f32.mrb[165].mxu0 }
 0x575   : > { %v6924_v6 = vpop.f32.mrb[166].mxu0 }
 0x576   : > { %7600 = vst [vmem:[%s9949_s26 + $0x140] sm:$0xff] %v7552_v7  ;;  %v7553_v19 = vmax.f32 %v7505_v52, 0.0  ;;  %v7259_v61 = vadd.f32 %v7211_v62, %v7147_v14  ;;  %v7150_v56 = vadd.f32 %v8443_v54, %v6924_v6  ;;  %v6926_v1 = vpop.f32.mrb[167].mxu0 }
 0x578   : > { %7601 = vst [vmem:[%s9949_s26 + $0x148] sm:$0xff] %v7553_v19  ;;  %v7458_v38 = vadd.f32 %v13891_v31, %v7259_v61  ;;  %v7260_v35 = vadd.f32 %v7212_v9, %v7150_v56 }
 0x57a   : > { %v7506_v23 = vadd.f32 %v7458_v38, %v7355_v13  ;;  %v7459_v5 = vadd.f32 %v13891_v31, %v7260_v35 }
 0x57b   : > { %v6929_v30 = vpop.f32.mrb[168].mxu0 }
 0x57c   : > { %v7554_v37 = vmax.f32 %v7506_v23, 0.0  ;;  %v7507_v17 = vadd.f32 %v7459_v5, %v7356_v24  ;;  %v7155_v54 = vadd.f32 %v7154_v60, %v6929_v30  ;;  %v6931_v48 = vpop.f32.mrb[169].mxu0 }
 0x57d   : > { %v6932_v16 = vpop.f32.mrb[170].mxu0 }
 0x57e   : > { %7602 = vst [vmem:[%s9949_s26 + $0x150] sm:$0xff] %v7554_v37  ;;  %v7555_v34 = vmax.f32 %v7507_v17, 0.0  ;;  %v7261_v27 = vadd.f32 %v7213_v45, %v7155_v54  ;;  %v7158_v20 = vadd.f32 %v7157_v8, %v6932_v16  ;;  %v6934_v49 = vpop.f32.mrb[171].mxu0 }
 0x580   : > { %7603 = vst [vmem:[%s9949_s26 + $0x158] sm:$0xff] %v7555_v34  ;;  %v7460_v40 = vadd.f32 %v13891_v31, %v7261_v27  ;;  %v7262_v4 = vadd.f32 %v7214_v39, %v7158_v20 }
 0x582   : > { %v7508_v57 = vadd.f32 %v7460_v40, %v7357_v11  ;;  %v7461_v32 = vadd.f32 %v13891_v31, %v7262_v4 }
 0x583   : > { %v6937_v60 = vpop.f32.mrb[172].mxu0 }
 0x584   : > { %v7556_v63 = vmax.f32 %v7508_v57, 0.0  ;;  %v7509_v10 = vadd.f32 %v7461_v32, %v7358_v12  ;;  %v7163_v29 = vadd.f32 %v14118_v41, %v6937_v60  ;;  %v6939_v8 = vpop.f32.mrb[173].mxu0  ;;  %v7360_v41 = vld [vmem:[%s9296_s16 + $0x191] sm:$0xff]  ;;  %s9004_s16 = scalar_lea.vmem %s14170_s13, 6144 }
 0x585   : > { %v6940_v2 = vpop.f32.mrb[174].mxu0  ;;  %p9005_p11 = scmp.ne.s32.totalorder %s14170_s13, %s9004_s16  ;;  %p9012_p9 = scmp.lt.s32.totalorder %s9010_s11, %s9004_s16 }
 0x586   : > { %7604 = vst [vmem:[%s9949_s26 + $0x160] sm:$0xff] %v7556_v63  ;;  %v7557_v0 = vmax.f32 %v7509_v10, 0.0  ;;  %v7263_v3 = vadd.f32 %v7215_v43, %v7163_v29  ;;  %v7166_v33 = vadd.f32 %v14124_v21, %v6940_v2  ;;  %v6942_v26 = vpop.f32.mrb[175].mxu0 }
 0x587   : > { %p9006_p1 = pnand %p9005_p11, %p15182_p0  ;;  %p9013_p12 = por %p9012_p9, %p9011_p7 }
 0x588   : > { %7605 = vst [vmem:[%s9949_s26 + $0x168] sm:$0xff] %v7557_v0  ;;  %v7462_v58 = vadd.f32 %v13891_v31, %v7263_v3  ;;  %v7264_v53 = vadd.f32 %v7216_v51, %v7166_v33 }
 0x589   : > { %p9007_p3 = pneg %p9006_p1 }
 0x58a   : > { %v7510_v36 = vadd.f32 %v7462_v58, %v7359_v28  ;;  %v7463_v18 = vadd.f32 %v13891_v31, %v7264_v53 }
 0x58b   : > { %p9014_p2 = pnand %p9013_p12, %p9007_p3 }
 0x58c   : > { %v7558_v46 = vmax.f32 %v7510_v36, 0.0  ;;  %v7511_v25 = vadd.f32 %v7463_v18, %v7360_v41 }
 0x58e   : > { %7606 = vst [vmem:[%s9949_s26 + $0x170] sm:$0xff] %v7558_v46  ;;  %v7559_v21 = vmax.f32 %v7511_v25, 0.0 }
 0x590   : > { %7607 = vst [vmem:[%s9949_s26 + $0x178] sm:$0xff] %v7559_v21 }
 0x591   : > { %9017 = shalt.err (!%p9014_p2)
}
 0x592   : > { %s9018_s26 = scalar_lea.hbm %s14167_s24, 6144  ;;  %s9022_s7 = scalar_lea.hbm %s14220_s5, 12288 }
 0x593   : > { %p9019_p13 = scmp.ne.s32.totalorder %s14167_s24, %s9018_s26  ;;  %p9023_p4 = scmp.lt.u32.totalorder %s14167_s24, %s14220_s5 }
 0x594   : > { %p9024_p5 = scmp.lt.u32.totalorder %s9022_s7, %s9018_s26  ;;  %p9026_p11 = scmp.lt.u32.totalorder %s9018_s26, %s14167_s24 }
 0x595   : > { %p9020_p6 = pnand %p9019_p13, %p15182_p0 }
 0x596   : > { %p9025_p8 = por %p9024_p5, %p9023_p4 }
 0x597   : > { %p9021_p10 = pneg %p9020_p6 }
 0x598   : > { %p9027_p1 = por %p9026_p11, %p9025_p8 }
 0x59a   : > { %p9028_p3 = pnand %p9027_p1, %p9021_p10 }
 0x59c   : > { %9031 = shalt.err (!%p9028_p3)
}
 0x59d   : > { %s9088_s12 = smov 128   ;;  %s9089_s17 = smov 8  }
 0x59e   : > { %8559 = dma.vmem_to_hbm [thread:$0]  (%p15182_p0), %s14170_s13, 6144, %s14167_s24, %s7609_s22, %s9088_s12, %s9088_s12, %s9089_s17  }
 0x59f PF: > { %s7637_s6 = sand.u32 1, %s9062_s18   ;;  %p15183_p7 = scmp.ne.s32.totalorder %s14405_s25, 0 }
 0x5a0   : > { %p15184_p9 = scmp.ge.s32.totalorder %s9074_s21, 2  ;;  %s7638_s16 = scalar_lea.sflag [#allocation5], %s7637_s6 }
 0x5a2   : > { %p8573_p12 = pnand %p15184_p9, %p15183_p7 }
 0x5a4   : > { %9057 = dma.done.wait (!%p8573_p12), %s7638_s16, 6144  }
 0x5a5   : > { %9059 = vsyncadd (!%p8573_p12), %s7638_s16, 4294961152  ;;  %p19_p2 = scmp.ge.s32.totalorder %s9230_s14, 4   ;;  %s15185_s18 = smov %s9066_s19 }
 0x5a6   : > { %s15186_s19 = smov %s9070_s20  ;;  %s15187_s20 = smov %s9246_s27 }
 0x5a7   : > { %s15188_s21 = smov %s9230_s14  ;;  %21 = sbr.rel (!%p19_p2) target bundleno = 6 (0x6), region = 97 }
 0x5ae   :  { %7643 = vsyncpa [#allocation4], 1 }
 0x5af   :  { %7645 = vsyncpa [#allocation4 + $0x1], 1 }
 0x5b0   :  { %7646 = vsyncpa [#allocation7], 1 }
 0x5b1   :  { %7647 = vsyncpa [#allocation5], 1 }
 0x5b2   :  { %7649 = vsyncpa [#allocation5 + $0x1], 1 }

</bundles_post_ra>
